<compile_context>
chip_gen: v5e
topology: v5e:2x2
jax: 0.10.0
libtpu: 0.0.40
codegen_flags: <defaults>
</compile_context>

<pallas_src>
import functools

import jax
import jax.numpy as jnp
from jax.experimental import pallas as pl
from jax.experimental.pallas import tpu as pltpu

EPS = 1e-5
_VMEM_LIMIT = 64 * 1024 * 1024  # scoped-VMEM cap for the heavier calls (tunable)


def _layernorm(x, gamma, beta):
    mu = jnp.mean(x, axis=-1, keepdims=True)
    var = jnp.mean((x - mu) ** 2, axis=-1, keepdims=True)
    return (x - mu) * jax.lax.rsqrt(var + EPS) * gamma + beta


def _rep(shape):
    nd = len(shape)
    return pl.BlockSpec(shape, lambda *args, _nd=nd: (0,) * _nd)


def _row_tile(n, cap=8):
    t = min(cap, n)
    while n % t:
        t -= 1
    return t


def _mix_tile(n):
    # last-two dims of a block must be (8,128)-aligned or cover the full axis.
    return 128 if (n > 128 and n % 128 == 0) else n


# --------------------------------------------------------------------------------------
# TriangleMultiplicativeModule kernels
# --------------------------------------------------------------------------------------
def _tri_proj_kernel(hidden, x_ref, ln_g, ln_b, w_fused, b_fused,
                     left_ref, right_ref, og_ref):
    # TODO(synk): optional `mask` multiply on left/right is not implemented (mask=None).
    x = x_ref[0]                                            # (tr, n, d) f32
    tr, n, d = x.shape
    h = hidden
    xn = _layernorm(x, ln_g[...], ln_b[...])
    x2 = xn.reshape(tr * n, d).astype(jnp.bfloat16)
    proj = jnp.dot(x2, w_fused[...], preferred_element_type=jnp.float32) + b_fused[...]
    left = proj[:, 0 * h:1 * h] * jax.nn.sigmoid(proj[:, 1 * h:2 * h])
    right = proj[:, 2 * h:3 * h] * jax.nn.sigmoid(proj[:, 3 * h:4 * h])
    og = jax.nn.sigmoid(proj[:, 4 * h:5 * h])
    left_ref[0] = left.reshape(tr, n, h).astype(left_ref.dtype)
    right_ref[0] = right.reshape(tr, n, h).astype(right_ref.dtype)
    og_ref[0] = og.reshape(tr, n, h).astype(og_ref.dtype)


def _tri_mix_kernel(a_ref, b_ref, out_ref):
    # out[c, i, j] += sum_k A[c, i, k] * B[c, j, k]  -- channel-batched MXU matmul,
    # accumulated in the f32 output block across the trailing k grid axis.
    @pl.when(pl.program_id(3) == 0)
    def _init():
        out_ref[...] = jnp.zeros_like(out_ref)

    out_ref[0] += jnp.einsum("cik,cjk->cij", a_ref[0], b_ref[0],
                             preferred_element_type=jnp.float32)


def _tri_out_kernel(x_ref, mix_ref, og_ref, on_g, on_b, wo, bo, out_ref):
    x = x_ref[0]                                            # (tr, n, d) f32
    mixd = mix_ref[0]                                       # (tr, n, h) f32
    tr, n, h = mixd.shape
    d = x.shape[-1]
    o = _layernorm(mixd, on_g[...], on_b[...]) * og_ref[0]  # out-gate applied post-mix
    o = jnp.dot(o.reshape(tr * n, h).astype(jnp.bfloat16), wo[...],
                preferred_element_type=jnp.float32) + bo[...]
    out_ref[0] = o.reshape(tr, n, d) + x                    # residual add (module(x) + x)


def triangle_multiply(x, p, mix):
    b, n, _, d = x.shape
    h = p["wl"].shape[1]
    tr = _row_tile(n)
    tm = _mix_tile(n)

    # fuse the 5 projections into one (D, 5H) matmul
    w_fused = jnp.concatenate(
        [p["wl"], p["wlg"], p["wr"], p["wrg"], p["wog"]], axis=1).astype(jnp.bfloat16)
    b_fused = jnp.concatenate(
        [p["bl"], p["blg"], p["br"], p["brg"], p["bog"]], axis=1)

    def row_spec(c):
        return pl.BlockSpec((1, tr, n, c), lambda bi, ri: (bi, ri, 0, 0))

    left, right, og = pl.pallas_call(
        functools.partial(_tri_proj_kernel, h),
        grid=(b, n // tr),
        in_specs=[row_spec(d), _rep((1, d)), _rep((1, d)),
                  _rep(w_fused.shape), _rep(b_fused.shape)],
        out_specs=[row_spec(h), row_spec(h), row_spec(h)],
        out_shape=[jax.ShapeDtypeStruct((b, n, n, h), jnp.bfloat16),
                   jax.ShapeDtypeStruct((b, n, n, h), jnp.bfloat16),
                   jax.ShapeDtypeStruct((b, n, n, h), jnp.float32)],
        compiler_params=pltpu.CompilerParams(
            dimension_semantics=("parallel", "parallel")),
    )(x, p["ln_g"], p["ln_b"], w_fused, b_fused)

    # Channel-major operands for the MXU mix; the permutation encodes the mix direction
    # so the mix kernel itself is direction-agnostic: out[c,i,j] = sum_k A[c,i,k]*B[c,j,k].
    if mix == "outgoing":      # out[i,j,c] = sum_k left[i,k,c] * right[j,k,c]
        a_cm = jnp.transpose(left, (0, 3, 1, 2))
        b_cm = jnp.transpose(right, (0, 3, 1, 2))
    else:                      # ingoing:  out[i,j,c] = sum_k left[k,j,c] * right[k,i,c]
        a_cm = jnp.transpose(right, (0, 3, 2, 1))
        b_cm = jnp.transpose(left, (0, 3, 2, 1))

    mixed_cm = pl.pallas_call(
        _tri_mix_kernel,
        grid=(b, n // tm, n // tm, n // tm),
        in_specs=[
            pl.BlockSpec((1, h, tm, tm), lambda bi, ii, jj, kk: (bi, 0, ii, kk)),
            pl.BlockSpec((1, h, tm, tm), lambda bi, ii, jj, kk: (bi, 0, jj, kk)),
        ],
        out_specs=pl.BlockSpec((1, h, tm, tm), lambda bi, ii, jj, kk: (bi, 0, ii, jj)),
        out_shape=jax.ShapeDtypeStruct((b, h, n, n), jnp.float32),
        compiler_params=pltpu.CompilerParams(
            dimension_semantics=("parallel", "parallel", "parallel", "arbitrary"),
            vmem_limit_bytes=_VMEM_LIMIT),
    )(a_cm, b_cm)

    # back to channels-last for the epilogue.
    # TODO(synk): the operand / result transposes could be folded in-kernel with
    #             pltpu.einshape to save the extra HBM passes.
    mixed = jnp.transpose(mixed_cm, (0, 2, 3, 1))

    return pl.pallas_call(
        _tri_out_kernel,
        grid=(b, n // tr),
        in_specs=[row_spec(d), row_spec(h), row_spec(h),
                  _rep((1, h)), _rep((1, h)), _rep((h, d)), _rep((1, d))],
        out_specs=row_spec(d),
        out_shape=jax.ShapeDtypeStruct(x.shape, x.dtype),
        compiler_params=pltpu.CompilerParams(
            dimension_semantics=("parallel", "parallel")),
    )(x, mixed, og, p["on_g"], p["on_b"], p["wo"].astype(jnp.bfloat16), p["bo"])


# --------------------------------------------------------------------------------------
# AxialAttention kernels
# --------------------------------------------------------------------------------------
def _edge_bias_kernel(e_ref, wbt_ref, out_ref):
    e = e_ref[0]                                            # (tr, n, d)
    tr, n, d = e.shape
    e2 = e.reshape(tr * n, d).astype(jnp.bfloat16)
    bias = jnp.dot(e2, wbt_ref[...], preferred_element_type=jnp.float32)
    out_ref[0] = bias.reshape(tr, n, -1)


def edge_attn_bias(x, wb):
    """Hoisted per-head bias: bias[b, h, i, j] = <edges[b,i,j,:], wb[h,:]>, once per batch."""
    b, n, _, d = x.shape
    heads = wb.shape[0]
    tr = _row_tile(n)
    wbt = jnp.transpose(wb[:, 0, :]).astype(jnp.bfloat16)   # (d, heads)
    bias = pl.pallas_call(
        _edge_bias_kernel,
        grid=(b, n // tr),
        in_specs=[pl.BlockSpec((1, tr, n, d), lambda bi, ri: (bi, ri, 0, 0)),
                  _rep((d, heads))],
        out_specs=pl.BlockSpec((1, tr, n, heads), lambda bi, ri: (bi, ri, 0, 0)),
        out_shape=jax.ShapeDtypeStruct((b, n, n, heads), jnp.float32),
        compiler_params=pltpu.CompilerParams(
            dimension_semantics=("parallel", "parallel")),
    )(x, wbt)
    return jnp.transpose(bias, (0, 3, 1, 2))                # (b, heads, n, n)


def _axial_attn_kernel(heads, dim_head, x_ref, bias_ref,
                       ln_g, ln_b, w_fused, bg, wo, bo, out_ref):
    # TODO(synk): mask / masked_fill and tie_dim (global_query_attn) paths not implemented
    #             (module defaults: mask=None, global_column_attn=False, dropout inactive).
    x = x_ref[0]                                            # (R, n, d): R folded sequences
    bias = bias_ref[0]                                      # (heads, n, n), shared by rows
    r, n, d = x.shape
    inner = heads * dim_head
    scale = dim_head ** -0.5

    xn = _layernorm(x, ln_g[...], ln_b[...])
    x2 = xn.reshape(r * n, d).astype(jnp.bfloat16)
    proj = jnp.dot(x2, w_fused[...], preferred_element_type=jnp.float32)  # (r*n, 4*inner)
    q = (proj[:, :inner] * scale).reshape(r, n, inner)
    k = proj[:, inner:2 * inner].reshape(r, n, inner)
    v = proj[:, 2 * inner:3 * inner].reshape(r, n, inner)
    gates = jax.nn.sigmoid(proj[:, 3 * inner:] + bg[...])   # (r*n, inner) f32

    head_outs = []
    for hh in range(heads):   # heads is small; each per-head matmul is batched over the R rows
        sl = slice(hh * dim_head, (hh + 1) * dim_head)
        qh = q[..., sl].astype(jnp.bfloat16)
        kh = k[..., sl].astype(jnp.bfloat16)
        vh = v[..., sl].astype(jnp.bfloat16)
        dots = jnp.einsum("rid,rjd->rij", qh, kh,
                          preferred_element_type=jnp.float32)             # (R, n, n)
        dots = dots + bias[hh][None]
        m = jnp.max(dots, axis=-1, keepdims=True)
        e = jnp.exp(dots - m)
        p = e * pl.reciprocal(jnp.sum(e, axis=-1, keepdims=True), approx=True)
        head_outs.append(jnp.einsum("rij,rjd->rid", p.astype(jnp.bfloat16), vh,
                                    preferred_element_type=jnp.float32))

    out = jnp.concatenate(head_outs, axis=-1).reshape(r * n, inner) * gates
    out = jnp.dot(out.astype(jnp.bfloat16), wo[...],
                  preferred_element_type=jnp.float32) + bo[...]
    out_ref[0] = out.reshape(r, n, d) + x                   # residual add


def axial_row_attention(x, bias_cm, p, heads, dim_head):
    b, n, _, d = x.shape
    inner = heads * dim_head
    rt = _row_tile(n)
    # fuse q / kv / gating projections into one (D, 4*inner) matmul
    w_fused = jnp.concatenate([p["wq"], p["wkv"], p["wg"]], axis=1).astype(jnp.bfloat16)
    return pl.pallas_call(
        functools.partial(_axial_attn_kernel, heads, dim_head),
        grid=(b, n // rt),
        in_specs=[pl.BlockSpec((1, rt, n, d), lambda bi, ri: (bi, ri, 0, 0)),
                  pl.BlockSpec((1, heads, n, n), lambda bi, ri: (bi, 0, 0, 0)),
                  _rep((1, d)), _rep((1, d)), _rep(w_fused.shape), _rep((1, inner)),
                  _rep((inner, d)), _rep((1, d))],
        out_specs=pl.BlockSpec((1, rt, n, d), lambda bi, ri: (bi, ri, 0, 0)),
        out_shape=jax.ShapeDtypeStruct(x.shape, x.dtype),
        compiler_params=pltpu.CompilerParams(
            dimension_semantics=("parallel", "parallel"),
            vmem_limit_bytes=_VMEM_LIMIT),
    )(x, bias_cm, p["ln_g"], p["ln_b"], w_fused, p["bg"],
      p["wo"].astype(jnp.bfloat16), p["bo"])


def axial_col_attention(x, bias_cm, p, heads, dim_head):
    # column (ingoing) attention == row attention on the transposed pair map, with the
    # bias computed from the UNtransposed edges (exactly the module's einops fold).
    # TODO(synk): fold this transpose into the kernel (column-tiled BlockSpec + in-kernel
    #             pltpu.einshape) to save two full HBM passes over the pair tensor.
    xt = jnp.transpose(x, (0, 2, 1, 3))
    out_t = axial_row_attention(xt, bias_cm, p, heads, dim_head)
    return jnp.transpose(out_t, (0, 2, 1, 3))


def pairwise_attention_block(x, params, heads, dim_head):
    # residual adds are fused inside the kernels
    x = triangle_multiply(x, params["tri_mult_out"], mix="outgoing")
    x = triangle_multiply(x, params["tri_mult_in"], mix="ingoing")
    bias = edge_attn_bias(x, params["tri_attn_out"]["wb"])
    x = axial_row_attention(x, bias, params["tri_attn_out"], heads, dim_head)
    bias = edge_attn_bias(x, params["tri_attn_in"]["wb"])
    x = axial_col_attention(x, bias, params["tri_attn_in"], heads, dim_head)
    return x


# --------------------------------------------------------------------------------------
# Deterministic parameter initialization (shapes from the PyTorch __init__).
# NOTE: values are random (deterministic) instead of the zero / constant inits so that the
#       attention path is numerically non-trivial; forward-pass semantics are unchanged.
# --------------------------------------------------------------------------------------
def init_params(key, dim, heads, dim_head):
    inner = heads * dim_head
    keys = iter(jax.random.split(key, 64))

    def w(shape, scale=0.05):
        return jax.random.normal(next(keys), shape, jnp.float32) * scale

    def tri():
        return dict(
            ln_g=jnp.ones((1, dim), jnp.float32), ln_b=jnp.zeros((1, dim), jnp.float32),
            wl=w((dim, dim)), bl=w((1, dim)),
            wr=w((dim, dim)), br=w((1, dim)),
            wlg=w((dim, dim)), blg=w((1, dim)),
            wrg=w((dim, dim)), brg=w((1, dim)),
            wog=w((dim, dim)), bog=w((1, dim)),
            on_g=jnp.ones((1, dim), jnp.float32), on_b=jnp.zeros((1, dim), jnp.float32),
            wo=w((dim, dim)), bo=w((1, dim)),
        )

    def attn():
        return dict(
            ln_g=jnp.ones((1, dim), jnp.float32), ln_b=jnp.zeros((1, dim), jnp.float32),
            wq=w((dim, inner)),
            wkv=w((dim, 2 * inner)),
            wg=w((dim, inner)), bg=w((1, inner)),
            wo=w((inner, dim)), bo=w((1, dim)),
            wb=w((heads, 1, dim)),          # edges_to_attn_bias weight, per-head rows
        )

    return dict(tri_mult_out=tri(), tri_mult_in=tri(),
                tri_attn_out=attn(), tri_attn_in=attn())


# --------------------------------------------------------------------------------------
# Pure-JAX reference (mirrors the PyTorch forward) for a correctness check
# --------------------------------------------------------------------------------------
def _ref_ln(x, g, b):
    mu = x.mean(-1, keepdims=True)
    var = ((x - mu) ** 2).mean(-1, keepdims=True)
    return (x - mu) / jnp.sqrt(var + EPS) * g.reshape(-1) + b.reshape(-1)


def _ref_tri(x, p, mix):
    xn = _ref_ln(x, p["ln_g"], p["ln_b"])
    left = xn @ p["wl"] + p["bl"][0]
    right = xn @ p["wr"] + p["br"][0]
    left = left * jax.nn.sigmoid(xn @ p["wlg"] + p["blg"][0])
    right = right * jax.nn.sigmoid(xn @ p["wrg"] + p["brg"][0])
    og = jax.nn.sigmoid(xn @ p["wog"] + p["bog"][0])
    if mix == "outgoing":
        out = jnp.einsum('bikd,bjkd->bijd', left, right)
    else:
        out = jnp.einsum('bkjd,bkid->bijd', left, right)
    out = _ref_ln(out, p["on_g"], p["on_b"]) * og
    return out @ p["wo"] + p["bo"][0]


def _ref_attn(x, edges, p, heads, dim_head, row):
    b, n, _, d = x.shape
    inner = heads * dim_head
    xn = _ref_ln(x, p["ln_g"], p["ln_b"])
    bias = jnp.einsum('bijd,hd->bhij', edges, p["wb"][:, 0, :])
    seqs = xn if row else jnp.transpose(xn, (0, 2, 1, 3))
    q = seqs @ p["wq"]
    kv = seqs @ p["wkv"]
    k, v = kv[..., :inner], kv[..., inner:]
    split = lambda t: t.reshape(b, n, n, heads, dim_head)
    qh, kh, vh = split(q), split(k), split(v)
    dots = jnp.einsum('brihd,brjhd->brhij', qh * dim_head ** -0.5, kh) + bias[:, None]
    attn = jax.nn.softmax(dots, axis=-1)
    out = jnp.einsum('brhij,brjhd->brihd', attn, vh).reshape(b, n, n, inner)
    out = out * jax.nn.sigmoid(seqs @ p["wg"] + p["bg"][0])
    out = out @ p["wo"] + p["bo"][0]
    return out if row else jnp.transpose(out, (0, 2, 1, 3))


def ref_block(x, params, heads, dim_head):
    x = _ref_tri(x, params["tri_mult_out"], "outgoing") + x
    x = _ref_tri(x, params["tri_mult_in"], "ingoing") + x
    x = _ref_attn(x, x, params["tri_attn_out"], heads, dim_head, row=True) + x
    x = _ref_attn(x, x, params["tri_attn_in"], heads, dim_head, row=False) + x
    return x


if __name__ == "__main__":
    B, N, DIM, HEADS, DIM_HEAD = 2, 16, 32, 4, 8
    key = jax.random.PRNGKey(0)
    kx, kp = jax.random.split(key)
    x = jax.random.normal(kx, (B, N, N, DIM), jnp.float32)
    params = init_params(kp, DIM, HEADS, DIM_HEAD)

    fwd = jax.jit(functools.partial(pairwise_attention_block,
                                    heads=HEADS, dim_head=DIM_HEAD))
    out = jax.block_until_ready(fwd(x, params))

    with jax.default_matmul_precision("highest"):
        ref = ref_block(x, params, HEADS, DIM_HEAD)
    err = float(jnp.max(jnp.abs(out - ref)))
    rel = float(jnp.linalg.norm(out - ref) / jnp.linalg.norm(ref))
    # kernels use bf16 matmul operands (f32 accumulation); reference is full f32
    assert out.shape == x.shape and err < 1e-1 and rel < 2e-2, \
        f"max abs err {err}, rel err {rel}"
    print("KERNEL_OK")
</pallas_src>

<mosaic_0001>
module attributes {stable_mosaic.version = 11 : i64} {
  func.func @_tri_proj_kernel(%arg0: i32, %arg1: i32, %arg2: memref<1x8x16x32xf32, #tpu.memory_space<vmem>>, %arg3: memref<1x32xf32, #tpu.memory_space<vmem>>, %arg4: memref<1x32xf32, #tpu.memory_space<vmem>>, %arg5: memref<32x160xbf16, #tpu.memory_space<vmem>>, %arg6: memref<1x160xf32, #tpu.memory_space<vmem>>, %arg7: memref<1x8x16x32xbf16, #tpu.memory_space<vmem>>, %arg8: memref<1x8x16x32xbf16, #tpu.memory_space<vmem>>, %arg9: memref<1x8x16x32xf32, #tpu.memory_space<vmem>>) attributes {dimension_semantics = [#tpu.dimension_semantics<parallel>, #tpu.dimension_semantics<parallel>], iteration_bounds = array<i64: 2, 2>, scalar_prefetch = 0 : i64, scratch_operands = 0 : i64, tpu.core_type = #tpu.core_type<tc>, window_params = [{transform_indices = @transform_0, window_bounds = array<i64: 1, 8, 16, 32>}, {pipeline_mode = #tpu.pipeline_mode<synchronous>, transform_indices = @transform_1, window_bounds = array<i64: 1, 32>}, {pipeline_mode = #tpu.pipeline_mode<synchronous>, transform_indices = @transform_2, window_bounds = array<i64: 1, 32>}, {pipeline_mode = #tpu.pipeline_mode<synchronous>, transform_indices = @transform_3, window_bounds = array<i64: 32, 160>}, {pipeline_mode = #tpu.pipeline_mode<synchronous>, transform_indices = @transform_4, window_bounds = array<i64: 1, 160>}, {transform_indices = @transform_5, window_bounds = array<i64: 1, 8, 16, 32>}, {transform_indices = @transform_6, window_bounds = array<i64: 1, 8, 16, 32>}, {transform_indices = @transform_7, window_bounds = array<i64: 1, 8, 16, 32>}]} {
    %c0 = arith.constant 0 : index
    %c0_0 = arith.constant 0 : index
    %c0_1 = arith.constant 0 : index
    %c0_2 = arith.constant 0 : index
    %0 = vector.load %arg2[%c0, %c0_0, %c0_1, %c0_2] : memref<1x8x16x32xf32, #tpu.memory_space<vmem>>, vector<1x8x16x32xf32>
    %1 = vector.shape_cast %0 : vector<1x8x16x32xf32> to vector<8x16x32xf32>
    %c0_3 = arith.constant 0 : index
    %c0_4 = arith.constant 0 : index
    %2 = vector.load %arg3[%c0_3, %c0_4] : memref<1x32xf32, #tpu.memory_space<vmem>>, vector<1x32xf32>
    %c0_5 = arith.constant 0 : index
    %c0_6 = arith.constant 0 : index
    %3 = vector.load %arg4[%c0_5, %c0_6] : memref<1x32xf32, #tpu.memory_space<vmem>>, vector<1x32xf32>
    %cst = arith.constant dense<0.000000e+00> : vector<8x16xf32>
    %4 = vector.multi_reduction <add>, %1, %cst [2] : vector<8x16x32xf32> to vector<8x16xf32>
    %5 = vector.shape_cast %4 : vector<8x16xf32> to vector<8x16x1xf32>
    %cst_7 = arith.constant 3.200000e+01 : f32
    %6 = vector.broadcast %cst_7 : f32 to vector<8x16x1xf32>
    %7 = arith.divf %5, %6 : vector<8x16x1xf32>
    %8 = vector.broadcast %7 : vector<8x16x1xf32> to vector<8x16x32xf32>
    %9 = arith.subf %1, %8 : vector<8x16x32xf32>
    %10 = arith.mulf %9, %9 : vector<8x16x32xf32>
    %cst_8 = arith.constant dense<0.000000e+00> : vector<8x16xf32>
    %11 = vector.multi_reduction <add>, %10, %cst_8 [2] : vector<8x16x32xf32> to vector<8x16xf32>
    %12 = vector.shape_cast %11 : vector<8x16xf32> to vector<8x16x1xf32>
    %cst_9 = arith.constant 3.200000e+01 : f32
    %13 = vector.broadcast %cst_9 : f32 to vector<8x16x1xf32>
    %14 = arith.divf %12, %13 : vector<8x16x1xf32>
    %15 = vector.broadcast %7 : vector<8x16x1xf32> to vector<8x16x32xf32>
    %16 = arith.subf %1, %15 : vector<8x16x32xf32>
    %cst_10 = arith.constant 9.99999974E-6 : f32
    %17 = vector.broadcast %cst_10 : f32 to vector<8x16x1xf32>
    %18 = arith.addf %14, %17 : vector<8x16x1xf32>
    %19 = math.rsqrt %18 : vector<8x16x1xf32>
    %20 = vector.broadcast %19 : vector<8x16x1xf32> to vector<8x16x32xf32>
    %21 = arith.mulf %16, %20 : vector<8x16x32xf32>
    %22 = vector.shape_cast %2 : vector<1x32xf32> to vector<1x1x32xf32>
    %23 = vector.broadcast %22 : vector<1x1x32xf32> to vector<8x16x32xf32>
    %24 = arith.mulf %21, %23 : vector<8x16x32xf32>
    %25 = vector.shape_cast %3 : vector<1x32xf32> to vector<1x1x32xf32>
    %26 = vector.broadcast %25 : vector<1x1x32xf32> to vector<8x16x32xf32>
    %27 = arith.addf %24, %26 : vector<8x16x32xf32>
    %28 = vector.shape_cast %27 : vector<8x16x32xf32> to vector<128x32xf32>
    %29 = arith.truncf %28 : vector<128x32xf32> to vector<128x32xbf16>
    %c0_11 = arith.constant 0 : index
    %c0_12 = arith.constant 0 : index
    %30 = vector.load %arg5[%c0_11, %c0_12] : memref<32x160xbf16, #tpu.memory_space<vmem>>, vector<32x160xbf16>
    %cst_13 = arith.constant dense<0.000000e+00> : vector<128x160xf32>
    %31 = tpu.matmul %29, %30, %cst_13 {dimension_numbers = #tpu.dot_dimension_numbers<[1], [0], [0], [1], [0, 0, 1, 1], [], []>} : vector<128x32xbf16>, vector<32x160xbf16>, vector<128x160xf32> -> vector<128x160xf32>
    %c0_14 = arith.constant 0 : index
    %c0_15 = arith.constant 0 : index
    %32 = vector.load %arg6[%c0_14, %c0_15] : memref<1x160xf32, #tpu.memory_space<vmem>>, vector<1x160xf32>
    %33 = vector.broadcast %32 : vector<1x160xf32> to vector<128x160xf32>
    %34 = arith.addf %31, %33 : vector<128x160xf32>
    %35 = vector.extract_strided_slice %34 {offsets = [0, 0], sizes = [128, 32], strides = [1, 1]} : vector<128x160xf32> to vector<128x32xf32>
    %36 = vector.extract_strided_slice %34 {offsets = [0, 32], sizes = [128, 32], strides = [1, 1]} : vector<128x160xf32> to vector<128x32xf32>
    %37 = arith.negf %36 : vector<128x32xf32>
    %38 = math.exp %37 : vector<128x32xf32>
    %cst_16 = arith.constant 1.000000e+00 : f32
    %39 = vector.broadcast %cst_16 : f32 to vector<128x32xf32>
    %40 = arith.addf %39, %38 : vector<128x32xf32>
    %41 = arith.divf %39, %40 : vector<128x32xf32>
    %42 = arith.mulf %35, %41 : vector<128x32xf32>
    %43 = vector.extract_strided_slice %34 {offsets = [0, 64], sizes = [128, 32], strides = [1, 1]} : vector<128x160xf32> to vector<128x32xf32>
    %44 = vector.extract_strided_slice %34 {offsets = [0, 96], sizes = [128, 32], strides = [1, 1]} : vector<128x160xf32> to vector<128x32xf32>
    %45 = arith.negf %44 : vector<128x32xf32>
    %46 = math.exp %45 : vector<128x32xf32>
    %cst_17 = arith.constant 1.000000e+00 : f32
    %47 = vector.broadcast %cst_17 : f32 to vector<128x32xf32>
    %48 = arith.addf %47, %46 : vector<128x32xf32>
    %49 = arith.divf %47, %48 : vector<128x32xf32>
    %50 = arith.mulf %43, %49 : vector<128x32xf32>
    %51 = vector.extract_strided_slice %34 {offsets = [0, 128], sizes = [128, 32], strides = [1, 1]} : vector<128x160xf32> to vector<128x32xf32>
    %52 = arith.negf %51 : vector<128x32xf32>
    %53 = math.exp %52 : vector<128x32xf32>
    %cst_18 = arith.constant 1.000000e+00 : f32
    %54 = vector.broadcast %cst_18 : f32 to vector<128x32xf32>
    %55 = arith.addf %54, %53 : vector<128x32xf32>
    %56 = arith.divf %54, %55 : vector<128x32xf32>
    %57 = vector.shape_cast %42 : vector<128x32xf32> to vector<8x16x32xf32>
    %58 = arith.truncf %57 : vector<8x16x32xf32> to vector<8x16x32xbf16>
    %c0_19 = arith.constant 0 : index
    %c0_20 = arith.constant 0 : index
    %c0_21 = arith.constant 0 : index
    %c0_22 = arith.constant 0 : index
    %59 = vector.load %arg7[%c0_19, %c0_20, %c0_21, %c0_22] : memref<1x8x16x32xbf16, #tpu.memory_space<vmem>>, vector<1x8x16x32xbf16>
    %60 = vector.shape_cast %59 : vector<1x8x16x32xbf16> to vector<8x16x32xbf16>
    %61 = vector.shape_cast %58 : vector<8x16x32xbf16> to vector<1x8x16x32xbf16>
    tpu.vector_store %arg7[%c0_19, %c0_20, %c0_21, %c0_22], %61 {strides = array<i32>} : memref<1x8x16x32xbf16, #tpu.memory_space<vmem>>, vector<1x8x16x32xbf16>,
    %62 = vector.shape_cast %50 : vector<128x32xf32> to vector<8x16x32xf32>
    %63 = arith.truncf %62 : vector<8x16x32xf32> to vector<8x16x32xbf16>
    %c0_23 = arith.constant 0 : index
    %c0_24 = arith.constant 0 : index
    %c0_25 = arith.constant 0 : index
    %c0_26 = arith.constant 0 : index
    %64 = vector.load %arg8[%c0_23, %c0_24, %c0_25, %c0_26] : memref<1x8x16x32xbf16, #tpu.memory_space<vmem>>, vector<1x8x16x32xbf16>
    %65 = vector.shape_cast %64 : vector<1x8x16x32xbf16> to vector<8x16x32xbf16>
    %66 = vector.shape_cast %63 : vector<8x16x32xbf16> to vector<1x8x16x32xbf16>
    tpu.vector_store %arg8[%c0_23, %c0_24, %c0_25, %c0_26], %66 {strides = array<i32>} : memref<1x8x16x32xbf16, #tpu.memory_space<vmem>>, vector<1x8x16x32xbf16>,
    %67 = vector.shape_cast %56 : vector<128x32xf32> to vector<8x16x32xf32>
    %c0_27 = arith.constant 0 : index
    %c0_28 = arith.constant 0 : index
    %c0_29 = arith.constant 0 : index
    %c0_30 = arith.constant 0 : index
    %68 = vector.load %arg9[%c0_27, %c0_28, %c0_29, %c0_30] : memref<1x8x16x32xf32, #tpu.memory_space<vmem>>, vector<1x8x16x32xf32>
    %69 = vector.shape_cast %68 : vector<1x8x16x32xf32> to vector<8x16x32xf32>
    %70 = vector.shape_cast %67 : vector<8x16x32xf32> to vector<1x8x16x32xf32>
    tpu.vector_store %arg9[%c0_27, %c0_28, %c0_29, %c0_30], %70 {strides = array<i32>} : memref<1x8x16x32xf32, #tpu.memory_space<vmem>>, vector<1x8x16x32xf32>,
    return
  }
  func.func @transform_0(%arg0: i32, %arg1: i32) -> (i32, i32, i32, i32) {
    %c0_i32 = arith.constant 0 : i32
    %c0_i32_0 = arith.constant 0 : i32
    %c0_i32_1 = arith.constant 0 : i32
    return %arg0, %arg1, %c0_i32, %c0_i32_0 : i32, i32, i32, i32
  }
  func.func @transform_1(%arg0: i32, %arg1: i32) -> (i32, i32) {
    %c0_i32 = arith.constant 0 : i32
    %c0_i32_0 = arith.constant 0 : i32
    %c0_i32_1 = arith.constant 0 : i32
    return %c0_i32, %c0_i32_0 : i32, i32
  }
  func.func @transform_2(%arg0: i32, %arg1: i32) -> (i32, i32) {
    %c0_i32 = arith.constant 0 : i32
    %c0_i32_0 = arith.constant 0 : i32
    %c0_i32_1 = arith.constant 0 : i32
    return %c0_i32, %c0_i32_0 : i32, i32
  }
  func.func @transform_3(%arg0: i32, %arg1: i32) -> (i32, i32) {
    %c0_i32 = arith.constant 0 : i32
    %c0_i32_0 = arith.constant 0 : i32
    %c0_i32_1 = arith.constant 0 : i32
    return %c0_i32, %c0_i32_0 : i32, i32
  }
  func.func @transform_4(%arg0: i32, %arg1: i32) -> (i32, i32) {
    %c0_i32 = arith.constant 0 : i32
    %c0_i32_0 = arith.constant 0 : i32
    %c0_i32_1 = arith.constant 0 : i32
    return %c0_i32, %c0_i32_0 : i32, i32
  }
  func.func @transform_5(%arg0: i32, %arg1: i32) -> (i32, i32, i32, i32) {
    %c0_i32 = arith.constant 0 : i32
    %c0_i32_0 = arith.constant 0 : i32
    %c0_i32_1 = arith.constant 0 : i32
    return %arg0, %arg1, %c0_i32, %c0_i32_0 : i32, i32, i32, i32
  }
  func.func @transform_6(%arg0: i32, %arg1: i32) -> (i32, i32, i32, i32) {
    %c0_i32 = arith.constant 0 : i32
    %c0_i32_0 = arith.constant 0 : i32
    %c0_i32_1 = arith.constant 0 : i32
    return %arg0, %arg1, %c0_i32, %c0_i32_0 : i32, i32, i32, i32
  }
  func.func @transform_7(%arg0: i32, %arg1: i32) -> (i32, i32, i32, i32) {
    %c0_i32 = arith.constant 0 : i32
    %c0_i32_0 = arith.constant 0 : i32
    %c0_i32_1 = arith.constant 0 : i32
    return %arg0, %arg1, %c0_i32, %c0_i32_0 : i32, i32, i32, i32
  }
}

module attributes {stable_mosaic.version = 11 : i64} {
  func.func @_tri_mix_kernel(%arg0: i32, %arg1: i32, %arg2: i32, %arg3: i32, %arg4: memref<1x32x16x16xbf16, #tpu.memory_space<vmem>>, %arg5: memref<1x32x16x16xbf16, #tpu.memory_space<vmem>>, %arg6: memref<1x32x16x16xf32, #tpu.memory_space<vmem>>) attributes {dimension_semantics = [#tpu.dimension_semantics<parallel>, #tpu.dimension_semantics<parallel>, #tpu.dimension_semantics<parallel>, #tpu.dimension_semantics<arbitrary>], iteration_bounds = array<i64: 2, 1, 1, 1>, scalar_prefetch = 0 : i64, scratch_operands = 0 : i64, tpu.core_type = #tpu.core_type<tc>, window_params = [{transform_indices = @transform_0, window_bounds = array<i64: 1, 32, 16, 16>}, {transform_indices = @transform_1, window_bounds = array<i64: 1, 32, 16, 16>}, {transform_indices = @transform_2, window_bounds = array<i64: 1, 32, 16, 16>}]} {
    %c0_i32 = arith.constant 0 : i32
    %0 = arith.cmpi eq, %arg3, %c0_i32 : i32
    %1 = arith.extui %0 : i1 to i32
    %c0_i32_0 = arith.constant 0 : i32
    %2 = arith.cmpi ne, %1, %c0_i32_0 : i32
    scf.if %2 {
      %cst_16 = arith.constant 0.000000e+00 : f32
      %14 = vector.broadcast %cst_16 : f32 to vector<1x32x16x16xf32>
      %c0_17 = arith.constant 0 : index
      %c0_18 = arith.constant 0 : index
      %c0_19 = arith.constant 0 : index
      %c0_20 = arith.constant 0 : index
      %15 = vector.load %arg6[%c0_17, %c0_18, %c0_19, %c0_20] : memref<1x32x16x16xf32, #tpu.memory_space<vmem>>, vector<1x32x16x16xf32>
      tpu.vector_store %arg6[%c0_17, %c0_18, %c0_19, %c0_20], %14 {strides = array<i32>} : memref<1x32x16x16xf32, #tpu.memory_space<vmem>>, vector<1x32x16x16xf32>,
    } else {
    }
    %c0 = arith.constant 0 : index
    %c0_1 = arith.constant 0 : index
    %c0_2 = arith.constant 0 : index
    %c0_3 = arith.constant 0 : index
    %3 = vector.load %arg6[%c0, %c0_1, %c0_2, %c0_3] : memref<1x32x16x16xf32, #tpu.memory_space<vmem>>, vector<1x32x16x16xf32>
    %4 = vector.shape_cast %3 : vector<1x32x16x16xf32> to vector<32x16x16xf32>
    %c0_4 = arith.constant 0 : index
    %c0_5 = arith.constant 0 : index
    %c0_6 = arith.constant 0 : index
    %c0_7 = arith.constant 0 : index
    %5 = vector.load %arg4[%c0_4, %c0_5, %c0_6, %c0_7] : memref<1x32x16x16xbf16, #tpu.memory_space<vmem>>, vector<1x32x16x16xbf16>
    %6 = vector.shape_cast %5 : vector<1x32x16x16xbf16> to vector<32x16x16xbf16>
    %c0_8 = arith.constant 0 : index
    %c0_9 = arith.constant 0 : index
    %c0_10 = arith.constant 0 : index
    %c0_11 = arith.constant 0 : index
    %7 = vector.load %arg5[%c0_8, %c0_9, %c0_10, %c0_11] : memref<1x32x16x16xbf16, #tpu.memory_space<vmem>>, vector<1x32x16x16xbf16>
    %8 = vector.shape_cast %7 : vector<1x32x16x16xbf16> to vector<32x16x16xbf16>
    "tpu.trace_start"() <{level = 10 : i32, message = "cik,cjk->cij"}> : () -> ()
    %cst = arith.constant dense<0.000000e+00> : vector<32x16x16xf32>
    %9 = tpu.matmul %6, %8, %cst {dimension_numbers = #tpu.dot_dimension_numbers<[2], [2], [1], [1], [0, 0, 0, 1, 1, 1], [0], [0]>} : vector<32x16x16xbf16>, vector<32x16x16xbf16>, vector<32x16x16xf32> -> vector<32x16x16xf32>
    "tpu.trace_stop"() : () -> ()
    %10 = arith.addf %4, %9 : vector<32x16x16xf32>
    %c0_12 = arith.constant 0 : index
    %c0_13 = arith.constant 0 : index
    %c0_14 = arith.constant 0 : index
    %c0_15 = arith.constant 0 : index
    %11 = vector.load %arg6[%c0_12, %c0_13, %c0_14, %c0_15] : memref<1x32x16x16xf32, #tpu.memory_space<vmem>>, vector<1x32x16x16xf32>
    %12 = vector.shape_cast %11 : vector<1x32x16x16xf32> to vector<32x16x16xf32>
    %13 = vector.shape_cast %10 : vector<32x16x16xf32> to vector<1x32x16x16xf32>
    tpu.vector_store %arg6[%c0_12, %c0_13, %c0_14, %c0_15], %13 {strides = array<i32>} : memref<1x32x16x16xf32, #tpu.memory_space<vmem>>, vector<1x32x16x16xf32>,
    return
  }
  func.func @transform_0(%arg0: i32, %arg1: i32, %arg2: i32, %arg3: i32) -> (i32, i32, i32, i32) {
    %c0_i32 = arith.constant 0 : i32
    %c0_i32_0 = arith.constant 0 : i32
    return %arg0, %c0_i32, %arg1, %arg3 : i32, i32, i32, i32
  }
  func.func @transform_1(%arg0: i32, %arg1: i32, %arg2: i32, %arg3: i32) -> (i32, i32, i32, i32) {
    %c0_i32 = arith.constant 0 : i32
    %c0_i32_0 = arith.constant 0 : i32
    return %arg0, %c0_i32, %arg2, %arg3 : i32, i32, i32, i32
  }
  func.func @transform_2(%arg0: i32, %arg1: i32, %arg2: i32, %arg3: i32) -> (i32, i32, i32, i32) {
    %c0_i32 = arith.constant 0 : i32
    %c0_i32_0 = arith.constant 0 : i32
    return %arg0, %c0_i32, %arg1, %arg2 : i32, i32, i32, i32
  }
}

module attributes {stable_mosaic.version = 11 : i64} {
  func.func @_tri_out_kernel(%arg0: i32, %arg1: i32, %arg2: memref<1x8x16x32xf32, #tpu.memory_space<vmem>>, %arg3: memref<1x8x16x32xf32, #tpu.memory_space<vmem>>, %arg4: memref<1x8x16x32xf32, #tpu.memory_space<vmem>>, %arg5: memref<1x32xf32, #tpu.memory_space<vmem>>, %arg6: memref<1x32xf32, #tpu.memory_space<vmem>>, %arg7: memref<32x32xbf16, #tpu.memory_space<vmem>>, %arg8: memref<1x32xf32, #tpu.memory_space<vmem>>, %arg9: memref<1x8x16x32xf32, #tpu.memory_space<vmem>>) attributes {dimension_semantics = [#tpu.dimension_semantics<parallel>, #tpu.dimension_semantics<parallel>], iteration_bounds = array<i64: 2, 2>, scalar_prefetch = 0 : i64, scratch_operands = 0 : i64, tpu.core_type = #tpu.core_type<tc>, window_params = [{transform_indices = @transform_0, window_bounds = array<i64: 1, 8, 16, 32>}, {transform_indices = @transform_1, window_bounds = array<i64: 1, 8, 16, 32>}, {transform_indices = @transform_2, window_bounds = array<i64: 1, 8, 16, 32>}, {pipeline_mode = #tpu.pipeline_mode<synchronous>, transform_indices = @transform_3, window_bounds = array<i64: 1, 32>}, {pipeline_mode = #tpu.pipeline_mode<synchronous>, transform_indices = @transform_4, window_bounds = array<i64: 1, 32>}, {pipeline_mode = #tpu.pipeline_mode<synchronous>, transform_indices = @transform_5, window_bounds = array<i64: 32, 32>}, {pipeline_mode = #tpu.pipeline_mode<synchronous>, transform_indices = @transform_6, window_bounds = array<i64: 1, 32>}, {transform_indices = @transform_7, window_bounds = array<i64: 1, 8, 16, 32>}]} {
    %c0 = arith.constant 0 : index
    %c0_0 = arith.constant 0 : index
    %c0_1 = arith.constant 0 : index
    %c0_2 = arith.constant 0 : index
    %0 = vector.load %arg2[%c0, %c0_0, %c0_1, %c0_2] : memref<1x8x16x32xf32, #tpu.memory_space<vmem>>, vector<1x8x16x32xf32>
    %1 = vector.shape_cast %0 : vector<1x8x16x32xf32> to vector<8x16x32xf32>
    %c0_3 = arith.constant 0 : index
    %c0_4 = arith.constant 0 : index
    %c0_5 = arith.constant 0 : index
    %c0_6 = arith.constant 0 : index
    %2 = vector.load %arg3[%c0_3, %c0_4, %c0_5, %c0_6] : memref<1x8x16x32xf32, #tpu.memory_space<vmem>>, vector<1x8x16x32xf32>
    %3 = vector.shape_cast %2 : vector<1x8x16x32xf32> to vector<8x16x32xf32>
    %c0_7 = arith.constant 0 : index
    %c0_8 = arith.constant 0 : index
    %4 = vector.load %arg5[%c0_7, %c0_8] : memref<1x32xf32, #tpu.memory_space<vmem>>, vector<1x32xf32>
    %c0_9 = arith.constant 0 : index
    %c0_10 = arith.constant 0 : index
    %5 = vector.load %arg6[%c0_9, %c0_10] : memref<1x32xf32, #tpu.memory_space<vmem>>, vector<1x32xf32>
    %cst = arith.constant dense<0.000000e+00> : vector<8x16xf32>
    %6 = vector.multi_reduction <add>, %3, %cst [2] : vector<8x16x32xf32> to vector<8x16xf32>
    %7 = vector.shape_cast %6 : vector<8x16xf32> to vector<8x16x1xf32>
    %cst_11 = arith.constant 3.200000e+01 : f32
    %8 = vector.broadcast %cst_11 : f32 to vector<8x16x1xf32>
    %9 = arith.divf %7, %8 : vector<8x16x1xf32>
    %10 = vector.broadcast %9 : vector<8x16x1xf32> to vector<8x16x32xf32>
    %11 = arith.subf %3, %10 : vector<8x16x32xf32>
    %12 = arith.mulf %11, %11 : vector<8x16x32xf32>
    %cst_12 = arith.constant dense<0.000000e+00> : vector<8x16xf32>
    %13 = vector.multi_reduction <add>, %12, %cst_12 [2] : vector<8x16x32xf32> to vector<8x16xf32>
    %14 = vector.shape_cast %13 : vector<8x16xf32> to vector<8x16x1xf32>
    %cst_13 = arith.constant 3.200000e+01 : f32
    %15 = vector.broadcast %cst_13 : f32 to vector<8x16x1xf32>
    %16 = arith.divf %14, %15 : vector<8x16x1xf32>
    %17 = vector.broadcast %9 : vector<8x16x1xf32> to vector<8x16x32xf32>
    %18 = arith.subf %3, %17 : vector<8x16x32xf32>
    %cst_14 = arith.constant 9.99999974E-6 : f32
    %19 = vector.broadcast %cst_14 : f32 to vector<8x16x1xf32>
    %20 = arith.addf %16, %19 : vector<8x16x1xf32>
    %21 = math.rsqrt %20 : vector<8x16x1xf32>
    %22 = vector.broadcast %21 : vector<8x16x1xf32> to vector<8x16x32xf32>
    %23 = arith.mulf %18, %22 : vector<8x16x32xf32>
    %24 = vector.shape_cast %4 : vector<1x32xf32> to vector<1x1x32xf32>
    %25 = vector.broadcast %24 : vector<1x1x32xf32> to vector<8x16x32xf32>
    %26 = arith.mulf %23, %25 : vector<8x16x32xf32>
    %27 = vector.shape_cast %5 : vector<1x32xf32> to vector<1x1x32xf32>
    %28 = vector.broadcast %27 : vector<1x1x32xf32> to vector<8x16x32xf32>
    %29 = arith.addf %26, %28 : vector<8x16x32xf32>
    %c0_15 = arith.constant 0 : index
    %c0_16 = arith.constant 0 : index
    %c0_17 = arith.constant 0 : index
    %c0_18 = arith.constant 0 : index
    %30 = vector.load %arg4[%c0_15, %c0_16, %c0_17, %c0_18] : memref<1x8x16x32xf32, #tpu.memory_space<vmem>>, vector<1x8x16x32xf32>
    %31 = vector.shape_cast %30 : vector<1x8x16x32xf32> to vector<8x16x32xf32>
    %32 = arith.mulf %29, %31 : vector<8x16x32xf32>
    %33 = vector.shape_cast %32 : vector<8x16x32xf32> to vector<128x32xf32>
    %34 = arith.truncf %33 : vector<128x32xf32> to vector<128x32xbf16>
    %c0_19 = arith.constant 0 : index
    %c0_20 = arith.constant 0 : index
    %35 = vector.load %arg7[%c0_19, %c0_20] : memref<32x32xbf16, #tpu.memory_space<vmem>>, vector<32x32xbf16>
    %cst_21 = arith.constant dense<0.000000e+00> : vector<128x32xf32>
    %36 = tpu.matmul %34, %35, %cst_21 {dimension_numbers = #tpu.dot_dimension_numbers<[1], [0], [0], [1], [0, 0, 1, 1], [], []>} : vector<128x32xbf16>, vector<32x32xbf16>, vector<128x32xf32> -> vector<128x32xf32>
    %c0_22 = arith.constant 0 : index
    %c0_23 = arith.constant 0 : index
    %37 = vector.load %arg8[%c0_22, %c0_23] : memref<1x32xf32, #tpu.memory_space<vmem>>, vector<1x32xf32>
    %38 = vector.broadcast %37 : vector<1x32xf32> to vector<128x32xf32>
    %39 = arith.addf %36, %38 : vector<128x32xf32>
    %40 = vector.shape_cast %39 : vector<128x32xf32> to vector<8x16x32xf32>
    %41 = arith.addf %40, %1 : vector<8x16x32xf32>
    %c0_24 = arith.constant 0 : index
    %c0_25 = arith.constant 0 : index
    %c0_26 = arith.constant 0 : index
    %c0_27 = arith.constant 0 : index
    %42 = vector.load %arg9[%c0_24, %c0_25, %c0_26, %c0_27] : memref<1x8x16x32xf32, #tpu.memory_space<vmem>>, vector<1x8x16x32xf32>
    %43 = vector.shape_cast %42 : vector<1x8x16x32xf32> to vector<8x16x32xf32>
    %44 = vector.shape_cast %41 : vector<8x16x32xf32> to vector<1x8x16x32xf32>
    tpu.vector_store %arg9[%c0_24, %c0_25, %c0_26, %c0_27], %44 {strides = array<i32>} : memref<1x8x16x32xf32, #tpu.memory_space<vmem>>, vector<1x8x16x32xf32>,
    return
  }
  func.func @transform_0(%arg0: i32, %arg1: i32) -> (i32, i32, i32, i32) {
    %c0_i32 = arith.constant 0 : i32
    %c0_i32_0 = arith.constant 0 : i32
    %c0_i32_1 = arith.constant 0 : i32
    return %arg0, %arg1, %c0_i32, %c0_i32_0 : i32, i32, i32, i32
  }
  func.func @transform_1(%arg0: i32, %arg1: i32) -> (i32, i32, i32, i32) {
    %c0_i32 = arith.constant 0 : i32
    %c0_i32_0 = arith.constant 0 : i32
    %c0_i32_1 = arith.constant 0 : i32
    return %arg0, %arg1, %c0_i32, %c0_i32_0 : i32, i32, i32, i32
  }
  func.func @transform_2(%arg0: i32, %arg1: i32) -> (i32, i32, i32, i32) {
    %c0_i32 = arith.constant 0 : i32
    %c0_i32_0 = arith.constant 0 : i32
    %c0_i32_1 = arith.constant 0 : i32
    return %arg0, %arg1, %c0_i32, %c0_i32_0 : i32, i32, i32, i32
  }
  func.func @transform_3(%arg0: i32, %arg1: i32) -> (i32, i32) {
    %c0_i32 = arith.constant 0 : i32
    %c0_i32_0 = arith.constant 0 : i32
    %c0_i32_1 = arith.constant 0 : i32
    return %c0_i32, %c0_i32_0 : i32, i32
  }
  func.func @transform_4(%arg0: i32, %arg1: i32) -> (i32, i32) {
    %c0_i32 = arith.constant 0 : i32
    %c0_i32_0 = arith.constant 0 : i32
    %c0_i32_1 = arith.constant 0 : i32
    return %c0_i32, %c0_i32_0 : i32, i32
  }
  func.func @transform_5(%arg0: i32, %arg1: i32) -> (i32, i32) {
    %c0_i32 = arith.constant 0 : i32
    %c0_i32_0 = arith.constant 0 : i32
    %c0_i32_1 = arith.constant 0 : i32
    return %c0_i32, %c0_i32_0 : i32, i32
  }
  func.func @transform_6(%arg0: i32, %arg1: i32) -> (i32, i32) {
    %c0_i32 = arith.constant 0 : i32
    %c0_i32_0 = arith.constant 0 : i32
    %c0_i32_1 = arith.constant 0 : i32
    return %c0_i32, %c0_i32_0 : i32, i32
  }
  func.func @transform_7(%arg0: i32, %arg1: i32) -> (i32, i32, i32, i32) {
    %c0_i32 = arith.constant 0 : i32
    %c0_i32_0 = arith.constant 0 : i32
    %c0_i32_1 = arith.constant 0 : i32
    return %arg0, %arg1, %c0_i32, %c0_i32_0 : i32, i32, i32, i32
  }
}

module attributes {stable_mosaic.version = 11 : i64} {
  func.func @_tri_proj_kernel(%arg0: i32, %arg1: i32, %arg2: memref<1x8x16x32xf32, #tpu.memory_space<vmem>>, %arg3: memref<1x32xf32, #tpu.memory_space<vmem>>, %arg4: memref<1x32xf32, #tpu.memory_space<vmem>>, %arg5: memref<32x160xbf16, #tpu.memory_space<vmem>>, %arg6: memref<1x160xf32, #tpu.memory_space<vmem>>, %arg7: memref<1x8x16x32xbf16, #tpu.memory_space<vmem>>, %arg8: memref<1x8x16x32xbf16, #tpu.memory_space<vmem>>, %arg9: memref<1x8x16x32xf32, #tpu.memory_space<vmem>>) attributes {dimension_semantics = [#tpu.dimension_semantics<parallel>, #tpu.dimension_semantics<parallel>], iteration_bounds = array<i64: 2, 2>, scalar_prefetch = 0 : i64, scratch_operands = 0 : i64, tpu.core_type = #tpu.core_type<tc>, window_params = [{transform_indices = @transform_0, window_bounds = array<i64: 1, 8, 16, 32>}, {pipeline_mode = #tpu.pipeline_mode<synchronous>, transform_indices = @transform_1, window_bounds = array<i64: 1, 32>}, {pipeline_mode = #tpu.pipeline_mode<synchronous>, transform_indices = @transform_2, window_bounds = array<i64: 1, 32>}, {pipeline_mode = #tpu.pipeline_mode<synchronous>, transform_indices = @transform_3, window_bounds = array<i64: 32, 160>}, {pipeline_mode = #tpu.pipeline_mode<synchronous>, transform_indices = @transform_4, window_bounds = array<i64: 1, 160>}, {transform_indices = @transform_5, window_bounds = array<i64: 1, 8, 16, 32>}, {transform_indices = @transform_6, window_bounds = array<i64: 1, 8, 16, 32>}, {transform_indices = @transform_7, window_bounds = array<i64: 1, 8, 16, 32>}]} {
    %c0 = arith.constant 0 : index
    %c0_0 = arith.constant 0 : index
    %c0_1 = arith.constant 0 : index
    %c0_2 = arith.constant 0 : index
    %0 = vector.load %arg2[%c0, %c0_0, %c0_1, %c0_2] : memref<1x8x16x32xf32, #tpu.memory_space<vmem>>, vector<1x8x16x32xf32>
    %1 = vector.shape_cast %0 : vector<1x8x16x32xf32> to vector<8x16x32xf32>
    %c0_3 = arith.constant 0 : index
    %c0_4 = arith.constant 0 : index
    %2 = vector.load %arg3[%c0_3, %c0_4] : memref<1x32xf32, #tpu.memory_space<vmem>>, vector<1x32xf32>
    %c0_5 = arith.constant 0 : index
    %c0_6 = arith.constant 0 : index
    %3 = vector.load %arg4[%c0_5, %c0_6] : memref<1x32xf32, #tpu.memory_space<vmem>>, vector<1x32xf32>
    %cst = arith.constant dense<0.000000e+00> : vector<8x16xf32>
    %4 = vector.multi_reduction <add>, %1, %cst [2] : vector<8x16x32xf32> to vector<8x16xf32>
    %5 = vector.shape_cast %4 : vector<8x16xf32> to vector<8x16x1xf32>
    %cst_7 = arith.constant 3.200000e+01 : f32
    %6 = vector.broadcast %cst_7 : f32 to vector<8x16x1xf32>
    %7 = arith.divf %5, %6 : vector<8x16x1xf32>
    %8 = vector.broadcast %7 : vector<8x16x1xf32> to vector<8x16x32xf32>
    %9 = arith.subf %1, %8 : vector<8x16x32xf32>
    %10 = arith.mulf %9, %9 : vector<8x16x32xf32>
    %cst_8 = arith.constant dense<0.000000e+00> : vector<8x16xf32>
    %11 = vector.multi_reduction <add>, %10, %cst_8 [2] : vector<8x16x32xf32> to vector<8x16xf32>
    %12 = vector.shape_cast %11 : vector<8x16xf32> to vector<8x16x1xf32>
    %cst_9 = arith.constant 3.200000e+01 : f32
    %13 = vector.broadcast %cst_9 : f32 to vector<8x16x1xf32>
    %14 = arith.divf %12, %13 : vector<8x16x1xf32>
    %15 = vector.broadcast %7 : vector<8x16x1xf32> to vector<8x16x32xf32>
    %16 = arith.subf %1, %15 : vector<8x16x32xf32>
    %cst_10 = arith.constant 9.99999974E-6 : f32
    %17 = vector.broadcast %cst_10 : f32 to vector<8x16x1xf32>
    %18 = arith.addf %14, %17 : vector<8x16x1xf32>
    %19 = math.rsqrt %18 : vector<8x16x1xf32>
    %20 = vector.broadcast %19 : vector<8x16x1xf32> to vector<8x16x32xf32>
    %21 = arith.mulf %16, %20 : vector<8x16x32xf32>
    %22 = vector.shape_cast %2 : vector<1x32xf32> to vector<1x1x32xf32>
    %23 = vector.broadcast %22 : vector<1x1x32xf32> to vector<8x16x32xf32>
    %24 = arith.mulf %21, %23 : vector<8x16x32xf32>
    %25 = vector.shape_cast %3 : vector<1x32xf32> to vector<1x1x32xf32>
    %26 = vector.broadcast %25 : vector<1x1x32xf32> to vector<8x16x32xf32>
    %27 = arith.addf %24, %26 : vector<8x16x32xf32>
    %28 = vector.shape_cast %27 : vector<8x16x32xf32> to vector<128x32xf32>
    %29 = arith.truncf %28 : vector<128x32xf32> to vector<128x32xbf16>
    %c0_11 = arith.constant 0 : index
    %c0_12 = arith.constant 0 : index
    %30 = vector.load %arg5[%c0_11, %c0_12] : memref<32x160xbf16, #tpu.memory_space<vmem>>, vector<32x160xbf16>
    %cst_13 = arith.constant dense<0.000000e+00> : vector<128x160xf32>
    %31 = tpu.matmul %29, %30, %cst_13 {dimension_numbers = #tpu.dot_dimension_numbers<[1], [0], [0], [1], [0, 0, 1, 1], [], []>} : vector<128x32xbf16>, vector<32x160xbf16>, vector<128x160xf32> -> vector<128x160xf32>
    %c0_14 = arith.constant 0 : index
    %c0_15 = arith.constant 0 : index
    %32 = vector.load %arg6[%c0_14, %c0_15] : memref<1x160xf32, #tpu.memory_space<vmem>>, vector<1x160xf32>
    %33 = vector.broadcast %32 : vector<1x160xf32> to vector<128x160xf32>
    %34 = arith.addf %31, %33 : vector<128x160xf32>
    %35 = vector.extract_strided_slice %34 {offsets = [0, 0], sizes = [128, 32], strides = [1, 1]} : vector<128x160xf32> to vector<128x32xf32>
    %36 = vector.extract_strided_slice %34 {offsets = [0, 32], sizes = [128, 32], strides = [1, 1]} : vector<128x160xf32> to vector<128x32xf32>
    %37 = arith.negf %36 : vector<128x32xf32>
    %38 = math.exp %37 : vector<128x32xf32>
    %cst_16 = arith.constant 1.000000e+00 : f32
    %39 = vector.broadcast %cst_16 : f32 to vector<128x32xf32>
    %40 = arith.addf %39, %38 : vector<128x32xf32>
    %41 = arith.divf %39, %40 : vector<128x32xf32>
    %42 = arith.mulf %35, %41 : vector<128x32xf32>
    %43 = vector.extract_strided_slice %34 {offsets = [0, 64], sizes = [128, 32], strides = [1, 1]} : vector<128x160xf32> to vector<128x32xf32>
    %44 = vector.extract_strided_slice %34 {offsets = [0, 96], sizes = [128, 32], strides = [1, 1]} : vector<128x160xf32> to vector<128x32xf32>
    %45 = arith.negf %44 : vector<128x32xf32>
    %46 = math.exp %45 : vector<128x32xf32>
    %cst_17 = arith.constant 1.000000e+00 : f32
    %47 = vector.broadcast %cst_17 : f32 to vector<128x32xf32>
    %48 = arith.addf %47, %46 : vector<128x32xf32>
    %49 = arith.divf %47, %48 : vector<128x32xf32>
    %50 = arith.mulf %43, %49 : vector<128x32xf32>
    %51 = vector.extract_strided_slice %34 {offsets = [0, 128], sizes = [128, 32], strides = [1, 1]} : vector<128x160xf32> to vector<128x32xf32>
    %52 = arith.negf %51 : vector<128x32xf32>
    %53 = math.exp %52 : vector<128x32xf32>
    %cst_18 = arith.constant 1.000000e+00 : f32
    %54 = vector.broadcast %cst_18 : f32 to vector<128x32xf32>
    %55 = arith.addf %54, %53 : vector<128x32xf32>
    %56 = arith.divf %54, %55 : vector<128x32xf32>
    %57 = vector.shape_cast %42 : vector<128x32xf32> to vector<8x16x32xf32>
    %58 = arith.truncf %57 : vector<8x16x32xf32> to vector<8x16x32xbf16>
    %c0_19 = arith.constant 0 : index
    %c0_20 = arith.constant 0 : index
    %c0_21 = arith.constant 0 : index
    %c0_22 = arith.constant 0 : index
    %59 = vector.load %arg7[%c0_19, %c0_20, %c0_21, %c0_22] : memref<1x8x16x32xbf16, #tpu.memory_space<vmem>>, vector<1x8x16x32xbf16>
    %60 = vector.shape_cast %59 : vector<1x8x16x32xbf16> to vector<8x16x32xbf16>
    %61 = vector.shape_cast %58 : vector<8x16x32xbf16> to vector<1x8x16x32xbf16>
    tpu.vector_store %arg7[%c0_19, %c0_20, %c0_21, %c0_22], %61 {strides = array<i32>} : memref<1x8x16x32xbf16, #tpu.memory_space<vmem>>, vector<1x8x16x32xbf16>,
    %62 = vector.shape_cast %50 : vector<128x32xf32> to vector<8x16x32xf32>
    %63 = arith.truncf %62 : vector<8x16x32xf32> to vector<8x16x32xbf16>
    %c0_23 = arith.constant 0 : index
    %c0_24 = arith.constant 0 : index
    %c0_25 = arith.constant 0 : index
    %c0_26 = arith.constant 0 : index
    %64 = vector.load %arg8[%c0_23, %c0_24, %c0_25, %c0_26] : memref<1x8x16x32xbf16, #tpu.memory_space<vmem>>, vector<1x8x16x32xbf16>
    %65 = vector.shape_cast %64 : vector<1x8x16x32xbf16> to vector<8x16x32xbf16>
    %66 = vector.shape_cast %63 : vector<8x16x32xbf16> to vector<1x8x16x32xbf16>
    tpu.vector_store %arg8[%c0_23, %c0_24, %c0_25, %c0_26], %66 {strides = array<i32>} : memref<1x8x16x32xbf16, #tpu.memory_space<vmem>>, vector<1x8x16x32xbf16>,
    %67 = vector.shape_cast %56 : vector<128x32xf32> to vector<8x16x32xf32>
    %c0_27 = arith.constant 0 : index
    %c0_28 = arith.constant 0 : index
    %c0_29 = arith.constant 0 : index
    %c0_30 = arith.constant 0 : index
    %68 = vector.load %arg9[%c0_27, %c0_28, %c0_29, %c0_30] : memref<1x8x16x32xf32, #tpu.memory_space<vmem>>, vector<1x8x16x32xf32>
    %69 = vector.shape_cast %68 : vector<1x8x16x32xf32> to vector<8x16x32xf32>
    %70 = vector.shape_cast %67 : vector<8x16x32xf32> to vector<1x8x16x32xf32>
    tpu.vector_store %arg9[%c0_27, %c0_28, %c0_29, %c0_30], %70 {strides = array<i32>} : memref<1x8x16x32xf32, #tpu.memory_space<vmem>>, vector<1x8x16x32xf32>,
    return
  }
  func.func @transform_0(%arg0: i32, %arg1: i32) -> (i32, i32, i32, i32) {
    %c0_i32 = arith.constant 0 : i32
    %c0_i32_0 = arith.constant 0 : i32
    %c0_i32_1 = arith.constant 0 : i32
    return %arg0, %arg1, %c0_i32, %c0_i32_0 : i32, i32, i32, i32
  }
  func.func @transform_1(%arg0: i32, %arg1: i32) -> (i32, i32) {
    %c0_i32 = arith.constant 0 : i32
    %c0_i32_0 = arith.constant 0 : i32
    %c0_i32_1 = arith.constant 0 : i32
    return %c0_i32, %c0_i32_0 : i32, i32
  }
  func.func @transform_2(%arg0: i32, %arg1: i32) -> (i32, i32) {
    %c0_i32 = arith.constant 0 : i32
    %c0_i32_0 = arith.constant 0 : i32
    %c0_i32_1 = arith.constant 0 : i32
    return %c0_i32, %c0_i32_0 : i32, i32
  }
  func.func @transform_3(%arg0: i32, %arg1: i32) -> (i32, i32) {
    %c0_i32 = arith.constant 0 : i32
    %c0_i32_0 = arith.constant 0 : i32
    %c0_i32_1 = arith.constant 0 : i32
    return %c0_i32, %c0_i32_0 : i32, i32
  }
  func.func @transform_4(%arg0: i32, %arg1: i32) -> (i32, i32) {
    %c0_i32 = arith.constant 0 : i32
    %c0_i32_0 = arith.constant 0 : i32
    %c0_i32_1 = arith.constant 0 : i32
    return %c0_i32, %c0_i32_0 : i32, i32
  }
  func.func @transform_5(%arg0: i32, %arg1: i32) -> (i32, i32, i32, i32) {
    %c0_i32 = arith.constant 0 : i32
    %c0_i32_0 = arith.constant 0 : i32
    %c0_i32_1 = arith.constant 0 : i32
    return %arg0, %arg1, %c0_i32, %c0_i32_0 : i32, i32, i32, i32
  }
  func.func @transform_6(%arg0: i32, %arg1: i32) -> (i32, i32, i32, i32) {
    %c0_i32 = arith.constant 0 : i32
    %c0_i32_0 = arith.constant 0 : i32
    %c0_i32_1 = arith.constant 0 : i32
    return %arg0, %arg1, %c0_i32, %c0_i32_0 : i32, i32, i32, i32
  }
  func.func @transform_7(%arg0: i32, %arg1: i32) -> (i32, i32, i32, i32) {
    %c0_i32 = arith.constant 0 : i32
    %c0_i32_0 = arith.constant 0 : i32
    %c0_i32_1 = arith.constant 0 : i32
    return %arg0, %arg1, %c0_i32, %c0_i32_0 : i32, i32, i32, i32
  }
}

module attributes {stable_mosaic.version = 11 : i64} {
  func.func @_edge_bias_kernel(%arg0: i32, %arg1: i32, %arg2: memref<1x8x16x32xf32, #tpu.memory_space<vmem>>, %arg3: memref<32x4xbf16, #tpu.memory_space<vmem>>, %arg4: memref<1x8x16x4xf32, #tpu.memory_space<vmem>>) attributes {dimension_semantics = [#tpu.dimension_semantics<parallel>, #tpu.dimension_semantics<parallel>], iteration_bounds = array<i64: 2, 2>, scalar_prefetch = 0 : i64, scratch_operands = 0 : i64, tpu.core_type = #tpu.core_type<tc>, window_params = [{transform_indices = @transform_0, window_bounds = array<i64: 1, 8, 16, 32>}, {pipeline_mode = #tpu.pipeline_mode<synchronous>, transform_indices = @transform_1, window_bounds = array<i64: 32, 4>}, {transform_indices = @transform_2, window_bounds = array<i64: 1, 8, 16, 4>}]} {
    %c0 = arith.constant 0 : index
    %c0_0 = arith.constant 0 : index
    %c0_1 = arith.constant 0 : index
    %c0_2 = arith.constant 0 : index
    %0 = vector.load %arg2[%c0, %c0_0, %c0_1, %c0_2] : memref<1x8x16x32xf32, #tpu.memory_space<vmem>>, vector<1x8x16x32xf32>
    %1 = vector.shape_cast %0 : vector<1x8x16x32xf32> to vector<8x16x32xf32>
    %2 = vector.shape_cast %1 : vector<8x16x32xf32> to vector<128x32xf32>
    %3 = arith.truncf %2 : vector<128x32xf32> to vector<128x32xbf16>
    %c0_3 = arith.constant 0 : index
    %c0_4 = arith.constant 0 : index
    %4 = vector.load %arg3[%c0_3, %c0_4] : memref<32x4xbf16, #tpu.memory_space<vmem>>, vector<32x4xbf16>
    %cst = arith.constant dense<0.000000e+00> : vector<128x4xf32>
    %5 = tpu.matmul %3, %4, %cst {dimension_numbers = #tpu.dot_dimension_numbers<[1], [0], [0], [1], [0, 0, 1, 1], [], []>} : vector<128x32xbf16>, vector<32x4xbf16>, vector<128x4xf32> -> vector<128x4xf32>
    %6 = vector.shape_cast %5 : vector<128x4xf32> to vector<8x16x4xf32>
    %c0_5 = arith.constant 0 : index
    %c0_6 = arith.constant 0 : index
    %c0_7 = arith.constant 0 : index
    %c0_8 = arith.constant 0 : index
    %7 = vector.load %arg4[%c0_5, %c0_6, %c0_7, %c0_8] : memref<1x8x16x4xf32, #tpu.memory_space<vmem>>, vector<1x8x16x4xf32>
    %8 = vector.shape_cast %7 : vector<1x8x16x4xf32> to vector<8x16x4xf32>
    %9 = vector.shape_cast %6 : vector<8x16x4xf32> to vector<1x8x16x4xf32>
    tpu.vector_store %arg4[%c0_5, %c0_6, %c0_7, %c0_8], %9 {strides = array<i32>} : memref<1x8x16x4xf32, #tpu.memory_space<vmem>>, vector<1x8x16x4xf32>,
    return
  }
  func.func @transform_0(%arg0: i32, %arg1: i32) -> (i32, i32, i32, i32) {
    %c0_i32 = arith.constant 0 : i32
    %c0_i32_0 = arith.constant 0 : i32
    %c0_i32_1 = arith.constant 0 : i32
    return %arg0, %arg1, %c0_i32, %c0_i32_0 : i32, i32, i32, i32
  }
  func.func @transform_1(%arg0: i32, %arg1: i32) -> (i32, i32) {
    %c0_i32 = arith.constant 0 : i32
    %c0_i32_0 = arith.constant 0 : i32
    %c0_i32_1 = arith.constant 0 : i32
    return %c0_i32, %c0_i32_0 : i32, i32
  }
  func.func @transform_2(%arg0: i32, %arg1: i32) -> (i32, i32, i32, i32) {
    %c0_i32 = arith.constant 0 : i32
    %c0_i32_0 = arith.constant 0 : i32
    %c0_i32_1 = arith.constant 0 : i32
    return %arg0, %arg1, %c0_i32, %c0_i32_0 : i32, i32, i32, i32
  }
}

module attributes {stable_mosaic.version = 11 : i64} {
  func.func @_axial_attn_kernel(%arg0: i32, %arg1: i32, %arg2: memref<1x8x16x32xf32, #tpu.memory_space<vmem>>, %arg3: memref<1x4x16x16xf32, #tpu.memory_space<vmem>>, %arg4: memref<1x32xf32, #tpu.memory_space<vmem>>, %arg5: memref<1x32xf32, #tpu.memory_space<vmem>>, %arg6: memref<32x128xbf16, #tpu.memory_space<vmem>>, %arg7: memref<1x32xf32, #tpu.memory_space<vmem>>, %arg8: memref<32x32xbf16, #tpu.memory_space<vmem>>, %arg9: memref<1x32xf32, #tpu.memory_space<vmem>>, %arg10: memref<1x8x16x32xf32, #tpu.memory_space<vmem>>) attributes {dimension_semantics = [#tpu.dimension_semantics<parallel>, #tpu.dimension_semantics<parallel>], iteration_bounds = array<i64: 2, 2>, scalar_prefetch = 0 : i64, scratch_operands = 0 : i64, tpu.core_type = #tpu.core_type<tc>, window_params = [{transform_indices = @transform_0, window_bounds = array<i64: 1, 8, 16, 32>}, {transform_indices = @transform_1, window_bounds = array<i64: 1, 4, 16, 16>}, {pipeline_mode = #tpu.pipeline_mode<synchronous>, transform_indices = @transform_2, window_bounds = array<i64: 1, 32>}, {pipeline_mode = #tpu.pipeline_mode<synchronous>, transform_indices = @transform_3, window_bounds = array<i64: 1, 32>}, {pipeline_mode = #tpu.pipeline_mode<synchronous>, transform_indices = @transform_4, window_bounds = array<i64: 32, 128>}, {pipeline_mode = #tpu.pipeline_mode<synchronous>, transform_indices = @transform_5, window_bounds = array<i64: 1, 32>}, {pipeline_mode = #tpu.pipeline_mode<synchronous>, transform_indices = @transform_6, window_bounds = array<i64: 32, 32>}, {pipeline_mode = #tpu.pipeline_mode<synchronous>, transform_indices = @transform_7, window_bounds = array<i64: 1, 32>}, {transform_indices = @transform_8, window_bounds = array<i64: 1, 8, 16, 32>}]} {
    %c0 = arith.constant 0 : index
    %c0_0 = arith.constant 0 : index
    %c0_1 = arith.constant 0 : index
    %c0_2 = arith.constant 0 : index
    %0 = vector.load %arg2[%c0, %c0_0, %c0_1, %c0_2] : memref<1x8x16x32xf32, #tpu.memory_space<vmem>>, vector<1x8x16x32xf32>
    %1 = vector.shape_cast %0 : vector<1x8x16x32xf32> to vector<8x16x32xf32>
    %c0_3 = arith.constant 0 : index
    %c0_4 = arith.constant 0 : index
    %c0_5 = arith.constant 0 : index
    %c0_6 = arith.constant 0 : index
    %2 = vector.load %arg3[%c0_3, %c0_4, %c0_5, %c0_6] : memref<1x4x16x16xf32, #tpu.memory_space<vmem>>, vector<1x4x16x16xf32>
    %3 = vector.shape_cast %2 : vector<1x4x16x16xf32> to vector<4x16x16xf32>
    %c0_7 = arith.constant 0 : index
    %c0_8 = arith.constant 0 : index
    %4 = vector.load %arg4[%c0_7, %c0_8] : memref<1x32xf32, #tpu.memory_space<vmem>>, vector<1x32xf32>
    %c0_9 = arith.constant 0 : index
    %c0_10 = arith.constant 0 : index
    %5 = vector.load %arg5[%c0_9, %c0_10] : memref<1x32xf32, #tpu.memory_space<vmem>>, vector<1x32xf32>
    %cst = arith.constant dense<0.000000e+00> : vector<8x16xf32>
    %6 = vector.multi_reduction <add>, %1, %cst [2] : vector<8x16x32xf32> to vector<8x16xf32>
    %7 = vector.shape_cast %6 : vector<8x16xf32> to vector<8x16x1xf32>
    %cst_11 = arith.constant 3.200000e+01 : f32
    %8 = vector.broadcast %cst_11 : f32 to vector<8x16x1xf32>
    %9 = arith.divf %7, %8 : vector<8x16x1xf32>
    %10 = vector.broadcast %9 : vector<8x16x1xf32> to vector<8x16x32xf32>
    %11 = arith.subf %1, %10 : vector<8x16x32xf32>
    %12 = arith.mulf %11, %11 : vector<8x16x32xf32>
    %cst_12 = arith.constant dense<0.000000e+00> : vector<8x16xf32>
    %13 = vector.multi_reduction <add>, %12, %cst_12 [2] : vector<8x16x32xf32> to vector<8x16xf32>
    %14 = vector.shape_cast %13 : vector<8x16xf32> to vector<8x16x1xf32>
    %cst_13 = arith.constant 3.200000e+01 : f32
    %15 = vector.broadcast %cst_13 : f32 to vector<8x16x1xf32>
    %16 = arith.divf %14, %15 : vector<8x16x1xf32>
    %17 = vector.broadcast %9 : vector<8x16x1xf32> to vector<8x16x32xf32>
    %18 = arith.subf %1, %17 : vector<8x16x32xf32>
    %cst_14 = arith.constant 9.99999974E-6 : f32
    %19 = vector.broadcast %cst_14 : f32 to vector<8x16x1xf32>
    %20 = arith.addf %16, %19 : vector<8x16x1xf32>
    %21 = math.rsqrt %20 : vector<8x16x1xf32>
    %22 = vector.broadcast %21 : vector<8x16x1xf32> to vector<8x16x32xf32>
    %23 = arith.mulf %18, %22 : vector<8x16x32xf32>
    %24 = vector.shape_cast %4 : vector<1x32xf32> to vector<1x1x32xf32>
    %25 = vector.broadcast %24 : vector<1x1x32xf32> to vector<8x16x32xf32>
    %26 = arith.mulf %23, %25 : vector<8x16x32xf32>
    %27 = vector.shape_cast %5 : vector<1x32xf32> to vector<1x1x32xf32>
    %28 = vector.broadcast %27 : vector<1x1x32xf32> to vector<8x16x32xf32>
    %29 = arith.addf %26, %28 : vector<8x16x32xf32>
    %30 = vector.shape_cast %29 : vector<8x16x32xf32> to vector<128x32xf32>
    %31 = arith.truncf %30 : vector<128x32xf32> to vector<128x32xbf16>
    %c0_15 = arith.constant 0 : index
    %c0_16 = arith.constant 0 : index
    %32 = vector.load %arg6[%c0_15, %c0_16] : memref<32x128xbf16, #tpu.memory_space<vmem>>, vector<32x128xbf16>
    %cst_17 = arith.constant dense<0.000000e+00> : vector<128x128xf32>
    %33 = tpu.matmul %31, %32, %cst_17 {dimension_numbers = #tpu.dot_dimension_numbers<[1], [0], [0], [1], [0, 0, 1, 1], [], []>} : vector<128x32xbf16>, vector<32x128xbf16>, vector<128x128xf32> -> vector<128x128xf32>
    %34 = vector.extract_strided_slice %33 {offsets = [0, 0], sizes = [128, 32], strides = [1, 1]} : vector<128x128xf32> to vector<128x32xf32>
    %cst_18 = arith.constant 0.353553385 : f32
    %35 = vector.broadcast %cst_18 : f32 to vector<128x32xf32>
    %36 = arith.mulf %34, %35 : vector<128x32xf32>
    %37 = vector.shape_cast %36 : vector<128x32xf32> to vector<8x16x32xf32>
    %38 = vector.extract_strided_slice %33 {offsets = [0, 32], sizes = [128, 32], strides = [1, 1]} : vector<128x128xf32> to vector<128x32xf32>
    %39 = vector.shape_cast %38 : vector<128x32xf32> to vector<8x16x32xf32>
    %40 = vector.extract_strided_slice %33 {offsets = [0, 64], sizes = [128, 32], strides = [1, 1]} : vector<128x128xf32> to vector<128x32xf32>
    %41 = vector.shape_cast %40 : vector<128x32xf32> to vector<8x16x32xf32>
    %42 = vector.extract_strided_slice %33 {offsets = [0, 96], sizes = [128, 32], strides = [1, 1]} : vector<128x128xf32> to vector<128x32xf32>
    %c0_19 = arith.constant 0 : index
    %c0_20 = arith.constant 0 : index
    %43 = vector.load %arg7[%c0_19, %c0_20] : memref<1x32xf32, #tpu.memory_space<vmem>>, vector<1x32xf32>
    %44 = vector.broadcast %43 : vector<1x32xf32> to vector<128x32xf32>
    %45 = arith.addf %42, %44 : vector<128x32xf32>
    %46 = arith.negf %45 : vector<128x32xf32>
    %47 = math.exp %46 : vector<128x32xf32>
    %cst_21 = arith.constant 1.000000e+00 : f32
    %48 = vector.broadcast %cst_21 : f32 to vector<128x32xf32>
    %49 = arith.addf %48, %47 : vector<128x32xf32>
    %50 = arith.divf %48, %49 : vector<128x32xf32>
    %51 = vector.extract_strided_slice %37 {offsets = [0, 0, 0], sizes = [8, 16, 8], strides = [1, 1, 1]} : vector<8x16x32xf32> to vector<8x16x8xf32>
    %52 = arith.truncf %51 : vector<8x16x8xf32> to vector<8x16x8xbf16>
    %53 = vector.extract_strided_slice %39 {offsets = [0, 0, 0], sizes = [8, 16, 8], strides = [1, 1, 1]} : vector<8x16x32xf32> to vector<8x16x8xf32>
    %54 = arith.truncf %53 : vector<8x16x8xf32> to vector<8x16x8xbf16>
    %55 = vector.extract_strided_slice %41 {offsets = [0, 0, 0], sizes = [8, 16, 8], strides = [1, 1, 1]} : vector<8x16x32xf32> to vector<8x16x8xf32>
    %56 = arith.truncf %55 : vector<8x16x8xf32> to vector<8x16x8xbf16>
    "tpu.trace_start"() <{level = 10 : i32, message = "rid,rjd->rij"}> : () -> ()
    %cst_22 = arith.constant dense<0.000000e+00> : vector<8x16x16xf32>
    %57 = tpu.matmul %52, %54, %cst_22 {dimension_numbers = #tpu.dot_dimension_numbers<[2], [2], [1], [1], [0, 0, 0, 1, 1, 1], [0], [0]>} : vector<8x16x8xbf16>, vector<8x16x8xbf16>, vector<8x16x16xf32> -> vector<8x16x16xf32>
    "tpu.trace_stop"() : () -> ()
    %58 = vector.extract_strided_slice %3 {offsets = [0, 0, 0], sizes = [1, 16, 16], strides = [1, 1, 1]} : vector<4x16x16xf32> to vector<1x16x16xf32>
    %59 = vector.shape_cast %58 : vector<1x16x16xf32> to vector<16x16xf32>
    %60 = vector.shape_cast %59 : vector<16x16xf32> to vector<1x16x16xf32>
    %61 = vector.broadcast %60 : vector<1x16x16xf32> to vector<8x16x16xf32>
    %62 = arith.addf %57, %61 : vector<8x16x16xf32>
    %cst_23 = arith.constant dense<0xFF800000> : vector<8x16xf32>
    %63 = vector.multi_reduction <maximumf>, %62, %cst_23 [2] : vector<8x16x16xf32> to vector<8x16xf32>
    %64 = vector.shape_cast %63 : vector<8x16xf32> to vector<8x16x1xf32>
    %65 = vector.broadcast %64 : vector<8x16x1xf32> to vector<8x16x16xf32>
    %66 = arith.subf %62, %65 : vector<8x16x16xf32>
    %67 = math.exp %66 : vector<8x16x16xf32>
    %cst_24 = arith.constant dense<0.000000e+00> : vector<8x16xf32>
    %68 = vector.multi_reduction <add>, %67, %cst_24 [2] : vector<8x16x16xf32> to vector<8x16xf32>
    %69 = vector.shape_cast %68 : vector<8x16xf32> to vector<8x16x1xf32>
    %70 = tpu.reciprocal %69 {approx = true} : vector<8x16x1xf32> -> vector<8x16x1xf32>
    %71 = vector.broadcast %70 : vector<8x16x1xf32> to vector<8x16x16xf32>
    %72 = arith.mulf %67, %71 : vector<8x16x16xf32>
    %73 = arith.truncf %72 : vector<8x16x16xf32> to vector<8x16x16xbf16>
    "tpu.trace_start"() <{level = 10 : i32, message = "rij,rjd->rid"}> : () -> ()
    %cst_25 = arith.constant dense<0.000000e+00> : vector<8x16x8xf32>
    %74 = tpu.matmul %73, %56, %cst_25 {dimension_numbers = #tpu.dot_dimension_numbers<[2], [1], [1], [2], [0, 0, 0, 1, 1, 2], [0], [0]>} : vector<8x16x16xbf16>, vector<8x16x8xbf16>, vector<8x16x8xf32> -> vector<8x16x8xf32>
    "tpu.trace_stop"() : () -> ()
    %75 = vector.extract_strided_slice %37 {offsets = [0, 0, 8], sizes = [8, 16, 8], strides = [1, 1, 1]} : vector<8x16x32xf32> to vector<8x16x8xf32>
    %76 = arith.truncf %75 : vector<8x16x8xf32> to vector<8x16x8xbf16>
    %77 = vector.extract_strided_slice %39 {offsets = [0, 0, 8], sizes = [8, 16, 8], strides = [1, 1, 1]} : vector<8x16x32xf32> to vector<8x16x8xf32>
    %78 = arith.truncf %77 : vector<8x16x8xf32> to vector<8x16x8xbf16>
    %79 = vector.extract_strided_slice %41 {offsets = [0, 0, 8], sizes = [8, 16, 8], strides = [1, 1, 1]} : vector<8x16x32xf32> to vector<8x16x8xf32>
    %80 = arith.truncf %79 : vector<8x16x8xf32> to vector<8x16x8xbf16>
    "tpu.trace_start"() <{level = 10 : i32, message = "rid,rjd->rij"}> : () -> ()
    %cst_26 = arith.constant dense<0.000000e+00> : vector<8x16x16xf32>
    %81 = tpu.matmul %76, %78, %cst_26 {dimension_numbers = #tpu.dot_dimension_numbers<[2], [2], [1], [1], [0, 0, 0, 1, 1, 1], [0], [0]>} : vector<8x16x8xbf16>, vector<8x16x8xbf16>, vector<8x16x16xf32> -> vector<8x16x16xf32>
    "tpu.trace_stop"() : () -> ()
    %82 = vector.extract_strided_slice %3 {offsets = [1, 0, 0], sizes = [1, 16, 16], strides = [1, 1, 1]} : vector<4x16x16xf32> to vector<1x16x16xf32>
    %83 = vector.shape_cast %82 : vector<1x16x16xf32> to vector<16x16xf32>
    %84 = vector.shape_cast %83 : vector<16x16xf32> to vector<1x16x16xf32>
    %85 = vector.broadcast %84 : vector<1x16x16xf32> to vector<8x16x16xf32>
    %86 = arith.addf %81, %85 : vector<8x16x16xf32>
    %cst_27 = arith.constant dense<0xFF800000> : vector<8x16xf32>
    %87 = vector.multi_reduction <maximumf>, %86, %cst_27 [2] : vector<8x16x16xf32> to vector<8x16xf32>
    %88 = vector.shape_cast %87 : vector<8x16xf32> to vector<8x16x1xf32>
    %89 = vector.broadcast %88 : vector<8x16x1xf32> to vector<8x16x16xf32>
    %90 = arith.subf %86, %89 : vector<8x16x16xf32>
    %91 = math.exp %90 : vector<8x16x16xf32>
    %cst_28 = arith.constant dense<0.000000e+00> : vector<8x16xf32>
    %92 = vector.multi_reduction <add>, %91, %cst_28 [2] : vector<8x16x16xf32> to vector<8x16xf32>
    %93 = vector.shape_cast %92 : vector<8x16xf32> to vector<8x16x1xf32>
    %94 = tpu.reciprocal %93 {approx = true} : vector<8x16x1xf32> -> vector<8x16x1xf32>
    %95 = vector.broadcast %94 : vector<8x16x1xf32> to vector<8x16x16xf32>
    %96 = arith.mulf %91, %95 : vector<8x16x16xf32>
    %97 = arith.truncf %96 : vector<8x16x16xf32> to vector<8x16x16xbf16>
    "tpu.trace_start"() <{level = 10 : i32, message = "rij,rjd->rid"}> : () -> ()
    %cst_29 = arith.constant dense<0.000000e+00> : vector<8x16x8xf32>
    %98 = tpu.matmul %97, %80, %cst_29 {dimension_numbers = #tpu.dot_dimension_numbers<[2], [1], [1], [2], [0, 0, 0, 1, 1, 2], [0], [0]>} : vector<8x16x16xbf16>, vector<8x16x8xbf16>, vector<8x16x8xf32> -> vector<8x16x8xf32>
    "tpu.trace_stop"() : () -> ()
    %99 = vector.extract_strided_slice %37 {offsets = [0, 0, 16], sizes = [8, 16, 8], strides = [1, 1, 1]} : vector<8x16x32xf32> to vector<8x16x8xf32>
    %100 = arith.truncf %99 : vector<8x16x8xf32> to vector<8x16x8xbf16>
    %101 = vector.extract_strided_slice %39 {offsets = [0, 0, 16], sizes = [8, 16, 8], strides = [1, 1, 1]} : vector<8x16x32xf32> to vector<8x16x8xf32>
    %102 = arith.truncf %101 : vector<8x16x8xf32> to vector<8x16x8xbf16>
    %103 = vector.extract_strided_slice %41 {offsets = [0, 0, 16], sizes = [8, 16, 8], strides = [1, 1, 1]} : vector<8x16x32xf32> to vector<8x16x8xf32>
    %104 = arith.truncf %103 : vector<8x16x8xf32> to vector<8x16x8xbf16>
    "tpu.trace_start"() <{level = 10 : i32, message = "rid,rjd->rij"}> : () -> ()
    %cst_30 = arith.constant dense<0.000000e+00> : vector<8x16x16xf32>
    %105 = tpu.matmul %100, %102, %cst_30 {dimension_numbers = #tpu.dot_dimension_numbers<[2], [2], [1], [1], [0, 0, 0, 1, 1, 1], [0], [0]>} : vector<8x16x8xbf16>, vector<8x16x8xbf16>, vector<8x16x16xf32> -> vector<8x16x16xf32>
    "tpu.trace_stop"() : () -> ()
    %106 = vector.extract_strided_slice %3 {offsets = [2, 0, 0], sizes = [1, 16, 16], strides = [1, 1, 1]} : vector<4x16x16xf32> to vector<1x16x16xf32>
    %107 = vector.shape_cast %106 : vector<1x16x16xf32> to vector<16x16xf32>
    %108 = vector.shape_cast %107 : vector<16x16xf32> to vector<1x16x16xf32>
    %109 = vector.broadcast %108 : vector<1x16x16xf32> to vector<8x16x16xf32>
    %110 = arith.addf %105, %109 : vector<8x16x16xf32>
    %cst_31 = arith.constant dense<0xFF800000> : vector<8x16xf32>
    %111 = vector.multi_reduction <maximumf>, %110, %cst_31 [2] : vector<8x16x16xf32> to vector<8x16xf32>
    %112 = vector.shape_cast %111 : vector<8x16xf32> to vector<8x16x1xf32>
    %113 = vector.broadcast %112 : vector<8x16x1xf32> to vector<8x16x16xf32>
    %114 = arith.subf %110, %113 : vector<8x16x16xf32>
    %115 = math.exp %114 : vector<8x16x16xf32>
    %cst_32 = arith.constant dense<0.000000e+00> : vector<8x16xf32>
    %116 = vector.multi_reduction <add>, %115, %cst_32 [2] : vector<8x16x16xf32> to vector<8x16xf32>
    %117 = vector.shape_cast %116 : vector<8x16xf32> to vector<8x16x1xf32>
    %118 = tpu.reciprocal %117 {approx = true} : vector<8x16x1xf32> -> vector<8x16x1xf32>
    %119 = vector.broadcast %118 : vector<8x16x1xf32> to vector<8x16x16xf32>
    %120 = arith.mulf %115, %119 : vector<8x16x16xf32>
    %121 = arith.truncf %120 : vector<8x16x16xf32> to vector<8x16x16xbf16>
    "tpu.trace_start"() <{level = 10 : i32, message = "rij,rjd->rid"}> : () -> ()
    %cst_33 = arith.constant dense<0.000000e+00> : vector<8x16x8xf32>
    %122 = tpu.matmul %121, %104, %cst_33 {dimension_numbers = #tpu.dot_dimension_numbers<[2], [1], [1], [2], [0, 0, 0, 1, 1, 2], [0], [0]>} : vector<8x16x16xbf16>, vector<8x16x8xbf16>, vector<8x16x8xf32> -> vector<8x16x8xf32>
    "tpu.trace_stop"() : () -> ()
    %123 = vector.extract_strided_slice %37 {offsets = [0, 0, 24], sizes = [8, 16, 8], strides = [1, 1, 1]} : vector<8x16x32xf32> to vector<8x16x8xf32>
    %124 = arith.truncf %123 : vector<8x16x8xf32> to vector<8x16x8xbf16>
    %125 = vector.extract_strided_slice %39 {offsets = [0, 0, 24], sizes = [8, 16, 8], strides = [1, 1, 1]} : vector<8x16x32xf32> to vector<8x16x8xf32>
    %126 = arith.truncf %125 : vector<8x16x8xf32> to vector<8x16x8xbf16>
    %127 = vector.extract_strided_slice %41 {offsets = [0, 0, 24], sizes = [8, 16, 8], strides = [1, 1, 1]} : vector<8x16x32xf32> to vector<8x16x8xf32>
    %128 = arith.truncf %127 : vector<8x16x8xf32> to vector<8x16x8xbf16>
    "tpu.trace_start"() <{level = 10 : i32, message = "rid,rjd->rij"}> : () -> ()
    %cst_34 = arith.constant dense<0.000000e+00> : vector<8x16x16xf32>
    %129 = tpu.matmul %124, %126, %cst_34 {dimension_numbers = #tpu.dot_dimension_numbers<[2], [2], [1], [1], [0, 0, 0, 1, 1, 1], [0], [0]>} : vector<8x16x8xbf16>, vector<8x16x8xbf16>, vector<8x16x16xf32> -> vector<8x16x16xf32>
    "tpu.trace_stop"() : () -> ()
    %130 = vector.extract_strided_slice %3 {offsets = [3, 0, 0], sizes = [1, 16, 16], strides = [1, 1, 1]} : vector<4x16x16xf32> to vector<1x16x16xf32>
    %131 = vector.shape_cast %130 : vector<1x16x16xf32> to vector<16x16xf32>
    %132 = vector.shape_cast %131 : vector<16x16xf32> to vector<1x16x16xf32>
    %133 = vector.broadcast %132 : vector<1x16x16xf32> to vector<8x16x16xf32>
    %134 = arith.addf %129, %133 : vector<8x16x16xf32>
    %cst_35 = arith.constant dense<0xFF800000> : vector<8x16xf32>
    %135 = vector.multi_reduction <maximumf>, %134, %cst_35 [2] : vector<8x16x16xf32> to vector<8x16xf32>
    %136 = vector.shape_cast %135 : vector<8x16xf32> to vector<8x16x1xf32>
    %137 = vector.broadcast %136 : vector<8x16x1xf32> to vector<8x16x16xf32>
    %138 = arith.subf %134, %137 : vector<8x16x16xf32>
    %139 = math.exp %138 : vector<8x16x16xf32>
    %cst_36 = arith.constant dense<0.000000e+00> : vector<8x16xf32>
    %140 = vector.multi_reduction <add>, %139, %cst_36 [2] : vector<8x16x16xf32> to vector<8x16xf32>
    %141 = vector.shape_cast %140 : vector<8x16xf32> to vector<8x16x1xf32>
    %142 = tpu.reciprocal %141 {approx = true} : vector<8x16x1xf32> -> vector<8x16x1xf32>
    %143 = vector.broadcast %142 : vector<8x16x1xf32> to vector<8x16x16xf32>
    %144 = arith.mulf %139, %143 : vector<8x16x16xf32>
    %145 = arith.truncf %144 : vector<8x16x16xf32> to vector<8x16x16xbf16>
    "tpu.trace_start"() <{level = 10 : i32, message = "rij,rjd->rid"}> : () -> ()
    %cst_37 = arith.constant dense<0.000000e+00> : vector<8x16x8xf32>
    %146 = tpu.matmul %145, %128, %cst_37 {dimension_numbers = #tpu.dot_dimension_numbers<[2], [1], [1], [2], [0, 0, 0, 1, 1, 2], [0], [0]>} : vector<8x16x16xbf16>, vector<8x16x8xbf16>, vector<8x16x8xf32> -> vector<8x16x8xf32>
    "tpu.trace_stop"() : () -> ()
    %147 = tpu.concatenate %74, %98, %122, %146 in 2 : vector<8x16x8xf32>, vector<8x16x8xf32>, vector<8x16x8xf32>, vector<8x16x8xf32> -> vector<8x16x32xf32>
    %148 = vector.shape_cast %147 : vector<8x16x32xf32> to vector<128x32xf32>
    %149 = arith.mulf %148, %50 : vector<128x32xf32>
    %150 = arith.truncf %149 : vector<128x32xf32> to vector<128x32xbf16>
    %c0_38 = arith.constant 0 : index
    %c0_39 = arith.constant 0 : index
    %151 = vector.load %arg8[%c0_38, %c0_39] : memref<32x32xbf16, #tpu.memory_space<vmem>>, vector<32x32xbf16>
    %cst_40 = arith.constant dense<0.000000e+00> : vector<128x32xf32>
    %152 = tpu.matmul %150, %151, %cst_40 {dimension_numbers = #tpu.dot_dimension_numbers<[1], [0], [0], [1], [0, 0, 1, 1], [], []>} : vector<128x32xbf16>, vector<32x32xbf16>, vector<128x32xf32> -> vector<128x32xf32>
    %c0_41 = arith.constant 0 : index
    %c0_42 = arith.constant 0 : index
    %153 = vector.load %arg9[%c0_41, %c0_42] : memref<1x32xf32, #tpu.memory_space<vmem>>, vector<1x32xf32>
    %154 = vector.broadcast %153 : vector<1x32xf32> to vector<128x32xf32>
    %155 = arith.addf %152, %154 : vector<128x32xf32>
    %156 = vector.shape_cast %155 : vector<128x32xf32> to vector<8x16x32xf32>
    %157 = arith.addf %156, %1 : vector<8x16x32xf32>
    %c0_43 = arith.constant 0 : index
    %c0_44 = arith.constant 0 : index
    %c0_45 = arith.constant 0 : index
    %c0_46 = arith.constant 0 : index
    %158 = vector.load %arg10[%c0_43, %c0_44, %c0_45, %c0_46] : memref<1x8x16x32xf32, #tpu.memory_space<vmem>>, vector<1x8x16x32xf32>
    %159 = vector.shape_cast %158 : vector<1x8x16x32xf32> to vector<8x16x32xf32>
    %160 = vector.shape_cast %157 : vector<8x16x32xf32> to vector<1x8x16x32xf32>
    tpu.vector_store %arg10[%c0_43, %c0_44, %c0_45, %c0_46], %160 {strides = array<i32>} : memref<1x8x16x32xf32, #tpu.memory_space<vmem>>, vector<1x8x16x32xf32>,
    return
  }
  func.func @transform_0(%arg0: i32, %arg1: i32) -> (i32, i32, i32, i32) {
    %c0_i32 = arith.constant 0 : i32
    %c0_i32_0 = arith.constant 0 : i32
    %c0_i32_1 = arith.constant 0 : i32
    return %arg0, %arg1, %c0_i32, %c0_i32_0 : i32, i32, i32, i32
  }
  func.func @transform_1(%arg0: i32, %arg1: i32) -> (i32, i32, i32, i32) {
    %c0_i32 = arith.constant 0 : i32
    %c0_i32_0 = arith.constant 0 : i32
    %c0_i32_1 = arith.constant 0 : i32
    %c0_i32_2 = arith.constant 0 : i32
    return %arg0, %c0_i32, %c0_i32_0, %c0_i32_1 : i32, i32, i32, i32
  }
  func.func @transform_2(%arg0: i32, %arg1: i32) -> (i32, i32) {
    %c0_i32 = arith.constant 0 : i32
    %c0_i32_0 = arith.constant 0 : i32
    %c0_i32_1 = arith.constant 0 : i32
    return %c0_i32, %c0_i32_0 : i32, i32
  }
  func.func @transform_3(%arg0: i32, %arg1: i32) -> (i32, i32) {
    %c0_i32 = arith.constant 0 : i32
    %c0_i32_0 = arith.constant 0 : i32
    %c0_i32_1 = arith.constant 0 : i32
    return %c0_i32, %c0_i32_0 : i32, i32
  }
  func.func @transform_4(%arg0: i32, %arg1: i32) -> (i32, i32) {
    %c0_i32 = arith.constant 0 : i32
    %c0_i32_0 = arith.constant 0 : i32
    %c0_i32_1 = arith.constant 0 : i32
    return %c0_i32, %c0_i32_0 : i32, i32
  }
  func.func @transform_5(%arg0: i32, %arg1: i32) -> (i32, i32) {
    %c0_i32 = arith.constant 0 : i32
    %c0_i32_0 = arith.constant 0 : i32
    %c0_i32_1 = arith.constant 0 : i32
    return %c0_i32, %c0_i32_0 : i32, i32
  }
  func.func @transform_6(%arg0: i32, %arg1: i32) -> (i32, i32) {
    %c0_i32 = arith.constant 0 : i32
    %c0_i32_0 = arith.constant 0 : i32
    %c0_i32_1 = arith.constant 0 : i32
    return %c0_i32, %c0_i32_0 : i32, i32
  }
  func.func @transform_7(%arg0: i32, %arg1: i32) -> (i32, i32) {
    %c0_i32 = arith.constant 0 : i32
    %c0_i32_0 = arith.constant 0 : i32
    %c0_i32_1 = arith.constant 0 : i32
    return %c0_i32, %c0_i32_0 : i32, i32
  }
  func.func @transform_8(%arg0: i32, %arg1: i32) -> (i32, i32, i32, i32) {
    %c0_i32 = arith.constant 0 : i32
    %c0_i32_0 = arith.constant 0 : i32
    %c0_i32_1 = arith.constant 0 : i32
    return %arg0, %arg1, %c0_i32, %c0_i32_0 : i32, i32, i32, i32
  }
}

</mosaic_0001>

<bundles_post_ra>
// kernel: pairwise_attention_block.10
= control target key start
LH: loop header
LB: loop body
LE: loop exit
PB: predicated region body
PF: predicated region fallthrough
CT: control target
= control target key end

     0   :  { %s3831_s0 = inlined_call_operand.hbm [shape: f32[2,16,16,32], index: 0, kind: input, shape index: {}]   ;;  %s3832_s1 = inlined_call_operand.vmem [shape: f32[1,32], index: 1, kind: input, shape index: {}]   ;;  %s3833_s2 = inlined_call_operand.vmem [shape: f32[1,32], index: 2, kind: input, shape index: {}]   ;;  %s3834_s3 = inlined_call_operand.vmem [shape: bf16[32,160], index: 3, kind: input, shape index: {}]   ;;  %s3835_s4 = inlined_call_operand.vmem [shape: f32[1,160], index: 4, kind: input, shape index: {}]   ;;  %s3836_s5 = inlined_call_operand.vmem [shape: bf16[2,16,16,32], index: 5, kind: output, shape index: {0}]   ;;  %s3837_s6 = inlined_call_operand.vmem [shape: bf16[2,16,16,32], index: 6, kind: output, shape index: {1}]   ;;  %s3838_s7 = inlined_call_operand.vmem [shape: f32[2,16,16,32], index: 7, kind: output, shape index: {2}]  }
   0x1   :  { %3841 = sst [smem:[#allocation7_spill]] %s3836_s5 }
   0x2   :  { %3842 = sst [smem:[#allocation8_spill]] %s3837_s6 }
   0x3   :  { %13 = vsyncpa [#allocation3], 0 }
   0x4   :  { %15 = vsyncpa [#allocation3 + $0x1], 0  ;;  %s2474_s24 = smov 0   ;;  %s2476_s25 = smov 0  }
   0x5   :  { %s2478_s26 = smov 0   ;;  %s2480_s27 = smov 0  }
   0x6   :  { %s2482_s28 = smov 0   ;;  %s2484_s29 = smov 0  }
   0x7   :  { %s2486_s30 = smov 0   ;;  %s2488_s8 = smov 0  }
   0x8 LB: > { %s1993_s9 = sadd.s32 4294967295, %s2427_s8   ;;  %s30_s10 = sadd.s32 1, %s2419_s29  ;;  %s2427_s8 = sphi %s2488_s8, %s21_s8   ;;  %s2423_s30 = sphi %s2486_s30, %s3909_s30   ;;  %s2419_s29 = sphi %s2484_s29, %s3908_s29   ;;  %s2415_s28 = sphi %s2482_s28, %s3907_s28   ;;  %s2411_s27 = sphi %s2480_s27, %s3906_s27   ;;  %s2407_s26 = sphi %s2478_s26, %s3905_s26   ;;  %s2403_s25 = sphi %s2476_s25, %s3904_s25   ;;  %s2399_s24 = sphi %s2474_s24, %s3903_s24  }
   0x9   : > { %p31_p0 = scmp.ge.s32.totalorder %s30_s10, 2  ;;  %s33_s11 = sadd.s32 1, %s2423_s30 }
   0xa   : > { %s42_s12 = sadd.s32 1, %s2407_s26  ;;  %p49_p1 = scmp.ne.s32.totalorder %s2407_s26, %s2403_s25 }
   0xb   : > { %s3911_s10 = smov (%p31_p0, %s30_s10), 0  ;;  %s3913_s11 = smov (!%p31_p0, %s33_s11), %s2423_s30 }
   0xc   : > { %3843 = sst [smem:[#allocation5_spill]] %s3911_s10  ;;  %s38_s13 = ssub.s32 %s2419_s29, %s3911_s10 }
   0xd   : > { %p50_p2 = scmp.eq.s32.totalorder %s2427_s8, 0  ;;  %p35_p3 = scmp.ge.s32.totalorder %s3913_s11, 2 }
   0xe   : > { %p55_p4 = scmp.ne.s32.totalorder %s2403_s25, %s2399_s24  ;;  %p56_p6 = scmp.eq.s32.totalorder %s1993_s9, 0 }
   0xf   : > { %p2525_p5 = por %p50_p2, %p49_p1  ;;  %s3915_s11 = smov (%p35_p3, %s3913_s11), 0 }
  0x10   : > { %3845 = sst [smem:[#allocation6_spill]] %s3915_s11  ;;  %p2531_p7 = por %p56_p6, %p55_p4 }
  0x11   : > { %s37_s16 = ssub.s32 %s2423_s30, %s3915_s11  ;;  %p2097_p8 = scmp.lt.s32.totalorder %s2427_s8, 4 }
  0x12   : > { %s39_s17 = sor.u32 %s38_s13, %s37_s16  ;;  %s259_s18 = sand.u32 1, %s2407_s26  }
  0x13   : > { %p40_p9 = scmp.eq.s32.totalorder %s39_s17, 0  ;;  %s1997_s19 = sshll.u32 %s259_s18, 7 }
  0x14   : > { %s2082_s20 = sshll.u32 %s2419_s29, 4  ;;  %s2000_s22 = sshll.u32 %s2423_s30, 5 }
  0x15   : > { %s2541_s21 = scalar_select %p40_p9, %s2407_s26, %s42_s12  }
  0x16   : > { %s269_s23 = sadd.s32 %s2082_s20, %s2000_s22  ;;  %s263_s24 = scalar_lea.vmem [#allocation2], %s1997_s19 }
  0x17   : > { %s274_s9 = sshll.u32 %s263_s24, 4  ;;  %s2001_s10 = sshll.u32 %s269_s23, 3  ;;  %s275_s9 = int_to_ptr.vmem [resolvable:$true] %s274_s9 }
  0x18   : > { %s271_s11 = scalar_lea.hbm %s3831_s0, %s2001_s10  ;;  %p2094_p10 = pnand %p2097_p8, %p2525_p5 }
  0x19   : > { %s272_s13 = sshll.u32 %s271_s11, 4  ;;  %p2002_p11 = scmp.ge.s32.totalorder %s2427_s8, 1  ;;  %s273_s13 = int_to_ptr.hbm [resolvable:$true] %s272_s13 }
  0x1a   : > { %s260_s16 = scalar_lea.sflag [#allocation3], %s259_s18  ;;  %s2429_s12 = smov 128  }
  0x1b   : > { %s2430_s17 = smov 8   ;;  %p282_p12 = scmp.lt.s32.totalorder %s2427_s8, 5 }
  0x1c   : > { %2096 = dma.hbm_to_vmem [thread:$0]  (!%p2094_p10), %s273_s13, 2048, %s275_s9, %s260_s16, %s2429_s12, %s2429_s12, %s2430_s17  }
  0x1d   : > { %p283_p13 = pnand %p2002_p11, %p282_p12 }
  0x1e   : > { %s288_s19 = sand.u32 (!%p283_p13), 1, %s2403_s25  }
  0x1f   : > { %286 = sbr.rel (%p283_p13) target bundleno = 883 (0x373), region = 40  ;;  %s2003_s20 = sshll.u32 (!%p283_p13), %s288_s19, 7 }
  0x20   : > { %s289_s22 = scalar_lea.sflag (!%p283_p13), [#allocation3], %s288_s19  ;;  %s2554_s5 = scalar_lea.vmem (!%p283_p13), [#allocation2], %s2003_s20 }
  0x24   : > { %2394 = dma.done.wait (%p2531_p7), %s289_s22, 2048  }
  0x25   : > { %2396 = vsyncadd (%p2531_p7), %s289_s22, 4294965248  ;;  %vm402_vm0 = vcmask 261120   ;;  %v392_v0 = vld [vmem:[%s2554_s5 + $0x40] sm:$0xff]  ;;  %v2565_v2 = vld [vmem:[%s2554_s5 + $0x50] sm:$0xff]  ;;  %v2431_v28 = vmov 32.0   ;;  %s2004_s18 = sshll.u32 %s2411_s27, 3 }
  0x26   : > { %v2562_v1 = vld [vmem:[%s2554_s5] sm:$0xff]  ;;  %v427_v3 = vsel %vm402_vm0, %v392_v0, 0.0  ;;  %v433_v5 = vsel %vm402_vm0, %v2565_v2, 0.0  ;;  %v393_v6 = vld [vmem:[%s2554_s5 + $0x48] sm:$0xff]  ;;  %v395_v8 = vld [vmem:[%s2554_s5 + $0x58] sm:$0xff]  ;;  %2169 = vrcp.f32 %v2431_v28  ;;  %p351_p0 = scmp.lt.s32.totalorder %s2415_s28, 1 }
  0x27   : > { %v403_v4 = vsel %vm402_vm0, %v2562_v1, 0.0  ;;  %428 = vadd.xlane.f32.xlu0 %v427_v3  ;;  %434 = vadd.xlane.f32.xlu2 %v433_v5  ;;  %v385_v7 = vld [vmem:[%s2554_s5 + $0x8] sm:$0xff]  ;;  %v430_v9 = vsel %vm402_vm0, %v393_v6, 0.0  ;;  %v436_v11 = vsel %vm402_vm0, %v395_v8, 0.0  ;;  %v2579_v12 = vld [vmem:[%s2554_s5 + $0x10] sm:$0xff]  ;;  %v2582_v13 = vld [vmem:[%s2554_s5 + $0x18] sm:$0xff] }
  0x28   : > { %404 = vadd.xlane.f32.xlu1 %v403_v4  ;;  %v406_v10 = vsel %vm402_vm0, %v385_v7, 0.0  ;;  %v2585_v14 = vld [vmem:[%s2554_s5 + $0x60] sm:$0xff]  ;;  %v409_v15 = vsel %vm402_vm0, %v2579_v12, 0.0  ;;  %v412_v16 = vsel %vm402_vm0, %v2582_v13, 0.0  ;;  %v2594_v18 = vld [vmem:[%s2554_s5 + $0x68] sm:$0xff]  ;;  %v2609_v24 = vld [vmem:[%s2554_s5 + $0x78] sm:$0xff] }
  0x29   : > { %v439_v17 = vsel %vm402_vm0, %v2585_v14, 0.0  ;;  %v2597_v19 = vld [vmem:[%s2554_s5 + $0x20] sm:$0xff]  ;;  %v2600_v20 = vld [vmem:[%s2554_s5 + $0x28] sm:$0xff]  ;;  %v442_v21 = vsel %vm402_vm0, %v2594_v18, 0.0  ;;  %v2612_v25 = vld [vmem:[%s2554_s5 + $0x70] sm:$0xff]  ;;  %v448_v26 = vsel %vm402_vm0, %v2609_v24, 0.0 }
  0x2a   : > { %v415_v22 = vsel %vm402_vm0, %v2597_v19, 0.0  ;;  %v418_v23 = vsel %vm402_vm0, %v2600_v20, 0.0  ;;  %v445_v27 = vsel %vm402_vm0, %v2612_v25, 0.0  ;;  %v2630_v48 = vld [vmem:[%s2554_s5 + $0x30] sm:$0xff]  ;;  %p353_p1 = scmp.lt.s32.totalorder %s2004_s18, 15  ;;  %s3917_s28 = smov (!%p351_p0, %s2415_s28), 1 }
  0x2b   : > { %v421_v53 = vsel %vm402_vm0, %v2630_v48, 0.0  ;;  %s2006_s23 = sshll.u32 %s3917_s28, 5  ;;  %s2432_s12 = smov 96  }
  0x2c   : > { %v2170_v29 = vpop.eup %2169  ;;  %s3919_s18 = smov (!%p353_p1, %s2004_s18), 15  ;;  %s3899_s22 = sld [smem:[#allocation7_spill]] }
  0x2d   : > { %v452_v30 = vmul.f32 32.0, %v2170_v29  ;;  %vm456_vm1 = vweird.f32 %v2170_v29  ;;  %s2005_s27 = sshll.u32 %s3919_s18, 1  ;;  %s2433_s6 = smov 64  }
  0x2e   : > { %s3135_s28 = sadd.s32 %s2006_s23, %s2005_s27  ;;  %s3900_s14 = sld [smem:[#allocation8_spill]] }
  0x2f   : > { %431 = vadd.xlane.f32.xlu0 %v430_v9  ;;  %437 = vadd.xlane.f32.xlu2 %v436_v11  ;;  %v453_v31 = vsub.f32 1.0, %v452_v30  ;;  %s2015_s24 = sshll.u32 %s3135_s28, 3  ;;  %s2007_s17 = sshll.u32 %s3135_s28, 2 }
  0x30   : > { %407 = vadd.xlane.f32.xlu1 %v406_v10  ;;  %s3165_s16 = scalar_lea.vmem %s3838_s7, %s2015_s24 }
  0x31   : > { %v454_v32 = vmul.f32 %v2170_v29, %v453_v31 }
  0x33   : > { %v455_v33 = vadd.f32 %v2170_v29, %v454_v32 }
  0x34   : > { %s3760_s15 = scalar_lea.vmem %s3900_s14, %s2007_s17 }
  0x35   : > { %v2618_v34 = vsel %vm456_vm1, %v2170_v29, %v455_v33 }
  0x37   : > { %410 = vadd.xlane.f32.xlu0 %v409_v15  ;;  %440 = vadd.xlane.f32.xlu2 %v439_v17 }
  0x38   : > { %413 = vadd.xlane.f32.xlu1 %v412_v16 }
  0x3f   : > { %443 = vadd.xlane.f32.xlu0 %v442_v21  ;;  %419 = vadd.xlane.f32.xlu2 %v418_v23  ;;  %v2676_v21 = vld [vmem:[%s2554_s5 + $0x38] sm:$0xff]  ;;  %s3659_s5 = scalar_lea.vmem %s3899_s22, %s2007_s17 }
  0x40   : > { %416 = vadd.xlane.f32.xlu1 %v415_v22  ;;  %v424_v28 = vsel %vm402_vm0, %v2676_v21, 0.0 }
  0x47   : > { %449 = vadd.xlane.f32.xlu0 %v448_v26  ;;  %446 = vadd.xlane.f32.xlu2 %v445_v27 }
  0x9a   : > { %v429_v35 = vpop.xlane.xlu0 %428  ;;  %v435_v38 = vpop.xlane.xlu2 %434 }
  0x9b   : > { %v405_v36 = vpop.xlane.xlu1 %404  ;;  %v466_v37 = vmul.f32 %v2618_v34, %v429_v35  ;;  %v468_v49 = vmul.f32 %v2618_v34, %v435_v38 }
  0x9c   : > { %v458_v44 = vmul.f32 %v2618_v34, %v405_v36 }
  0x9d   : > { %v2621_v39 = vsub.f32 %v392_v0, %v466_v37  ;;  %v2650_v58 = vsub.f32 %v2565_v2, %v468_v49 }
  0x9e   : > { %v2641_v54 = vsub.f32 %v2562_v1, %v458_v44 }
  0x9f   : > { %v498_v40 = vmul.f32 %v2621_v39, %v2621_v39  ;;  %v500_v2 = vmul.f32 %v2650_v58, %v2650_v58 }
  0xa0   : > { %v490_v1 = vmul.f32 %v2641_v54, %v2641_v54 }
  0xa1   : > { %v530_v41 = vsel %vm402_vm0, %v498_v40, 0.0 }
  0xa2   : > { %v432_v42 = vpop.xlane.xlu0 %431  ;;  %531 = vadd.xlane.f32.xlu0 %v530_v41  ;;  %v438_v47 = vpop.xlane.xlu2 %437 }
  0xa3   : > { %v408_v43 = vpop.xlane.xlu1 %407  ;;  %v467_v45 = vmul.f32 %v2618_v34, %v432_v42  ;;  %v469_v50 = vmul.f32 %v2618_v34, %v438_v47 }
  0xa4   : > { %v459_v46 = vmul.f32 %v2618_v34, %v408_v43 }
  0xa5   : > { %v2634_v51 = vsub.f32 %v393_v6, %v467_v45  ;;  %v2643_v55 = vsub.f32 %v395_v8, %v469_v50  ;;  %v536_v8 = vsel %vm402_vm0, %v500_v2, 0.0  ;;  %v2026_v50 = vld [vmem:[%s3834_s3 + $0x10] sm:$0xf] }
  0xa6   : > { %v2636_v52 = vsub.f32 %v385_v7, %v459_v46  ;;  %v506_v7 = vsel %vm402_vm0, %v490_v1, 0.0 }
  0xa7   : > { %v499_v56 = vmul.f32 %v2634_v51, %v2634_v51  ;;  %v501_v0 = vmul.f32 %v2643_v55, %v2643_v55 }
  0xa8   : > { %v491_v57 = vmul.f32 %v2636_v52, %v2636_v52 }
  0xa9   : > { %v533_v59 = vsel %vm402_vm0, %v499_v56, 0.0  ;;  %v539_v6 = vsel %vm402_vm0, %v501_v0, 0.0  ;;  %v2083_v0 = vld [vmem:[%s3834_s3 + $0x4] sm:$0xf] }
  0xaa   : > { %v509_v60 = vsel %vm402_vm0, %v491_v57, 0.0  ;;  %422 = vadd.xlane.f32.xlu0 %v421_v53  ;;  %534 = vadd.xlane.f32.xlu1 %v533_v59  ;;  %v411_v61 = vpop.xlane.xlu0 %410  ;;  %v441_v63 = vpop.xlane.xlu2 %440  ;;  %v2085_v53 = vld [vmem:[%s3834_s3 + $0x14] sm:$0xf]  ;;  %v2028_v59 = vld [vmem:[%s3834_s3 + $0x18] sm:$0xf0] }
  0xab   : > { %v414_v62 = vpop.xlane.xlu1 %413  ;;  %510 = vadd.xlane.f32.xlu2 %v509_v60  ;;  %v470_v3 = vmul.f32 %v2618_v34, %v441_v63  ;;  %v460_v15 = vmul.f32 %v2618_v34, %v411_v61  ;;  %v2031_v60 = vor.u32 %v2085_v53, %v2028_v59  ;;  %v2084_v63 = vld [vmem:[%s3834_s3 + $0x4] sm:$0xf0] }
  0xac   : > { %v461_v4 = vmul.f32 %v2618_v34, %v414_v62  ;;  %v2018_v62 = vld [vmem:[%s3834_s3] sm:$0xf] }
  0xad   : > { %v2663_v5 = vsub.f32 %v2585_v14, %v470_v3  ;;  %v2682_v23 = vsub.f32 %v2579_v12, %v460_v15  ;;  %2089 = vmatpush.bf16.msra.mxu3 %v2031_v60  ;;  %917 = vmatpush.bf16.msra.mxu1 %v2031_v60  ;;  %v2019_v1 = vor.u32 %v2084_v63, %v2018_v62  ;;  %v2020_v3 = vld [vmem:[%s3834_s3 + $0x8] sm:$0xf0] }
  0xae   : > { %v2669_v9 = vsub.f32 %v2582_v13, %v461_v4  ;;  %v2023_v2 = vor.u32 %v2083_v0, %v2020_v3 }
  0xaf   : > { %v502_v14 = vmul.f32 %v2663_v5, %v2663_v5 }
  0xb0   : > { %v493_v22 = vmul.f32 %v2669_v9, %v2669_v9 }
  0xb1   : > { %v542_v27 = vsel %vm402_vm0, %v502_v14, 0.0  ;;  %2090 = vmatpush.bf16.msra.mxu3 %v2023_v2  ;;  %918 = vmatpush.bf16.msra.mxu1 %v2023_v2 }
  0xb2   : > { %540 = vadd.xlane.f32.xlu0 %v539_v6  ;;  %507 = vadd.xlane.f32.xlu1 %v506_v7  ;;  %v444_v10 = vpop.xlane.xlu0 %443  ;;  %v420_v16 = vpop.xlane.xlu2 %419  ;;  %v515_v29 = vsel %vm402_vm0, %v493_v22, 0.0 }
  0xb3   : > { %v417_v11 = vpop.xlane.xlu1 %416  ;;  %537 = vadd.xlane.f32.xlu2 %v536_v8  ;;  %v463_v17 = vmul.f32 %v2618_v34, %v420_v16  ;;  %v471_v32 = vmul.f32 %v2618_v34, %v444_v10 }
  0xb4   : > { %v462_v13 = vmul.f32 %v2618_v34, %v417_v11 }
  0xb5   : > { %v2685_v26 = vsub.f32 %v2600_v20, %v463_v17  ;;  %v492_v20 = vmul.f32 %v2682_v23, %v2682_v23 }
  0xb6   : > { %v2692_v30 = vsub.f32 %v2597_v19, %v462_v13  ;;  %v2703_v19 = vsub.f32 %v2594_v18, %v471_v32 }
  0xb7   : > { %v495_v12 = vmul.f32 %v2685_v26, %v2685_v26  ;;  %v512_v37 = vsel %vm402_vm0, %v492_v20, 0.0 }
  0xb8   : > { %v494_v35 = vmul.f32 %v2692_v30, %v2692_v30  ;;  %v503_v43 = vmul.f32 %v2703_v19, %v2703_v19 }
  0xb9   : > { %v521_v36 = vsel %vm402_vm0, %v495_v12, 0.0 }
  0xba   : > { %543 = vadd.xlane.f32.xlu0 %v542_v27  ;;  %425 = vadd.xlane.f32.xlu1 %v424_v28  ;;  %v450_v31 = vpop.xlane.xlu0 %449  ;;  %v518_v40 = vsel %vm402_vm0, %v494_v35, 0.0  ;;  %v447_v41 = vpop.xlane.xlu2 %446 }
  0xbb   : > { %516 = vadd.xlane.f32.xlu2 %v515_v29  ;;  %v473_v33 = vmul.f32 %v2618_v34, %v450_v31  ;;  %v472_v42 = vmul.f32 %v2618_v34, %v447_v41 }
  0xbd   : > { %v2708_v38 = vsub.f32 %v2609_v24, %v473_v33  ;;  %v2717_v44 = vsub.f32 %v2612_v25, %v472_v42  ;;  %v545_v24 = vsel %vm402_vm0, %v503_v43, 0.0  ;;  %v2086_v25 = vld [vmem:[%s3834_s3 + $0x14] sm:$0xf0] }
  0xbe   : > { %v2027_v57 = vor.u32 %v2086_v25, %v2026_v50 }
  0xbf   : > { %v505_v18 = vmul.f32 %v2708_v38, %v2708_v38  ;;  %v504_v46 = vmul.f32 %v2717_v44, %v2717_v44 }
  0xc0   : > { %2087 = vmatpush.bf16.msra.mxu2 %v2027_v57  ;;  %868 = vmatpush.bf16.msra.mxu0 %v2027_v57 }
  0xc1   : > { %v551_v45 = vsel %vm402_vm0, %v505_v18, 0.0  ;;  %v548_v47 = vsel %vm402_vm0, %v504_v46, 0.0 }
  0xc2   : > { %522 = vadd.xlane.f32.xlu0 %v521_v36  ;;  %513 = vadd.xlane.f32.xlu1 %v512_v37 }
  0xc3   : > { %519 = vadd.xlane.f32.xlu2 %v518_v40 }
  0xc4   : > { %2088 = vmatpush.bf16.msra.mxu2 %v2019_v1  ;;  %869 = vmatpush.bf16.msra.mxu0 %v2019_v1 }
  0xca   : > { %546 = vadd.xlane.f32.xlu1 %v545_v24 }
  0xcb   : > { %552 = vadd.xlane.f32.xlu2 %v551_v45 }
  0xd2   : > { %549 = vadd.xlane.f32.xlu1 %v548_v47 }
 0x115   : > { %v532_v49 = vpop.xlane.xlu0 %531 }
 0x116   : > { %v562_v56 = vmul.f32 %v532_v49, %v2618_v34 }
 0x118   : > { %v2737_v61 = vadd.f32 1e-05, %v562_v56 }
 0x11a   : > { %2171 = vrsqrt.f32 %v2737_v61  ;;  %vm672_vm3 = vweird.f32 %v2737_v61 }
 0x11d   : > { %v423_v4 = vpop.xlane.xlu0 %422  ;;  %v535_v6 = vpop.xlane.xlu1 %534 }
 0x11e   : > { %v464_v7 = vmul.f32 %v2618_v34, %v423_v4  ;;  %v511_v8 = vpop.xlane.xlu2 %510  ;;  %v563_v10 = vmul.f32 %v535_v6, %v2618_v34 }
 0x11f   : > { %v555_v11 = vmul.f32 %v511_v8, %v2618_v34 }
 0x120   : > { %v2755_v15 = vpop.eup %2171  ;;  %v2758_v16 = vsub.f32 %v2630_v48, %v464_v7  ;;  %v579_v14 = vadd.f32 1e-05, %v563_v10 }
 0x121   : > { %v667_v17 = vmul.f32 %v2755_v15, %v2737_v61  ;;  %v2762_v22 = vadd.f32 1e-05, %v555_v11  ;;  %vm673_vm2 = vweird.f32 %v2755_v15 }
 0x122   : > { %2173 = vrsqrt.f32 %v579_v14  ;;  %v496_v13 = vmul.f32 %v2758_v16, %v2758_v16  ;;  %vm682_vm4 = vweird.f32 %v579_v14  ;;  %vm2810_vm6 = vmor %vm672_vm3, %vm673_vm2 }
 0x123   : > { %v668_v27 = vmul.f32 %v2755_v15, %v667_v17  ;;  %2175 = vrsqrt.f32 %v2762_v22  ;;  %vm602_vm7 = vweird.f32 %v2762_v22 }
 0x124   : > { %v524_v28 = vsel %vm402_vm0, %v496_v13, 0.0 }
 0x125   : > { %525 = vadd.xlane.f32.xlu0 %v524_v28  ;;  %v541_v29 = vpop.xlane.xlu0 %540  ;;  %v508_v48 = vpop.xlane.xlu1 %507  ;;  %v669_v20 = vmul.f32 0.5, %v668_v27 }
 0x126   : > { %v565_v31 = vmul.f32 %v541_v29, %v2618_v34  ;;  %v538_v32 = vpop.xlane.xlu2 %537  ;;  %v554_v12 = vmul.f32 %v508_v48, %v2618_v34 }
 0x127   : > { %v564_v33 = vmul.f32 %v538_v32, %v2618_v34  ;;  %v670_v18 = vsub.f32 1.5, %v669_v20 }
 0x128   : > { %v2772_v35 = vpop.eup %2173  ;;  %v2774_v36 = vadd.f32 1e-05, %v565_v31  ;;  %v2776_v37 = vadd.f32 1e-05, %v554_v12 }
 0x129   : > { %v2778_v40 = vpop.eup %2175  ;;  %v677_v41 = vmul.f32 %v2772_v35, %v579_v14  ;;  %v2781_v42 = vadd.f32 1e-05, %v564_v33  ;;  %v671_v57 = vmul.f32 %v2755_v15, %v670_v18  ;;  %vm683_vm5 = vweird.f32 %v2772_v35 }
 0x12a   : > { %v597_v43 = vmul.f32 %v2778_v40, %v2762_v22  ;;  %2177 = vrsqrt.f32 %v2774_v36  ;;  %vm603_vm8 = vweird.f32 %v2778_v40  ;;  %vm2825_vm9 = vmor %vm682_vm4, %vm683_vm5  ;;  %vm702_vm10 = vweird.f32 %v2774_v36 }
 0x12b   : > { %v678_v24 = vmul.f32 %v2772_v35, %v677_v41  ;;  %2179 = vrsqrt.f32 %v2781_v42  ;;  %v675_v10 = vsel %vm2810_vm6, %v2755_v15, %v671_v57  ;;  %vm692_vm11 = vweird.f32 %v2781_v42  ;;  %vm2847_vm12 = vmor %vm602_vm7, %vm603_vm8  ;;  %v2857_v41 = vld [vmem:[%s3832_s1] ss:$0 sm:$0xff] }
 0x12c   : > { %v598_v45 = vmul.f32 %v2778_v40, %v597_v43  ;;  %2181 = vrsqrt.f32 %v2776_v37  ;;  %v754_v31 = vmul.f32 %v675_v10, %v2621_v39  ;;  %vm592_vm13 = vweird.f32 %v2776_v37 }
 0x12d   : > { %v679_v46 = vmul.f32 0.5, %v678_v24  ;;  %v544_v47 = vpop.xlane.xlu0 %543  ;;  %v426_v49 = vpop.xlane.xlu1 %425 }
 0x12e   : > { %v599_v50 = vmul.f32 0.5, %v598_v45  ;;  %v566_v25 = vmul.f32 %v544_v47, %v2618_v34  ;;  %v517_v53 = vpop.xlane.xlu2 %516  ;;  %v465_v56 = vmul.f32 %v2618_v34, %v426_v49 }
 0x12f   : > { %v680_v59 = vsub.f32 1.5, %v679_v46  ;;  %v557_v60 = vmul.f32 %v517_v53, %v2618_v34  ;;  %v773_v53 = vmul.f32 %v2857_v41, %v754_v31 }
 0x130   : > { %v2795_v62 = vpop.eup %2177  ;;  %v2799_v63 = vadd.f32 1e-05, %v566_v25  ;;  %v600_v1 = vsub.f32 1.5, %v599_v50  ;;  %v2819_v8 = vsub.f32 %v2676_v21, %v465_v56 }
 0x131   : > { %v2801_v0 = vpop.eup %2179  ;;  %v681_v3 = vmul.f32 %v2772_v35, %v680_v59  ;;  %v697_v2 = vmul.f32 %v2795_v62, %v2774_v36  ;;  %v2806_v4 = vadd.f32 1e-05, %v557_v60  ;;  %vm703_vm15 = vweird.f32 %v2795_v62  ;;  %v2887_v60 = vld [vmem:[%s3833_s2] ss:$0 sm:$0xff] }
 0x132   : > { %v2808_v6 = vpop.eup %2181  ;;  %v687_v61 = vmul.f32 %v2801_v0, %v2781_v42  ;;  %2183 = vrsqrt.f32 %v2799_v63  ;;  %v601_v15 = vmul.f32 %v2778_v40, %v600_v1  ;;  %vm693_vm1 = vweird.f32 %v2801_v0  ;;  %vm2899_vm3 = vmor %vm702_vm10, %vm703_vm15 }
 0x133   : > { %v698_v17 = vmul.f32 %v2795_v62, %v697_v2  ;;  %v587_v13 = vmul.f32 %v2808_v6, %v2776_v37  ;;  %v685_v21 = vsel %vm2825_vm9, %v2772_v35, %v681_v3  ;;  %2185 = vrsqrt.f32 %v2806_v4  ;;  %vm2908_vm4 = vmor %vm692_vm11, %vm693_vm1 }
 0x134   : > { %v688_v27 = vmul.f32 %v2801_v0, %v687_v61  ;;  %v497_v35 = vmul.f32 %v2819_v8, %v2819_v8  ;;  %v755_v39 = vmul.f32 %v685_v21, %v2634_v51  ;;  %vm593_vm14 = vweird.f32 %v2808_v6 }
 0x135   : > { %v699_v14 = vmul.f32 0.5, %v698_v17  ;;  %v588_v28 = vmul.f32 %v2808_v6, %v587_v13  ;;  %v523_v29 = vpop.xlane.xlu0 %522  ;;  %v514_v48 = vpop.xlane.xlu1 %513  ;;  %v605_v46 = vsel %vm2847_vm12, %v2778_v40, %v601_v15  ;;  %vm594_vm2 = vmor %vm592_vm13, %vm593_vm14  ;;  %vm622_vm5 = vweird.f32 %v2806_v4 }
 0x136   : > { %v689_v12 = vmul.f32 0.5, %v688_v27  ;;  %v559_v20 = vmul.f32 %v523_v29, %v2618_v34  ;;  %v520_v33 = vpop.xlane.xlu2 %519  ;;  %v556_v18 = vmul.f32 %v514_v48, %v2618_v34  ;;  %v527_v45 = vsel %vm402_vm0, %v497_v35, 0.0 }
 0x137   : > { %v589_v43 = vmul.f32 0.5, %v588_v28  ;;  %v558_v22 = vmul.f32 %v520_v33, %v2618_v34  ;;  %v700_v47 = vsub.f32 1.5, %v699_v14  ;;  %528 = vadd.xlane.f32.xlu1 %v527_v45  ;;  %v774_v59 = vmul.f32 %v2857_v41, %v755_v39 }
 0x138   : > { %v2864_v24 = vadd.f32 1e-05, %v559_v20  ;;  %v690_v49 = vsub.f32 1.5, %v689_v12  ;;  %v2870_v50 = vpop.eup %2183  ;;  %v2881_v57 = vadd.f32 1e-05, %v556_v18  ;;  %v747_v1 = vmul.f32 %v605_v46, %v2636_v52 }
 0x139   : > { %v590_v51 = vsub.f32 1.5, %v589_v43  ;;  %v2874_v25 = vadd.f32 1e-05, %v558_v22  ;;  %v2877_v56 = vpop.eup %2185  ;;  %v701_v2 = vmul.f32 %v2795_v62, %v700_v47  ;;  %v707_v36 = vmul.f32 %v2870_v50, %v2799_v63 }
 0x13a   : > { %2187 = vrsqrt.f32 %v2864_v24  ;;  %v617_v3 = vmul.f32 %v2877_v56, %v2806_v4  ;;  %v691_v61 = vmul.f32 %v2801_v0, %v690_v49  ;;  %v793_v21 = vadd.f32 %v2887_v60, %v774_v59 }
 0x13b   : > { %v591_v40 = vmul.f32 %v2808_v6, %v590_v51  ;;  %2189 = vrsqrt.f32 %v2874_v25  ;;  %v705_v28 = vsel %vm2899_vm3, %v2795_v62, %v701_v2  ;;  %v708_v31 = vmul.f32 %v2870_v50, %v707_v36 }
 0x13c   : > { %v618_v17 = vmul.f32 %v2877_v56, %v617_v3  ;;  %2191 = vrsqrt.f32 %v2881_v57  ;;  %v695_v29 = vsel %vm2908_vm4, %v2801_v0, %v691_v61  ;;  %v766_v20 = vmul.f32 %v2857_v41, %v747_v1 }
 0x13d   : > { %v595_v52 = vsel %vm594_vm2, %v2808_v6, %v591_v40  ;;  %v547_v10 = vpop.xlane.xlu1 %546  ;;  %v792_v6 = vadd.f32 %v2887_v60, %v773_v53  ;;  %vm623_vm6 = vweird.f32 %v2877_v56  ;;  %v756_v39 = vmul.f32 %v695_v29, %v2650_v58 }
 0x13e   : > { %v746_v11 = vmul.f32 %v595_v52, %v2641_v54  ;;  %v553_v13 = vpop.xlane.xlu2 %552  ;;  %v619_v15 = vmul.f32 0.5, %v618_v17  ;;  %v567_v14 = vmul.f32 %v547_v10, %v2618_v34  ;;  %v757_v18 = vmul.f32 %v705_v28, %v2643_v55  ;;  %vm2953_vm7 = vmor %vm622_vm5, %vm623_vm6 }
 0x13f   : > { %v569_v42 = vmul.f32 %v553_v13, %v2618_v34  ;;  %v804_v48 = vpack.c.bf16 %v793_v21, %v792_v6  ;;  %v709_v49 = vmul.f32 0.5, %v708_v31  ;;  %v785_v58 = vadd.f32 %v2887_v60, %v766_v20 }
 0x140   : > { %v2920_v27 = vpop.eup %2187  ;;  %v765_v54 = vmul.f32 %v2857_v41, %v746_v11  ;;  %v620_v32 = vsub.f32 1.5, %v619_v15  ;;  %v2931_v12 = vadd.f32 1e-05, %v567_v14  ;;  %vm612_vm8 = vweird.f32 %v2881_v57 }
 0x141   : > { %v2934_v33 = vpop.eup %2189  ;;  %v637_v62 = vmul.f32 %v2920_v27, %v2864_v24  ;;  %2036 = vmatmul.msk.bf16.vlgmr.msra.gmra.mxu2 %vm402_vm0, %v804_v48  ;;  %2044 = vmatmul.msk.bf16.vlgmr.msra.gmra.mxu3 %vm402_vm0, %v804_v48  ;;  %v2942_v0 = vadd.f32 1e-05, %v569_v42  ;;  %v775_v1 = vmul.f32 %v2857_v41, %v756_v39  ;;  %v776_v7 = vmul.f32 %v2857_v41, %v757_v18 }
 0x142   : > { %v2192_v35 = vpop.eup %2191  ;;  %v627_v43 = vmul.f32 %v2934_v33, %v2874_v25  ;;  %v784_v22 = vadd.f32 %v2887_v60, %v765_v54  ;;  %v621_v45 = vmul.f32 %v2877_v56, %v620_v32  ;;  %2193 = vrsqrt.f32 %v2931_v12 }
 0x143   : > { %v607_v46 = vmul.f32 %v2192_v35, %v2881_v57  ;;  %v638_v53 = vmul.f32 %v2920_v27, %v637_v62  ;;  %2195 = vrsqrt.f32 %v2942_v0  ;;  %vm613_vm9 = vweird.f32 %v2192_v35 }
 0x144   : > { %v628_v55 = vmul.f32 %v2934_v33, %v627_v43  ;;  %v800_v59 = vpack.c.bf16 %v785_v58, %v784_v22  ;;  %v625_v3 = vsel %vm2953_vm7, %v2877_v56, %v621_v45  ;;  %v710_v61 = vsub.f32 1.5, %v709_v49  ;;  %vm614_vm12 = vmor %vm612_vm8, %vm613_vm9 }
 0x145   : > { %v550_v47 = vpop.xlane.xlu1 %549  ;;  %v608_v40 = vmul.f32 %v2192_v35, %v607_v46  ;;  %vm712_vm10 = vweird.f32 %v2799_v63  ;;  %v639_v10 = vmul.f32 0.5, %v638_v53  ;;  %vm713_vm11 = vweird.f32 %v2870_v50 }
 0x146   : > { %v568_v4 = vmul.f32 %v550_v47, %v2618_v34  ;;  %2032 = vmatmul.msk.bf16.vlgmr.msra.gmra.mxu0 %vm402_vm0, %v800_v59  ;;  %2040 = vmatmul.msk.bf16.vlgmr.msra.gmra.mxu1 %vm402_vm0, %v800_v59  ;;  %v749_v56 = vmul.f32 %v625_v3, %v2669_v9  ;;  %v629_v36 = vmul.f32 0.5, %v628_v55  ;;  %v794_v17 = vadd.f32 %v2887_v60, %v775_v1  ;;  %vm2987_vm13 = vmor %vm712_vm10, %vm713_vm11 }
 0x147   : > { %v609_v2 = vmul.f32 0.5, %v608_v40  ;;  %v795_v42 = vadd.f32 %v2887_v60, %v776_v7  ;;  %v711_v15 = vmul.f32 %v2870_v50, %v710_v61  ;;  %v640_v57 = vsub.f32 1.5, %v639_v10 }
 0x148   : > { %v2971_v52 = vadd.f32 1e-05, %v568_v4  ;;  %v2194_v11 = vpop.eup %2193  ;;  %vm722_vm14 = vweird.f32 %v2931_v12  ;;  %v768_v48 = vmul.f32 %v2857_v41, %v749_v56  ;;  %v630_v31 = vsub.f32 1.5, %v629_v36 }
 0x149   : > { %v610_v37 = vsub.f32 1.5, %v609_v2  ;;  %v2979_v13 = vpop.eup %2195  ;;  %v717_v21 = vmul.f32 %v2194_v11, %v2931_v12  ;;  %vm723_vm15 = vweird.f32 %v2194_v11  ;;  %v805_v63 = vpack.c.bf16 %v795_v42, %v794_v17 }
 0x14a   : > { %2197 = vrsqrt.f32 %v2971_v52  ;;  %v737_v29 = vmul.f32 %v2979_v13, %v2942_v0  ;;  %v715_v20 = vsel %vm2987_vm13, %v2870_v50, %v711_v15  ;;  %vm642_vm1 = vweird.f32 %v2864_v24  ;;  %vm724_vm5 = vmor %vm722_vm14, %vm723_vm15 }
 0x14b   : > { %v611_v6 = vmul.f32 %v2192_v35, %v610_v37  ;;  %v718_v54 = vmul.f32 %v2194_v11, %v717_v21  ;;  %vm643_vm2 = vweird.f32 %v2920_v27  ;;  %vm632_vm3 = vweird.f32 %v2874_v25 }
 0x14c   : > { %vm633_vm4 = vweird.f32 %v2934_v33  ;;  %v738_v50 = vmul.f32 %v2979_v13, %v737_v29  ;;  %v787_v18 = vadd.f32 %v2887_v60, %v768_v48  ;;  %v758_v25 = vmul.f32 %v715_v20, %v2663_v5  ;;  %vm3018_vm6 = vmor %vm642_vm1, %vm643_vm2 }
 0x14d   : > { %v615_v14 = vsel %vm614_vm12, %v2192_v35, %v611_v6  ;;  %v719_v32 = vmul.f32 0.5, %v718_v54  ;;  %v641_v35 = vmul.f32 %v2920_v27, %v640_v57  ;;  %v631_v46 = vmul.f32 %v2934_v33, %v630_v31  ;;  %vm3023_vm7 = vmor %vm632_vm3, %vm633_vm4 }
 0x14e   : > { %v748_v28 = vmul.f32 %v615_v14, %v2682_v23  ;;  %v739_v53 = vmul.f32 0.5, %v738_v50  ;;  %v777_v59 = vmul.f32 %v2857_v41, %v758_v25  ;;  %vm732_vm8 = vweird.f32 %v2971_v52 }
 0x14f   : > { %v720_v39 = vsub.f32 1.5, %v719_v32  ;;  %v645_v5 = vsel %vm3018_vm6, %v2920_v27, %v641_v35  ;;  %v635_v55 = vsel %vm3023_vm7, %v2934_v33, %v631_v46  ;;  %vm742_vm10 = vweird.f32 %v2942_v0 }
 0x150   : > { %v767_v23 = vmul.f32 %v2857_v41, %v748_v28  ;;  %v2198_v62 = vpop.eup %2197  ;;  %v751_v3 = vmul.f32 %v645_v5, %v2685_v26  ;;  %v740_v27 = vsub.f32 1.5, %v739_v53  ;;  %v796_v33 = vadd.f32 %v2887_v60, %v777_v59 }
 0x151   : > { %2037 = vmatmul.msk.bf16.gmra.mxu2 %vm402_vm0, %v805_v63  ;;  %2045 = vmatmul.msk.bf16.gmra.mxu3 %vm402_vm0, %v805_v63  ;;  %v727_v43 = vmul.f32 %v2198_v62, %v2971_v52  ;;  %v721_v12 = vmul.f32 %v2194_v11, %v720_v39  ;;  %vm733_vm9 = vweird.f32 %v2198_v62  ;;  %vm743_vm11 = vweird.f32 %v2979_v13 }
 0x152   : > { %v786_v22 = vadd.f32 %v2887_v60, %v767_v23  ;;  %vm734_vm12 = vmor %vm732_vm8, %vm733_vm9  ;;  %v741_v10 = vmul.f32 %v2979_v13, %v740_v27  ;;  %v770_v52 = vmul.f32 %v2857_v41, %v751_v3 }
 0x153   : > { %v728_v49 = vmul.f32 %v2198_v62, %v727_v43  ;;  %v725_v58 = vsel %vm724_vm5, %v2194_v11, %v721_v12  ;;  %vm744_vm13 = vmor %vm742_vm10, %vm743_vm11 }
 0x154   : > { %v801_v51 = vpack.c.bf16 %v787_v18, %v786_v22  ;;  %v759_v24 = vmul.f32 %v725_v58, %v2703_v19  ;;  %v750_v19 = vmul.f32 %v635_v55, %v2692_v30  ;;  %v745_v37 = vsel %vm744_vm13, %v2979_v13, %v741_v10 }
 0x155   : > { %v729_v40 = vmul.f32 0.5, %v728_v49  ;;  %v789_v11 = vadd.f32 %v2887_v60, %v770_v52  ;;  %v761_v36 = vmul.f32 %v745_v37, %v2708_v38 }
 0x156   : > { %2033 = vmatmul.msk.bf16.gmra.mxu0 %vm402_vm0, %v801_v51  ;;  %2041 = vmatmul.msk.bf16.gmra.mxu1 %vm402_vm0, %v801_v51  ;;  %v778_v1 = vmul.f32 %v2857_v41, %v759_v24  ;;  %v769_v26 = vmul.f32 %v2857_v41, %v750_v19 }
 0x157   : > { %v730_v4 = vsub.f32 1.5, %v729_v40  ;;  %v780_v21 = vmul.f32 %v2857_v41, %v761_v36 }
 0x158   : > { %v797_v2 = vadd.f32 %v2887_v60, %v778_v1  ;;  %v788_v0 = vadd.f32 %v2887_v60, %v769_v26 }
 0x159   : > { %v731_v7 = vmul.f32 %v2198_v62, %v730_v4  ;;  %v799_v13 = vadd.f32 %v2887_v60, %v780_v21 }
 0x15a   : > { %v806_v61 = vpack.c.bf16 %v797_v2, %v796_v33  ;;  %v802_v17 = vpack.c.bf16 %v789_v11, %v788_v0 }
 0x15b   : > { %v735_v30 = vsel %vm734_vm12, %v2198_v62, %v731_v7 }
 0x15c   : > { %v760_v56 = vmul.f32 %v735_v30, %v2717_v44 }
 0x15e   : > { %v779_v6 = vmul.f32 %v2857_v41, %v760_v56 }
 0x160   : > { %v798_v42 = vadd.f32 %v2887_v60, %v779_v6 }
 0x161   : > { %2038 = vmatmul.msk.bf16.gmra.mxu2 %vm402_vm0, %v806_v61  ;;  %2046 = vmatmul.msk.bf16.gmra.mxu3 %vm402_vm0, %v806_v61 }
 0x162   : > { %v807_v15 = vpack.c.bf16 %v799_v13, %v798_v42 }
 0x166   : > { %2034 = vmatmul.msk.bf16.gmra.mxu0 %vm402_vm0, %v802_v17  ;;  %2042 = vmatmul.msk.bf16.gmra.mxu1 %vm402_vm0, %v802_v17 }
 0x171   : > { %2039 = vmatmul.msk.bf16.gmra.mxu2 %vm402_vm0, %v807_v15  ;;  %2047 = vmatmul.msk.bf16.gmra.mxu3 %vm402_vm0, %v807_v15 }
 0x198   : > { %v526_v44 = vpop.xlane.xlu0 %525 }
 0x199   : > { %v560_v38 = vmul.f32 %v526_v44, %v2618_v34 }
 0x19b   : > { %v576_v9 = vadd.f32 1e-05, %v560_v38 }
 0x19d   : > { %2199 = vrsqrt.f32 %v576_v9  ;;  %vm652_vm14 = vweird.f32 %v576_v9 }
 0x1a3   : > { %v2200_v57 = vpop.eup %2199 }
 0x1a4   : > { %v647_v14 = vmul.f32 %v2200_v57, %v576_v9  ;;  %vm653_vm15 = vweird.f32 %v2200_v57 }
 0x1a5   : > { %vm654_vm1 = vmor %vm652_vm14, %vm653_vm15 }
 0x1a6   : > { %v648_v54 = vmul.f32 %v2200_v57, %v647_v14 }
 0x1a8   : > { %v649_v31 = vmul.f32 0.5, %v648_v54 }
 0x1aa   : > { %v529_v28 = vpop.xlane.xlu1 %528  ;;  %v650_v32 = vsub.f32 1.5, %v649_v31 }
 0x1ab   : > { %v561_v29 = vmul.f32 %v529_v28, %v2618_v34  ;;  %v812_v34 = vld [vmem:[%s3835_s4] sm:$0x3] }
 0x1ac   : > { %v651_v20 = vmul.f32 %v2200_v57, %v650_v32  ;;  %v3070_v45 = vperm.slane %v812_v34, 0  ;;  %v3072_v46 = vperm.slane %v812_v34, 1 }
 0x1ad   : > { %v577_v48 = vadd.f32 1e-05, %v561_v29 }
 0x1ae   : > { %v655_v35 = vsel %vm654_vm1, %v2200_v57, %v651_v20 }
 0x1af   : > { %2201 = vrsqrt.f32 %v577_v48  ;;  %v752_v43 = vmul.f32 %v655_v35, %v2758_v16  ;;  %vm662_vm3 = vweird.f32 %v577_v48 }
 0x1b1   : > { %v771_v12 = vmul.f32 %v2857_v41, %v752_v43 }
 0x1b3   : > { %v790_v24 = vadd.f32 %v2887_v60, %v771_v12 }
 0x1b5   : > { %v2202_v63 = vpop.eup %2201 }
 0x1b6   : > { %v657_v23 = vmul.f32 %v2202_v63, %v577_v48  ;;  %vm663_vm2 = vweird.f32 %v2202_v63 }
 0x1b7   : > { %vm664_vm4 = vmor %vm662_vm3, %vm663_vm2 }
 0x1b8   : > { %v658_v62 = vmul.f32 %v2202_v63, %v657_v23 }
 0x1ba   : > { %v659_v39 = vmul.f32 0.5, %v658_v62 }
 0x1bc   : > { %v660_v50 = vsub.f32 1.5, %v659_v39 }
 0x1be   : > { %v661_v22 = vmul.f32 %v2202_v63, %v660_v50 }
 0x1c0   : > { %v665_v18 = vsel %vm664_vm4, %v2202_v63, %v661_v22 }
 0x1c1   : > { %v753_v25 = vmul.f32 %v665_v18, %v2819_v8 }
 0x1c3   : > { %v772_v47 = vmul.f32 %v2857_v41, %v753_v25  ;;  %v871_v5 = vpop.f32.mrf.mxu0  ;;  %v920_v53 = vpop.f32.mrf.mxu1 }
 0x1c4   : > { %v891_v49 = vpop.f32.mrf.mxu2  ;;  %v940_v16 = vpop.f32.mrf.mxu3  ;;  %v3083_v40 = vadd.f32 %v871_v5, %v3070_v45  ;;  %v921_v55 = vadd.f32 %v920_v53, %v3072_v46 }
 0x1c5   : > { %v3077_v51 = vadd.f32 %v891_v49, %v3070_v45  ;;  %v941_v58 = vadd.f32 %v940_v16, %v3072_v46  ;;  %v791_v8 = vadd.f32 %v2887_v60, %v772_v47 }
 0x1c6   : > { %v2048_v1 = vmul.f32 -1.442695, %v3083_v40  ;;  %v2064_v3 = vmul.f32 -1.442695, %v921_v55 }
 0x1c7   : > { %v2056_v41 = vmul.f32 -1.442695, %v3077_v51  ;;  %v2072_v59 = vmul.f32 -1.442695, %v941_v58  ;;  %v803_v4 = vpack.c.bf16 %v791_v8, %v790_v24 }
 0x1c9   : > { %2203 = vpow2.f32 %v2056_v41  ;;  %2035 = vmatmul.msk.bf16.gmra.mxu0 %vm402_vm0, %v803_v4  ;;  %2043 = vmatmul.msk.bf16.gmra.mxu1 %vm402_vm0, %v803_v4 }
 0x1ca   : > { %2205 = vpow2.f32 %v2072_v59 }
 0x1cb   : > { %2207 = vpow2.f32 %v2048_v1  ;;  %v873_v33 = vpop.f32.mrf.mxu0  ;;  %v922_v7 = vpop.f32.mrf.mxu1 }
 0x1cc   : > { %2209 = vpow2.f32 %v2064_v3  ;;  %v893_v60 = vpop.f32.mrf.mxu2  ;;  %v942_v19 = vpop.f32.mrf.mxu3  ;;  %v923_v30 = vadd.f32 %v922_v7, %v3072_v46  ;;  %v3103_v56 = vadd.f32 %v873_v33, %v3070_v45 }
 0x1cd   : > { %v3092_v27 = vadd.f32 %v893_v60, %v3070_v45  ;;  %v943_v2 = vadd.f32 %v942_v19, %v3072_v46 }
 0x1ce   : > { %v2065_v21 = vmul.f32 -1.442695, %v923_v30  ;;  %v2049_v15 = vmul.f32 -1.442695, %v3103_v56 }
 0x1cf   : > { %v2204_v61 = vpop.eup %2203  ;;  %v2057_v10 = vmul.f32 -1.442695, %v3092_v27  ;;  %v2073_v11 = vmul.f32 -1.442695, %v943_v2 }
 0x1d0   : > { %v2206_v26 = vpop.eup %2205  ;;  %v3097_v52 = vadd.f32 1.0, %v2204_v61 }
 0x1d1   : > { %v2208_v37 = vpop.eup %2207  ;;  %v3100_v0 = vadd.f32 1.0, %v2206_v26  ;;  %2211 = vpow2.f32 %v2057_v10 }
 0x1d2   : > { %v2210_v36 = vpop.eup %2209  ;;  %v3109_v17 = vadd.f32 1.0, %v2208_v37 }
 0x1d3   : > { %2213 = vrcp.f32 %v3100_v0  ;;  %v3114_v6 = vadd.f32 1.0, %v2210_v36  ;;  %v876_v38 = vpop.f32.mrf.mxu0  ;;  %v925_v9 = vpop.f32.mrf.mxu1  ;;  %vm1533_vm5 = vweird.f32 %v3100_v0  ;;  %v1537_v20 = vand.u32 2147483647, %v3100_v0 }
 0x1d4   : > { %2215 = vrcp.f32 %v3097_v52  ;;  %v896_v42 = vpop.f32.mrf.mxu2  ;;  %v945_v13 = vpop.f32.mrf.mxu3  ;;  %v3127_v28 = vadd.f32 %v876_v38, %v3070_v45  ;;  %v926_v31 = vadd.f32 %v925_v9, %v3072_v46  ;;  %v1539_v62 = vand.u32 2147483648, %v3100_v0 }
 0x1d5   : > { %2217 = vpow2.f32 %v2073_v11  ;;  %v3118_v44 = vadd.f32 %v896_v42, %v3070_v45  ;;  %v946_v14 = vadd.f32 %v945_v13, %v3072_v46  ;;  %v1417_v35 = vand.u32 2147483647, %v3114_v6 }
 0x1d6   : > { %2219 = vrcp.f32 %v3114_v6  ;;  %v2066_v39 = vmul.f32 -1.442695, %v926_v31  ;;  %v1419_v22 = vand.u32 2147483648, %v3114_v6  ;;  %v2050_v18 = vmul.f32 -1.442695, %v3127_v28 }
 0x1d7   : > { %2221 = vrcp.f32 %v3109_v17  ;;  %v2058_v57 = vmul.f32 -1.442695, %v3118_v44  ;;  %v2212_v54 = vpop.eup %2211  ;;  %v2074_v48 = vmul.f32 -1.442695, %v946_v14  ;;  %v1033_v49 = vand.u32 2147483647, %v3109_v17 }
 0x1d8   : > { %2223 = vpow2.f32 %v2065_v21  ;;  %v3146_v47 = vadd.f32 1.0, %v2212_v54  ;;  %vm3150_vm7 = vcmp.eq.f32.partialorder %v1537_v20, 8.507059e+37  ;;  %v1540_v8 = vor.u32 1.1754944e-38, %v1539_v62 }
 0x1d9   : > { %v2214_v29 = vpop.eup %2213  ;;  %2225 = vpow2.f32 %v2049_v15  ;;  %vm1413_vm8 = vweird.f32 %v3114_v6  ;;  %vm3158_vm9 = vcmp.eq.f32.partialorder %v1417_v35, 8.507059e+37  ;;  %v1420_v3 = vor.u32 1.1754944e-38, %v1419_v22 }
 0x1da   : > { %v3130_v32 = vpop.eup %2215  ;;  %v1529_v63 = vmul.f32 %v2214_v29, %v3100_v0  ;;  %2227 = vpow2.f32 %v2058_v57  ;;  %vm1534_vm6 = vweird.f32 %v2214_v29  ;;  %v1035_v54 = vand.u32 2147483648, %v3109_v17 }
 0x1db   : > { %v2218_v23 = vpop.eup %2217  ;;  %2229 = vpow2.f32 %v2074_v48  ;;  %vm1535_vm10 = vmor %vm1533_vm5, %vm1534_vm6  ;;  %v878_v20 = vpop.f32.mrf.mxu0 }
 0x1dc   : > { %v2220_v50 = vpop.eup %2219  ;;  %v1530_v43 = vsub.f32 1.0, %v1529_v63  ;;  %v3140_v34 = vadd.f32 1.0, %v2218_v23  ;;  %2231 = vpow2.f32 %v2066_v39  ;;  %v898_v53 = vpop.f32.mrf.mxu2 }
 0x1dd   : > { %v3143_v25 = vpop.eup %2221  ;;  %v1409_v12 = vmul.f32 %v2220_v50, %v3114_v6  ;;  %vm1414_vm11 = vweird.f32 %v2220_v50  ;;  %v3172_v2 = vadd.f32 %v898_v53, %v3070_v45  ;;  %v947_v33 = vpop.f32.mrf.mxu3  ;;  %v3231_v53 = vadd.f32 %v878_v20, %v3070_v45 }
 0x1de   : > { %v2224_v16 = vpop.eup %2223  ;;  %v1531_v58 = vmul.f32 %v2214_v29, %v1530_v43  ;;  %2233 = vrcp.f32 %v3140_v34  ;;  %v1552_v61 = vand.u32 2147483647, %v3140_v34  ;;  %vm1415_vm12 = vmor %vm1413_vm8, %vm1414_vm11  ;;  %v1554_v21 = vand.u32 2147483648, %v3140_v34  ;;  %v927_v39 = vpop.f32.mrf.mxu1 }
 0x1df   : > { %v2226_v24 = vpop.eup %2225  ;;  %v1410_v55 = vsub.f32 1.0, %v1409_v12  ;;  %v3156_v41 = vadd.f32 1.0, %v2224_v16  ;;  %2235 = vpow2.f32 %v2050_v18  ;;  %v3195_v15 = vmul.f32 %v3143_v25, %v3109_v17 }
 0x1e0   : > { %v2228_v59 = vpop.eup %2227  ;;  %v1532_v4 = vadd.f32 %v2214_v29, %v1531_v58  ;;  %2237 = vrcp.f32 %v3146_v47  ;;  %v3175_v10 = vadd.f32 1.0, %v2226_v24  ;;  %vm1548_vm13 = vweird.f32 %v3140_v34 }
 0x1e1   : > { %v2230_v60 = vpop.eup %2229  ;;  %v1411_v19 = vmul.f32 %v2220_v50, %v1410_v55  ;;  %2239 = vrcp.f32 %v3156_v41  ;;  %v3180_v0 = vadd.f32 1.0, %v2228_v59  ;;  %v1434_v42 = vand.u32 2147483648, %v3156_v41 }
 0x1e2   : > { %v1536_v7 = vsel %vm1535_vm10, %v2214_v29, %v1532_v4  ;;  %v2232_v26 = vpop.eup %2231  ;;  %v3182_v11 = vadd.f32 1.0, %v2230_v60  ;;  %v1432_v57 = vand.u32 2147483647, %v3156_v41  ;;  %vm3209_vm14 = vcmp.eq.f32.partialorder %v1552_v61, 8.507059e+37 }
 0x1e3   : > { %v1541_v30 = vsel %vm3150_vm7, %v1540_v8, %v1536_v7  ;;  %v1412_v37 = vadd.f32 %v2220_v50, %v1411_v19  ;;  %v3191_v13 = vadd.f32 1.0, %v2232_v26  ;;  %v3215_v63 = vmul.f32 -1.442695, %v3172_v2 }
 0x1e4   : > { %v2234_v36 = vpop.eup %2233  ;;  %1769 = vst.msk [vmem:[%s3165_s16 + $0x40] sm:$0xff] %vm402_vm0, %v1541_v30  ;;  %2241 = vrcp.f32 %v3182_v11  ;;  %v1555_v62 = vor.u32 1.1754944e-38, %v1554_v21  ;;  %vm1428_vm15 = vweird.f32 %v3156_v41  ;;  %v1435_v35 = vor.u32 1.1754944e-38, %v1434_v42 }
 0x1e5   : > { %v1416_v38 = vsel %vm1415_vm12, %v2220_v50, %v1412_v37  ;;  %v1544_v9 = vmul.f32 %v2234_v36, %v3140_v34  ;;  %v2236_v6 = vpop.eup %2235  ;;  %2243 = vrcp.f32 %v3175_v10  ;;  %v901_v50 = vpop.f32.mrf.mxu2  ;;  %vm1549_vm1 = vweird.f32 %v2234_v36 }
 0x1e6   : > { %v1421_v14 = vsel %vm3158_vm9, %v1420_v3, %v1416_v38  ;;  %v3205_v29 = vpop.eup %2237  ;;  %2245 = vrcp.f32 %v3180_v0  ;;  %vm3220_vm2 = vcmp.eq.f32.partialorder %v1432_v57, 8.507059e+37  ;;  %v3224_v12 = vadd.f32 1.0, %v2236_v6  ;;  %v950_v1 = vpop.f32.mrf.mxu3  ;;  %vm1550_vm5 = vmor %vm1548_vm13, %vm1549_vm1 }
 0x1e7   : > { %1761 = vst.msk [vmem:[%s3165_s16] sm:$0xff] %vm402_vm0, %v1421_v14  ;;  %v1545_v48 = vsub.f32 1.0, %v1544_v9  ;;  %v2240_v23 = vpop.eup %2239  ;;  %2247 = vrcp.f32 %v3191_v13  ;;  %vm1563_vm3 = vweird.f32 %v3182_v11  ;;  %v1567_v16 = vand.u32 2147483647, %v3182_v11 }
 0x1e8   : > { %v1424_v22 = vmul.f32 %v2240_v23, %v3156_v41  ;;  %v1569_v58 = vand.u32 2147483648, %v3182_v11  ;;  %v948_v5 = vadd.f32 %v947_v33, %v3072_v46  ;;  %vm1030_vm4 = vweird.f32 %v3143_v25 }
 0x1e9   : > { %v1546_v43 = vmul.f32 %v2234_v36, %v1545_v48  ;;  %v928_v59 = vadd.f32 %v927_v39, %v3072_v46  ;;  %v3236_v4 = vadd.f32 %v901_v50, %v3070_v45  ;;  %vm1429_vm6 = vweird.f32 %v2240_v23 }
 0x1ea   : > { %v2242_v24 = vpop.eup %2241  ;;  %v1425_v55 = vsub.f32 1.0, %v1424_v22  ;;  %v2075_v19 = vmul.f32 -1.442695, %v948_v5  ;;  %v2051_v33 = vmul.f32 -1.442695, %v3231_v53  ;;  %vm1029_vm7 = vweird.f32 %v3109_v17  ;;  %vm1430_vm9 = vmor %vm1428_vm15, %vm1429_vm6 }
 0x1eb   : > { %v1547_v8 = vadd.f32 %v2234_v36, %v1546_v43  ;;  %v3238_v3 = vpop.eup %2243  ;;  %v1559_v60 = vmul.f32 %v2242_v24, %v3182_v11  ;;  %vm1564_vm8 = vweird.f32 %v2242_v24  ;;  %v2067_v30 = vmul.f32 -1.442695, %v928_v59  ;;  %vm3285_vm15 = vmor %vm1029_vm7, %vm1030_vm4 }
 0x1ec   : > { %v3246_v7 = vpop.eup %2245  ;;  %v1426_v26 = vmul.f32 %v2240_v23, %v1425_v55  ;;  %2249 = vpow2.f32 %v2075_v19  ;;  %v951_v42 = vadd.f32 %v950_v1, %v3072_v46  ;;  %v1026_v14 = vsub.f32 1.0, %v3195_v15  ;;  %vm1565_vm11 = vmor %vm1563_vm3, %vm1564_vm8 }
 0x1ed   : > { %v1551_v61 = vsel %vm1550_vm5, %v2234_v36, %v1547_v8  ;;  %v2248_v37 = vpop.eup %2247  ;;  %v1560_v21 = vsub.f32 1.0, %v1559_v60  ;;  %2251 = vpow2.f32 %v2051_v33  ;;  %v2060_v36 = vmul.f32 -1.442695, %v3236_v4 }
 0x1ee   : > { %v1556_v34 = vsel %vm3209_vm14, %v1555_v62, %v1551_v61  ;;  %v1427_v38 = vadd.f32 %v2240_v23, %v1426_v26  ;;  %v1439_v9 = vmul.f32 %v2248_v37, %v3191_v13  ;;  %2253 = vpow2.f32 %v2067_v30 }
 0x1ef   : > { %1770 = vst.msk [vmem:[%s3165_s16 + $0x48] sm:$0xff] %vm402_vm0, %v1556_v34  ;;  %v1561_v57 = vmul.f32 %v2242_v24, %v1560_v21  ;;  %v2076_v6 = vmul.f32 -1.442695, %v951_v42  ;;  %vm3261_vm10 = vcmp.eq.f32.partialorder %v1033_v49, 8.507059e+37  ;;  %v1447_v62 = vand.u32 2147483647, %v3191_v13 }
 0x1f0   : > { %v1431_v31 = vsel %vm1430_vm9, %v2240_v23, %v1427_v38  ;;  %v1440_v20 = vsub.f32 1.0, %v1439_v9  ;;  %v1449_v39 = vand.u32 2147483648, %v3191_v13  ;;  %v1027_v43 = vmul.f32 %v3143_v25, %v1026_v14  ;;  %v930_v23 = vpop.f32.mrf.mxu1 }
 0x1f1   : > { %v1436_v41 = vsel %vm3220_vm2, %v1435_v35, %v1431_v31  ;;  %v1562_v50 = vadd.f32 %v2242_v24, %v1561_v57  ;;  %2255 = vpow2.f32 %v2076_v6  ;;  %vm1568_vm12 = vcmp.eq.f32.partialorder %v1567_v16, 8.507059e+37 }
 0x1f2   : > { %1762 = vst.msk [vmem:[%s3165_s16 + $0x8] sm:$0xff] %vm402_vm0, %v1436_v41  ;;  %v1570_v49 = vor.u32 1.1754944e-38, %v1569_v58  ;;  %v1441_v15 = vmul.f32 %v2248_v37, %v1440_v20  ;;  %vm1444_vm13 = vweird.f32 %v2248_v37  ;;  %v2250_v22 = vpop.eup %2249  ;;  %2257 = vpow2.f32 %v2060_v36  ;;  %v881_v58 = vpop.f32.mrf.mxu0 }
 0x1f3   : > { %v1566_v5 = vsel %vm1565_vm11, %v2242_v24, %v1562_v50  ;;  %v1028_v35 = vadd.f32 %v3143_v25, %v1027_v43  ;;  %v1160_v18 = vmul.f32 %v3205_v29, %v3146_v47  ;;  %v2252_v8 = vpop.eup %2251  ;;  %vm1443_vm14 = vweird.f32 %v3191_v13 }
 0x1f4   : > { %v1571_v55 = vsel %vm1568_vm12, %v1570_v49, %v1566_v5  ;;  %v1442_v59 = vadd.f32 %v2248_v37, %v1441_v15  ;;  %v3279_v11 = vadd.f32 1.0, %v2250_v22  ;;  %v2254_v24 = vpop.eup %2253  ;;  %2259 = vrcp.f32 %v3224_v12  ;;  %vm1445_vm1 = vmor %vm1443_vm14, %vm1444_vm13  ;;  %v903_v15 = vpop.f32.mrf.mxu2 }
 0x1f5   : > { %1771 = vst.msk [vmem:[%s3165_s16 + $0x50] sm:$0xff] %vm402_vm0, %v1571_v55  ;;  %v1450_v13 = vor.u32 1.1754944e-38, %v1449_v39  ;;  %v1032_v1 = vsel %vm3285_vm15, %v3143_v25, %v1028_v35  ;;  %v931_v60 = vadd.f32 %v930_v23, %v3072_v46  ;;  %vm1448_vm2 = vcmp.eq.f32.partialorder %v1447_v62, 8.507059e+37  ;;  %v952_v62 = vpop.f32.mrf.mxu3 }
 0x1f6   : > { %v1446_v19 = vsel %vm1445_vm1, %v2248_v37, %v1442_v59  ;;  %2261 = vrcp.f32 %v3279_v11  ;;  %v1036_v33 = vor.u32 1.1754944e-38, %v1035_v54  ;;  %v3300_v30 = vadd.f32 1.0, %v2254_v24 }
 0x1f7   : > { %v2256_v61 = vpop.eup %2255  ;;  %v1451_v26 = vsel %vm1448_vm2, %v1450_v13, %v1446_v19  ;;  %v3303_v34 = vadd.f32 %v881_v58, %v3070_v45  ;;  %v1161_v21 = vsub.f32 1.0, %v1160_v18  ;;  %v1584_v25 = vand.u32 2147483648, %v3279_v11 }
 0x1f8   : > { %1763 = vst.msk [vmem:[%s3165_s16 + $0x10] sm:$0xff] %vm402_vm0, %v1451_v26  ;;  %v3308_v42 = vadd.f32 1.0, %v2252_v8  ;;  %v3310_v37 = vadd.f32 1.0, %v2256_v61  ;;  %v1037_v17 = vsel %vm3261_vm10, %v1036_v33, %v1032_v1  ;;  %v2258_v54 = vpop.eup %2257  ;;  %v1582_v38 = vand.u32 2147483647, %v3279_v11 }
 0x1f9   : > { %2263 = vrcp.f32 %v3300_v30  ;;  %1280 = vrot.lane.b32.xlu2 %v1037_v17, %s2432_s12  ;;  %v2068_v9 = vmul.f32 -1.442695, %v931_v60  ;;  %vm1578_vm3 = vweird.f32 %v3279_v11  ;;  %v2052_v57 = vmul.f32 -1.442695, %v3303_v34 }
 0x1fa   : > { %2265 = vpow2.f32 %v3215_v63  ;;  %v3318_v36 = vpop.eup %2259  ;;  %v1162_v6 = vmul.f32 %v3205_v29, %v1161_v21  ;;  %v1585_v48 = vor.u32 1.1754944e-38, %v1584_v25  ;;  %v1462_v31 = vand.u32 2147483647, %v3300_v30 }
 0x1fb   : > { %2267 = vrcp.f32 %v3310_v37  ;;  %v3326_v20 = vadd.f32 1.0, %v2258_v54  ;;  %vm3329_vm4 = vcmp.eq.f32.partialorder %v1582_v38, 8.507059e+37  ;;  %v1464_v41 = vand.u32 2147483648, %v3300_v30 }
 0x1fc   : > { %v2262_v14 = vpop.eup %2261  ;;  %2269 = vrcp.f32 %v3308_v42  ;;  %vm1164_vm5 = vweird.f32 %v3146_v47  ;;  %vm1458_vm6 = vweird.f32 %v3300_v30  ;;  %v1163_v50 = vadd.f32 %v3205_v29, %v1162_v6 }
 0x1fd   : > { %v1574_v63 = vmul.f32 %v2262_v14, %v3279_v11  ;;  %2271 = vpow2.f32 %v2068_v9  ;;  %vm1165_vm7 = vweird.f32 %v3205_v29  ;;  %v1168_v43 = vand.u32 2147483647, %v3146_v47 }
 0x1fe   : > { %v1170_v49 = vand.u32 2147483648, %v3146_v47  ;;  %v1597_v5 = vand.u32 2147483647, %v3310_v37  ;;  %vm3341_vm8 = vmor %vm1164_vm5, %vm1165_vm7  ;;  %v953_v18 = vadd.f32 %v952_v62, %v3072_v46  ;;  %v1040_v8 = vmul.f32 %v3238_v3, %v3175_v10 }
 0x1ff   : > { %v2264_v23 = vpop.eup %2263  ;;  %v1575_v22 = vsub.f32 1.0, %v1574_v63  ;;  %vm1579_vm9 = vweird.f32 %v2262_v14  ;;  %vm1593_vm10 = vweird.f32 %v3310_v37  ;;  %v1599_v47 = vand.u32 2147483648, %v3310_v37 }
 0x200   : > { %v2266_v55 = vpop.eup %2265  ;;  %v1454_v59 = vmul.f32 %v2264_v23, %v3300_v30  ;;  %v1167_v16 = vsel %vm3341_vm8, %v3205_v29, %v1163_v50  ;;  %v1171_v13 = vor.u32 1.1754944e-38, %v1170_v49  ;;  %v3355_v1 = vadd.f32 %v903_v15, %v3070_v45  ;;  %vm1580_vm13 = vmor %vm1578_vm3, %vm1579_vm9 }
 0x201   : > { %v2268_v58 = vpop.eup %2267  ;;  %v1576_v24 = vmul.f32 %v2262_v14, %v1575_v22  ;;  %v2077_v60 = vmul.f32 -1.442695, %v953_v18  ;;  %vm1169_vm11 = vcmp.eq.f32.partialorder %v1168_v43, 8.507059e+37  ;;  %v1041_v26 = vsub.f32 1.0, %v1040_v8 }
 0x202   : > { %v3357_v19 = vpop.eup %2269  ;;  %v1455_v33 = vsub.f32 1.0, %v1454_v59  ;;  %v1589_v61 = vmul.f32 %v2268_v58, %v3310_v37  ;;  %vm1459_vm12 = vweird.f32 %v2264_v23  ;;  %2273 = vpow2.f32 %v2052_v57 }
 0x203   : > { %v2272_v21 = vpop.eup %2271  ;;  %v1577_v25 = vadd.f32 %v2262_v14, %v1576_v24  ;;  %v1172_v29 = vsel %vm1169_vm11, %v1171_v13, %v1167_v16  ;;  %2275 = vpow2.f32 %v2077_v60  ;;  %vm1594_vm14 = vweird.f32 %v2268_v58  ;;  %vm1460_vm15 = vmor %vm1458_vm6, %vm1459_vm12  ;;  %v883_v13 = vpop.f32.mrf.mxu0 }
 0x204   : > { %v1456_v17 = vmul.f32 %v2264_v23, %v1455_v33  ;;  %v1590_v54 = vsub.f32 1.0, %v1589_v61  ;;  %v3363_v38 = vadd.f32 1.0, %v2272_v21  ;;  %1298 = vrot.lane.b32.xlu1 %v1172_v29, %s2432_s12  ;;  %v2061_v6 = vmul.f32 -1.442695, %v3355_v1  ;;  %v906_v21 = vpop.f32.mrf.mxu2 }
 0x205   : > { %v1581_v9 = vsel %vm1580_vm13, %v2262_v14, %v1577_v25  ;;  %v1042_v62 = vmul.f32 %v3238_v3, %v1041_v26  ;;  %vm1463_vm1 = vcmp.eq.f32.partialorder %v1462_v31, 8.507059e+37  ;;  %v1465_v11 = vor.u32 1.1754944e-38, %v1464_v41 }
 0x206   : > { %v1586_v57 = vsel %vm3329_vm4, %v1585_v48, %v1581_v9  ;;  %v1457_v63 = vadd.f32 %v2264_v23, %v1456_v17  ;;  %v1591_v50 = vmul.f32 %v2268_v58, %v1590_v54  ;;  %2277 = vrcp.f32 %v3363_v38  ;;  %vm1595_vm4 = vmor %vm1593_vm10, %vm1594_vm14  ;;  %v955_v54 = vpop.f32.mrf.mxu3 }
 0x207   : > { %1772 = vst.msk [vmem:[%s3165_s16 + $0x58] sm:$0xff] %vm402_vm0, %v1586_v57  ;;  %vm3376_vm2 = vcmp.eq.f32.partialorder %v1597_v5, 8.507059e+37  ;;  %v1043_v39 = vadd.f32 %v3238_v3, %v1042_v62  ;;  %v1600_v49 = vor.u32 1.1754944e-38, %v1599_v47  ;;  %vm1045_vm3 = vweird.f32 %v3238_v3 }
 0x208   : > { %v1461_v48 = vsel %vm1460_vm15, %v2264_v23, %v1457_v63  ;;  %v1592_v43 = vadd.f32 %v2268_v58, %v1591_v50  ;;  %v2274_v15 = vpop.eup %2273  ;;  %vm1044_vm5 = vweird.f32 %v3175_v10  ;;  %v1048_v30 = vand.u32 2147483647, %v3175_v10 }
 0x209   : > { %v1466_v22 = vsel %vm1463_vm1, %v1465_v11, %v1461_v48  ;;  %v1050_v31 = vand.u32 2147483648, %v3175_v10  ;;  %v2276_v41 = vpop.eup %2275  ;;  %v1477_v5 = vand.u32 2147483647, %v3363_v38  ;;  %v1479_v35 = vand.u32 2147483648, %v3363_v38  ;;  %vm3392_vm6 = vmor %vm1044_vm5, %vm1045_vm3 }
 0x20a   : > { %1764 = vst.msk [vmem:[%s3165_s16 + $0x18] sm:$0xff] %vm402_vm0, %v1466_v22  ;;  %v1596_v23 = vsel %vm1595_vm4, %v2268_v58, %v1592_v43  ;;  %2279 = vpow2.f32 %v2061_v6  ;;  %v3398_v8 = vadd.f32 1.0, %v2276_v41  ;;  %v1047_v10 = vsel %vm3392_vm6, %v3238_v3, %v1043_v39  ;;  %v932_v3 = vpop.f32.mrf.mxu1 }
 0x20b   : > { %v1601_v37 = vsel %vm3376_vm2, %v1600_v49, %v1596_v23  ;;  %v1145_v59 = vmul.f32 %v3130_v32, %v3097_v52  ;;  %v3405_v16 = vadd.f32 1.0, %v2266_v55  ;;  %2281 = vrcp.f32 %v3326_v20 }
 0x20c   : > { %v2278_v47 = vpop.eup %2277  ;;  %1773 = vst.msk [vmem:[%s3165_s16 + $0x60] sm:$0xff] %vm402_vm0, %v1601_v37  ;;  %v3410_v58 = vadd.f32 1.0, %v2274_v15  ;;  %v1051_v24 = vor.u32 1.1754944e-38, %v1050_v31  ;;  %vm1473_vm7 = vweird.f32 %v3363_v38  ;;  %2283 = vrcp.f32 %v3398_v8 }
 0x20d   : > { %v1469_v60 = vmul.f32 %v2278_v47, %v3363_v38  ;;  %vm1049_vm8 = vcmp.eq.f32.partialorder %v1048_v30, 8.507059e+37  ;;  %vm3415_vm9 = vcmp.eq.f32.partialorder %v1477_v5, 8.507059e+37  ;;  %v1480_v55 = vor.u32 1.1754944e-38, %v1479_v35 }
 0x20e   : > { %v1052_v61 = vsel %vm1049_vm8, %v1051_v24, %v1047_v10  ;;  %v1146_v26 = vsub.f32 1.0, %v1145_v59  ;;  %vm1149_vm10 = vweird.f32 %v3097_v52  ;;  %v1155_v29 = vand.u32 2147483648, %v3097_v52 }
 0x20f   : > { %v1470_v25 = vsub.f32 1.0, %v1469_v60  ;;  %1282 = vrot.lane.b32.xlu0 %v1052_v61, %s2432_s12  ;;  %v3423_v17 = vadd.f32 %v883_v13, %v3070_v45  ;;  %vm1150_vm11 = vweird.f32 %v3130_v32  ;;  %v1153_v62 = vand.u32 2147483647, %v3097_v52 }
 0x210   : > { %v2280_v9 = vpop.eup %2279  ;;  %v1147_v6 = vmul.f32 %v3130_v32, %v1146_v26  ;;  %v933_v57 = vadd.f32 %v932_v3, %v3072_v46  ;;  %vm1474_vm12 = vweird.f32 %v2278_v47  ;;  %v3431_v11 = vadd.f32 %v906_v21, %v3070_v45  ;;  %vm1151_vm13 = vmor %vm1149_vm10, %vm1150_vm11 }
 0x211   : > { %v1471_v63 = vmul.f32 %v2278_v47, %v1470_v25  ;;  %v2053_v50 = vmul.f32 -1.442695, %v3423_v17  ;;  %v3433_v14 = vpop.eup %2281  ;;  %v956_v43 = vadd.f32 %v955_v54, %v3072_v46  ;;  %v1175_v49 = vmul.f32 %v3246_v7, %v3180_v0  ;;  %vm1475_vm14 = vmor %vm1473_vm7, %vm1474_vm12 }
 0x212   : > { %v1148_v39 = vadd.f32 %v3130_v32, %v1147_v6  ;;  %v2069_v48 = vmul.f32 -1.442695, %v933_v57  ;;  %v2284_v15 = vpop.eup %2283  ;;  %v3439_v30 = vadd.f32 1.0, %v2280_v9  ;;  %v1156_v31 = vor.u32 1.1754944e-38, %v1155_v29 }
 0x213   : > { %v1472_v22 = vadd.f32 %v2278_v47, %v1471_v63  ;;  %2285 = vpow2.f32 %v2053_v50  ;;  %v1604_v41 = vmul.f32 %v2284_v15, %v3398_v8  ;;  %vm1154_vm15 = vcmp.eq.f32.partialorder %v1153_v62, 8.507059e+37 }
 0x214   : > { %v1152_v23 = vsel %vm1151_vm13, %v3130_v32, %v1148_v39  ;;  %2287 = vpow2.f32 %v2069_v48  ;;  %v2062_v18 = vmul.f32 -1.442695, %v3431_v11  ;;  %v2078_v37 = vmul.f32 -1.442695, %v956_v43 }
 0x215   : > { %v1476_v5 = vsel %vm1475_vm14, %v2278_v47, %v1472_v22  ;;  %v1157_v35 = vsel %vm1154_vm15, %v1156_v31, %v1152_v23  ;;  %v1605_v10 = vsub.f32 1.0, %v1604_v41  ;;  %v1612_v59 = vand.u32 2147483647, %v3398_v8 }
 0x216   : > { %v1481_v52 = vsel %vm3415_vm9, %v1480_v55, %v1476_v5  ;;  %1296 = vrot.lane.b32.xlu2 %v1157_v35, %s2432_s12  ;;  %v1176_v38 = vsub.f32 1.0, %v1175_v49  ;;  %vm1609_vm1 = vweird.f32 %v2284_v15  ;;  %v1614_v32 = vand.u32 2147483648, %v3398_v8 }
 0x217   : > { %1765 = vst.msk [vmem:[%s3165_s16 + $0x20] sm:$0xff] %vm402_vm0, %v1481_v52  ;;  %2289 = vpow2.f32 %v2078_v37  ;;  %v1055_v47 = vmul.f32 %v3318_v36, %v3224_v12  ;;  %v1606_v24 = vmul.f32 %v2284_v15, %v1605_v10  ;;  %vm1180_vm2 = vweird.f32 %v3246_v7 }
 0x218   : > { %v1177_v13 = vmul.f32 %v3246_v7, %v1176_v38  ;;  %v1185_v60 = vand.u32 2147483648, %v3180_v0  ;;  %vm1608_vm3 = vweird.f32 %v3398_v8  ;;  %2291 = vpow2.f32 %v2062_v18 }
 0x219   : > { %v2286_v3 = vpop.eup %2285  ;;  %v1183_v33 = vand.u32 2147483647, %v3180_v0  ;;  %v1056_v55 = vsub.f32 1.0, %v1055_v47  ;;  %v1607_v26 = vadd.f32 %v2284_v15, %v1606_v24  ;;  %vm1610_vm4 = vmor %vm1608_vm3, %vm1609_vm1  ;;  %vm1613_vm5 = vcmp.eq.f32.partialorder %v1612_v59, 8.507059e+37 }
 0x21a   : > { %v2288_v61 = vpop.eup %2287  ;;  %v1178_v21 = vadd.f32 %v3246_v7, %v1177_v13  ;;  %vm1179_vm6 = vweird.f32 %v3180_v0  ;;  %v1615_v25 = vor.u32 1.1754944e-38, %v1614_v32  ;;  %vm1060_vm8 = vweird.f32 %v3318_v36 }
 0x21b   : > { %v3467_v29 = vadd.f32 1.0, %v2288_v61  ;;  %vm3471_vm7 = vmor %vm1179_vm6, %vm1180_vm2  ;;  %v1057_v54 = vmul.f32 %v3318_v36, %v1056_v55  ;;  %v1611_v9 = vsel %vm1610_vm4, %v2284_v15, %v1607_v26  ;;  %v1186_v0 = vor.u32 1.1754944e-38, %v1185_v60 }
 0x21c   : > { %v1182_v6 = vsel %vm3471_vm7, %v3246_v7, %v1178_v21  ;;  %v1065_v62 = vand.u32 2147483648, %v3224_v12  ;;  %v1616_v63 = vsel %vm1613_vm5, %v1615_v25, %v1611_v9  ;;  %vm1184_vm9 = vcmp.eq.f32.partialorder %v1183_v33, 8.507059e+37  ;;  %v957_v7 = vpop.f32.mrf.mxu3 }
 0x21d   : > { %v2290_v57 = vpop.eup %2289  ;;  %2293 = vrcp.f32 %v3467_v29  ;;  %v1063_v50 = vand.u32 2147483647, %v3224_v12  ;;  %1774 = vst.msk [vmem:[%s3165_s16 + $0x68] sm:$0xff] %vm402_vm0, %v1616_v63  ;;  %v3486_v39 = vadd.f32 1.0, %v2286_v3  ;;  %v1187_v43 = vsel %vm1184_vm9, %v1186_v0, %v1182_v6 }
 0x21e   : > { %2295 = vrcp.f32 %v3405_v16  ;;  %v3488_v48 = vadd.f32 1.0, %v2290_v57  ;;  %v2292_v49 = vpop.eup %2291  ;;  %1300 = vrot.lane.b32.xlu0 %v1187_v43, %s2432_s12  ;;  %v1058_v15 = vadd.f32 %v3318_v36, %v1057_v54  ;;  %vm1059_vm10 = vweird.f32 %v3224_v12 }
 0x21f   : > { %2297 = vrcp.f32 %v3410_v58  ;;  %v1492_v22 = vand.u32 2147483647, %v3467_v29  ;;  %v1494_v31 = vand.u32 2147483648, %v3467_v29  ;;  %vm1061_vm11 = vmor %vm1059_vm10, %vm1060_vm8  ;;  %v1066_v41 = vor.u32 1.1754944e-38, %v1065_v62 }
 0x220   : > { %2299 = vrcp.f32 %v3488_v48  ;;  %v1062_v23 = vsel %vm1061_vm11, %v3318_v36, %v1058_v15  ;;  %vm1064_vm12 = vcmp.eq.f32.partialorder %v1063_v50, 8.507059e+37  ;;  %v958_v5 = vadd.f32 %v957_v7, %v3072_v46 }
 0x221   : > { %2301 = vrcp.f32 %v3439_v30  ;;  %v3503_v12 = vadd.f32 1.0, %v2292_v49  ;;  %v1067_v35 = vsel %vm1064_vm12, %v1066_v41, %v1062_v23  ;;  %v1070_v18 = vmul.f32 %v3357_v19, %v3308_v42 }
 0x222   : > { %2303 = vrcp.f32 %v3486_v39  ;;  %vm1488_vm13 = vweird.f32 %v3467_v29  ;;  %v1627_v52 = vand.u32 2147483647, %v3488_v48  ;;  %1284 = vrot.lane.b32.xlu1 %v1067_v35, %s2432_s12  ;;  %v2079_v10 = vmul.f32 -1.442695, %v958_v5 }
 0x223   : > { %v2294_v37 = vpop.eup %2293  ;;  %v1078_v36 = vand.u32 2147483647, %v3308_v42  ;;  %vm3514_vm14 = vcmp.eq.f32.partialorder %v1492_v22, 8.507059e+37  ;;  %v1495_v47 = vor.u32 1.1754944e-38, %v1494_v31  ;;  %v1071_v24 = vsub.f32 1.0, %v1070_v18 }
 0x224   : > { %v3511_v59 = vpop.eup %2295  ;;  %v1484_v38 = vmul.f32 %v2294_v37, %v3467_v29  ;;  %v1080_v13 = vand.u32 2147483648, %v3308_v42  ;;  %vm1623_vm15 = vweird.f32 %v3488_v48  ;;  %v1629_v3 = vand.u32 2147483648, %v3488_v48 }
 0x225   : > { %v3519_v60 = vpop.eup %2297  ;;  %2305 = vpow2.f32 %v2079_v10  ;;  %vm1074_vm1 = vweird.f32 %v3308_v42  ;;  %v1205_v33 = vmul.f32 %v3433_v14, %v3326_v20  ;;  %vm1489_vm2 = vweird.f32 %v2294_v37 }
 0x226   : > { %v2300_v55 = vpop.eup %2299  ;;  %v1485_v61 = vsub.f32 1.0, %v1484_v38  ;;  %v1072_v26 = vmul.f32 %v3357_v19, %v1071_v24  ;;  %vm1075_vm3 = vweird.f32 %v3357_v19  ;;  %vm3531_vm4 = vcmp.eq.f32.partialorder %v1627_v52, 8.507059e+37  ;;  %vm1490_vm10 = vmor %vm1488_vm13, %vm1489_vm2 }
 0x227   : > { %v3528_v21 = vpop.eup %2301  ;;  %v1619_v25 = vmul.f32 %v2300_v55, %v3488_v48  ;;  %vm3535_vm5 = vcmp.eq.f32.partialorder %v1078_v36, 8.507059e+37  ;;  %v1206_v9 = vsub.f32 1.0, %v1205_v33  ;;  %vm1209_vm6 = vweird.f32 %v3326_v20  ;;  %vm1076_vm7 = vmor %vm1074_vm1, %vm1075_vm3 }
 0x228   : > { %v3540_v6 = vpop.eup %2303  ;;  %v1486_v0 = vmul.f32 %v2294_v37, %v1485_v61  ;;  %v1073_v62 = vadd.f32 %v3357_v19, %v1072_v26  ;;  %v1081_v57 = vor.u32 1.1754944e-38, %v1080_v13  ;;  %v1215_v63 = vand.u32 2147483648, %v3326_v20 }
 0x229   : > { %v1620_v50 = vsub.f32 1.0, %v1619_v25  ;;  %v1207_v43 = vmul.f32 %v3433_v14, %v1206_v9  ;;  %vm1210_vm8 = vweird.f32 %v3433_v14  ;;  %v1085_v7 = vmul.f32 %v3519_v60, %v3410_v58 }
 0x22a   : > { %v1487_v49 = vadd.f32 %v2294_v37, %v1486_v0  ;;  %vm1624_vm9 = vweird.f32 %v2300_v55  ;;  %v1077_v15 = vsel %vm1076_vm7, %v3357_v19, %v1073_v62  ;;  %v1213_v22 = vand.u32 2147483647, %v3326_v20  ;;  %vm1211_vm11 = vmor %vm1209_vm6, %vm1210_vm8 }
 0x22b   : > { %v2306_v31 = vpop.eup %2305  ;;  %v1621_v42 = vmul.f32 %v2300_v55, %v1620_v50  ;;  %v1082_v41 = vsel %vm3535_vm5, %v1081_v57, %v1077_v15  ;;  %v1208_v23 = vadd.f32 %v3433_v14, %v1207_v43  ;;  %v1086_v5 = vsub.f32 1.0, %v1085_v7  ;;  %vm1625_vm13 = vmor %vm1623_vm15, %vm1624_vm9 }
 0x22c   : > { %v1491_v35 = vsel %vm1490_vm10, %v2294_v37, %v1487_v49  ;;  %v3558_v18 = vadd.f32 1.0, %v2306_v31  ;;  %1286 = vrot.lane.b32.xlu2 %v1082_v41, %s2432_s12  ;;  %v1216_v19 = vor.u32 1.1754944e-38, %v1215_v63  ;;  %vm1090_vm12 = vweird.f32 %v3519_v60 }
 0x22d   : > { %v1496_v29 = vsel %vm3514_vm14, %v1495_v47, %v1491_v35  ;;  %v1622_v52 = vadd.f32 %v2300_v55, %v1621_v42  ;;  %v1212_v10 = vsel %vm1211_vm11, %v3433_v14, %v1208_v23  ;;  %v1087_v37 = vmul.f32 %v3519_v60, %v1086_v5 }
 0x22e   : > { %1766 = vst.msk [vmem:[%s3165_s16 + $0x28] sm:$0xff] %vm402_vm0, %v1496_v29  ;;  %v1630_v20 = vor.u32 1.1754944e-38, %v1629_v3  ;;  %2307 = vrcp.f32 %v3558_v18  ;;  %vm1214_vm1 = vcmp.eq.f32.partialorder %v1213_v22, 8.507059e+37  ;;  %vm1089_vm2 = vweird.f32 %v3410_v58 }
 0x22f   : > { %v1626_v36 = vsel %vm1625_vm13, %v2300_v55, %v1622_v52  ;;  %v1217_v38 = vsel %vm1214_vm1, %v1216_v19, %v1212_v10  ;;  %v1088_v32 = vadd.f32 %v3519_v60, %v1087_v37  ;;  %v1093_v14 = vand.u32 2147483647, %v3410_v58  ;;  %vm1091_vm14 = vmor %vm1089_vm2, %vm1090_vm12 }
 0x230   : > { %2309 = vrcp.f32 %v3503_v12  ;;  %v1631_v47 = vsel %vm3531_vm4, %v1630_v20, %v1626_v36  ;;  %1304 = vrot.lane.b32.xlu1 %v1217_v38, %s2432_s12  ;;  %v1095_v48 = vand.u32 2147483648, %v3410_v58  ;;  %v1190_v13 = vmul.f32 %v3511_v59, %v3405_v16 }
 0x231   : > { %1775 = vst.msk [vmem:[%s3165_s16 + $0x70] sm:$0xff] %vm402_vm0, %v1631_v47  ;;  %v1092_v24 = vsel %vm1091_vm14, %v3519_v60, %v1088_v32  ;;  %v1198_v33 = vand.u32 2147483647, %v3405_v16  ;;  %vm1094_vm15 = vcmp.eq.f32.partialorder %v1093_v14, 8.507059e+37  ;;  %v1200_v61 = vand.u32 2147483648, %v3405_v16 }
 0x232   : > { %v1096_v3 = vor.u32 1.1754944e-38, %v1095_v48  ;;  %v1191_v55 = vsub.f32 1.0, %v1190_v13  ;;  %v1100_v26 = vmul.f32 %v3540_v6, %v3486_v39  ;;  %v1642_v58 = vand.u32 2147483647, %v3558_v18 }
 0x233   : > { %v1644_v8 = vand.u32 2147483648, %v3558_v18  ;;  %vm1194_vm3 = vweird.f32 %v3405_v16  ;;  %vm1195_vm4 = vweird.f32 %v3511_v59  ;;  %vm3602_vm5 = vcmp.eq.f32.partialorder %v1198_v33, 8.507059e+37 }
 0x234   : > { %v2308_v25 = vpop.eup %2307  ;;  %v1097_v54 = vsel %vm1094_vm15, %v1096_v3, %v1092_v24  ;;  %v1192_v9 = vmul.f32 %v3511_v59, %v1191_v55  ;;  %v1101_v0 = vsub.f32 1.0, %v1100_v26  ;;  %vm1104_vm6 = vweird.f32 %v3486_v39  ;;  %vm1196_vm9 = vmor %vm1194_vm3, %vm1195_vm4 }
 0x235   : > { %v1634_v60 = vmul.f32 %v2308_v25, %v3558_v18  ;;  %1288 = vrot.lane.b32.xlu0 %v1097_v54, %s2432_s12  ;;  %vm1105_vm7 = vweird.f32 %v3540_v6  ;;  %v1220_v63 = vmul.f32 %v3528_v21, %v3439_v30  ;;  %v1201_v7 = vor.u32 1.1754944e-38, %v1200_v61  ;;  %v908_v54 = vpop.f32.mrf.mxu2 }
 0x236   : > { %v2310_v62 = vpop.eup %2309  ;;  %v1193_v43 = vadd.f32 %v3511_v59, %v1192_v9  ;;  %v1102_v49 = vmul.f32 %v3540_v6, %v1101_v0  ;;  %vm1639_vm8 = vweird.f32 %v2308_v25  ;;  %v1110_v15 = vand.u32 2147483648, %v3486_v39  ;;  %vm3630_vm12 = vmor %vm1104_vm6, %vm1105_vm7 }
 0x237   : > { %v1635_v50 = vsub.f32 1.0, %v1634_v60  ;;  %v1221_v22 = vsub.f32 1.0, %v1220_v63  ;;  %v1230_v31 = vand.u32 2147483648, %v3439_v30  ;;  %v1235_v5 = vmul.f32 %v2310_v62, %v3503_v12 }
 0x238   : > { %v1197_v41 = vsel %vm1196_vm9, %v3511_v59, %v1193_v43  ;;  %v1103_v23 = vadd.f32 %v3540_v6, %v1102_v49  ;;  %vm1225_vm10 = vweird.f32 %v3528_v21  ;;  %v1228_v16 = vand.u32 2147483647, %v3439_v30 }
 0x239   : > { %v1636_v42 = vmul.f32 %v2308_v25, %v1635_v50  ;;  %v1202_v35 = vsel %vm3602_vm5, %v1201_v7, %v1197_v41  ;;  %v1222_v19 = vmul.f32 %v3528_v21, %v1221_v22  ;;  %vm1638_vm11 = vweird.f32 %v3558_v18 }
 0x23a   : > { %1302 = vrot.lane.b32.xlu2 %v1202_v35, %s2432_s12  ;;  %v1108_v52 = vand.u32 2147483647, %v3486_v39  ;;  %v1236_v10 = vsub.f32 1.0, %v1235_v5  ;;  %vm1640_vm13 = vmor %vm1638_vm11, %vm1639_vm8  ;;  %v1645_v37 = vor.u32 1.1754944e-38, %v1644_v8  ;;  %vm1224_vm1 = vweird.f32 %v3439_v30 }
 0x23b   : > { %v1637_v29 = vadd.f32 %v2308_v25, %v1636_v42  ;;  %v1223_v20 = vadd.f32 %v3528_v21, %v1222_v19  ;;  %vm1643_vm2 = vcmp.eq.f32.partialorder %v1642_v58, 8.507059e+37  ;;  %v1107_v36 = vsel %vm3630_vm12, %v3540_v6, %v1103_v23  ;;  %vm1226_vm14 = vmor %vm1224_vm1, %vm1225_vm10 }
 0x23c   : > { %v1231_v38 = vor.u32 1.1754944e-38, %v1230_v31  ;;  %v1111_v39 = vor.u32 1.1754944e-38, %v1110_v15  ;;  %vm1229_vm15 = vcmp.eq.f32.partialorder %v1228_v16, 8.507059e+37  ;;  %vm1109_vm3 = vcmp.eq.f32.partialorder %v1108_v52, 8.507059e+37 }
 0x23d   : > { %v1641_v18 = vsel %vm1640_vm13, %v2308_v25, %v1637_v29  ;;  %v1227_v14 = vsel %vm1226_vm14, %v3528_v21, %v1223_v20  ;;  %v1237_v30 = vmul.f32 %v2310_v62, %v1236_v10  ;;  %vm1240_vm4 = vweird.f32 %v2310_v62 }
 0x23e   : > { %v1646_v32 = vsel %vm1643_vm2, %v1645_v37, %v1641_v18  ;;  %v1232_v47 = vsel %vm1229_vm15, %v1231_v38, %v1227_v14  ;;  %v1112_v48 = vsel %vm1109_vm3, %v1111_v39, %v1107_v36  ;;  %v1245_v24 = vand.u32 2147483648, %v3503_v12 }
 0x23f   : > { %1776 = vst.msk [vmem:[%s3165_s16 + $0x78] sm:$0xff] %vm402_vm0, %v1646_v32  ;;  %1306 = vrot.lane.b32.xlu0 %v1232_v47, %s2432_s12  ;;  %v1238_v6 = vadd.f32 %v2310_v62, %v1237_v30  ;;  %vm1239_vm5 = vweird.f32 %v3503_v12  ;;  %v1243_v21 = vand.u32 2147483647, %v3503_v12  ;;  %vm1664_vm8 = vcmask 257024  }
 0x240   : > { %vm1241_vm6 = vmor %vm1239_vm5, %vm1240_vm4  ;;  %v1246_v3 = vor.u32 1.1754944e-38, %v1245_v24 }
 0x241   : > { %v1242_v13 = vsel %vm1241_vm6, %v2310_v62, %v1238_v6  ;;  %vm1244_vm7 = vcmp.eq.f32.partialorder %v1243_v21, 8.507059e+37  ;;  %v3669_v62 = vadd.f32 %v908_v54, %v3070_v45 }
 0x242   : > { %1290 = vrot.lane.b32.xlu2 %v1112_v48, %s2432_s12  ;;  %v1247_v33 = vsel %vm1244_vm7, %v1246_v3, %v1242_v13 }
 0x243   : > { %v2063_v50 = vmul.f32 -1.442695, %v3669_v62 }
 0x246   : > { %v935_v12 = vpop.f32.mrf.mxu1  ;;  %v886_v60 = vpop.f32.mrf.mxu0 }
 0x247   : > { %v936_v25 = vadd.f32 %v935_v12, %v3072_v46  ;;  %v3672_v63 = vadd.f32 %v886_v60, %v3070_v45 }
 0x249   : > { %v2070_v58 = vmul.f32 -1.442695, %v936_v25  ;;  %v2054_v43 = vmul.f32 -1.442695, %v3672_v63 }
 0x24a   : > { %1308 = vrot.lane.b32.xlu2 %v1247_v33, %s2432_s12 }
 0x24b   : > { %2311 = vpow2.f32 %v2070_v58 }
 0x24e   : > { %v937_v8 = vpop.f32.mrf.mxu1  ;;  %v888_v7 = vpop.f32.mrf.mxu0 }
 0x24f   : > { %v3677_v22 = vadd.f32 %v888_v7, %v3070_v45 }
 0x251   : > { %v2312_v9 = vpop.eup %2311  ;;  %v2055_v16 = vmul.f32 -1.442695, %v3677_v22 }
 0x252   : > { %v1398_v57 = vadd.f32 1.0, %v2312_v9 }
 0x253   : > { %v1281_v55 = vpop.permute.xlu2 %1280 }
 0x254   : > { %v1328_v61 = vmul.f32 %v1281_v55, %v3083_v40  ;;  %v938_v40 = vadd.f32 %v937_v8, %v3072_v46  ;;  %2313 = vrcp.f32 %v1398_v57  ;;  %v1509_v41 = vand.u32 2147483648, %v1398_v57 }
 0x255   : > { %v1507_v5 = vand.u32 2147483647, %v1398_v57  ;;  %vm1503_vm10 = vweird.f32 %v1398_v57 }
 0x256   : > { %v3661_v26 = vpack.c.bf16 %v1328_v61, %v1328_v61  ;;  %v2071_v0 = vmul.f32 -1.442695, %v938_v40  ;;  %v1510_v45 = vor.u32 1.1754944e-38, %v1509_v41 }
 0x257   : > { %vm1508_vm12 = vcmp.eq.f32.partialorder %v1507_v5, 8.507059e+37 }
 0x258   : > { %1665 = vst.msk [vmem:[%s3659_s5] sm:$0xf] %vm1664_vm8, %v3661_v26  ;;  %2315 = vpow2.f32 %v2071_v0 }
 0x259   : > { %2317 = vpow2.f32 %v2063_v50 }
 0x25a   : > { %v2314_v49 = vpop.eup %2313  ;;  %2319 = vpow2.f32 %v2054_v43 }
 0x25b   : > { %v1499_v15 = vmul.f32 %v2314_v49, %v1398_v57  ;;  %vm1504_vm9 = vweird.f32 %v2314_v49 }
 0x25c   : > { %vm1505_vm11 = vmor %vm1503_vm10, %vm1504_vm9 }
 0x25d   : > { %v1500_v42 = vsub.f32 1.0, %v1499_v15 }
 0x25e   : > { %v2316_v46 = vpop.eup %2315 }
 0x25f   : > { %v1399_v31 = vadd.f32 1.0, %v2316_v46  ;;  %v1501_v23 = vmul.f32 %v2314_v49, %v1500_v42  ;;  %v2318_v35 = vpop.eup %2317 }
 0x260   : > { %v2320_v29 = vpop.eup %2319  ;;  %v3681_v10 = vadd.f32 1.0, %v2318_v35 }
 0x261   : > { %2321 = vrcp.f32 %v1399_v31  ;;  %v1502_v52 = vadd.f32 %v2314_v49, %v1501_v23  ;;  %v1014_v36 = vadd.f32 1.0, %v2320_v29  ;;  %v1524_v47 = vand.u32 2147483648, %v1399_v31 }
 0x262   : > { %2323 = vpow2.f32 %v2055_v16  ;;  %v1522_v48 = vand.u32 2147483647, %v1399_v31  ;;  %vm1518_vm1 = vweird.f32 %v1399_v31  ;;  %vm1254_vm6 = vweird.f32 %v3681_v10 }
 0x263   : > { %v1506_v20 = vsel %vm1505_vm11, %v2314_v49, %v1502_v52  ;;  %2325 = vrcp.f32 %v3681_v10  ;;  %v1525_v13 = vor.u32 1.1754944e-38, %v1524_v47  ;;  %v1125_v9 = vand.u32 2147483648, %v1014_v36 }
 0x264   : > { %v1511_v38 = vsel %vm1508_vm12, %v1510_v45, %v1506_v20  ;;  %2327 = vrcp.f32 %v1014_v36  ;;  %vm1523_vm14 = vcmp.eq.f32.partialorder %v1522_v48, 8.507059e+37  ;;  %v1123_v50 = vand.u32 2147483647, %v1014_v36 }
 0x265   : > { %1767 = vst.msk [vmem:[%s3165_s16 + $0x30] sm:$0xff] %vm402_vm0, %v1511_v38  ;;  %vm1119_vm15 = vweird.f32 %v1014_v36  ;;  %v1126_v15 = vor.u32 1.1754944e-38, %v1125_v9  ;;  %v1260_v35 = vand.u32 2147483648, %v3681_v10  ;;  %v1258_v29 = vand.u32 2147483647, %v3681_v10 }
 0x266   : > { %vm1124_vm4 = vcmp.eq.f32.partialorder %v1123_v50, 8.507059e+37 }
 0x267   : > { %v2322_v18 = vpop.eup %2321 }
 0x268   : > { %v1514_v32 = vmul.f32 %v2322_v18, %v1399_v31  ;;  %vm1519_vm13 = vweird.f32 %v2322_v18  ;;  %v2324_v24 = vpop.eup %2323 }
 0x269   : > { %vm1520_vm2 = vmor %vm1518_vm1, %vm1519_vm13  ;;  %v2326_v3 = vpop.eup %2325  ;;  %v1015_v33 = vadd.f32 1.0, %v2324_v24  ;;  %vm1259_vm13 = vcmp.eq.f32.partialorder %v1258_v29, 8.507059e+37 }
 0x26a   : > { %v1515_v39 = vsub.f32 1.0, %v1514_v32  ;;  %v2328_v55 = vpop.eup %2327  ;;  %v1250_v12 = vmul.f32 %v2326_v3, %v3681_v10  ;;  %vm1255_vm5 = vweird.f32 %v2326_v3 }
 0x26b   : > { %2329 = vrcp.f32 %v1015_v33  ;;  %v1115_v8 = vmul.f32 %v2328_v55, %v1014_v36  ;;  %v1138_v16 = vand.u32 2147483647, %v1015_v33  ;;  %vm1256_vm9 = vmor %vm1254_vm6, %vm1255_vm5  ;;  %vm1134_vm10 = vweird.f32 %v1015_v33 }
 0x26c   : > { %v1516_v30 = vmul.f32 %v2322_v18, %v1515_v39  ;;  %v1251_v60 = vsub.f32 1.0, %v1250_v12 }
 0x26d   : > { %v1116_v54 = vsub.f32 1.0, %v1115_v8  ;;  %vm1139_vm12 = vcmp.eq.f32.partialorder %v1138_v16, 8.507059e+37 }
 0x26e   : > { %v1517_v21 = vadd.f32 %v2322_v18, %v1516_v30 }
 0x26f   : > { %v1117_v57 = vmul.f32 %v2328_v55, %v1116_v54 }
 0x270   : > { %v1297_v19 = vpop.permute.xlu2 %1296 }
 0x271   : > { %v1336_v59 = vmul.f32 %v1297_v19, %v3077_v51  ;;  %v2330_v43 = vpop.eup %2329  ;;  %v1118_v49 = vadd.f32 %v2328_v55, %v1117_v57 }
 0x272   : > { %v1130_v42 = vmul.f32 %v2330_v43, %v1015_v33  ;;  %vm1135_vm7 = vweird.f32 %v2330_v43 }
 0x273   : > { %v3683_v37 = vpack.c.bf16 %v1336_v59, %v1336_v59  ;;  %vm1136_vm11 = vmor %vm1134_vm10, %vm1135_vm7 }
 0x274   : > { %v1131_v23 = vsub.f32 1.0, %v1130_v42 }
 0x275   : > { %1673 = vst.msk [vmem:[%s3659_s5 + $0x20] sm:$0xf] %vm1664_vm8, %v3683_v37 }
 0x276   : > { %v1299_v51 = vpop.permute.xlu1 %1298  ;;  %v1132_v19 = vmul.f32 %v2330_v43, %v1131_v23 }
 0x277   : > { %v1337_v14 = vmul.f32 %v1299_v51, %v3092_v27  ;;  %v1521_v27 = vsel %vm1520_vm2, %v2322_v18, %v1517_v21  ;;  %v1261_v18 = vor.u32 1.1754944e-38, %v1260_v35 }
 0x278   : > { %v1526_v61 = vsel %vm1523_vm14, %v1525_v13, %v1521_v27  ;;  %v1133_v59 = vadd.f32 %v2330_v43, %v1132_v19 }
 0x279   : > { %v3692_v6 = vpack.c.bf16 %v1337_v14, %v1337_v14  ;;  %1768 = vst.msk [vmem:[%s3165_s16 + $0x38] sm:$0xff] %vm402_vm0, %v1526_v61  ;;  %vm1120_vm0 = vweird.f32 %v2328_v55 }
 0x27a   : > { %vm1121_vm3 = vmor %vm1119_vm15, %vm1120_vm0  ;;  %v1137_v38 = vsel %vm1136_vm11, %v2330_v43, %v1133_v59 }
 0x27b   : > { %1674 = vst.msk [vmem:[%s3659_s5 + $0x24] sm:$0xf] %vm1664_vm8, %v3692_v6  ;;  %v1122_v31 = vsel %vm1121_vm3, %v2328_v55, %v1118_v49 }
 0x27c   : > { %v1127_v41 = vsel %vm1124_vm4, %v1126_v15, %v1122_v31 }
 0x27d   : > { %1292 = vrot.lane.b32.xlu1 %v1127_v41, %s2432_s12 }
 0x281   : > { %v1283_v25 = vpop.permute.xlu0 %1282 }
 0x282   : > { %v1329_v58 = vmul.f32 %v1283_v25, %v3103_v56  ;;  %v1252_v56 = vmul.f32 %v2326_v3, %v1251_v60 }
 0x284   : > { %v1649_v40 = vpack.c.bf16 %v1329_v58, %v1329_v58  ;;  %v1253_v5 = vadd.f32 %v2326_v3, %v1252_v56 }
 0x286   : > { %v1287_v0 = vpop.permute.xlu2 %1286  ;;  %1666 = vst.msk [vmem:[%s3659_s5 + $0x4] sm:$0xf] %vm1664_vm8, %v1649_v40  ;;  %1699 = vrot.lane.b32.xlu2 %v1649_v40, %s2433_s6  ;;  %v1257_v52 = vsel %vm1256_vm9, %v2326_v3, %v1253_v5 }
 0x287   : > { %v1331_v7 = vmul.f32 %v1287_v0, %v3231_v53  ;;  %v1140_v53 = vand.u32 2147483648, %v1015_v33  ;;  %v1262_v51 = vsel %vm1259_vm13, %v1261_v18, %v1257_v52 }
 0x288   : > { %1310 = vrot.lane.b32.xlu1 %v1262_v51, %s2432_s12 }
 0x289   : > { %v3705_v46 = vpack.c.bf16 %v1331_v7, %v1331_v7  ;;  %v1141_v20 = vor.u32 1.1754944e-38, %v1140_v53 }
 0x28b   : > { %1668 = vst.msk [vmem:[%s3659_s5 + $0xc] sm:$0xf] %vm1664_vm8, %v3705_v46  ;;  %v1142_v32 = vsel %vm1139_vm12, %v1141_v20, %v1137_v38 }
 0x28c   : > { %1294 = vrot.lane.b32.xlu0 %v1142_v32, %s2432_s12 }
 0x290   : > { %v1301_v45 = vpop.permute.xlu0 %1300  ;;  %1713 = vrot.lane.b32.xlu1 %v3683_v37, %s2433_s6 }
 0x291   : > { %v1338_v36 = vmul.f32 %v1301_v45, %v3118_v44 }
 0x293   : > { %v1658_v39 = vpack.c.bf16 %v1338_v36, %v1338_v36 }
 0x294   : > { %v1303_v10 = vpop.permute.xlu2 %1302  ;;  %v1285_v14 = vpop.permute.xlu1 %1284  ;;  %1697 = vrot.lane.b32.xlu0 %v3661_v26, %s2433_s6 }
 0x295   : > { %v1339_v47 = vmul.f32 %v1303_v10, %v3172_v2  ;;  %1675 = vst.msk [vmem:[%s3659_s5 + $0x28] sm:$0xf] %vm1664_vm8, %v1658_v39  ;;  %v1330_v44 = vmul.f32 %v1285_v14, %v3127_v28  ;;  %1717 = vrot.lane.b32.xlu2 %v1658_v39, %s2433_s6 }
 0x297   : > { %v1659_v30 = vpack.c.bf16 %v1339_v47, %v1339_v47  ;;  %v1650_v48 = vpack.c.bf16 %v1330_v44, %v1330_v44 }
 0x299   : > { %1676 = vst.msk [vmem:[%s3659_s5 + $0x2c] sm:$0xf] %vm1664_vm8, %v1659_v30  ;;  %1701 = vrot.lane.b32.xlu1 %v1650_v48, %s2433_s6 }
 0x29a   : > { %1667 = vst.msk [vmem:[%s3659_s5 + $0x8] sm:$0xf] %vm1664_vm8, %v1650_v48 }
 0x29c   : > { %v1291_v2 = vpop.permute.xlu2 %1290  ;;  %1715 = vrot.lane.b32.xlu0 %v3692_v6, %s2433_s6 }
 0x29d   : > { %v1333_v24 = vmul.f32 %v1291_v2, %v3423_v17 }
 0x29f   : > { %v1653_v28 = vpack.c.bf16 %v1333_v24, %v1333_v24 }
 0x2a1   : > { %1670 = vst.msk [vmem:[%s3659_s5 + $0x14] sm:$0xf] %vm1664_vm8, %v1653_v28  ;;  %1719 = vrot.lane.b32.xlu1 %v1659_v30, %s2433_s6 }
 0x2a2   : > { %v1305_v21 = vpop.permute.xlu1 %1304 }
 0x2a3   : > { %v1340_v13 = vmul.f32 %v1305_v21, %v3236_v4 }
 0x2a4   : > { %v1309_v26 = vpop.permute.xlu2 %1308  ;;  %1703 = vrot.lane.b32.xlu0 %v3705_v46, %s2433_s6 }
 0x2a5   : > { %v1660_v3 = vpack.c.bf16 %v1340_v13, %v1340_v13  ;;  %v1342_v37 = vmul.f32 %v1309_v26, %v3431_v11 }
 0x2a7   : > { %1677 = vst.msk [vmem:[%s3659_s5 + $0x30] sm:$0xf] %vm1664_vm8, %v1660_v3  ;;  %v1289_v17 = vpop.permute.xlu0 %1288  ;;  %v1662_v33 = vpack.c.bf16 %v1342_v37, %v1342_v37 }
 0x2a8   : > { %v1332_v27 = vmul.f32 %v1289_v17, %v3303_v34 }
 0x2a9   : > { %1679 = vst.msk [vmem:[%s3659_s5 + $0x38] sm:$0xf] %vm1664_vm8, %v1662_v33  ;;  %1707 = vrot.lane.b32.xlu1 %v1653_v28, %s2433_s6 }
 0x2aa   : > { %v1652_v4 = vpack.c.bf16 %v1332_v27, %v1332_v27 }
 0x2ac   : > { %1669 = vst.msk [vmem:[%s3659_s5 + $0x10] sm:$0xf] %vm1664_vm8, %v1652_v4  ;;  %1705 = vrot.lane.b32.xlu2 %v1652_v4, %s2433_s6  ;;  %1721 = vrot.lane.b32.xlu0 %v1660_v3, %s2433_s6 }
 0x2b1   : > { %v1307_v11 = vpop.permute.xlu0 %1306  ;;  %1725 = vrot.lane.b32.xlu1 %v1662_v33, %s2433_s6 }
 0x2b2   : > { %v1341_v6 = vmul.f32 %v1307_v11, %v3355_v1 }
 0x2b4   : > { %v1661_v55 = vpack.c.bf16 %v1341_v6, %v1341_v6 }
 0x2b6   : > { %1678 = vst.msk [vmem:[%s3659_s5 + $0x34] sm:$0xf] %vm1664_vm8, %v1661_v55 }
 0x2e0   : > { %v1700_v34 = vpop.permute.xlu2 %1699 }
 0x2e1   : > { %1746 = vst.msk [vmem:[%s3760_s15 + $0x4] sm:$0xf] %vm1664_vm8, %v1700_v34 }
 0x2ef   : > { %v1718_v1 = vpop.permute.xlu2 %1717  ;;  %v1293_v61 = vpop.permute.xlu1 %1292 }
 0x2f0   : > { %1755 = vst.msk [vmem:[%s3760_s15 + $0x28] sm:$0xf] %vm1664_vm8, %v1718_v1  ;;  %v1334_v12 = vmul.f32 %v1293_v61, %v3672_v63 }
 0x2f2   : > { %v1654_v25 = vpack.c.bf16 %v1334_v12, %v1334_v12 }
 0x2f4   : > { %1671 = vst.msk [vmem:[%s3659_s5 + $0x18] sm:$0xf] %vm1664_vm8, %v1654_v25  ;;  %1709 = vrot.lane.b32.xlu0 %v1654_v25, %s2433_s6 }
 0x2fa   : > { %v1311_v54 = vpop.permute.xlu1 %1310 }
 0x2fb   : > { %v1343_v60 = vmul.f32 %v1311_v54, %v3669_v62 }
 0x2fd   : > { %v1663_v63 = vpack.c.bf16 %v1343_v60, %v1343_v60 }
 0x2fe   : > { %v1295_v8 = vpop.permute.xlu0 %1294 }
 0x2ff   : > { %v1335_v40 = vmul.f32 %v1295_v8, %v3677_v22  ;;  %1680 = vst.msk [vmem:[%s3659_s5 + $0x3c] sm:$0xf] %vm1664_vm8, %v1663_v63  ;;  %1727 = vrot.lane.b32.xlu0 %v1663_v63, %s2433_s6 }
 0x301   : > { %v1655_v9 = vpack.c.bf16 %v1335_v40, %v1335_v40 }
 0x302   : > { %v1714_v22 = vpop.permute.xlu1 %1713 }
 0x303   : > { %1672 = vst.msk [vmem:[%s3659_s5 + $0x1c] sm:$0xf] %vm1664_vm8, %v1655_v9  ;;  %1711 = vrot.lane.b32.xlu2 %v1655_v9, %s2433_s6 }
 0x304   : > { %1753 = vst.msk [vmem:[%s3760_s15 + $0x20] sm:$0xf] %vm1664_vm8, %v1714_v22 }
 0x306   : > { %v1706_v58 = vpop.permute.xlu2 %1705  ;;  %v1698_v0 = vpop.permute.xlu0 %1697 }
 0x307   : > { %1749 = vst.msk [vmem:[%s3760_s15 + $0x10] sm:$0xf] %vm1664_vm8, %v1706_v58 }
 0x308   : > { %1745 = vst.msk [vmem:[%s3760_s15] sm:$0xf] %vm1664_vm8, %v1698_v0 }
 0x30b   : > { %1723 = vrot.lane.b32.xlu2 %v1661_v55, %s2433_s6  ;;  %v1702_v57 = vpop.permute.xlu1 %1701 }
 0x30c   : > { %1747 = vst.msk [vmem:[%s3760_s15 + $0x8] sm:$0xf] %vm1664_vm8, %v1702_v57 }
 0x30e   : > { %v1716_v62 = vpop.permute.xlu0 %1715 }
 0x30f   : > { %1754 = vst.msk [vmem:[%s3760_s15 + $0x24] sm:$0xf] %vm1664_vm8, %v1716_v62 }
 0x313   : > { %v1720_v43 = vpop.permute.xlu1 %1719 }
 0x314   : > { %1756 = vst.msk [vmem:[%s3760_s15 + $0x2c] sm:$0xf] %vm1664_vm8, %v1720_v43 }
 0x316   : > { %v1704_v50 = vpop.permute.xlu0 %1703 }
 0x317   : > { %1748 = vst.msk [vmem:[%s3760_s15 + $0xc] sm:$0xf] %vm1664_vm8, %v1704_v50 }
 0x31b   : > { %v1708_v49 = vpop.permute.xlu1 %1707 }
 0x31c   : > { %1750 = vst.msk [vmem:[%s3760_s15 + $0x14] sm:$0xf] %vm1664_vm8, %v1708_v49 }
 0x31e   : > { %v1722_v7 = vpop.permute.xlu0 %1721 }
 0x31f   : > { %1757 = vst.msk [vmem:[%s3760_s15 + $0x30] sm:$0xf] %vm1664_vm8, %v1722_v7 }
 0x323   : > { %v1726_v56 = vpop.permute.xlu1 %1725 }
 0x324   : > { %1759 = vst.msk [vmem:[%s3760_s15 + $0x38] sm:$0xf] %vm1664_vm8, %v1726_v56 }
 0x35d   : > { %v1712_v46 = vpop.permute.xlu2 %1711 }
 0x35e   : > { %1752 = vst.msk [vmem:[%s3760_s15 + $0x1c] sm:$0xf] %vm1664_vm8, %v1712_v46 }
 0x365   : > { %v1724_v15 = vpop.permute.xlu2 %1723 }
 0x366   : > { %1758 = vst.msk [vmem:[%s3760_s15 + $0x34] sm:$0xf] %vm1664_vm8, %v1724_v15  ;;  %v1710_v31 = vpop.permute.xlu0 %1709 }
 0x367   : > { %1751 = vst.msk [vmem:[%s3760_s15 + $0x18] sm:$0xf] %vm1664_vm8, %v1710_v31 }
 0x371   : > { %v1728_v42 = vpop.permute.xlu0 %1727 }
 0x372   : > { %1760 = vst.msk [vmem:[%s3760_s15 + $0x3c] sm:$0xf] %vm1664_vm8, %v1728_v42 }
 0x373 PF: > { %s21_s8 = sadd.s32 1, %s2427_s8   ;;  %s3901_s18 = sld [smem:[#allocation5_spill]] }
 0x374   : > { %p18_p2 = scmp.ge.s32.totalorder %s21_s8, 6   ;;  %s3902_s23 = sld [smem:[#allocation6_spill]] }
 0x375   : > { %s3903_s24 = smov %s2403_s25  ;;  %s3904_s25 = smov %s2407_s26 }
 0x376   : > { %s3905_s26 = smov %s2541_s21  ;;  %s3906_s27 = smov %s2419_s29 }
 0x377   : > { %s3907_s28 = smov %s2423_s30  ;;  %20 = sbr.rel (!%p18_p2) target bundleno = 8 (0x8), region = 104 }
 0x379   : > { %s3908_s29 = smov %s3901_s18 }
 0x37a   : > { %s3909_s30 = smov %s3902_s23 }
 0x37c   :  { %1863 = vsyncpa [#allocation3], 1 }
 0x37d   :  { %1865 = vsyncpa [#allocation3 + $0x1], 1 }

// kernel: pairwise_attention_block.11
= control target key start
LH: loop header
LB: loop body
LE: loop exit
PB: predicated region body
PF: predicated region fallthrough
CT: control target
= control target key end

     0   :  { %s2174_s9 = smov 0   ;;  %s2176_s10 = smov 0   ;;  %s2732_s0 = inlined_call_operand.vmem [shape: bf16[2,32,16,16], index: 0, kind: input, shape index: {}]   ;;  %s2733_s1 = inlined_call_operand.vmem [shape: bf16[2,32,16,16], index: 1, kind: input, shape index: {}]   ;;  %s2734_s2 = inlined_call_operand.vmem [shape: f32[2,32,16,16], index: 2, kind: output, shape index: {}]  }
   0x1   :  { %s2178_s11 = smov 0  }
   0x2 LB: > { %s38_s12 = sadd.s32 1, %s2152_s10  ;;  %p1745_p0 = scmp.ge.s32.totalorder %s2156_s11, 1  ;;  %s2156_s11 = sphi %s2178_s11, %s12_s11   ;;  %s2152_s10 = sphi %s2176_s10, %s2736_s10   ;;  %s2148_s9 = sphi %s2174_s9, %s2735_s9  }
   0x3   : > { %p40_p1 = scmp.ge.s32.totalorder %s38_s12, 2  ;;  %p176_p2 = scmp.lt.s32.totalorder %s2156_s11, 3 }
   0x5   : > { %s2738_s12 = smov (%p40_p1, %s38_s12), 0  ;;  %p177_p3 = pnand %p1745_p0, %p176_p2 }
   0x6   : > { %p225_p4 = scmp.lt.s32.totalorder (!%p177_p3), %s2148_s9, 1 }
   0x7   : > { %180 = sbr.rel (%p177_p3) target bundleno = 283 (0x11b), region = 28 }
   0xc   : > { %s2740_s9 = smov (!%p225_p4, %s2148_s9), 1  ;;  %vm268_vm0 = vcmask 130048  }
   0xd   : > { %s2042_s13 = sshll.u32 %s2740_s9, 8  ;;  %s2044_s20 = sshll.u32 %s2740_s9, 9 }
   0xe   : > { %s2198_s16 = scalar_lea.vmem %s2733_s1, %s2042_s13  ;;  %s2207_s19 = scalar_lea.vmem %s2732_s0, %s2042_s13 }
   0xf   : > { %v2077_v0 = vld [vmem:[%s2198_s16] sm:$0xff]  ;;  %v2078_v1 = vld [vmem:[%s2198_s16 + $0x8] sm:$0xff]  ;;  %v2079_v2 = vld [vmem:[%s2198_s16 + $0x10] sm:$0xff]  ;;  %s2313_s23 = scalar_lea.vmem %s2734_s2, %s2044_s20 }
  0x10   : > { %v2080_v3 = vld [vmem:[%s2198_s16 + $0x18] sm:$0xff]  ;;  %v540_v4 = vsel %vm268_vm0, %v2077_v0, 0  ;;  %v570_v5 = vsel %vm268_vm0, %v2078_v1, 0  ;;  %v600_v6 = vsel %vm268_vm0, %v2079_v2, 0  ;;  %v2083_v7 = vld [vmem:[%s2198_s16 + $0x30] sm:$0xff]  ;;  %v2081_v10 = vld [vmem:[%s2198_s16 + $0x20] sm:$0xff] }
  0x11   : > { %549 = vmatpush.bf16.xpose.msra.mxu0 %v540_v4  ;;  %579 = vmatpush.bf16.xpose.msra.mxu1 %v570_v5  ;;  %v630_v8 = vsel %vm268_vm0, %v2080_v3, 0  ;;  %v2084_v9 = vld [vmem:[%s2198_s16 + $0x38] sm:$0xff]  ;;  %v2082_v11 = vld [vmem:[%s2198_s16 + $0x28] sm:$0xff]  ;;  %v720_v12 = vsel %vm268_vm0, %v2083_v7, 0  ;;  %v2045_v13 = vld [vmem:[%s2207_s19] sm:$0xff]  ;;  %v660_v15 = vsel %vm268_vm0, %v2081_v10, 0 }
  0x12   : > { %609 = vmatpush.bf16.xpose.msra.mxu2 %v600_v6  ;;  %639 = vmatpush.bf16.xpose.msra.mxu3 %v630_v8  ;;  %v750_v14 = vsel %vm268_vm0, %v2084_v9, 0  ;;  %v690_v16 = vsel %vm268_vm0, %v2082_v11, 0  ;;  %v2087_v17 = vld [vmem:[%s2198_s16 + $0x50] sm:$0xff]  ;;  %v2088_v18 = vld [vmem:[%s2198_s16 + $0x58] sm:$0xff]  ;;  %v2046_v19 = vld [vmem:[%s2207_s19 + $0x8] sm:$0xff] }
  0x13   : > { %v2085_v20 = vld [vmem:[%s2198_s16 + $0x40] sm:$0xff]  ;;  %v2086_v21 = vld [vmem:[%s2198_s16 + $0x48] sm:$0xff]  ;;  %v2047_v22 = vld [vmem:[%s2207_s19 + $0x10] sm:$0xff]  ;;  %v840_v24 = vsel %vm268_vm0, %v2087_v17, 0  ;;  %v870_v25 = vsel %vm268_vm0, %v2088_v18, 0 }
  0x14   : > { %v2048_v23 = vld [vmem:[%s2207_s19 + $0x18] sm:$0xff]  ;;  %v780_v26 = vsel %vm268_vm0, %v2085_v20, 0  ;;  %v810_v27 = vsel %vm268_vm0, %v2086_v21, 0  ;;  %v2049_v28 = vld [vmem:[%s2207_s19 + $0x20] sm:$0xff]  ;;  %v2091_v29 = vld [vmem:[%s2198_s16 + $0x70] sm:$0xff] }
  0x15   : > { %v2092_v30 = vld [vmem:[%s2198_s16 + $0x78] sm:$0xff]  ;;  %v2050_v31 = vld [vmem:[%s2207_s19 + $0x28] sm:$0xff]  ;;  %v2089_v32 = vld [vmem:[%s2198_s16 + $0x60] sm:$0xff]  ;;  %v960_v36 = vsel %vm268_vm0, %v2091_v29, 0 }
  0x16   : > { %v2090_v33 = vld [vmem:[%s2198_s16 + $0x68] sm:$0xff]  ;;  %v2051_v34 = vld [vmem:[%s2207_s19 + $0x30] sm:$0xff]  ;;  %v2052_v35 = vld [vmem:[%s2207_s19 + $0x38] sm:$0xff]  ;;  %v990_v37 = vsel %vm268_vm0, %v2092_v30, 0  ;;  %v900_v38 = vsel %vm268_vm0, %v2089_v32, 0 }
  0x17   : > { %v930_v39 = vsel %vm268_vm0, %v2090_v33, 0  ;;  %v2053_v40 = vld [vmem:[%s2207_s19 + $0x40] sm:$0xff]  ;;  %v2095_v41 = vld [vmem:[%s2198_s16 + $0x90] sm:$0xff]  ;;  %v2096_v42 = vld [vmem:[%s2198_s16 + $0x98] sm:$0xff] }
  0x18   : > { %1760 = vmatmul.msk.bf16.vlgmr.msra.gmra.mxu0 %vm268_vm0, %v2045_v13  ;;  %1769 = vmatmul.msk.bf16.vlgmr.msra.gmra.mxu1 %vm268_vm0, %v2046_v19  ;;  %v2054_v43 = vld [vmem:[%s2207_s19 + $0x48] sm:$0xff]  ;;  %v2093_v44 = vld [vmem:[%s2198_s16 + $0x80] sm:$0xff]  ;;  %v2055_v46 = vld [vmem:[%s2207_s19 + $0x50] sm:$0xff]  ;;  %v1080_v48 = vsel %vm268_vm0, %v2095_v41, 0  ;;  %v1110_v49 = vsel %vm268_vm0, %v2096_v42, 0 }
  0x19   : > { %669 = vmatpush.bf16.xpose.msrb.mxu0 %v660_v15  ;;  %699 = vmatpush.bf16.xpose.msrb.mxu1 %v690_v16  ;;  %v2094_v45 = vld [vmem:[%s2198_s16 + $0x88] sm:$0xff]  ;;  %v2056_v47 = vld [vmem:[%s2207_s19 + $0x58] sm:$0xff]  ;;  %v1020_v50 = vsel %vm268_vm0, %v2093_v44, 0  ;;  %v2057_v52 = vld [vmem:[%s2207_s19 + $0x60] sm:$0xff] }
  0x1a   : > { %729 = vmatpush.bf16.xpose.msrb.mxu2 %v720_v12  ;;  %759 = vmatpush.bf16.xpose.msrb.mxu3 %v750_v14  ;;  %v1050_v51 = vsel %vm268_vm0, %v2094_v45, 0  ;;  %v2099_v53 = vld [vmem:[%s2198_s16 + $0xb0] sm:$0xff]  ;;  %v2100_v54 = vld [vmem:[%s2198_s16 + $0xb8] sm:$0xff]  ;;  %v2058_v55 = vld [vmem:[%s2207_s19 + $0x68] sm:$0xff] }
  0x1b   : > { %1778 = vmatmul.msk.bf16.vlgmr.msra.gmra.mxu2 %vm268_vm0, %v2047_v22  ;;  %1787 = vmatmul.msk.bf16.vlgmr.msra.gmra.mxu3 %vm268_vm0, %v2048_v23  ;;  %v2097_v56 = vld [vmem:[%s2198_s16 + $0xa0] sm:$0xff]  ;;  %v2098_v57 = vld [vmem:[%s2198_s16 + $0xa8] sm:$0xff]  ;;  %v2059_v58 = vld [vmem:[%s2207_s19 + $0x70] sm:$0xff]  ;;  %v1200_v60 = vsel %vm268_vm0, %v2099_v53, 0  ;;  %v1230_v61 = vsel %vm268_vm0, %v2100_v54, 0 }
  0x1c   : > { %v2060_v59 = vld [vmem:[%s2207_s19 + $0x78] sm:$0xff]  ;;  %v1140_v62 = vsel %vm268_vm0, %v2097_v56, 0  ;;  %v1170_v63 = vsel %vm268_vm0, %v2098_v57, 0  ;;  %v2061_v0 = vld [vmem:[%s2207_s19 + $0x80] sm:$0xff]  ;;  %v2103_v1 = vld [vmem:[%s2198_s16 + $0xd0] sm:$0xff] }
  0x1d   : > { %v2104_v2 = vld [vmem:[%s2198_s16 + $0xd8] sm:$0xff]  ;;  %v2062_v3 = vld [vmem:[%s2207_s19 + $0x88] sm:$0xff]  ;;  %v2101_v4 = vld [vmem:[%s2198_s16 + $0xc0] sm:$0xff]  ;;  %v1320_v8 = vsel %vm268_vm0, %v2103_v1, 0 }
  0x1e   : > { %v2102_v5 = vld [vmem:[%s2198_s16 + $0xc8] sm:$0xff]  ;;  %v2063_v6 = vld [vmem:[%s2207_s19 + $0x90] sm:$0xff]  ;;  %v2064_v7 = vld [vmem:[%s2207_s19 + $0x98] sm:$0xff]  ;;  %v1350_v9 = vsel %vm268_vm0, %v2104_v2, 0  ;;  %v1260_v10 = vsel %vm268_vm0, %v2101_v4, 0 }
  0x1f   : > { %v1290_v11 = vsel %vm268_vm0, %v2102_v5, 0  ;;  %v2065_v12 = vld [vmem:[%s2207_s19 + $0xa0] sm:$0xff]  ;;  %v2107_v13 = vld [vmem:[%s2198_s16 + $0xf0] sm:$0xff]  ;;  %v2108_v14 = vld [vmem:[%s2198_s16 + $0xf8] sm:$0xff] }
  0x20   : > { %v2066_v15 = vld [vmem:[%s2207_s19 + $0xa8] sm:$0xff]  ;;  %v2105_v16 = vld [vmem:[%s2198_s16 + $0xe0] sm:$0xff]  ;;  %v2067_v18 = vld [vmem:[%s2207_s19 + $0xb0] sm:$0xff]  ;;  %v1440_v20 = vsel %vm268_vm0, %v2107_v13, 0  ;;  %v1470_v21 = vsel %vm268_vm0, %v2108_v14, 0 }
  0x21   : > { %789 = vmatpush.bf16.xpose.msra.mxu0 %v780_v26  ;;  %819 = vmatpush.bf16.xpose.msra.mxu1 %v810_v27  ;;  %v2106_v17 = vld [vmem:[%s2198_s16 + $0xe8] sm:$0xff]  ;;  %v2068_v19 = vld [vmem:[%s2207_s19 + $0xb8] sm:$0xff]  ;;  %v1380_v22 = vsel %vm268_vm0, %v2105_v16, 0  ;;  %v2071_v27 = vld [vmem:[%s2207_s19 + $0xd0] sm:$0xff] }
  0x22   : > { %849 = vmatpush.bf16.xpose.msra.mxu2 %v840_v24  ;;  %879 = vmatpush.bf16.xpose.msra.mxu3 %v870_v25  ;;  %v1410_v23 = vsel %vm268_vm0, %v2106_v17, 0  ;;  %v2158_v24 = vmov 0.0   ;;  %v2069_v25 = vld [vmem:[%s2207_s19 + $0xc0] sm:$0xff]  ;;  %v2070_v26 = vld [vmem:[%s2207_s19 + $0xc8] sm:$0xff]  ;;  %v2076_v32 = vld [vmem:[%s2207_s19 + $0xf8] sm:$0xff] }
  0x23   : > { %269 = vst.msk [vmem:[%s2313_s23] sm:$0xff] %vm268_vm0, %v2158_v24  ;;  %v2073_v29 = vld [vmem:[%s2207_s19 + $0xe0] sm:$0xff]  ;;  %v2074_v30 = vld [vmem:[%s2207_s19 + $0xe8] sm:$0xff] }
  0x24   : > { %270 = vst.msk [vmem:[%s2313_s23 + $0x8] sm:$0xff] %vm268_vm0, %v2158_v24 }
  0x25   : > { %271 = vst.msk [vmem:[%s2313_s23 + $0x10] sm:$0xff] %vm268_vm0, %v2158_v24 }
  0x26   : > { %272 = vst.msk [vmem:[%s2313_s23 + $0x18] sm:$0xff] %vm268_vm0, %v2158_v24 }
  0x27   : > { %273 = vst.msk [vmem:[%s2313_s23 + $0x20] sm:$0xff] %vm268_vm0, %v2158_v24 }
  0x28   : > { %1796 = vmatmul.msk.bf16.vlgmr.msrb.gmra.mxu0 %vm268_vm0, %v2049_v28  ;;  %1805 = vmatmul.msk.bf16.vlgmr.msrb.gmra.mxu1 %vm268_vm0, %v2050_v31  ;;  %274 = vst.msk [vmem:[%s2313_s23 + $0x28] sm:$0xff] %vm268_vm0, %v2158_v24  ;;  %v2072_v28 = vld [vmem:[%s2207_s19 + $0xd8] sm:$0xff]  ;;  %v2075_v31 = vld [vmem:[%s2207_s19 + $0xf0] sm:$0xff] }
  0x29   : > { %909 = vmatpush.bf16.xpose.msrb.mxu0 %v900_v38  ;;  %939 = vmatpush.bf16.xpose.msrb.mxu1 %v930_v39  ;;  %275 = vst.msk [vmem:[%s2313_s23 + $0x30] sm:$0xff] %vm268_vm0, %v2158_v24 }
  0x2a   : > { %276 = vst.msk [vmem:[%s2313_s23 + $0x38] sm:$0xff] %vm268_vm0, %v2158_v24  ;;  %v333_v33 = vld [vmem:[%s2313_s23] sm:$0xff] }
  0x2b   : > { %1814 = vmatmul.msk.bf16.vlgmr.msrb.gmra.mxu2 %vm268_vm0, %v2051_v34  ;;  %1823 = vmatmul.msk.bf16.vlgmr.msrb.gmra.mxu3 %vm268_vm0, %v2052_v35  ;;  %277 = vst.msk [vmem:[%s2313_s23 + $0x40] sm:$0xff] %vm268_vm0, %v2158_v24 }
  0x2c   : > { %969 = vmatpush.bf16.xpose.msrb.mxu2 %v960_v36  ;;  %999 = vmatpush.bf16.xpose.msrb.mxu3 %v990_v37  ;;  %278 = vst.msk [vmem:[%s2313_s23 + $0x48] sm:$0xff] %vm268_vm0, %v2158_v24  ;;  %v335_v41 = vld [vmem:[%s2313_s23 + $0x10] sm:$0xff] }
  0x2d   : > { %279 = vst.msk [vmem:[%s2313_s23 + $0x50] sm:$0xff] %vm268_vm0, %v2158_v24 }
  0x2e   : > { %280 = vst.msk [vmem:[%s2313_s23 + $0x58] sm:$0xff] %vm268_vm0, %v2158_v24  ;;  %v337_v44 = vld [vmem:[%s2313_s23 + $0x20] sm:$0xff] }
  0x2f   : > { %281 = vst.msk [vmem:[%s2313_s23 + $0x60] sm:$0xff] %vm268_vm0, %v2158_v24  ;;  %v338_v53 = vld [vmem:[%s2313_s23 + $0x28] sm:$0xff] }
  0x30   : > { %282 = vst.msk [vmem:[%s2313_s23 + $0x68] sm:$0xff] %vm268_vm0, %v2158_v24 }
  0x31   : > { %283 = vst.msk [vmem:[%s2313_s23 + $0x70] sm:$0xff] %vm268_vm0, %v2158_v24 }
  0x32   : > { %284 = vst.msk [vmem:[%s2313_s23 + $0x78] sm:$0xff] %vm268_vm0, %v2158_v24  ;;  %v341_v57 = vld [vmem:[%s2313_s23 + $0x40] sm:$0xff] }
  0x33   : > { %285 = vst.msk [vmem:[%s2313_s23 + $0x80] sm:$0xff] %vm268_vm0, %v2158_v24  ;;  %v342_v5 = vld [vmem:[%s2313_s23 + $0x48] sm:$0xff] }
  0x34   : > { %286 = vst.msk [vmem:[%s2313_s23 + $0x88] sm:$0xff] %vm268_vm0, %v2158_v24 }
  0x35   : > { %287 = vst.msk [vmem:[%s2313_s23 + $0x90] sm:$0xff] %vm268_vm0, %v2158_v24 }
  0x36   : > { %288 = vst.msk [vmem:[%s2313_s23 + $0x98] sm:$0xff] %vm268_vm0, %v2158_v24 }
  0x37   : > { %289 = vst.msk [vmem:[%s2313_s23 + $0xa0] sm:$0xff] %vm268_vm0, %v2158_v24 }
  0x38   : > { %1832 = vmatmul.msk.bf16.vlgmr.msra.gmra.mxu0 %vm268_vm0, %v2053_v40  ;;  %1841 = vmatmul.msk.bf16.vlgmr.msra.gmra.mxu1 %vm268_vm0, %v2054_v43  ;;  %290 = vst.msk [vmem:[%s2313_s23 + $0xa8] sm:$0xff] %vm268_vm0, %v2158_v24 }
  0x39   : > { %1029 = vmatpush.bf16.xpose.msra.mxu0 %v1020_v50  ;;  %1059 = vmatpush.bf16.xpose.msra.mxu1 %v1050_v51  ;;  %291 = vst.msk [vmem:[%s2313_s23 + $0xb0] sm:$0xff] %vm268_vm0, %v2158_v24  ;;  %v336_v51 = vld [vmem:[%s2313_s23 + $0x18] sm:$0xff] }
  0x3a   : > { %292 = vst.msk [vmem:[%s2313_s23 + $0xb8] sm:$0xff] %vm268_vm0, %v2158_v24  ;;  %v349_v13 = vld [vmem:[%s2313_s23 + $0x80] sm:$0xff] }
  0x3b   : > { %1850 = vmatmul.msk.bf16.vlgmr.msra.gmra.mxu2 %vm268_vm0, %v2055_v46  ;;  %1859 = vmatmul.msk.bf16.vlgmr.msra.gmra.mxu3 %vm268_vm0, %v2056_v47  ;;  %293 = vst.msk [vmem:[%s2313_s23 + $0xc0] sm:$0xff] %vm268_vm0, %v2158_v24  ;;  %v339_v47 = vld [vmem:[%s2313_s23 + $0x30] sm:$0xff] }
  0x3c   : > { %1089 = vmatpush.bf16.xpose.msra.mxu2 %v1080_v48  ;;  %1119 = vmatpush.bf16.xpose.msra.mxu3 %v1110_v49  ;;  %294 = vst.msk [vmem:[%s2313_s23 + $0xc8] sm:$0xff] %vm268_vm0, %v2158_v24  ;;  %v334_v49 = vld [vmem:[%s2313_s23 + $0x8] sm:$0xff]  ;;  %v351_v16 = vld [vmem:[%s2313_s23 + $0x90] sm:$0xff] }
  0x3d   : > { %295 = vst.msk [vmem:[%s2313_s23 + $0xd0] sm:$0xff] %vm268_vm0, %v2158_v24 }
  0x3e   : > { %296 = vst.msk [vmem:[%s2313_s23 + $0xd8] sm:$0xff] %vm268_vm0, %v2158_v24 }
  0x3f   : > { %297 = vst.msk [vmem:[%s2313_s23 + $0xe0] sm:$0xff] %vm268_vm0, %v2158_v24 }
  0x40   : > { %298 = vst.msk [vmem:[%s2313_s23 + $0xe8] sm:$0xff] %vm268_vm0, %v2158_v24 }
  0x41   : > { %299 = vst.msk [vmem:[%s2313_s23 + $0xf0] sm:$0xff] %vm268_vm0, %v2158_v24 }
  0x42   : > { %300 = vst.msk [vmem:[%s2313_s23 + $0xf8] sm:$0xff] %vm268_vm0, %v2158_v24 }
  0x43   : > { %301 = vst.msk [vmem:[%s2313_s23 + $0x100] sm:$0xff] %vm268_vm0, %v2158_v24 }
  0x44   : > { %302 = vst.msk [vmem:[%s2313_s23 + $0x108] sm:$0xff] %vm268_vm0, %v2158_v24 }
  0x45   : > { %303 = vst.msk [vmem:[%s2313_s23 + $0x110] sm:$0xff] %vm268_vm0, %v2158_v24 }
  0x46   : > { %304 = vst.msk [vmem:[%s2313_s23 + $0x118] sm:$0xff] %vm268_vm0, %v2158_v24 }
  0x47   : > { %305 = vst.msk [vmem:[%s2313_s23 + $0x120] sm:$0xff] %vm268_vm0, %v2158_v24 }
  0x48   : > { %1868 = vmatmul.msk.bf16.vlgmr.msrb.gmra.mxu0 %vm268_vm0, %v2057_v52  ;;  %1877 = vmatmul.msk.bf16.vlgmr.msrb.gmra.mxu1 %vm268_vm0, %v2058_v55  ;;  %306 = vst.msk [vmem:[%s2313_s23 + $0x128] sm:$0xff] %vm268_vm0, %v2158_v24  ;;  %v340_v55 = vld [vmem:[%s2313_s23 + $0x38] sm:$0xff] }
  0x49   : > { %1149 = vmatpush.bf16.xpose.msrb.mxu0 %v1140_v62  ;;  %1179 = vmatpush.bf16.xpose.msrb.mxu1 %v1170_v63  ;;  %307 = vst.msk [vmem:[%s2313_s23 + $0x130] sm:$0xff] %vm268_vm0, %v2158_v24  ;;  %v345_v63 = vld [vmem:[%s2313_s23 + $0x60] sm:$0xff] }
  0x4a   : > { %308 = vst.msk [vmem:[%s2313_s23 + $0x138] sm:$0xff] %vm268_vm0, %v2158_v24 }
  0x4b   : > { %1886 = vmatmul.msk.bf16.vlgmr.msrb.gmra.mxu2 %vm268_vm0, %v2059_v58  ;;  %1895 = vmatmul.msk.bf16.vlgmr.msrb.gmra.mxu3 %vm268_vm0, %v2060_v59  ;;  %309 = vst.msk [vmem:[%s2313_s23 + $0x140] sm:$0xff] %vm268_vm0, %v2158_v24  ;;  %v343_v59 = vld [vmem:[%s2313_s23 + $0x50] sm:$0xff] }
  0x4c   : > { %1209 = vmatpush.bf16.xpose.msrb.mxu2 %v1200_v60  ;;  %1239 = vmatpush.bf16.xpose.msrb.mxu3 %v1230_v61  ;;  %310 = vst.msk [vmem:[%s2313_s23 + $0x148] sm:$0xff] %vm268_vm0, %v2158_v24 }
  0x4d   : > { %311 = vst.msk [vmem:[%s2313_s23 + $0x150] sm:$0xff] %vm268_vm0, %v2158_v24 }
  0x4e   : > { %312 = vst.msk [vmem:[%s2313_s23 + $0x158] sm:$0xff] %vm268_vm0, %v2158_v24 }
  0x4f   : > { %313 = vst.msk [vmem:[%s2313_s23 + $0x160] sm:$0xff] %vm268_vm0, %v2158_v24 }
  0x50   : > { %314 = vst.msk [vmem:[%s2313_s23 + $0x168] sm:$0xff] %vm268_vm0, %v2158_v24 }
  0x51   : > { %315 = vst.msk [vmem:[%s2313_s23 + $0x170] sm:$0xff] %vm268_vm0, %v2158_v24 }
  0x52   : > { %316 = vst.msk [vmem:[%s2313_s23 + $0x178] sm:$0xff] %vm268_vm0, %v2158_v24 }
  0x53   : > { %317 = vst.msk [vmem:[%s2313_s23 + $0x180] sm:$0xff] %vm268_vm0, %v2158_v24 }
  0x54   : > { %318 = vst.msk [vmem:[%s2313_s23 + $0x188] sm:$0xff] %vm268_vm0, %v2158_v24 }
  0x55   : > { %319 = vst.msk [vmem:[%s2313_s23 + $0x190] sm:$0xff] %vm268_vm0, %v2158_v24 }
  0x56   : > { %320 = vst.msk [vmem:[%s2313_s23 + $0x198] sm:$0xff] %vm268_vm0, %v2158_v24 }
  0x57   : > { %321 = vst.msk [vmem:[%s2313_s23 + $0x1a0] sm:$0xff] %vm268_vm0, %v2158_v24 }
  0x58   : > { %1904 = vmatmul.msk.bf16.vlgmr.msra.gmra.mxu0 %vm268_vm0, %v2061_v0  ;;  %1913 = vmatmul.msk.bf16.vlgmr.msra.gmra.mxu1 %vm268_vm0, %v2062_v3  ;;  %322 = vst.msk [vmem:[%s2313_s23 + $0x1a8] sm:$0xff] %vm268_vm0, %v2158_v24  ;;  %v347_v3 = vld [vmem:[%s2313_s23 + $0x70] sm:$0xff] }
  0x59   : > { %1269 = vmatpush.bf16.xpose.msra.mxu0 %v1260_v10  ;;  %1299 = vmatpush.bf16.xpose.msra.mxu1 %v1290_v11  ;;  %323 = vst.msk [vmem:[%s2313_s23 + $0x1b0] sm:$0xff] %vm268_vm0, %v2158_v24  ;;  %v346_v10 = vld [vmem:[%s2313_s23 + $0x68] sm:$0xff]  ;;  %v348_v11 = vld [vmem:[%s2313_s23 + $0x78] sm:$0xff] }
  0x5a   : > { %324 = vst.msk [vmem:[%s2313_s23 + $0x1b8] sm:$0xff] %vm268_vm0, %v2158_v24 }
  0x5b   : > { %1922 = vmatmul.msk.bf16.vlgmr.msra.gmra.mxu2 %vm268_vm0, %v2063_v6  ;;  %1931 = vmatmul.msk.bf16.vlgmr.msra.gmra.mxu3 %vm268_vm0, %v2064_v7  ;;  %325 = vst.msk [vmem:[%s2313_s23 + $0x1c0] sm:$0xff] %vm268_vm0, %v2158_v24  ;;  %v344_v7 = vld [vmem:[%s2313_s23 + $0x58] sm:$0xff] }
  0x5c   : > { %1329 = vmatpush.bf16.xpose.msra.mxu2 %v1320_v8  ;;  %1359 = vmatpush.bf16.xpose.msra.mxu3 %v1350_v9  ;;  %326 = vst.msk [vmem:[%s2313_s23 + $0x1c8] sm:$0xff] %vm268_vm0, %v2158_v24 }
  0x5d   : > { %327 = vst.msk [vmem:[%s2313_s23 + $0x1d0] sm:$0xff] %vm268_vm0, %v2158_v24 }
  0x5e   : > { %328 = vst.msk [vmem:[%s2313_s23 + $0x1d8] sm:$0xff] %vm268_vm0, %v2158_v24 }
  0x5f   : > { %329 = vst.msk [vmem:[%s2313_s23 + $0x1e0] sm:$0xff] %vm268_vm0, %v2158_v24 }
  0x60   : > { %330 = vst.msk [vmem:[%s2313_s23 + $0x1e8] sm:$0xff] %vm268_vm0, %v2158_v24 }
  0x61   : > { %331 = vst.msk [vmem:[%s2313_s23 + $0x1f0] sm:$0xff] %vm268_vm0, %v2158_v24 }
  0x62   : > { %332 = vst.msk [vmem:[%s2313_s23 + $0x1f8] sm:$0xff] %vm268_vm0, %v2158_v24  ;;  %v355_v24 = vld [vmem:[%s2313_s23 + $0xb0] sm:$0xff] }
  0x68   : > { %1940 = vmatmul.msk.bf16.vlgmr.msrb.gmra.mxu0 %vm268_vm0, %v2065_v12  ;;  %1949 = vmatmul.msk.bf16.vlgmr.msrb.gmra.mxu1 %vm268_vm0, %v2066_v15 }
  0x69   : > { %1389 = vmatpush.bf16.xpose.msrb.mxu0 %v1380_v22  ;;  %1419 = vmatpush.bf16.xpose.msrb.mxu1 %v1410_v23  ;;  %v353_v23 = vld [vmem:[%s2313_s23 + $0xa0] sm:$0xff] }
  0x6b   : > { %1958 = vmatmul.msk.bf16.vlgmr.msrb.gmra.mxu2 %vm268_vm0, %v2067_v18  ;;  %1967 = vmatmul.msk.bf16.vlgmr.msrb.gmra.mxu3 %vm268_vm0, %v2068_v19 }
  0x6c   : > { %1449 = vmatpush.bf16.xpose.msrb.mxu2 %v1440_v20  ;;  %1479 = vmatpush.bf16.xpose.msrb.mxu3 %v1470_v21 }
  0x78   : > { %1976 = vmatmul.msk.bf16.vlgmr.msra.gmra.mxu0 %vm268_vm0, %v2069_v25  ;;  %1985 = vmatmul.msk.bf16.vlgmr.msra.gmra.mxu1 %vm268_vm0, %v2070_v26  ;;  %v350_v25 = vld [vmem:[%s2313_s23 + $0x88] sm:$0xff]  ;;  %v352_v26 = vld [vmem:[%s2313_s23 + $0x98] sm:$0xff] }
  0x7b   : > { %1994 = vmatmul.msk.bf16.vlgmr.msra.gmra.mxu2 %vm268_vm0, %v2071_v27  ;;  %2003 = vmatmul.msk.bf16.vlgmr.msra.gmra.mxu3 %vm268_vm0, %v2072_v28 }
  0x88   : > { %2012 = vmatmul.msk.bf16.vlgmr.msrb.gmra.mxu0 %vm268_vm0, %v2073_v29  ;;  %2021 = vmatmul.msk.bf16.vlgmr.msrb.gmra.mxu1 %vm268_vm0, %v2074_v30 }
  0x8b   : > { %2030 = vmatmul.msk.bf16.vlgmr.msrb.gmra.mxu2 %vm268_vm0, %v2075_v31  ;;  %2039 = vmatmul.msk.bf16.vlgmr.msrb.gmra.mxu3 %vm268_vm0, %v2076_v32 }
  0x95   : > { %v551_v34 = vpop.f32.mrf.mxu0  ;;  %v581_v35 = vpop.f32.mrf.mxu1 }
  0x96   : > { %v1486_v36 = vadd.f32 %v551_v34, %v333_v33  ;;  %v1488_v48 = vadd.f32 %v581_v35, %v335_v41  ;;  %v354_v35 = vld [vmem:[%s2313_s23 + $0xa8] sm:$0xff] }
  0x98   : > { %1550 = vst.msk [vmem:[%s2313_s23] sm:$0xff] %vm268_vm0, %v1486_v36  ;;  %v356_v36 = vld [vmem:[%s2313_s23 + $0xb8] sm:$0xff] }
  0x99   : > { %1552 = vst.msk [vmem:[%s2313_s23 + $0x10] sm:$0xff] %vm268_vm0, %v1488_v48  ;;  %v363_v48 = vld [vmem:[%s2313_s23 + $0xf0] sm:$0xff] }
  0x9d   : > { %v553_v39 = vpop.f32.mrf.mxu0  ;;  %v583_v40 = vpop.f32.mrf.mxu1 }
  0x9e   : > { %v611_v37 = vpop.f32.mrf.mxu2  ;;  %v641_v38 = vpop.f32.mrf.mxu3  ;;  %v1487_v54 = vadd.f32 %v553_v39, %v334_v49  ;;  %v1489_v56 = vadd.f32 %v583_v40, %v336_v51  ;;  %v358_v49 = vld [vmem:[%s2313_s23 + $0xc8] sm:$0xff] }
  0x9f   : > { %v1490_v50 = vadd.f32 %v611_v37, %v337_v44  ;;  %v1492_v52 = vadd.f32 %v641_v38, %v339_v47  ;;  %v357_v37 = vld [vmem:[%s2313_s23 + $0xc0] sm:$0xff]  ;;  %v359_v38 = vld [vmem:[%s2313_s23 + $0xd0] sm:$0xff] }
  0xa0   : > { %1551 = vst.msk [vmem:[%s2313_s23 + $0x8] sm:$0xff] %vm268_vm0, %v1487_v54  ;;  %v361_v47 = vld [vmem:[%s2313_s23 + $0xe0] sm:$0xff] }
  0xa1   : > { %1554 = vst.msk [vmem:[%s2313_s23 + $0x20] sm:$0xff] %vm268_vm0, %v1490_v50  ;;  %v360_v50 = vld [vmem:[%s2313_s23 + $0xd8] sm:$0xff] }
  0xa2   : > { %1556 = vst.msk [vmem:[%s2313_s23 + $0x30] sm:$0xff] %vm268_vm0, %v1492_v52 }
  0xa3   : > { %1553 = vst.msk [vmem:[%s2313_s23 + $0x18] sm:$0xff] %vm268_vm0, %v1489_v56 }
  0xa5   : > { %v671_v45 = vpop.f32.mrf.mxu0  ;;  %v701_v46 = vpop.f32.mrf.mxu1 }
  0xa6   : > { %v613_v42 = vpop.f32.mrf.mxu2  ;;  %v643_v43 = vpop.f32.mrf.mxu3  ;;  %v1494_v2 = vadd.f32 %v671_v45, %v341_v57  ;;  %v1496_v4 = vadd.f32 %v701_v46, %v343_v59  ;;  %v362_v59 = vld [vmem:[%s2313_s23 + $0xe8] sm:$0xff] }
  0xa7   : > { %v1491_v58 = vadd.f32 %v613_v42, %v338_v53  ;;  %v1493_v62 = vadd.f32 %v643_v43, %v340_v55 }
  0xa8   : > { %1558 = vst.msk [vmem:[%s2313_s23 + $0x40] sm:$0xff] %vm268_vm0, %v1494_v2 }
  0xa9   : > { %1555 = vst.msk [vmem:[%s2313_s23 + $0x28] sm:$0xff] %vm268_vm0, %v1491_v58 }
  0xaa   : > { %1557 = vst.msk [vmem:[%s2313_s23 + $0x38] sm:$0xff] %vm268_vm0, %v1493_v62  ;;  %v367_v62 = vld [vmem:[%s2313_s23 + $0x110] sm:$0xff] }
  0xab   : > { %1560 = vst.msk [vmem:[%s2313_s23 + $0x50] sm:$0xff] %vm268_vm0, %v1496_v4 }
  0xad   : > { %v673_v0 = vpop.f32.mrf.mxu0  ;;  %v703_v1 = vpop.f32.mrf.mxu1 }
  0xae   : > { %v731_v60 = vpop.f32.mrf.mxu2  ;;  %v761_v61 = vpop.f32.mrf.mxu3  ;;  %v1495_v9 = vadd.f32 %v673_v0, %v342_v5  ;;  %v1497_v12 = vadd.f32 %v703_v1, %v344_v7  ;;  %v369_v7 = vld [vmem:[%s2313_s23 + $0x120] sm:$0xff] }
  0xaf   : > { %v1498_v6 = vadd.f32 %v731_v60, %v345_v63  ;;  %v1500_v8 = vadd.f32 %v761_v61, %v347_v3  ;;  %v364_v60 = vld [vmem:[%s2313_s23 + $0xf8] sm:$0xff]  ;;  %v365_v61 = vld [vmem:[%s2313_s23 + $0x100] sm:$0xff] }
  0xb0   : > { %1559 = vst.msk [vmem:[%s2313_s23 + $0x48] sm:$0xff] %vm268_vm0, %v1495_v9  ;;  %v366_v9 = vld [vmem:[%s2313_s23 + $0x108] sm:$0xff] }
  0xb1   : > { %1562 = vst.msk [vmem:[%s2313_s23 + $0x60] sm:$0xff] %vm268_vm0, %v1498_v6 }
  0xb2   : > { %1564 = vst.msk [vmem:[%s2313_s23 + $0x70] sm:$0xff] %vm268_vm0, %v1500_v8  ;;  %v371_v8 = vld [vmem:[%s2313_s23 + $0x130] sm:$0xff] }
  0xb3   : > { %1561 = vst.msk [vmem:[%s2313_s23 + $0x58] sm:$0xff] %vm268_vm0, %v1497_v12 }
  0xb5   : > { %v791_v19 = vpop.f32.mrf.mxu0  ;;  %v821_v20 = vpop.f32.mrf.mxu1 }
  0xb6   : > { %v733_v14 = vpop.f32.mrf.mxu2  ;;  %v763_v15 = vpop.f32.mrf.mxu3  ;;  %v1502_v21 = vadd.f32 %v791_v19, %v349_v13  ;;  %v1504_v22 = vadd.f32 %v821_v20, %v351_v16  ;;  %v370_v19 = vld [vmem:[%s2313_s23 + $0x128] sm:$0xff]  ;;  %v372_v20 = vld [vmem:[%s2313_s23 + $0x138] sm:$0xff] }
  0xb7   : > { %v1499_v17 = vadd.f32 %v733_v14, %v346_v10  ;;  %v1501_v18 = vadd.f32 %v763_v15, %v348_v11  ;;  %v368_v10 = vld [vmem:[%s2313_s23 + $0x118] sm:$0xff] }
  0xb8   : > { %1566 = vst.msk [vmem:[%s2313_s23 + $0x80] sm:$0xff] %vm268_vm0, %v1502_v21  ;;  %v373_v21 = vld [vmem:[%s2313_s23 + $0x140] sm:$0xff] }
  0xb9   : > { %1563 = vst.msk [vmem:[%s2313_s23 + $0x68] sm:$0xff] %vm268_vm0, %v1499_v17 }
  0xba   : > { %1565 = vst.msk [vmem:[%s2313_s23 + $0x78] sm:$0xff] %vm268_vm0, %v1501_v18 }
  0xbb   : > { %1568 = vst.msk [vmem:[%s2313_s23 + $0x90] sm:$0xff] %vm268_vm0, %v1504_v22  ;;  %v375_v22 = vld [vmem:[%s2313_s23 + $0x150] sm:$0xff] }
  0xbd   : > { %v793_v31 = vpop.f32.mrf.mxu0  ;;  %v823_v32 = vpop.f32.mrf.mxu1 }
  0xbe   : > { %v851_v27 = vpop.f32.mrf.mxu2  ;;  %v881_v28 = vpop.f32.mrf.mxu3  ;;  %v1503_v33 = vadd.f32 %v793_v31, %v350_v25  ;;  %v1505_v34 = vadd.f32 %v823_v32, %v352_v26  ;;  %v377_v31 = vld [vmem:[%s2313_s23 + $0x160] sm:$0xff]  ;;  %v379_v32 = vld [vmem:[%s2313_s23 + $0x170] sm:$0xff] }
  0xbf   : > { %v1506_v29 = vadd.f32 %v851_v27, %v353_v23  ;;  %v1508_v30 = vadd.f32 %v881_v28, %v355_v24 }
  0xc0   : > { %1567 = vst.msk [vmem:[%s2313_s23 + $0x88] sm:$0xff] %vm268_vm0, %v1503_v33  ;;  %v374_v33 = vld [vmem:[%s2313_s23 + $0x148] sm:$0xff] }
  0xc1   : > { %1570 = vst.msk [vmem:[%s2313_s23 + $0xa0] sm:$0xff] %vm268_vm0, %v1506_v29 }
  0xc2   : > { %1572 = vst.msk [vmem:[%s2313_s23 + $0xb0] sm:$0xff] %vm268_vm0, %v1508_v30 }
  0xc3   : > { %1569 = vst.msk [vmem:[%s2313_s23 + $0x98] sm:$0xff] %vm268_vm0, %v1505_v34  ;;  %v376_v34 = vld [vmem:[%s2313_s23 + $0x158] sm:$0xff] }
  0xc5   : > { %v911_v43 = vpop.f32.mrf.mxu0  ;;  %v941_v44 = vpop.f32.mrf.mxu1 }
  0xc6   : > { %v853_v39 = vpop.f32.mrf.mxu2  ;;  %v883_v40 = vpop.f32.mrf.mxu3  ;;  %v1510_v45 = vadd.f32 %v911_v43, %v357_v37  ;;  %v1512_v46 = vadd.f32 %v941_v44, %v359_v38  ;;  %v378_v43 = vld [vmem:[%s2313_s23 + $0x168] sm:$0xff]  ;;  %v380_v44 = vld [vmem:[%s2313_s23 + $0x178] sm:$0xff] }
  0xc7   : > { %v1507_v41 = vadd.f32 %v853_v39, %v354_v35  ;;  %v1509_v42 = vadd.f32 %v883_v40, %v356_v36 }
  0xc8   : > { %1574 = vst.msk [vmem:[%s2313_s23 + $0xc0] sm:$0xff] %vm268_vm0, %v1510_v45  ;;  %v381_v45 = vld [vmem:[%s2313_s23 + $0x180] sm:$0xff] }
  0xc9   : > { %1571 = vst.msk [vmem:[%s2313_s23 + $0xa8] sm:$0xff] %vm268_vm0, %v1507_v41 }
  0xca   : > { %1573 = vst.msk [vmem:[%s2313_s23 + $0xb8] sm:$0xff] %vm268_vm0, %v1509_v42 }
  0xcb   : > { %1576 = vst.msk [vmem:[%s2313_s23 + $0xd0] sm:$0xff] %vm268_vm0, %v1512_v46  ;;  %v383_v46 = vld [vmem:[%s2313_s23 + $0x190] sm:$0xff] }
  0xcd   : > { %v913_v55 = vpop.f32.mrf.mxu0  ;;  %v943_v56 = vpop.f32.mrf.mxu1 }
  0xce   : > { %v971_v51 = vpop.f32.mrf.mxu2  ;;  %v1001_v52 = vpop.f32.mrf.mxu3  ;;  %v1511_v57 = vadd.f32 %v913_v55, %v358_v49  ;;  %v1513_v58 = vadd.f32 %v943_v56, %v360_v50  ;;  %v385_v55 = vld [vmem:[%s2313_s23 + $0x1a0] sm:$0xff]  ;;  %v387_v56 = vld [vmem:[%s2313_s23 + $0x1b0] sm:$0xff] }
  0xcf   : > { %v1514_v53 = vadd.f32 %v971_v51, %v361_v47  ;;  %v1516_v54 = vadd.f32 %v1001_v52, %v363_v48 }
  0xd0   : > { %1575 = vst.msk [vmem:[%s2313_s23 + $0xc8] sm:$0xff] %vm268_vm0, %v1511_v57  ;;  %v382_v57 = vld [vmem:[%s2313_s23 + $0x188] sm:$0xff] }
  0xd1   : > { %1578 = vst.msk [vmem:[%s2313_s23 + $0xe0] sm:$0xff] %vm268_vm0, %v1514_v53 }
  0xd2   : > { %1580 = vst.msk [vmem:[%s2313_s23 + $0xf0] sm:$0xff] %vm268_vm0, %v1516_v54 }
  0xd3   : > { %1577 = vst.msk [vmem:[%s2313_s23 + $0xd8] sm:$0xff] %vm268_vm0, %v1513_v58  ;;  %v384_v58 = vld [vmem:[%s2313_s23 + $0x198] sm:$0xff] }
  0xd5   : > { %v1031_v3 = vpop.f32.mrf.mxu0  ;;  %v1061_v4 = vpop.f32.mrf.mxu1 }
  0xd6   : > { %v973_v63 = vpop.f32.mrf.mxu2  ;;  %v1003_v0 = vpop.f32.mrf.mxu3  ;;  %v1518_v5 = vadd.f32 %v1031_v3, %v365_v61  ;;  %v1520_v6 = vadd.f32 %v1061_v4, %v367_v62  ;;  %v386_v3 = vld [vmem:[%s2313_s23 + $0x1a8] sm:$0xff]  ;;  %v388_v4 = vld [vmem:[%s2313_s23 + $0x1b8] sm:$0xff] }
  0xd7   : > { %v1515_v1 = vadd.f32 %v973_v63, %v362_v59  ;;  %v1517_v2 = vadd.f32 %v1003_v0, %v364_v60 }
  0xd8   : > { %1582 = vst.msk [vmem:[%s2313_s23 + $0x100] sm:$0xff] %vm268_vm0, %v1518_v5  ;;  %v389_v5 = vld [vmem:[%s2313_s23 + $0x1c0] sm:$0xff] }
  0xd9   : > { %1579 = vst.msk [vmem:[%s2313_s23 + $0xe8] sm:$0xff] %vm268_vm0, %v1515_v1 }
  0xda   : > { %1581 = vst.msk [vmem:[%s2313_s23 + $0xf8] sm:$0xff] %vm268_vm0, %v1517_v2 }
  0xdb   : > { %1584 = vst.msk [vmem:[%s2313_s23 + $0x110] sm:$0xff] %vm268_vm0, %v1520_v6  ;;  %v391_v6 = vld [vmem:[%s2313_s23 + $0x1d0] sm:$0xff] }
  0xdd   : > { %v1033_v15 = vpop.f32.mrf.mxu0  ;;  %v1063_v16 = vpop.f32.mrf.mxu1 }
  0xde   : > { %v1091_v11 = vpop.f32.mrf.mxu2  ;;  %v1121_v12 = vpop.f32.mrf.mxu3  ;;  %v1519_v17 = vadd.f32 %v1033_v15, %v366_v9  ;;  %v1521_v18 = vadd.f32 %v1063_v16, %v368_v10  ;;  %v393_v15 = vld [vmem:[%s2313_s23 + $0x1e0] sm:$0xff]  ;;  %v395_v16 = vld [vmem:[%s2313_s23 + $0x1f0] sm:$0xff] }
  0xdf   : > { %v1522_v13 = vadd.f32 %v1091_v11, %v369_v7  ;;  %v1524_v14 = vadd.f32 %v1121_v12, %v371_v8 }
  0xe0   : > { %1583 = vst.msk [vmem:[%s2313_s23 + $0x108] sm:$0xff] %vm268_vm0, %v1519_v17  ;;  %v390_v17 = vld [vmem:[%s2313_s23 + $0x1c8] sm:$0xff] }
  0xe1   : > { %1586 = vst.msk [vmem:[%s2313_s23 + $0x120] sm:$0xff] %vm268_vm0, %v1522_v13 }
  0xe2   : > { %1588 = vst.msk [vmem:[%s2313_s23 + $0x130] sm:$0xff] %vm268_vm0, %v1524_v14 }
  0xe3   : > { %1585 = vst.msk [vmem:[%s2313_s23 + $0x118] sm:$0xff] %vm268_vm0, %v1521_v18  ;;  %v392_v18 = vld [vmem:[%s2313_s23 + $0x1d8] sm:$0xff] }
  0xe5   : > { %v1151_v27 = vpop.f32.mrf.mxu0  ;;  %v1181_v28 = vpop.f32.mrf.mxu1 }
  0xe6   : > { %v1093_v23 = vpop.f32.mrf.mxu2  ;;  %v1123_v24 = vpop.f32.mrf.mxu3  ;;  %v1526_v29 = vadd.f32 %v1151_v27, %v373_v21  ;;  %v1528_v30 = vadd.f32 %v1181_v28, %v375_v22  ;;  %v394_v27 = vld [vmem:[%s2313_s23 + $0x1e8] sm:$0xff]  ;;  %v396_v28 = vld [vmem:[%s2313_s23 + $0x1f8] sm:$0xff] }
  0xe7   : > { %v1523_v25 = vadd.f32 %v1093_v23, %v370_v19  ;;  %v1525_v26 = vadd.f32 %v1123_v24, %v372_v20 }
  0xe8   : > { %1590 = vst.msk [vmem:[%s2313_s23 + $0x140] sm:$0xff] %vm268_vm0, %v1526_v29 }
  0xe9   : > { %1587 = vst.msk [vmem:[%s2313_s23 + $0x128] sm:$0xff] %vm268_vm0, %v1523_v25 }
  0xea   : > { %1589 = vst.msk [vmem:[%s2313_s23 + $0x138] sm:$0xff] %vm268_vm0, %v1525_v26 }
  0xeb   : > { %1592 = vst.msk [vmem:[%s2313_s23 + $0x150] sm:$0xff] %vm268_vm0, %v1528_v30 }
  0xed   : > { %v1153_v39 = vpop.f32.mrf.mxu0  ;;  %v1183_v40 = vpop.f32.mrf.mxu1 }
  0xee   : > { %v1211_v35 = vpop.f32.mrf.mxu2  ;;  %v1241_v36 = vpop.f32.mrf.mxu3  ;;  %v1527_v41 = vadd.f32 %v1153_v39, %v374_v33  ;;  %v1529_v42 = vadd.f32 %v1183_v40, %v376_v34 }
  0xef   : > { %v1530_v37 = vadd.f32 %v1211_v35, %v377_v31  ;;  %v1532_v38 = vadd.f32 %v1241_v36, %v379_v32 }
  0xf0   : > { %1591 = vst.msk [vmem:[%s2313_s23 + $0x148] sm:$0xff] %vm268_vm0, %v1527_v41 }
  0xf1   : > { %1594 = vst.msk [vmem:[%s2313_s23 + $0x160] sm:$0xff] %vm268_vm0, %v1530_v37 }
  0xf2   : > { %1596 = vst.msk [vmem:[%s2313_s23 + $0x170] sm:$0xff] %vm268_vm0, %v1532_v38 }
  0xf3   : > { %1593 = vst.msk [vmem:[%s2313_s23 + $0x158] sm:$0xff] %vm268_vm0, %v1529_v42 }
  0xf5   : > { %v1271_v51 = vpop.f32.mrf.mxu0  ;;  %v1301_v52 = vpop.f32.mrf.mxu1 }
  0xf6   : > { %v1213_v47 = vpop.f32.mrf.mxu2  ;;  %v1243_v48 = vpop.f32.mrf.mxu3  ;;  %v1534_v53 = vadd.f32 %v1271_v51, %v381_v45  ;;  %v1536_v54 = vadd.f32 %v1301_v52, %v383_v46 }
  0xf7   : > { %v1531_v49 = vadd.f32 %v1213_v47, %v378_v43  ;;  %v1533_v50 = vadd.f32 %v1243_v48, %v380_v44 }
  0xf8   : > { %1598 = vst.msk [vmem:[%s2313_s23 + $0x180] sm:$0xff] %vm268_vm0, %v1534_v53 }
  0xf9   : > { %1595 = vst.msk [vmem:[%s2313_s23 + $0x168] sm:$0xff] %vm268_vm0, %v1531_v49 }
  0xfa   : > { %1597 = vst.msk [vmem:[%s2313_s23 + $0x178] sm:$0xff] %vm268_vm0, %v1533_v50 }
  0xfb   : > { %1600 = vst.msk [vmem:[%s2313_s23 + $0x190] sm:$0xff] %vm268_vm0, %v1536_v54 }
  0xfd   : > { %v1273_v63 = vpop.f32.mrf.mxu0  ;;  %v1303_v0 = vpop.f32.mrf.mxu1 }
  0xfe   : > { %v1331_v59 = vpop.f32.mrf.mxu2  ;;  %v1361_v60 = vpop.f32.mrf.mxu3  ;;  %v1535_v1 = vadd.f32 %v1273_v63, %v382_v57  ;;  %v1537_v2 = vadd.f32 %v1303_v0, %v384_v58 }
  0xff   : > { %v1538_v61 = vadd.f32 %v1331_v59, %v385_v55  ;;  %v1540_v62 = vadd.f32 %v1361_v60, %v387_v56 }
 0x100   : > { %1599 = vst.msk [vmem:[%s2313_s23 + $0x188] sm:$0xff] %vm268_vm0, %v1535_v1 }
 0x101   : > { %1602 = vst.msk [vmem:[%s2313_s23 + $0x1a0] sm:$0xff] %vm268_vm0, %v1538_v61 }
 0x102   : > { %1604 = vst.msk [vmem:[%s2313_s23 + $0x1b0] sm:$0xff] %vm268_vm0, %v1540_v62 }
 0x103   : > { %1601 = vst.msk [vmem:[%s2313_s23 + $0x198] sm:$0xff] %vm268_vm0, %v1537_v2 }
 0x105   : > { %v1391_v11 = vpop.f32.mrf.mxu0  ;;  %v1421_v12 = vpop.f32.mrf.mxu1 }
 0x106   : > { %v1333_v7 = vpop.f32.mrf.mxu2  ;;  %v1363_v8 = vpop.f32.mrf.mxu3  ;;  %v1542_v13 = vadd.f32 %v1391_v11, %v389_v5  ;;  %v1544_v14 = vadd.f32 %v1421_v12, %v391_v6 }
 0x107   : > { %v1539_v9 = vadd.f32 %v1333_v7, %v386_v3  ;;  %v1541_v10 = vadd.f32 %v1363_v8, %v388_v4 }
 0x108   : > { %1606 = vst.msk [vmem:[%s2313_s23 + $0x1c0] sm:$0xff] %vm268_vm0, %v1542_v13 }
 0x109   : > { %1603 = vst.msk [vmem:[%s2313_s23 + $0x1a8] sm:$0xff] %vm268_vm0, %v1539_v9 }
 0x10a   : > { %1605 = vst.msk [vmem:[%s2313_s23 + $0x1b8] sm:$0xff] %vm268_vm0, %v1541_v10 }
 0x10b   : > { %1608 = vst.msk [vmem:[%s2313_s23 + $0x1d0] sm:$0xff] %vm268_vm0, %v1544_v14 }
 0x10d   : > { %v1393_v23 = vpop.f32.mrf.mxu0  ;;  %v1423_v24 = vpop.f32.mrf.mxu1 }
 0x10e   : > { %v1451_v19 = vpop.f32.mrf.mxu2  ;;  %v1481_v20 = vpop.f32.mrf.mxu3  ;;  %v1543_v25 = vadd.f32 %v1393_v23, %v390_v17  ;;  %v1545_v26 = vadd.f32 %v1423_v24, %v392_v18 }
 0x10f   : > { %v1546_v21 = vadd.f32 %v1451_v19, %v393_v15  ;;  %v1548_v22 = vadd.f32 %v1481_v20, %v395_v16 }
 0x110   : > { %1607 = vst.msk [vmem:[%s2313_s23 + $0x1c8] sm:$0xff] %vm268_vm0, %v1543_v25 }
 0x111   : > { %1610 = vst.msk [vmem:[%s2313_s23 + $0x1e0] sm:$0xff] %vm268_vm0, %v1546_v21 }
 0x112   : > { %1612 = vst.msk [vmem:[%s2313_s23 + $0x1f0] sm:$0xff] %vm268_vm0, %v1548_v22 }
 0x113   : > { %1609 = vst.msk [vmem:[%s2313_s23 + $0x1d8] sm:$0xff] %vm268_vm0, %v1545_v26 }
 0x116   : > { %v1453_v29 = vpop.f32.mrf.mxu2  ;;  %v1483_v30 = vpop.f32.mrf.mxu3 }
 0x117   : > { %v1547_v31 = vadd.f32 %v1453_v29, %v394_v27  ;;  %v1549_v32 = vadd.f32 %v1483_v30, %v396_v28 }
 0x119   : > { %1611 = vst.msk [vmem:[%s2313_s23 + $0x1e8] sm:$0xff] %vm268_vm0, %v1547_v31 }
 0x11a   : > { %1613 = vst.msk [vmem:[%s2313_s23 + $0x1f8] sm:$0xff] %vm268_vm0, %v1549_v32 }
 0x11b PF: > { %s12_s11 = sadd.s32 1, %s2156_s11   ;;  %s2735_s9 = smov %s2152_s10 }
 0x11c   : > { %p9_p5 = scmp.ge.s32.totalorder %s12_s11, 4   ;;  %s2736_s10 = smov %s2738_s12 }
 0x11e   :  { %11 = sbr.rel (!%p9_p5) target bundleno = 2 (0x2), region = 65 }

// kernel: pairwise_attention_block.12
= control target key start
LH: loop header
LB: loop body
LE: loop exit
PB: predicated region body
PF: predicated region fallthrough
CT: control target
= control target key end

     0   :  { %s1346_s24 = smov 0   ;;  %s1348_s25 = smov 0   ;;  %s2101_s0 = inlined_call_operand.vmem [shape: f32[2,16,16,32], index: 0, kind: input, shape index: {}]   ;;  %s2102_s1 = inlined_call_operand.vmem [shape: f32[2,16,16,32], index: 1, kind: input, shape index: {}]   ;;  %s2103_s2 = inlined_call_operand.vmem [shape: f32[2,16,16,32], index: 2, kind: input, shape index: {}]   ;;  %s2104_s3 = inlined_call_operand.vmem [shape: f32[1,32], index: 3, kind: input, shape index: {}]   ;;  %s2105_s4 = inlined_call_operand.vmem [shape: f32[1,32], index: 4, kind: input, shape index: {}]   ;;  %s2106_s5 = inlined_call_operand.vmem [shape: bf16[32,32], index: 5, kind: input, shape index: {}]   ;;  %s2107_s6 = inlined_call_operand.vmem [shape: f32[1,32], index: 6, kind: input, shape index: {}]   ;;  %s2108_s7 = inlined_call_operand.vmem [shape: f32[2,16,16,32], index: 7, kind: output, shape index: {}]  }
   0x1   :  { %s1350_s26 = smov 0   ;;  %s1352_s27 = smov 0  }
   0x2   :  { %s1354_s28 = smov 0  }
   0x3 LB: > { %s26_s29 = sadd.s32 1, %s1295_s26  ;;  %s29_s30 = sadd.s32 1, %s1299_s27  ;;  %s1303_s28 = sphi %s1354_s28, %s17_s28   ;;  %s1299_s27 = sphi %s1352_s27, %s2136_s27   ;;  %s1295_s26 = sphi %s1350_s26, %s2135_s26   ;;  %s1291_s25 = sphi %s1348_s25, %s2134_s25   ;;  %s1287_s24 = sphi %s1346_s24, %s2133_s24  }
   0x4   : > { %p27_p0 = scmp.ge.s32.totalorder %s26_s29, 2  ;;  %p1144_p1 = scmp.ge.s32.totalorder %s1303_s28, 1 }
   0x5   : > { %p295_p2 = scmp.lt.s32.totalorder %s1303_s28, 5 }
   0x6   : > { %s2138_s29 = smov (%p27_p0, %s26_s29), 0  ;;  %s2140_s30 = smov (!%p27_p0, %s29_s30), %s1299_s27 }
   0x7   : > { %p296_p3 = pnand %p1144_p1, %p295_p2  ;;  %p31_p4 = scmp.ge.s32.totalorder %s2140_s30, 2 }
   0x8   : > { %s1145_s8 = sshll.u32 (!%p296_p3), %s1287_s24, 3  ;;  %p358_p5 = scmp.lt.s32.totalorder (!%p296_p3), %s1291_s25, 1 }
   0x9   : > { %s2142_s30 = smov (%p31_p4, %s2140_s30), 0  ;;  %299 = sbr.rel (%p296_p3) target bundleno = 484 (0x1e4), region = 48 }
   0xa   : > { %p360_p6 = scmp.lt.s32.totalorder (!%p296_p3), %s1145_s8, 15 }
   0xe   : > { %s2144_s25 = smov (!%p358_p5, %s1291_s25), 1  ;;  %s2146_s8 = smov (!%p360_p6, %s1145_s8), 15  ;;  %vm436_vm0 = vcmask 261120   ;;  %v1305_v32 = vmov 32.0  }
   0xf   : > { %s1147_s9 = sshll.u32 %s2144_s25, 5  ;;  %s1146_s10 = sshll.u32 %s2146_s8, 1  ;;  %1231 = vrcp.f32 %v1305_v32 }
  0x10   : > { %s364_s11 = sadd.s32 %s1147_s9, %s1146_s10 }
  0x11   : > { %s1376_s12 = sshll.u32 %s364_s11, 3 }
  0x12   : > { %s1382_s15 = scalar_lea.vmem %s2102_s1, %s1376_s12  ;;  %s1744_s8 = scalar_lea.vmem %s2103_s2, %s1376_s12 }
  0x13   : > { %v430_v0 = vld [vmem:[%s1382_s15 + $0x60] sm:$0xff]  ;;  %v1394_v6 = vld [vmem:[%s1382_s15 + $0x68] sm:$0xff]  ;;  %v1415_v14 = vld [vmem:[%s1382_s15 + $0x50] sm:$0xff]  ;;  %s2009_s11 = scalar_lea.vmem %s2101_s0, %s1376_s12  ;;  %s2022_s17 = scalar_lea.vmem %s2108_s7, %s1376_s12 }
  0x14   : > { %v426_v1 = vld [vmem:[%s1382_s15 + $0x40] sm:$0xff]  ;;  %v473_v3 = vsel %vm436_vm0, %v430_v0, 0.0  ;;  %v1397_v7 = vld [vmem:[%s1382_s15 + $0x48] sm:$0xff]  ;;  %v476_v9 = vsel %vm436_vm0, %v1394_v6, 0.0  ;;  %v467_v17 = vsel %vm436_vm0, %v1415_v14, 0.0  ;;  %v1424_v18 = vld [vmem:[%s1382_s15 + $0x58] sm:$0xff] }
  0x15   : > { %v1387_v2 = vld [vmem:[%s1382_s15] sm:$0xff]  ;;  %v461_v4 = vsel %vm436_vm0, %v426_v1, 0.0  ;;  %474 = vadd.xlane.f32.xlu1 %v473_v3  ;;  %v1400_v8 = vld [vmem:[%s1382_s15 + $0x8] sm:$0xff]  ;;  %v464_v10 = vsel %vm436_vm0, %v1397_v7, 0.0  ;;  %v1427_v19 = vld [vmem:[%s1382_s15 + $0x70] sm:$0xff]  ;;  %v470_v21 = vsel %vm436_vm0, %v1424_v18, 0.0  ;;  %v1232_v33 = vpop.eup %1231 }
  0x16   : > { %v437_v5 = vsel %vm436_vm0, %v1387_v2, 0.0  ;;  %462 = vadd.xlane.f32.xlu0 %v461_v4  ;;  %v440_v11 = vsel %vm436_vm0, %v1400_v8, 0.0  ;;  %v1409_v12 = vld [vmem:[%s1382_s15 + $0x20] sm:$0xff]  ;;  %v1412_v13 = vld [vmem:[%s1382_s15 + $0x28] sm:$0xff]  ;;  %v1430_v20 = vld [vmem:[%s1382_s15 + $0x78] sm:$0xff]  ;;  %v479_v22 = vsel %vm436_vm0, %v1427_v19, 0.0  ;;  %vm490_vm1 = vweird.f32 %v1232_v33 }
  0x17   : > { %438 = vadd.xlane.f32.xlu2 %v437_v5  ;;  %v449_v15 = vsel %vm436_vm0, %v1409_v12, 0.0  ;;  %v452_v16 = vsel %vm436_vm0, %v1412_v13, 0.0  ;;  %v482_v23 = vsel %vm436_vm0, %v1430_v20, 0.0  ;;  %v1439_v24 = vld [vmem:[%s1382_s15 + $0x10] sm:$0xff]  ;;  %v1442_v25 = vld [vmem:[%s1382_s15 + $0x18] sm:$0xff]  ;;  %v486_v34 = vmul.f32 32.0, %v1232_v33 }
  0x18   : > { %v1445_v26 = vld [vmem:[%s1382_s15 + $0x30] sm:$0xff]  ;;  %v443_v27 = vsel %vm436_vm0, %v1439_v24, 0.0  ;;  %v446_v28 = vsel %vm436_vm0, %v1442_v25, 0.0  ;;  %v1454_v30 = vld [vmem:[%s1382_s15 + $0x38] sm:$0xff] }
  0x19   : > { %v455_v29 = vsel %vm436_vm0, %v1445_v26, 0.0  ;;  %v458_v31 = vsel %vm436_vm0, %v1454_v30, 0.0  ;;  %v487_v35 = vsub.f32 1.0, %v486_v34 }
  0x1b   : > { %v488_v36 = vmul.f32 %v1232_v33, %v487_v35 }
  0x1d   : > { %477 = vadd.xlane.f32.xlu1 %v476_v9  ;;  %v489_v37 = vadd.f32 %v1232_v33, %v488_v36 }
  0x1e   : > { %465 = vadd.xlane.f32.xlu0 %v464_v10 }
  0x1f   : > { %441 = vadd.xlane.f32.xlu2 %v440_v11  ;;  %v1458_v38 = vsel %vm490_vm1, %v1232_v33, %v489_v37 }
  0x25   : > { %453 = vadd.xlane.f32.xlu1 %v452_v16 }
  0x26   : > { %450 = vadd.xlane.f32.xlu0 %v449_v15 }
  0x27   : > { %468 = vadd.xlane.f32.xlu2 %v467_v17 }
  0x2d   : > { %480 = vadd.xlane.f32.xlu1 %v479_v22 }
  0x2e   : > { %471 = vadd.xlane.f32.xlu0 %v470_v21 }
  0x2f   : > { %483 = vadd.xlane.f32.xlu2 %v482_v23 }
  0x35   : > { %447 = vadd.xlane.f32.xlu1 %v446_v28 }
  0x36   : > { %444 = vadd.xlane.f32.xlu0 %v443_v27 }
  0x37   : > { %456 = vadd.xlane.f32.xlu2 %v455_v29 }
  0x3e   : > { %459 = vadd.xlane.f32.xlu0 %v458_v31 }
  0x88   : > { %v475_v39 = vpop.xlane.xlu1 %474 }
  0x89   : > { %v463_v40 = vpop.xlane.xlu0 %462  ;;  %v504_v41 = vmul.f32 %v1458_v38, %v475_v39 }
  0x8a   : > { %v500_v42 = vmul.f32 %v1458_v38, %v463_v40  ;;  %v439_v43 = vpop.xlane.xlu2 %438 }
  0x8b   : > { %v1462_v44 = vsub.f32 %v430_v0, %v504_v41  ;;  %v492_v56 = vmul.f32 %v1458_v38, %v439_v43 }
  0x8c   : > { %v1464_v45 = vsub.f32 %v426_v1, %v500_v42 }
  0x8d   : > { %v536_v47 = vmul.f32 %v1462_v44, %v1462_v44  ;;  %v1492_v63 = vsub.f32 %v1387_v2, %v492_v56 }
  0x8e   : > { %v532_v46 = vmul.f32 %v1464_v45, %v1464_v45 }
  0x8f   : > { %v576_v49 = vsel %vm436_vm0, %v536_v47, 0.0  ;;  %v524_v10 = vmul.f32 %v1492_v63, %v1492_v63 }
  0x90   : > { %v564_v48 = vsel %vm436_vm0, %v532_v46, 0.0  ;;  %v478_v50 = vpop.xlane.xlu1 %477  ;;  %577 = vadd.xlane.f32.xlu0 %v576_v49 }
  0x91   : > { %v466_v51 = vpop.xlane.xlu0 %465  ;;  %565 = vadd.xlane.f32.xlu1 %v564_v48  ;;  %v505_v52 = vmul.f32 %v1458_v38, %v478_v50 }
  0x92   : > { %v501_v53 = vmul.f32 %v1458_v38, %v466_v51  ;;  %v442_v54 = vpop.xlane.xlu2 %441 }
  0x93   : > { %v493_v55 = vmul.f32 %v1458_v38, %v442_v54  ;;  %v1477_v57 = vsub.f32 %v1394_v6, %v505_v52 }
  0x94   : > { %v1480_v58 = vsub.f32 %v1397_v7, %v501_v53 }
  0x95   : > { %v1483_v59 = vsub.f32 %v1400_v8, %v493_v55  ;;  %v537_v60 = vmul.f32 %v1477_v57, %v1477_v57 }
  0x96   : > { %v533_v61 = vmul.f32 %v1480_v58, %v1480_v58 }
  0x97   : > { %v525_v62 = vmul.f32 %v1483_v59, %v1483_v59  ;;  %v579_v0 = vsel %vm436_vm0, %v537_v60, 0.0 }
  0x98   : > { %v567_v1 = vsel %vm436_vm0, %v533_v61, 0.0  ;;  %v454_v5 = vpop.xlane.xlu1 %453 }
  0x99   : > { %v451_v3 = vpop.xlane.xlu0 %450  ;;  %580 = vadd.xlane.f32.xlu1 %v579_v0  ;;  %568 = vadd.xlane.f32.xlu2 %v567_v1  ;;  %v543_v4 = vsel %vm436_vm0, %v525_v62, 0.0  ;;  %v497_v8 = vmul.f32 %v1458_v38, %v454_v5 }
  0x9a   : > { %v496_v6 = vmul.f32 %v1458_v38, %v451_v3  ;;  %544 = vadd.xlane.f32.xlu0 %v543_v4  ;;  %v469_v7 = vpop.xlane.xlu2 %468 }
  0x9b   : > { %v502_v9 = vmul.f32 %v1458_v38, %v469_v7  ;;  %v1509_v15 = vsub.f32 %v1412_v13, %v497_v8  ;;  %v1180_v7 = vld [vmem:[%s2106_s5 + $0x8] sm:$0xff] }
  0x9c   : > { %v1501_v2 = vsub.f32 %v1409_v12, %v496_v6  ;;  %v540_v12 = vsel %vm436_vm0, %v524_v10, 0.0  ;;  %1182 = vmatpush.bf16.msra.mxu2 %v1180_v7  ;;  %1183 = vmatpush.bf16.msra.mxu3 %v1180_v7 }
  0x9d   : > { %v1506_v11 = vsub.f32 %v1415_v14, %v502_v9  ;;  %v529_v29 = vmul.f32 %v1509_v15, %v1509_v15  ;;  %924 = vmatpush.bf16.msra.mxu0 %v1180_v7  ;;  %1181 = vmatpush.bf16.msra.mxu1 %v1180_v7 }
  0x9e   : > { %v528_v16 = vmul.f32 %v1501_v2, %v1501_v2 }
  0x9f   : > { %v534_v17 = vmul.f32 %v1506_v11, %v1506_v11  ;;  %v555_v36 = vsel %vm436_vm0, %v529_v29, 0.0 }
  0xa0   : > { %v552_v21 = vsel %vm436_vm0, %v528_v16, 0.0  ;;  %v481_v14 = vpop.xlane.xlu1 %480 }
  0xa1   : > { %v472_v22 = vpop.xlane.xlu0 %471  ;;  %553 = vadd.xlane.f32.xlu1 %v552_v21  ;;  %541 = vadd.xlane.f32.xlu2 %v540_v12  ;;  %v570_v23 = vsel %vm436_vm0, %v534_v17, 0.0  ;;  %v506_v28 = vmul.f32 %v1458_v38, %v481_v14 }
  0xa2   : > { %v503_v27 = vmul.f32 %v1458_v38, %v472_v22  ;;  %571 = vadd.xlane.f32.xlu0 %v570_v23  ;;  %v484_v13 = vpop.xlane.xlu2 %483 }
  0xa3   : > { %v507_v31 = vmul.f32 %v1458_v38, %v484_v13  ;;  %v1530_v34 = vsub.f32 %v1427_v19, %v506_v28 }
  0xa4   : > { %v1524_v32 = vsub.f32 %v1424_v18, %v503_v27  ;;  %v1179_v27 = vld [vmem:[%s2106_s5] sm:$0xff] }
  0xa5   : > { %v1527_v33 = vsub.f32 %v1430_v20, %v507_v31  ;;  %v538_v43 = vmul.f32 %v1530_v34, %v1530_v34  ;;  %1185 = vmatpush.bf16.msra.mxu2 %v1179_v27  ;;  %1186 = vmatpush.bf16.msra.mxu3 %v1179_v27 }
  0xa6   : > { %v535_v35 = vmul.f32 %v1524_v32, %v1524_v32  ;;  %925 = vmatpush.bf16.msra.mxu0 %v1179_v27  ;;  %1184 = vmatpush.bf16.msra.mxu1 %v1179_v27 }
  0xa7   : > { %v539_v37 = vmul.f32 %v1527_v33, %v1527_v33  ;;  %v582_v51 = vsel %vm436_vm0, %v538_v43, 0.0 }
  0xa8   : > { %v573_v39 = vsel %vm436_vm0, %v535_v35, 0.0  ;;  %v448_v20 = vpop.xlane.xlu1 %447 }
  0xa9   : > { %574 = vadd.xlane.f32.xlu1 %v573_v39  ;;  %v445_v40 = vpop.xlane.xlu0 %444  ;;  %556 = vadd.xlane.f32.xlu2 %v555_v36  ;;  %v585_v18 = vsel %vm436_vm0, %v539_v37, 0.0  ;;  %v495_v42 = vmul.f32 %v1458_v38, %v448_v20 }
  0xaa   : > { %v494_v41 = vmul.f32 %v1458_v38, %v445_v40  ;;  %586 = vadd.xlane.f32.xlu0 %v585_v18  ;;  %v457_v19 = vpop.xlane.xlu2 %456 }
  0xab   : > { %v498_v46 = vmul.f32 %v1458_v38, %v457_v19  ;;  %v1551_v49 = vsub.f32 %v1442_v25, %v495_v42 }
  0xac   : > { %v1545_v47 = vsub.f32 %v1439_v24, %v494_v41 }
  0xad   : > { %v1548_v48 = vsub.f32 %v1445_v26, %v498_v46  ;;  %v527_v25 = vmul.f32 %v1551_v49, %v1551_v49 }
  0xae   : > { %v526_v50 = vmul.f32 %v1545_v47, %v1545_v47 }
  0xaf   : > { %v530_v52 = vmul.f32 %v1548_v48, %v1548_v48  ;;  %v549_v60 = vsel %vm436_vm0, %v527_v25, 0.0 }
  0xb0   : > { %v546_v53 = vsel %vm436_vm0, %v526_v50, 0.0 }
  0xb1   : > { %547 = vadd.xlane.f32.xlu1 %v546_v53  ;;  %v460_v54 = vpop.xlane.xlu0 %459  ;;  %583 = vadd.xlane.f32.xlu2 %v582_v51  ;;  %v558_v24 = vsel %vm436_vm0, %v530_v52, 0.0 }
  0xb2   : > { %v499_v26 = vmul.f32 %v1458_v38, %v460_v54  ;;  %559 = vadd.xlane.f32.xlu0 %v558_v24 }
  0xb4   : > { %v1564_v55 = vsub.f32 %v1454_v30, %v499_v26 }
  0xb6   : > { %v531_v56 = vmul.f32 %v1564_v55, %v1564_v55 }
  0xb8   : > { %v561_v61 = vsel %vm436_vm0, %v531_v56, 0.0 }
  0xb9   : > { %562 = vadd.xlane.f32.xlu1 %v561_v61  ;;  %550 = vadd.xlane.f32.xlu2 %v549_v60 }
 0x103   : > { %v578_v0 = vpop.xlane.xlu0 %577 }
 0x104   : > { %v566_v62 = vpop.xlane.xlu1 %565  ;;  %v600_v3 = vmul.f32 %v578_v0, %v1458_v38 }
 0x105   : > { %v596_v1 = vmul.f32 %v566_v62, %v1458_v38 }
 0x106   : > { %v1572_v5 = vadd.f32 1e-05, %v600_v3 }
 0x107   : > { %v612_v4 = vadd.f32 1e-05, %v596_v1 }
 0x108   : > { %vm746_vm6 = vweird.f32 %v1572_v5 }
 0x109   : > { %1233 = vrsqrt.f32 %v612_v4  ;;  %vm706_vm4 = vweird.f32 %v612_v4 }
 0x10a   : > { %1235 = vrsqrt.f32 %v1572_v5 }
 0x10c   : > { %v581_v30 = vpop.xlane.xlu1 %580  ;;  %v569_v6 = vpop.xlane.xlu2 %568 }
 0x10d   : > { %v601_v8 = vmul.f32 %v581_v30, %v1458_v38  ;;  %v545_v9 = vpop.xlane.xlu0 %544  ;;  %v597_v10 = vmul.f32 %v569_v6, %v1458_v38 }
 0x10e   : > { %v589_v16 = vmul.f32 %v545_v9, %v1458_v38 }
 0x10f   : > { %v1581_v17 = vpop.eup %1233  ;;  %v1583_v21 = vadd.f32 1e-05, %v601_v8  ;;  %v1585_v12 = vadd.f32 1e-05, %v597_v10 }
 0x110   : > { %v1587_v22 = vpop.eup %1235  ;;  %v701_v23 = vmul.f32 %v1581_v17, %v612_v4  ;;  %v1590_v14 = vadd.f32 1e-05, %v589_v16  ;;  %vm707_vm2 = vweird.f32 %v1581_v17 }
 0x111   : > { %v741_v13 = vmul.f32 %v1587_v22, %v1572_v5  ;;  %1237 = vrsqrt.f32 %v1583_v21  ;;  %vm747_vm3 = vweird.f32 %v1587_v22  ;;  %vm1631_vm5 = vmor %vm706_vm4, %vm707_vm2  ;;  %vm756_vm7 = vweird.f32 %v1583_v21 }
 0x112   : > { %v702_v28 = vmul.f32 %v1581_v17, %v701_v23  ;;  %1239 = vrsqrt.f32 %v1590_v14  ;;  %vm636_vm8 = vweird.f32 %v1590_v14  ;;  %vm1644_vm9 = vmor %vm746_vm6, %vm747_vm3  ;;  %vm716_vm10 = vweird.f32 %v1585_v12 }
 0x113   : > { %v742_v29 = vmul.f32 %v1587_v22, %v741_v13  ;;  %1241 = vrsqrt.f32 %v1585_v12  ;;  %v1665_v13 = vld [vmem:[%s2104_s3] ss:$0 sm:$0xff] }
 0x114   : > { %v703_v31 = vmul.f32 0.5, %v702_v28  ;;  %v554_v35 = vpop.xlane.xlu1 %553  ;;  %v542_v36 = vpop.xlane.xlu2 %541 }
 0x115   : > { %v743_v37 = vmul.f32 0.5, %v742_v29  ;;  %v592_v39 = vmul.f32 %v554_v35, %v1458_v38  ;;  %v572_v40 = vpop.xlane.xlu0 %571  ;;  %v588_v18 = vmul.f32 %v542_v36, %v1458_v38 }
 0x116   : > { %v704_v20 = vsub.f32 1.5, %v703_v31  ;;  %v598_v41 = vmul.f32 %v572_v40, %v1458_v38 }
 0x117   : > { %v1605_v19 = vpop.eup %1237  ;;  %v744_v42 = vsub.f32 1.5, %v743_v37  ;;  %v1608_v43 = vadd.f32 1e-05, %v592_v39  ;;  %v1624_v26 = vadd.f32 1e-05, %v588_v18 }
 0x118   : > { %v1610_v46 = vpop.eup %1239  ;;  %v705_v50 = vmul.f32 %v1581_v17, %v704_v20  ;;  %v751_v51 = vmul.f32 %v1605_v19, %v1583_v21  ;;  %v1616_v52 = vadd.f32 1e-05, %v598_v41  ;;  %vm757_vm11 = vweird.f32 %v1605_v19 }
 0x119   : > { %v1618_v53 = vpop.eup %1241  ;;  %v745_v54 = vmul.f32 %v1587_v22, %v744_v42  ;;  %v631_v24 = vmul.f32 %v1610_v46, %v1590_v14  ;;  %1243 = vrsqrt.f32 %v1608_v43  ;;  %vm637_vm13 = vweird.f32 %v1610_v46  ;;  %vm1706_vm2 = vmor %vm756_vm7, %vm757_vm11 }
 0x11a   : > { %v752_v25 = vmul.f32 %v1605_v19, %v751_v51  ;;  %v711_v56 = vmul.f32 %v1618_v53, %v1585_v12  ;;  %v709_v62 = vsel %vm1631_vm5, %v1581_v17, %v705_v50  ;;  %1245 = vrsqrt.f32 %v1616_v52  ;;  %v1700_v51 = vld [vmem:[%s2105_s4] ss:$0 sm:$0xff]  ;;  %vm1729_vm5 = vmor %vm636_vm8, %vm637_vm13 }
 0x11b   : > { %v632_v61 = vmul.f32 %v1610_v46, %v631_v24  ;;  %v749_v30 = vsel %vm1644_vm9, %v1587_v22, %v745_v54  ;;  %1247 = vrsqrt.f32 %v1624_v26  ;;  %v788_v23 = vmul.f32 %v709_v62, %v1464_v45 }
 0x11c   : > { %v753_v1 = vmul.f32 0.5, %v752_v25  ;;  %v712_v3 = vmul.f32 %v1618_v53, %v711_v56  ;;  %v575_v4 = vpop.xlane.xlu1 %574  ;;  %v557_v5 = vpop.xlane.xlu2 %556  ;;  %v792_v28 = vmul.f32 %v749_v30, %v1462_v44  ;;  %vm717_vm12 = vweird.f32 %v1618_v53 }
 0x11d   : > { %v633_v6 = vmul.f32 0.5, %v632_v61  ;;  %v587_v7 = vpop.xlane.xlu0 %586  ;;  %v599_v10 = vmul.f32 %v575_v4, %v1458_v38  ;;  %v593_v22 = vmul.f32 %v557_v5, %v1458_v38  ;;  %vm666_vm14 = vweird.f32 %v1608_v43  ;;  %vm1688_vm1 = vmor %vm716_vm10, %vm717_vm12 }
 0x11e   : > { %v754_v8 = vsub.f32 1.5, %v753_v1  ;;  %v713_v9 = vmul.f32 0.5, %v712_v3  ;;  %v603_v16 = vmul.f32 %v587_v7, %v1458_v38  ;;  %vm726_vm15 = vweird.f32 %v1616_v52 }
 0x11f   : > { %v1657_v17 = vpop.eup %1243  ;;  %v634_v27 = vsub.f32 1.5, %v633_v6  ;;  %v1674_v35 = vadd.f32 1e-05, %v599_v10  ;;  %v1694_v42 = vadd.f32 1e-05, %v593_v22  ;;  %v807_v50 = vmul.f32 %v1665_v13, %v788_v23  ;;  %v842_v22 = vld [vmem:[%s1744_s8 + $0x40] sm:$0xff] }
 0x120   : > { %v714_v29 = vsub.f32 1.5, %v713_v9  ;;  %v661_v31 = vmul.f32 %v1657_v17, %v1608_v43  ;;  %v755_v45 = vmul.f32 %v1605_v19, %v754_v8  ;;  %v1676_v36 = vpop.eup %1245  ;;  %v1681_v39 = vadd.f32 1e-05, %v603_v16 }
 0x121   : > { %v1683_v40 = vpop.eup %1247  ;;  %v635_v18 = vmul.f32 %v1610_v46, %v634_v27  ;;  %v721_v41 = vmul.f32 %v1676_v36, %v1616_v52  ;;  %v1716_v61 = vmul.f32 %v1665_v13, %v792_v28  ;;  %vm667_vm3 = vweird.f32 %v1657_v17 }
 0x122   : > { %v715_v37 = vmul.f32 %v1618_v53, %v714_v29  ;;  %v662_v44 = vmul.f32 %v1657_v17, %v661_v31  ;;  %v621_v25 = vmul.f32 %v1683_v40, %v1624_v26  ;;  %v759_v21 = vsel %vm1706_vm2, %v1605_v19, %v755_v45  ;;  %vm1757_vm6 = vmor %vm666_vm14, %vm667_vm3 }
 0x123   : > { %v722_v62 = vmul.f32 %v1676_v36, %v721_v41  ;;  %vm626_vm4 = vweird.f32 %v1624_v26  ;;  %1249 = vrsqrt.f32 %v1674_v35  ;;  %v639_v4 = vsel %vm1729_vm5, %v1610_v46, %v635_v18 }
 0x124   : > { %v719_v54 = vsel %vm1688_vm1, %v1618_v53, %v715_v37  ;;  %v663_v24 = vmul.f32 0.5, %v662_v44  ;;  %v548_v56 = vpop.xlane.xlu1 %547  ;;  %v584_v60 = vpop.xlane.xlu2 %583  ;;  %v622_v3 = vmul.f32 %v1683_v40, %v621_v25  ;;  %1251 = vrsqrt.f32 %v1681_v39 }
 0x125   : > { %v560_v53 = vpop.xlane.xlu0 %559  ;;  %v789_v1 = vmul.f32 %v719_v54, %v1480_v58  ;;  %v723_v5 = vmul.f32 0.5, %v722_v62  ;;  %1253 = vrsqrt.f32 %v1694_v42  ;;  %v826_v58 = vadd.f32 %v1700_v51, %v807_v50 }
 0x126   : > { %v664_v19 = vsub.f32 1.5, %v663_v24  ;;  %v623_v30 = vmul.f32 0.5, %v622_v3  ;;  %v590_v6 = vmul.f32 %v548_v56, %v1458_v38  ;;  %v594_v7 = vmul.f32 %v560_v53, %v1458_v38 }
 0x127   : > { %v1751_v46 = vmul.f32 %v759_v21, %v1477_v57  ;;  %v724_v9 = vsub.f32 1.5, %v723_v5  ;;  %vm727_vm7 = vweird.f32 %v1676_v36  ;;  %v602_v10 = vmul.f32 %v584_v60, %v1458_v38  ;;  %v843_v60 = vld [vmem:[%s1744_s8 + $0x48] sm:$0xff] }
 0x128   : > { %v665_v14 = vmul.f32 %v1657_v17, %v664_v19  ;;  %v624_v23 = vsub.f32 1.5, %v623_v30  ;;  %v1766_v57 = vadd.f32 1e-05, %v590_v6  ;;  %v808_v27 = vmul.f32 %v1665_v13, %v789_v1  ;;  %vm1797_vm10 = vmor %vm726_vm15, %vm727_vm7 }
 0x129   : > { %v1770_v43 = vpop.eup %1249  ;;  %v1773_v28 = vmul.f32 %v639_v4, %v1483_v59  ;;  %v725_v29 = vmul.f32 %v1676_v36, %v724_v9  ;;  %vm627_vm8 = vweird.f32 %v1683_v40  ;;  %v1777_v31 = vadd.f32 1e-05, %v594_v7 }
 0x12a   : > { %v669_v16 = vsel %vm1757_vm6, %v1657_v17, %v665_v14  ;;  %v1779_v45 = vpop.eup %1251  ;;  %v625_v17 = vmul.f32 %v1683_v40, %v624_v23  ;;  %v731_v37 = vmul.f32 %v1770_v43, %v1674_v35  ;;  %vm736_vm9 = vweird.f32 %v1674_v35  ;;  %vm1811_vm12 = vmor %vm626_vm4, %vm627_vm8 }
 0x12b   : > { %1255 = vrsqrt.f32 %v1766_v57  ;;  %v1786_v44 = vadd.f32 1e-05, %v602_v10  ;;  %v1788_v59 = vpop.eup %1253  ;;  %v1791_v18 = vmul.f32 %v669_v16, %v1501_v2  ;;  %v771_v41 = vmul.f32 %v1779_v45, %v1681_v39 }
 0x12c   : > { %vm776_vm11 = vweird.f32 %v1681_v39  ;;  %v858_v50 = vmul.f32 %v842_v22, %v826_v58  ;;  %v729_v2 = vsel %vm1797_vm10, %v1676_v36, %v725_v29  ;;  %v732_v12 = vmul.f32 %v1770_v43, %v731_v37  ;;  %v563_v24 = vpop.xlane.xlu1 %562  ;;  %v551_v25 = vpop.xlane.xlu2 %550 }
 0x12d   : > { %v671_v54 = vmul.f32 %v1788_v59, %v1694_v42  ;;  %v827_v56 = vadd.f32 %v1700_v51, %v808_v27  ;;  %v629_v36 = vsel %vm1811_vm12, %v1683_v40, %v625_v17  ;;  %vm737_vm13 = vweird.f32 %v1770_v43 }
 0x12e   : > { %v772_v26 = vmul.f32 %v1779_v45, %v771_v41  ;;  %vm676_vm14 = vweird.f32 %v1694_v42  ;;  %1257 = vrsqrt.f32 %v1777_v31  ;;  %v733_v21 = vmul.f32 0.5, %v732_v12  ;;  %vm1852_vm4 = vmor %vm736_vm9, %vm737_vm13  ;;  %v847_v12 = vld [vmem:[%s1744_s8 + $0x68] sm:$0xff] }
 0x12f   : > { %vm777_vm15 = vweird.f32 %v1779_v45  ;;  %v672_v62 = vmul.f32 %v1788_v59, %v671_v54  ;;  %1259 = vrsqrt.f32 %v1786_v44  ;;  %v1831_v53 = vmul.f32 %v729_v2, %v1506_v11 }
 0x130   : > { %v773_v40 = vmul.f32 0.5, %v772_v26  ;;  %v595_v0 = vmul.f32 %v563_v24, %v1458_v38  ;;  %v591_v1 = vmul.f32 %v551_v25, %v1458_v38  ;;  %v780_v3 = vmul.f32 %v629_v36, %v1492_v63  ;;  %vm778_vm5 = vmor %vm776_vm11, %vm777_vm15 }
 0x131   : > { %v1835_v19 = vpop.eup %1255  ;;  %v734_v4 = vsub.f32 1.5, %v733_v21  ;;  %v673_v5 = vmul.f32 0.5, %v672_v62  ;;  %v859_v58 = vmul.f32 %v843_v60, %v827_v56  ;;  %vm677_vm1 = vweird.f32 %v1788_v59  ;;  %v834_v62 = vld [vmem:[%s1744_s8] sm:$0xff] }
 0x132   : > { %v774_v14 = vsub.f32 1.5, %v773_v40  ;;  %v641_v30 = vmul.f32 %v1835_v19, %v1766_v57  ;;  %vm646_vm2 = vweird.f32 %v1766_v57  ;;  %v1842_v11 = vadd.f32 1e-05, %v595_v0  ;;  %vm1889_vm8 = vmor %vm676_vm14, %vm677_vm1 }
 0x133   : > { %v735_v6 = vmul.f32 %v1770_v43, %v734_v4  ;;  %v674_v38 = vsub.f32 1.5, %v673_v5  ;;  %vm686_vm3 = vweird.f32 %v1777_v31  ;;  %v870_v7 = vpack.c.bf16 %v859_v58, %v858_v50  ;;  %v846_v50 = vld [vmem:[%s1744_s8 + $0x60] sm:$0xff]  ;;  %v835_v4 = vld [vmem:[%s1744_s8 + $0x8] sm:$0xff] }
 0x134   : > { %v1846_v63 = vpop.eup %1257  ;;  %v775_v9 = vmul.f32 %v1779_v45, %v774_v14  ;;  %v642_v10 = vmul.f32 %v1835_v19, %v641_v30  ;;  %1261 = vrsqrt.f32 %v1842_v11  ;;  %v1859_v16 = vadd.f32 1e-05, %v591_v1 }
 0x135   : > { %v1861_v23 = vpop.eup %1259  ;;  %v739_v27 = vsel %vm1852_vm4, %v1770_v43, %v735_v6  ;;  %v675_v35 = vmul.f32 %v1788_v59, %v674_v38  ;;  %v681_v22 = vmul.f32 %v1846_v63, %v1777_v31  ;;  %1173 = vmatmul.msk.bf16.vlgmr.msra.gmra.mxu2 %vm436_vm0, %v870_v7  ;;  %v812_v29 = vmul.f32 %v1665_v13, %v1751_v46 }
 0x136   : > { %v779_v17 = vsel %vm778_vm5, %v1779_v45, %v775_v9  ;;  %v643_v37 = vmul.f32 0.5, %v642_v10  ;;  %vm647_vm6 = vweird.f32 %v1835_v19  ;;  %v761_v39 = vmul.f32 %v1861_v23, %v1786_v44  ;;  %v838_v10 = vld [vmem:[%s1744_s8 + $0x20] sm:$0xff] }
 0x137   : > { %vm766_vm7 = vweird.f32 %v1786_v44  ;;  %v791_v43 = vmul.f32 %v739_v27, %v1524_v32  ;;  %v1883_v20 = vmul.f32 %v779_v17, %v1527_v33  ;;  %v682_v45 = vmul.f32 %v1846_v63, %v681_v22  ;;  %vm1917_vm11 = vmor %vm646_vm2, %vm647_vm6  ;;  %v839_v22 = vld [vmem:[%s1744_s8 + $0x28] sm:$0xff] }
 0x138   : > { %vm687_vm9 = vweird.f32 %v1846_v63  ;;  %v679_v41 = vsel %vm1889_vm8, %v1788_v59, %v675_v35  ;;  %v644_v32 = vsub.f32 1.5, %v643_v37  ;;  %v762_v33 = vmul.f32 %v1861_v23, %v761_v39 }
 0x139   : > { %1263 = vrsqrt.f32 %v1859_v16  ;;  %v683_v2 = vmul.f32 0.5, %v682_v45  ;;  %vm767_vm10 = vweird.f32 %v1861_v23  ;;  %v830_v42 = vadd.f32 %v1700_v51, %v1716_v61  ;;  %vm1938_vm14 = vmor %vm686_vm3, %vm687_vm9 }
 0x13a   : > { %v831_v52 = vadd.f32 %v1700_v51, %v812_v29  ;;  %v1906_v54 = vpop.eup %1261  ;;  %v645_v59 = vmul.f32 %v1835_v19, %v644_v32  ;;  %v763_v24 = vmul.f32 0.5, %v762_v33  ;;  %v799_v25 = vmul.f32 %v1665_v13, %v780_v3  ;;  %vm768_vm15 = vmor %vm766_vm7, %vm767_vm10 }
 0x13b   : > { %v800_v56 = vmul.f32 %v1665_v13, %v1773_v28  ;;  %v785_v36 = vmul.f32 %v679_v41, %v1509_v15  ;;  %v684_v26 = vsub.f32 1.5, %v683_v2  ;;  %v691_v60 = vmul.f32 %v1906_v54, %v1842_v11  ;;  %v844_v41 = vld [vmem:[%s1744_s8 + $0x50] sm:$0xff] }
 0x13c   : > { %vm696_vm12 = vweird.f32 %v1842_v11  ;;  %v862_v21 = vmul.f32 %v846_v50, %v830_v42  ;;  %v649_v15 = vsel %vm1917_vm11, %v1835_v19, %v645_v59  ;;  %v764_v28 = vsub.f32 1.5, %v763_v24  ;;  %v848_v11 = vld [vmem:[%s1744_s8 + $0x70] sm:$0xff] }
 0x13d   : > { %v863_v40 = vmul.f32 %v847_v12, %v831_v52  ;;  %v818_v57 = vadd.f32 %v1700_v51, %v799_v25  ;;  %v685_v0 = vmul.f32 %v1846_v63, %v684_v26  ;;  %v692_v1 = vmul.f32 %v1906_v54, %v691_v60  ;;  %v849_v26 = vld [vmem:[%s1744_s8 + $0x78] sm:$0xff] }
 0x13e   : > { %vm697_vm13 = vweird.f32 %v1906_v54  ;;  %v819_v3 = vadd.f32 %v1700_v51, %v800_v56  ;;  %v765_v58 = vmul.f32 %v1861_v23, %v764_v28  ;;  %v803_v6 = vmul.f32 %v1665_v13, %v1791_v18 }
 0x13f   : > { %v1264_v5 = vpop.eup %1263  ;;  %v872_v14 = vpack.c.bf16 %v863_v40, %v862_v21  ;;  %v850_v30 = vmul.f32 %v834_v62, %v818_v57  ;;  %v782_v38 = vmul.f32 %v649_v15, %v1545_v47  ;;  %v689_v7 = vsel %vm1938_vm14, %v1846_v63, %v685_v0  ;;  %vm698_vm2 = vmor %vm696_vm12, %vm697_vm13  ;;  %v836_v0 = vld [vmem:[%s1744_s8 + $0x10] sm:$0xff] }
 0x140   : > { %v693_v31 = vmul.f32 0.5, %v692_v1  ;;  %v651_v8 = vmul.f32 %v1264_v5, %v1859_v16  ;;  %v769_v9 = vsel %vm768_vm15, %v1861_v23, %v765_v58  ;;  %vm657_vm1 = vweird.f32 %v1264_v5  ;;  %v837_v1 = vld [vmem:[%s1744_s8 + $0x18] sm:$0xff] }
 0x141   : > { %1175 = vmatmul.msk.bf16.vlgmr.msra.gmra.mxu3 %vm436_vm0, %v872_v14  ;;  %v851_v18 = vmul.f32 %v835_v4, %v819_v3  ;;  %v804_v47 = vmul.f32 %v1665_v13, %v785_v36  ;;  %v794_v63 = vmul.f32 %v769_v9, %v1530_v34  ;;  %v822_v44 = vadd.f32 %v1700_v51, %v803_v6  ;;  %v845_v34 = vld [vmem:[%s1744_s8 + $0x58] sm:$0xff]  ;;  %v411_v9 = vld [vmem:[%s2009_s11 + $0x48] sm:$0xff] }
 0x142   : > { %v694_v27 = vsub.f32 1.5, %v693_v31  ;;  %v652_v35 = vmul.f32 %v1264_v5, %v651_v8  ;;  %v809_v23 = vmul.f32 %v1665_v13, %v1831_v53  ;;  %v810_v37 = vmul.f32 %v1665_v13, %v791_v43  ;;  %v841_v3 = vld [vmem:[%s1744_s8 + $0x38] sm:$0xff] }
 0x143   : > { %v866_v29 = vpack.c.bf16 %v851_v18, %v850_v30  ;;  %v823_v17 = vadd.f32 %v1700_v51, %v804_v47  ;;  %v854_v45 = vmul.f32 %v838_v10, %v822_v44  ;;  %v813_v32 = vmul.f32 %v1665_v13, %v794_v63  ;;  %v402_v47 = vld [vmem:[%s2009_s11] sm:$0xff] }
 0x144   : > { %v695_v39 = vmul.f32 %v1906_v54, %v694_v27  ;;  %v653_v46 = vmul.f32 0.5, %v652_v35  ;;  %v828_v53 = vadd.f32 %v1700_v51, %v809_v23  ;;  %v829_v43 = vadd.f32 %v1700_v51, %v810_v37  ;;  %v414_v35 = vld [vmem:[%s2009_s11 + $0x60] sm:$0xff] }
 0x145   : > { %1169 = vmatmul.msk.bf16.vlgmr.msra.gmra.mxu0 %vm436_vm0, %v866_v29  ;;  %v855_v33 = vmul.f32 %v839_v22, %v823_v17  ;;  %v814_v50 = vmul.f32 %v1665_v13, %v1883_v20  ;;  %v786_v2 = vmul.f32 %v689_v7, %v1548_v48  ;;  %v832_v12 = vadd.f32 %v1700_v51, %v813_v32  ;;  %v406_v23 = vld [vmem:[%s2009_s11 + $0x20] sm:$0xff] }
 0x146   : > { %v699_v42 = vsel %vm698_vm2, %v1906_v54, %v695_v39  ;;  %v654_v52 = vsub.f32 1.5, %v653_v46  ;;  %v860_v25 = vmul.f32 %v844_v41, %v828_v53  ;;  %v861_v56 = vmul.f32 %v845_v34, %v829_v43  ;;  %v403_v41 = vld [vmem:[%s2009_s11 + $0x8] sm:$0xff] }
 0x147   : > { %v787_v59 = vmul.f32 %v699_v42, %v1564_v55  ;;  %v868_v24 = vpack.c.bf16 %v855_v33, %v854_v45  ;;  %vm656_vm3 = vweird.f32 %v1859_v16  ;;  %v833_v61 = vadd.f32 %v1700_v51, %v814_v50  ;;  %v415_v33 = vld [vmem:[%s2009_s11 + $0x68] sm:$0xff] }
 0x148   : > { %v655_v36 = vmul.f32 %v1264_v5, %v654_v52  ;;  %vm658_vm4 = vmor %vm656_vm3, %vm657_vm1  ;;  %v871_v48 = vpack.c.bf16 %v861_v56, %v860_v25  ;;  %v864_v20 = vmul.f32 %v848_v11, %v832_v12  ;;  %v801_v55 = vmul.f32 %v1665_v13, %v782_v38  ;;  %v410_v38 = vld [vmem:[%s2009_s11 + $0x40] sm:$0xff]  ;;  %v407_v52 = vld [vmem:[%s2009_s11 + $0x28] sm:$0xff] }
 0x149   : > { %1171 = vmatmul.msk.bf16.vlgmr.msra.gmra.mxu1 %vm436_vm0, %v868_v24  ;;  %v806_v54 = vmul.f32 %v1665_v13, %v787_v59  ;;  %v865_v21 = vmul.f32 %v849_v26, %v833_v61  ;;  %v805_v62 = vmul.f32 %v1665_v13, %v786_v2  ;;  %v412_v2 = vld [vmem:[%s2009_s11 + $0x50] sm:$0xff] }
 0x14a   : > { %v659_v60 = vsel %vm658_vm4, %v1264_v5, %v655_v36  ;;  %1174 = vmatmul.msk.bf16.gmra.mxu2 %vm436_vm0, %v871_v48  ;;  %v820_v40 = vadd.f32 %v1700_v51, %v801_v55  ;;  %v840_v5 = vld [vmem:[%s1744_s8 + $0x30] sm:$0xff] }
 0x14b   : > { %v783_v16 = vmul.f32 %v659_v60, %v1551_v49  ;;  %v873_v15 = vpack.c.bf16 %v865_v21, %v864_v20  ;;  %v825_v57 = vadd.f32 %v1700_v51, %v806_v54  ;;  %v824_v49 = vadd.f32 %v1700_v51, %v805_v62  ;;  %v404_v36 = vld [vmem:[%s2009_s11 + $0x10] sm:$0xff]  ;;  %v413_v60 = vld [vmem:[%s2009_s11 + $0x58] sm:$0xff] }
 0x14c   : > { %v852_v19 = vmul.f32 %v836_v0, %v820_v40  ;;  %v416_v48 = vld [vmem:[%s2009_s11 + $0x70] sm:$0xff] }
 0x14d   : > { %v802_v28 = vmul.f32 %v1665_v13, %v783_v16  ;;  %v857_v14 = vmul.f32 %v841_v3, %v825_v57  ;;  %v856_v30 = vmul.f32 %v840_v5, %v824_v49  ;;  %v408_v21 = vld [vmem:[%s2009_s11 + $0x30] sm:$0xff]  ;;  %v417_v49 = vld [vmem:[%s2009_s11 + $0x78] sm:$0xff] }
 0x14f   : > { %v821_v4 = vadd.f32 %v1700_v51, %v802_v28  ;;  %v869_v6 = vpack.c.bf16 %v857_v14, %v856_v30  ;;  %v2014_v51 = vld [vmem:[%s2107_s6] ss:$0 sm:$0xff]  ;;  %v409_v14 = vld [vmem:[%s2009_s11 + $0x38] sm:$0xff] }
 0x151   : > { %1176 = vmatmul.msk.bf16.gmra.mxu3 %vm436_vm0, %v873_v15  ;;  %v853_v58 = vmul.f32 %v837_v1, %v821_v4  ;;  %v405_v1 = vld [vmem:[%s2009_s11 + $0x18] sm:$0xff] }
 0x153   : > { %v867_v13 = vpack.c.bf16 %v853_v58, %v852_v19 }
 0x155   : > { %1170 = vmatmul.msk.bf16.gmra.mxu0 %vm436_vm0, %v867_v13 }
 0x159   : > { %1172 = vmatmul.msk.bf16.gmra.mxu1 %vm436_vm0, %v869_v6 }
 0x1b8   : > { %v947_v7 = vpop.f32.mrf.mxu2 }
 0x1b9   : > { %v948_v31 = vadd.f32 %v2014_v51, %v947_v7 }
 0x1bb   : > { %v975_v8 = vadd.f32 %v948_v31, %v410_v38 }
 0x1bd   : > { %991 = vst.msk [vmem:[%s2022_s17 + $0x40] sm:$0xff] %vm436_vm0, %v975_v8 }
 0x1c0   : > { %v949_v18 = vpop.f32.mrf.mxu2 }
 0x1c1   : > { %v950_v63 = vadd.f32 %v2014_v51, %v949_v18 }
 0x1c2   : > { %v927_v10 = vpop.f32.mrf.mxu0 }
 0x1c3   : > { %v928_v27 = vadd.f32 %v2014_v51, %v927_v10  ;;  %v976_v22 = vadd.f32 %v950_v63, %v411_v9 }
 0x1c4   : > { %v957_v44 = vpop.f32.mrf.mxu3 }
 0x1c5   : > { %v958_v29 = vadd.f32 %v2014_v51, %v957_v44  ;;  %v967_v17 = vadd.f32 %v928_v27, %v402_v47  ;;  %992 = vst.msk [vmem:[%s2022_s17 + $0x48] sm:$0xff] %vm436_vm0, %v976_v22 }
 0x1c6   : > { %v937_v37 = vpop.f32.mrf.mxu1 }
 0x1c7   : > { %v979_v39 = vadd.f32 %v958_v29, %v414_v35  ;;  %983 = vst.msk [vmem:[%s2022_s17] sm:$0xff] %vm436_vm0, %v967_v17  ;;  %v938_v46 = vadd.f32 %v2014_v51, %v937_v37 }
 0x1c9   : > { %995 = vst.msk [vmem:[%s2022_s17 + $0x60] sm:$0xff] %vm436_vm0, %v979_v39  ;;  %v971_v45 = vadd.f32 %v938_v46, %v406_v23 }
 0x1ca   : > { %v929_v34 = vpop.f32.mrf.mxu0 }
 0x1cb   : > { %v930_v32 = vadd.f32 %v2014_v51, %v929_v34  ;;  %987 = vst.msk [vmem:[%s2022_s17 + $0x20] sm:$0xff] %vm436_vm0, %v971_v45 }
 0x1cc   : > { %v959_v53 = vpop.f32.mrf.mxu3 }
 0x1cd   : > { %v960_v43 = vadd.f32 %v2014_v51, %v959_v53  ;;  %v968_v50 = vadd.f32 %v930_v32, %v403_v41  ;;  %v952_v42 = vpop.f32.mrf.mxu2 }
 0x1ce   : > { %v939_v12 = vpop.f32.mrf.mxu1  ;;  %v953_v59 = vadd.f32 %v2014_v51, %v952_v42 }
 0x1cf   : > { %v980_v11 = vadd.f32 %v960_v43, %v415_v33  ;;  %984 = vst.msk [vmem:[%s2022_s17 + $0x8] sm:$0xff] %vm436_vm0, %v968_v50  ;;  %v940_v24 = vadd.f32 %v2014_v51, %v939_v12 }
 0x1d0   : > { %v977_v25 = vadd.f32 %v953_v59, %v412_v2 }
 0x1d1   : > { %996 = vst.msk [vmem:[%s2022_s17 + $0x68] sm:$0xff] %vm436_vm0, %v980_v11  ;;  %v972_v56 = vadd.f32 %v940_v24, %v407_v52 }
 0x1d2   : > { %v932_v61 = vpop.f32.mrf.mxu0  ;;  %993 = vst.msk [vmem:[%s2022_s17 + $0x50] sm:$0xff] %vm436_vm0, %v977_v25 }
 0x1d3   : > { %v933_v26 = vadd.f32 %v2014_v51, %v932_v61  ;;  %988 = vst.msk [vmem:[%s2022_s17 + $0x28] sm:$0xff] %vm436_vm0, %v972_v56 }
 0x1d4   : > { %v962_v20 = vpop.f32.mrf.mxu3 }
 0x1d5   : > { %v963_v55 = vadd.f32 %v2014_v51, %v962_v20  ;;  %v969_v54 = vadd.f32 %v933_v26, %v404_v36  ;;  %v954_v16 = vpop.f32.mrf.mxu2 }
 0x1d6   : > { %v942_v62 = vpop.f32.mrf.mxu1  ;;  %v955_v15 = vadd.f32 %v2014_v51, %v954_v16 }
 0x1d7   : > { %v981_v28 = vadd.f32 %v963_v55, %v416_v48  ;;  %985 = vst.msk [vmem:[%s2022_s17 + $0x10] sm:$0xff] %vm436_vm0, %v969_v54  ;;  %v943_v40 = vadd.f32 %v2014_v51, %v942_v62 }
 0x1d8   : > { %v978_v57 = vadd.f32 %v955_v15, %v413_v60 }
 0x1d9   : > { %997 = vst.msk [vmem:[%s2022_s17 + $0x70] sm:$0xff] %vm436_vm0, %v981_v28  ;;  %v973_v0 = vadd.f32 %v943_v40, %v408_v21 }
 0x1da   : > { %v934_v3 = vpop.f32.mrf.mxu0  ;;  %994 = vst.msk [vmem:[%s2022_s17 + $0x58] sm:$0xff] %vm436_vm0, %v978_v57 }
 0x1db   : > { %v935_v4 = vadd.f32 %v2014_v51, %v934_v3  ;;  %989 = vst.msk [vmem:[%s2022_s17 + $0x30] sm:$0xff] %vm436_vm0, %v973_v0 }
 0x1dc   : > { %v964_v5 = vpop.f32.mrf.mxu3 }
 0x1dd   : > { %v965_v19 = vadd.f32 %v2014_v51, %v964_v5  ;;  %v970_v58 = vadd.f32 %v935_v4, %v405_v1 }
 0x1de   : > { %v944_v13 = vpop.f32.mrf.mxu1 }
 0x1df   : > { %v982_v30 = vadd.f32 %v965_v19, %v417_v49  ;;  %986 = vst.msk [vmem:[%s2022_s17 + $0x18] sm:$0xff] %vm436_vm0, %v970_v58  ;;  %v945_v6 = vadd.f32 %v2014_v51, %v944_v13 }
 0x1e1   : > { %998 = vst.msk [vmem:[%s2022_s17 + $0x78] sm:$0xff] %vm436_vm0, %v982_v30  ;;  %v974_v38 = vadd.f32 %v945_v6, %v409_v14 }
 0x1e3   : > { %990 = vst.msk [vmem:[%s2022_s17 + $0x38] sm:$0xff] %vm436_vm0, %v974_v38 }
 0x1e4 PF: > { %s17_s28 = sadd.s32 1, %s1303_s28   ;;  %s2133_s24 = smov %s1295_s26 }
 0x1e5   : > { %p14_p7 = scmp.ge.s32.totalorder %s17_s28, 6   ;;  %s2134_s25 = smov %s1299_s27 }
 0x1e6   : > { %s2135_s26 = smov %s2138_s29  ;;  %s2136_s27 = smov %s2142_s30 }
 0x1e7   :  { %16 = sbr.rel (!%p14_p7) target bundleno = 3 (0x3), region = 84 }

// kernel: pairwise_attention_block.16
= control target key start
LH: loop header
LB: loop body
LE: loop exit
PB: predicated region body
PF: predicated region fallthrough
CT: control target
= control target key end

     0   :  { %s553_s9 = smov 0   ;;  %s555_s10 = smov 0   ;;  %s659_s0 = inlined_call_operand.vmem [shape: f32[2,16,16,32], index: 0, kind: input, shape index: {}]   ;;  %s660_s1 = inlined_call_operand.vmem [shape: bf16[32,4], index: 1, kind: input, shape index: {}]   ;;  %s661_s2 = inlined_call_operand.vmem [shape: f32[2,16,16,4], index: 2, kind: output, shape index: {}]  }
   0x1   :  { %s557_s11 = smov 0   ;;  %s559_s12 = smov 0  }
   0x2   :  { %s561_s13 = smov 0  }
   0x3 LB: > { %s21_s14 = sadd.s32 1, %s528_s11  ;;  %s24_s15 = sadd.s32 1, %s532_s12  ;;  %s536_s13 = sphi %s561_s13, %s12_s13   ;;  %s532_s12 = sphi %s559_s12, %s665_s12   ;;  %s528_s11 = sphi %s557_s11, %s664_s11   ;;  %s524_s10 = sphi %s555_s10, %s663_s10   ;;  %s520_s9 = sphi %s553_s9, %s662_s9  }
   0x4   : > { %p22_p0 = scmp.ge.s32.totalorder %s21_s14, 2  ;;  %p423_p1 = scmp.ge.s32.totalorder %s536_s13, 1 }
   0x5   : > { %p134_p2 = scmp.lt.s32.totalorder %s536_s13, 5 }
   0x6   : > { %s667_s14 = smov (%p22_p0, %s21_s14), 0  ;;  %s669_s15 = smov (!%p22_p0, %s24_s15), %s532_s12 }
   0x7   : > { %p135_p3 = pnand %p423_p1, %p134_p2  ;;  %p26_p4 = scmp.ge.s32.totalorder %s669_s15, 2 }
   0x8   : > { %s424_s18 = sshll.u32 (!%p135_p3), %s520_s9, 3  ;;  %p167_p5 = scmp.lt.s32.totalorder (!%p135_p3), %s524_s10, 1 }
   0x9   : > { %s671_s15 = smov (%p26_p4, %s669_s15), 0  ;;  %138 = sbr.rel (%p135_p3) target bundleno = 182 (0xb6), region = 28 }
   0xa   : > { %p169_p6 = scmp.lt.s32.totalorder (!%p135_p3), %s424_s18, 15 }
   0xe   : > { %v451_v0 = vld [vmem:[%s660_s1 + $0x8] sm:$0xff]  ;;  %v450_v1 = vld [vmem:[%s660_s1] sm:$0xff]  ;;  %s673_s10 = smov (!%p167_p5, %s524_s10), 1  ;;  %s675_s18 = smov (!%p169_p6, %s424_s18), 15  ;;  %vm229_vm0 = vcmask 261120   ;;  %vm303_vm1 = vcmask 31744  }
   0xf   : > { %260 = vmatpush.bf16.msra.mxu0 %v451_v0  ;;  %452 = vmatpush.bf16.msra.mxu1 %v451_v0  ;;  %s426_s21 = sshll.u32 %s673_s10, 5  ;;  %s425_s22 = sshll.u32 %s675_s18, 1 }
  0x10   : > { %453 = vmatpush.bf16.msra.mxu2 %v451_v0  ;;  %454 = vmatpush.bf16.msra.mxu3 %v451_v0  ;;  %s589_s23 = sadd.s32 %s426_s21, %s425_s22 }
  0x11   : > { %s427_s24 = sshll.u32 %s589_s23, 3 }
  0x12   : > { %s175_s27 = scalar_lea.vmem %s659_s0, %s427_s24  ;;  %s610_s30 = scalar_lea.vmem %s661_s2, %s427_s24 }
  0x13   : > { %261 = vmatpush.bf16.msra.mxu0 %v450_v1  ;;  %455 = vmatpush.bf16.msra.mxu1 %v450_v1  ;;  %v189_v2 = vld [vmem:[%s175_s27] sm:$0xff]  ;;  %v190_v3 = vld [vmem:[%s175_s27 + $0x8] sm:$0xff]  ;;  %v191_v14 = vld [vmem:[%s175_s27 + $0x10] sm:$0xff] }
  0x14   : > { %456 = vmatpush.bf16.msra.mxu2 %v450_v1  ;;  %457 = vmatpush.bf16.msra.mxu3 %v450_v1  ;;  %v193_v4 = vld [vmem:[%s175_s27 + $0x20] sm:$0xff]  ;;  %v205_v5 = vpack.c.bf16 %v190_v3, %v189_v2  ;;  %v194_v6 = vld [vmem:[%s175_s27 + $0x28] sm:$0xff]  ;;  %v192_v15 = vld [vmem:[%s175_s27 + $0x18] sm:$0xff] }
  0x15   : > { %v197_v7 = vld [vmem:[%s175_s27 + $0x40] sm:$0xff]  ;;  %v198_v8 = vld [vmem:[%s175_s27 + $0x48] sm:$0xff]  ;;  %v207_v9 = vpack.c.bf16 %v194_v6, %v193_v4  ;;  %v195_v16 = vld [vmem:[%s175_s27 + $0x30] sm:$0xff]  ;;  %v206_v22 = vpack.c.bf16 %v192_v15, %v191_v14 }
  0x16   : > { %v209_v10 = vpack.c.bf16 %v198_v8, %v197_v7  ;;  %v201_v11 = vld [vmem:[%s175_s27 + $0x60] sm:$0xff]  ;;  %v202_v12 = vld [vmem:[%s175_s27 + $0x68] sm:$0xff]  ;;  %440 = vmatmul.msk.bf16.vlgmr.msra.gmra.mxu0 %vm229_vm0, %v205_v5  ;;  %v196_v17 = vld [vmem:[%s175_s27 + $0x38] sm:$0xff] }
  0x17   : > { %v211_v13 = vpack.c.bf16 %v202_v12, %v201_v11  ;;  %442 = vmatmul.msk.bf16.vlgmr.msra.gmra.mxu1 %vm229_vm0, %v207_v9  ;;  %v199_v18 = vld [vmem:[%s175_s27 + $0x50] sm:$0xff]  ;;  %v200_v19 = vld [vmem:[%s175_s27 + $0x58] sm:$0xff]  ;;  %v208_v23 = vpack.c.bf16 %v196_v17, %v195_v16 }
  0x18   : > { %444 = vmatmul.msk.bf16.vlgmr.msra.gmra.mxu2 %vm229_vm0, %v209_v10  ;;  %v203_v20 = vld [vmem:[%s175_s27 + $0x70] sm:$0xff]  ;;  %v204_v21 = vld [vmem:[%s175_s27 + $0x78] sm:$0xff]  ;;  %v210_v24 = vpack.c.bf16 %v200_v19, %v199_v18 }
  0x19   : > { %446 = vmatmul.msk.bf16.vlgmr.msra.gmra.mxu3 %vm229_vm0, %v211_v13  ;;  %v212_v25 = vpack.c.bf16 %v204_v21, %v203_v20 }
  0x26   : > { %441 = vmatmul.msk.bf16.gmra.mxu0 %vm229_vm0, %v206_v22 }
  0x27   : > { %443 = vmatmul.msk.bf16.gmra.mxu1 %vm229_vm0, %v208_v23 }
  0x28   : > { %445 = vmatmul.msk.bf16.gmra.mxu2 %vm229_vm0, %v210_v24 }
  0x29   : > { %447 = vmatmul.msk.bf16.gmra.mxu3 %vm229_vm0, %v212_v25 }
  0x93   : > { %v263_v26 = vpop.f32.mrf.mxu0 }
  0x94   : > { %304 = vst.msk [vmem:[%s610_s30] sm:$0xff] %vm303_vm1, %v263_v26  ;;  %v273_v27 = vpop.f32.mrf.mxu1 }
  0x95   : > { %308 = vst.msk [vmem:[%s610_s30 + $0x20] sm:$0xff] %vm303_vm1, %v273_v27 }
  0x9b   : > { %v283_v28 = vpop.f32.mrf.mxu2  ;;  %v265_v30 = vpop.f32.mrf.mxu0 }
  0x9c   : > { %312 = vst.msk [vmem:[%s610_s30 + $0x40] sm:$0xff] %vm303_vm1, %v283_v28  ;;  %v293_v29 = vpop.f32.mrf.mxu3  ;;  %v275_v31 = vpop.f32.mrf.mxu1 }
  0x9d   : > { %316 = vst.msk [vmem:[%s610_s30 + $0x60] sm:$0xff] %vm303_vm1, %v293_v29 }
  0x9e   : > { %305 = vst.msk [vmem:[%s610_s30 + $0x8] sm:$0xff] %vm303_vm1, %v265_v30 }
  0x9f   : > { %309 = vst.msk [vmem:[%s610_s30 + $0x28] sm:$0xff] %vm303_vm1, %v275_v31 }
  0xa3   : > { %v285_v32 = vpop.f32.mrf.mxu2  ;;  %v268_v34 = vpop.f32.mrf.mxu0 }
  0xa4   : > { %313 = vst.msk [vmem:[%s610_s30 + $0x48] sm:$0xff] %vm303_vm1, %v285_v32  ;;  %v295_v33 = vpop.f32.mrf.mxu3  ;;  %v278_v35 = vpop.f32.mrf.mxu1 }
  0xa5   : > { %317 = vst.msk [vmem:[%s610_s30 + $0x68] sm:$0xff] %vm303_vm1, %v295_v33 }
  0xa6   : > { %306 = vst.msk [vmem:[%s610_s30 + $0x10] sm:$0xff] %vm303_vm1, %v268_v34 }
  0xa7   : > { %310 = vst.msk [vmem:[%s610_s30 + $0x30] sm:$0xff] %vm303_vm1, %v278_v35 }
  0xab   : > { %v288_v36 = vpop.f32.mrf.mxu2  ;;  %v270_v38 = vpop.f32.mrf.mxu0 }
  0xac   : > { %314 = vst.msk [vmem:[%s610_s30 + $0x50] sm:$0xff] %vm303_vm1, %v288_v36  ;;  %v298_v37 = vpop.f32.mrf.mxu3  ;;  %v280_v39 = vpop.f32.mrf.mxu1 }
  0xad   : > { %318 = vst.msk [vmem:[%s610_s30 + $0x70] sm:$0xff] %vm303_vm1, %v298_v37 }
  0xae   : > { %307 = vst.msk [vmem:[%s610_s30 + $0x18] sm:$0xff] %vm303_vm1, %v270_v38 }
  0xaf   : > { %311 = vst.msk [vmem:[%s610_s30 + $0x38] sm:$0xff] %vm303_vm1, %v280_v39 }
  0xb3   : > { %v290_v40 = vpop.f32.mrf.mxu2 }
  0xb4   : > { %315 = vst.msk [vmem:[%s610_s30 + $0x58] sm:$0xff] %vm303_vm1, %v290_v40  ;;  %v300_v41 = vpop.f32.mrf.mxu3 }
  0xb5   : > { %319 = vst.msk [vmem:[%s610_s30 + $0x78] sm:$0xff] %vm303_vm1, %v300_v41 }
  0xb6 PF: > { %s12_s13 = sadd.s32 1, %s536_s13   ;;  %s662_s9 = smov %s528_s11 }
  0xb7   : > { %p9_p7 = scmp.ge.s32.totalorder %s12_s13, 6   ;;  %s663_s10 = smov %s532_s12 }
  0xb8   : > { %s664_s11 = smov %s667_s14  ;;  %s665_s12 = smov %s671_s15 }
  0xb9   :  { %11 = sbr.rel (!%p9_p7) target bundleno = 3 (0x3), region = 58 }

// kernel: pairwise_attention_block.13
= control target key start
LH: loop header
LB: loop body
LE: loop exit
PB: predicated region body
PF: predicated region fallthrough
CT: control target
= control target key end

     0   :  { %s2364_s24 = smov 0   ;;  %s2366_s25 = smov 0   ;;  %s3656_s0 = inlined_call_operand.vmem [shape: f32[2,16,16,32], index: 0, kind: input, shape index: {}]   ;;  %s3657_s1 = inlined_call_operand.vmem [shape: f32[1,32], index: 1, kind: input, shape index: {}]   ;;  %s3658_s2 = inlined_call_operand.vmem [shape: f32[1,32], index: 2, kind: input, shape index: {}]   ;;  %s3659_s3 = inlined_call_operand.vmem [shape: bf16[32,160], index: 3, kind: input, shape index: {}]   ;;  %s3660_s4 = inlined_call_operand.vmem [shape: f32[1,160], index: 4, kind: input, shape index: {}]   ;;  %s3661_s5 = inlined_call_operand.vmem [shape: bf16[2,16,16,32], index: 5, kind: output, shape index: {0}]   ;;  %s3662_s6 = inlined_call_operand.vmem [shape: bf16[2,16,16,32], index: 6, kind: output, shape index: {1}]   ;;  %s3663_s7 = inlined_call_operand.vmem [shape: f32[2,16,16,32], index: 7, kind: output, shape index: {2}]  }
   0x1   :  { %s2368_s26 = smov 0   ;;  %s2370_s27 = smov 0  }
   0x2   :  { %s2372_s28 = smov 0  }
   0x3 LB: > { %s27_s29 = sadd.s32 1, %s2311_s26  ;;  %s30_s30 = sadd.s32 1, %s2315_s27  ;;  %s2319_s28 = sphi %s2372_s28, %s18_s28   ;;  %s2315_s27 = sphi %s2370_s27, %s3719_s27   ;;  %s2311_s26 = sphi %s2368_s26, %s3718_s26   ;;  %s2307_s25 = sphi %s2366_s25, %s3717_s25   ;;  %s2303_s24 = sphi %s2364_s24, %s3716_s24  }
   0x4   : > { %p28_p0 = scmp.ge.s32.totalorder %s27_s29, 2  ;;  %p1983_p1 = scmp.ge.s32.totalorder %s2319_s28, 1 }
   0x5   : > { %p268_p2 = scmp.lt.s32.totalorder %s2319_s28, 5 }
   0x6   : > { %s3721_s29 = smov (%p28_p0, %s27_s29), 0  ;;  %s3723_s30 = smov (!%p28_p0, %s30_s30), %s2315_s27 }
   0x7   : > { %p269_p3 = pnand %p1983_p1, %p268_p2  ;;  %p32_p4 = scmp.ge.s32.totalorder %s3723_s30, 2 }
   0x8   : > { %s1984_s8 = sshll.u32 (!%p269_p3), %s2303_s24, 3  ;;  %p331_p5 = scmp.lt.s32.totalorder (!%p269_p3), %s2307_s25, 1 }
   0x9   : > { %s3725_s30 = smov (%p32_p4, %s3723_s30), 0  ;;  %272 = sbr.rel (%p269_p3) target bundleno = 865 (0x361), region = 40 }
   0xa   : > { %p333_p6 = scmp.lt.s32.totalorder (!%p269_p3), %s1984_s8, 15  ;;  %s2323_s13 = smov (!%p269_p3), 64  }
   0xe   : > { %s3727_s25 = smov (!%p331_p5, %s2307_s25), 1  ;;  %s3729_s8 = smov (!%p333_p6, %s1984_s8), 15  ;;  %vm393_vm0 = vcmask 261120   ;;  %v2321_v28 = vmov 32.0  }
   0xf   : > { %s1986_s9 = sshll.u32 %s3727_s25, 5  ;;  %s1985_s10 = sshll.u32 %s3729_s8, 1  ;;  %2119 = vrcp.f32 %v2321_v28 }
  0x10   : > { %s2394_s11 = sadd.s32 %s1986_s9, %s1985_s10 }
  0x11   : > { %s1987_s12 = sshll.u32 %s2394_s11, 3  ;;  %s1991_s25 = sshll.u32 %s2394_s11, 2 }
  0x12   : > { %s2402_s15 = scalar_lea.vmem %s3656_s0, %s1987_s12  ;;  %s2999_s24 = scalar_lea.vmem %s3663_s7, %s1987_s12 }
  0x13   : > { %v383_v0 = vld [vmem:[%s2402_s15 + $0x40] sm:$0xff]  ;;  %v2409_v2 = vld [vmem:[%s2402_s15 + $0x50] sm:$0xff]  ;;  %v384_v6 = vld [vmem:[%s2402_s15 + $0x48] sm:$0xff]  ;;  %s2322_s12 = smov 96   ;;  %s3493_s10 = scalar_lea.vmem %s3661_s5, %s1991_s25 }
  0x14   : > { %v2406_v1 = vld [vmem:[%s2402_s15] sm:$0xff]  ;;  %v418_v3 = vsel %vm393_vm0, %v383_v0, 0.0  ;;  %v424_v5 = vsel %vm393_vm0, %v2409_v2, 0.0  ;;  %v376_v7 = vld [vmem:[%s2402_s15 + $0x8] sm:$0xff]  ;;  %v386_v8 = vld [vmem:[%s2402_s15 + $0x58] sm:$0xff]  ;;  %v421_v9 = vsel %vm393_vm0, %v384_v6, 0.0  ;;  %s3594_s16 = scalar_lea.vmem %s3662_s6, %s1991_s25 }
  0x15   : > { %v394_v4 = vsel %vm393_vm0, %v2406_v1, 0.0  ;;  %419 = vadd.xlane.f32.xlu0 %v418_v3  ;;  %425 = vadd.xlane.f32.xlu2 %v424_v5  ;;  %v397_v10 = vsel %vm393_vm0, %v376_v7, 0.0  ;;  %v427_v11 = vsel %vm393_vm0, %v386_v8, 0.0  ;;  %v2423_v12 = vld [vmem:[%s2402_s15 + $0x10] sm:$0xff]  ;;  %v2426_v13 = vld [vmem:[%s2402_s15 + $0x18] sm:$0xff]  ;;  %v2429_v14 = vld [vmem:[%s2402_s15 + $0x60] sm:$0xff]  ;;  %v2120_v29 = vpop.eup %2119 }
  0x16   : > { %395 = vadd.xlane.f32.xlu1 %v394_v4  ;;  %v400_v15 = vsel %vm393_vm0, %v2423_v12, 0.0  ;;  %v403_v16 = vsel %vm393_vm0, %v2426_v13, 0.0  ;;  %v430_v17 = vsel %vm393_vm0, %v2429_v14, 0.0  ;;  %v2438_v18 = vld [vmem:[%s2402_s15 + $0x68] sm:$0xff]  ;;  %v2441_v19 = vld [vmem:[%s2402_s15 + $0x20] sm:$0xff]  ;;  %v2453_v24 = vld [vmem:[%s2402_s15 + $0x78] sm:$0xff]  ;;  %vm447_vm1 = vweird.f32 %v2120_v29 }
  0x17   : > { %v2444_v20 = vld [vmem:[%s2402_s15 + $0x28] sm:$0xff]  ;;  %v433_v21 = vsel %vm393_vm0, %v2438_v18, 0.0  ;;  %v406_v22 = vsel %vm393_vm0, %v2441_v19, 0.0  ;;  %v2456_v25 = vld [vmem:[%s2402_s15 + $0x70] sm:$0xff]  ;;  %v439_v26 = vsel %vm393_vm0, %v2453_v24, 0.0  ;;  %v443_v30 = vmul.f32 32.0, %v2120_v29 }
  0x18   : > { %v409_v23 = vsel %vm393_vm0, %v2444_v20, 0.0  ;;  %v436_v27 = vsel %vm393_vm0, %v2456_v25, 0.0  ;;  %v2474_v48 = vld [vmem:[%s2402_s15 + $0x30] sm:$0xff] }
  0x19   : > { %v444_v31 = vsub.f32 1.0, %v443_v30  ;;  %v412_v53 = vsel %vm393_vm0, %v2474_v48, 0.0 }
  0x1b   : > { %v445_v32 = vmul.f32 %v2120_v29, %v444_v31 }
  0x1d   : > { %422 = vadd.xlane.f32.xlu0 %v421_v9  ;;  %428 = vadd.xlane.f32.xlu2 %v427_v11  ;;  %v446_v33 = vadd.f32 %v2120_v29, %v445_v32 }
  0x1e   : > { %398 = vadd.xlane.f32.xlu1 %v397_v10 }
  0x1f   : > { %v2462_v34 = vsel %vm447_vm1, %v2120_v29, %v446_v33 }
  0x25   : > { %401 = vadd.xlane.f32.xlu0 %v400_v15  ;;  %431 = vadd.xlane.f32.xlu2 %v430_v17 }
  0x26   : > { %404 = vadd.xlane.f32.xlu1 %v403_v16 }
  0x2d   : > { %434 = vadd.xlane.f32.xlu0 %v433_v21  ;;  %410 = vadd.xlane.f32.xlu2 %v409_v23  ;;  %v2520_v21 = vld [vmem:[%s2402_s15 + $0x38] sm:$0xff] }
  0x2e   : > { %407 = vadd.xlane.f32.xlu1 %v406_v22  ;;  %v415_v28 = vsel %vm393_vm0, %v2520_v21, 0.0 }
  0x35   : > { %440 = vadd.xlane.f32.xlu0 %v439_v26  ;;  %437 = vadd.xlane.f32.xlu2 %v436_v27 }
  0x88   : > { %v420_v35 = vpop.xlane.xlu0 %419  ;;  %v426_v38 = vpop.xlane.xlu2 %425 }
  0x89   : > { %v396_v36 = vpop.xlane.xlu1 %395  ;;  %v457_v37 = vmul.f32 %v2462_v34, %v420_v35  ;;  %v459_v49 = vmul.f32 %v2462_v34, %v426_v38 }
  0x8a   : > { %v449_v44 = vmul.f32 %v2462_v34, %v396_v36 }
  0x8b   : > { %v2465_v39 = vsub.f32 %v383_v0, %v457_v37  ;;  %v2494_v58 = vsub.f32 %v2409_v2, %v459_v49 }
  0x8c   : > { %v2485_v54 = vsub.f32 %v2406_v1, %v449_v44 }
  0x8d   : > { %v489_v40 = vmul.f32 %v2465_v39, %v2465_v39  ;;  %v491_v2 = vmul.f32 %v2494_v58, %v2494_v58 }
  0x8e   : > { %v481_v1 = vmul.f32 %v2485_v54, %v2485_v54 }
  0x8f   : > { %v521_v41 = vsel %vm393_vm0, %v489_v40, 0.0 }
  0x90   : > { %v423_v42 = vpop.xlane.xlu0 %422  ;;  %522 = vadd.xlane.f32.xlu0 %v521_v41  ;;  %v429_v47 = vpop.xlane.xlu2 %428 }
  0x91   : > { %v399_v43 = vpop.xlane.xlu1 %398  ;;  %v458_v45 = vmul.f32 %v2462_v34, %v423_v42  ;;  %v460_v50 = vmul.f32 %v2462_v34, %v429_v47 }
  0x92   : > { %v450_v46 = vmul.f32 %v2462_v34, %v399_v43 }
  0x93   : > { %v2478_v51 = vsub.f32 %v384_v6, %v458_v45  ;;  %v2487_v55 = vsub.f32 %v386_v8, %v460_v50  ;;  %v527_v8 = vsel %vm393_vm0, %v491_v2, 0.0  ;;  %v2010_v50 = vld [vmem:[%s3659_s3 + $0x10] sm:$0xf] }
  0x94   : > { %v2480_v52 = vsub.f32 %v376_v7, %v450_v46  ;;  %v497_v7 = vsel %vm393_vm0, %v481_v1, 0.0 }
  0x95   : > { %v490_v56 = vmul.f32 %v2478_v51, %v2478_v51  ;;  %v492_v0 = vmul.f32 %v2487_v55, %v2487_v55 }
  0x96   : > { %v482_v57 = vmul.f32 %v2480_v52, %v2480_v52 }
  0x97   : > { %v524_v59 = vsel %vm393_vm0, %v490_v56, 0.0  ;;  %v530_v6 = vsel %vm393_vm0, %v492_v0, 0.0  ;;  %v2066_v0 = vld [vmem:[%s3659_s3 + $0x4] sm:$0xf] }
  0x98   : > { %v500_v60 = vsel %vm393_vm0, %v482_v57, 0.0  ;;  %413 = vadd.xlane.f32.xlu0 %v412_v53  ;;  %525 = vadd.xlane.f32.xlu1 %v524_v59  ;;  %v402_v61 = vpop.xlane.xlu0 %401  ;;  %v432_v63 = vpop.xlane.xlu2 %431  ;;  %v2068_v53 = vld [vmem:[%s3659_s3 + $0x14] sm:$0xf]  ;;  %v2012_v59 = vld [vmem:[%s3659_s3 + $0x18] sm:$0xf0] }
  0x99   : > { %v405_v62 = vpop.xlane.xlu1 %404  ;;  %501 = vadd.xlane.f32.xlu2 %v500_v60  ;;  %v461_v3 = vmul.f32 %v2462_v34, %v432_v63  ;;  %v451_v15 = vmul.f32 %v2462_v34, %v402_v61  ;;  %v2015_v60 = vor.u32 %v2068_v53, %v2012_v59  ;;  %v2067_v63 = vld [vmem:[%s3659_s3 + $0x4] sm:$0xf0] }
  0x9a   : > { %v452_v4 = vmul.f32 %v2462_v34, %v405_v62  ;;  %v2002_v62 = vld [vmem:[%s3659_s3] sm:$0xf] }
  0x9b   : > { %v2507_v5 = vsub.f32 %v2429_v14, %v461_v3  ;;  %v2526_v23 = vsub.f32 %v2423_v12, %v451_v15  ;;  %2072 = vmatpush.bf16.msra.mxu3 %v2015_v60  ;;  %908 = vmatpush.bf16.msra.mxu1 %v2015_v60  ;;  %v2003_v1 = vor.u32 %v2067_v63, %v2002_v62  ;;  %v2004_v3 = vld [vmem:[%s3659_s3 + $0x8] sm:$0xf0] }
  0x9c   : > { %v2513_v9 = vsub.f32 %v2426_v13, %v452_v4  ;;  %v2007_v2 = vor.u32 %v2066_v0, %v2004_v3 }
  0x9d   : > { %v493_v14 = vmul.f32 %v2507_v5, %v2507_v5 }
  0x9e   : > { %v484_v22 = vmul.f32 %v2513_v9, %v2513_v9 }
  0x9f   : > { %v533_v27 = vsel %vm393_vm0, %v493_v14, 0.0  ;;  %2073 = vmatpush.bf16.msra.mxu3 %v2007_v2  ;;  %909 = vmatpush.bf16.msra.mxu1 %v2007_v2 }
  0xa0   : > { %531 = vadd.xlane.f32.xlu0 %v530_v6  ;;  %498 = vadd.xlane.f32.xlu1 %v497_v7  ;;  %v435_v10 = vpop.xlane.xlu0 %434  ;;  %v411_v16 = vpop.xlane.xlu2 %410  ;;  %v506_v29 = vsel %vm393_vm0, %v484_v22, 0.0 }
  0xa1   : > { %v408_v11 = vpop.xlane.xlu1 %407  ;;  %528 = vadd.xlane.f32.xlu2 %v527_v8  ;;  %v454_v17 = vmul.f32 %v2462_v34, %v411_v16  ;;  %v462_v32 = vmul.f32 %v2462_v34, %v435_v10 }
  0xa2   : > { %v453_v13 = vmul.f32 %v2462_v34, %v408_v11 }
  0xa3   : > { %v2529_v26 = vsub.f32 %v2444_v20, %v454_v17  ;;  %v483_v20 = vmul.f32 %v2526_v23, %v2526_v23 }
  0xa4   : > { %v2536_v30 = vsub.f32 %v2441_v19, %v453_v13  ;;  %v2547_v19 = vsub.f32 %v2438_v18, %v462_v32 }
  0xa5   : > { %v486_v12 = vmul.f32 %v2529_v26, %v2529_v26  ;;  %v503_v37 = vsel %vm393_vm0, %v483_v20, 0.0 }
  0xa6   : > { %v485_v35 = vmul.f32 %v2536_v30, %v2536_v30  ;;  %v494_v43 = vmul.f32 %v2547_v19, %v2547_v19 }
  0xa7   : > { %v512_v36 = vsel %vm393_vm0, %v486_v12, 0.0 }
  0xa8   : > { %534 = vadd.xlane.f32.xlu0 %v533_v27  ;;  %416 = vadd.xlane.f32.xlu1 %v415_v28  ;;  %v441_v31 = vpop.xlane.xlu0 %440  ;;  %v509_v40 = vsel %vm393_vm0, %v485_v35, 0.0  ;;  %v438_v41 = vpop.xlane.xlu2 %437 }
  0xa9   : > { %507 = vadd.xlane.f32.xlu2 %v506_v29  ;;  %v464_v33 = vmul.f32 %v2462_v34, %v441_v31  ;;  %v463_v42 = vmul.f32 %v2462_v34, %v438_v41 }
  0xab   : > { %v2552_v38 = vsub.f32 %v2453_v24, %v464_v33  ;;  %v2561_v44 = vsub.f32 %v2456_v25, %v463_v42  ;;  %v536_v24 = vsel %vm393_vm0, %v494_v43, 0.0  ;;  %v2069_v25 = vld [vmem:[%s3659_s3 + $0x14] sm:$0xf0] }
  0xac   : > { %v2011_v57 = vor.u32 %v2069_v25, %v2010_v50 }
  0xad   : > { %v496_v18 = vmul.f32 %v2552_v38, %v2552_v38  ;;  %v495_v46 = vmul.f32 %v2561_v44, %v2561_v44 }
  0xae   : > { %2070 = vmatpush.bf16.msra.mxu2 %v2011_v57  ;;  %859 = vmatpush.bf16.msra.mxu0 %v2011_v57 }
  0xaf   : > { %v542_v45 = vsel %vm393_vm0, %v496_v18, 0.0  ;;  %v539_v47 = vsel %vm393_vm0, %v495_v46, 0.0 }
  0xb0   : > { %513 = vadd.xlane.f32.xlu0 %v512_v36  ;;  %504 = vadd.xlane.f32.xlu1 %v503_v37 }
  0xb1   : > { %510 = vadd.xlane.f32.xlu2 %v509_v40 }
  0xb2   : > { %2071 = vmatpush.bf16.msra.mxu2 %v2003_v1  ;;  %860 = vmatpush.bf16.msra.mxu0 %v2003_v1 }
  0xb8   : > { %537 = vadd.xlane.f32.xlu1 %v536_v24 }
  0xb9   : > { %543 = vadd.xlane.f32.xlu2 %v542_v45 }
  0xc0   : > { %540 = vadd.xlane.f32.xlu1 %v539_v47 }
 0x103   : > { %v523_v49 = vpop.xlane.xlu0 %522 }
 0x104   : > { %v553_v56 = vmul.f32 %v523_v49, %v2462_v34 }
 0x106   : > { %v2581_v61 = vadd.f32 1e-05, %v553_v56 }
 0x108   : > { %2121 = vrsqrt.f32 %v2581_v61  ;;  %vm663_vm3 = vweird.f32 %v2581_v61 }
 0x10b   : > { %v414_v4 = vpop.xlane.xlu0 %413  ;;  %v526_v6 = vpop.xlane.xlu1 %525 }
 0x10c   : > { %v455_v7 = vmul.f32 %v2462_v34, %v414_v4  ;;  %v502_v8 = vpop.xlane.xlu2 %501  ;;  %v554_v10 = vmul.f32 %v526_v6, %v2462_v34 }
 0x10d   : > { %v546_v11 = vmul.f32 %v502_v8, %v2462_v34 }
 0x10e   : > { %v2599_v15 = vpop.eup %2121  ;;  %v2602_v16 = vsub.f32 %v2474_v48, %v455_v7  ;;  %v570_v14 = vadd.f32 1e-05, %v554_v10 }
 0x10f   : > { %v658_v17 = vmul.f32 %v2599_v15, %v2581_v61  ;;  %v2606_v22 = vadd.f32 1e-05, %v546_v11  ;;  %vm664_vm2 = vweird.f32 %v2599_v15 }
 0x110   : > { %2123 = vrsqrt.f32 %v570_v14  ;;  %v487_v13 = vmul.f32 %v2602_v16, %v2602_v16  ;;  %vm673_vm4 = vweird.f32 %v570_v14  ;;  %vm2654_vm6 = vmor %vm663_vm3, %vm664_vm2 }
 0x111   : > { %v659_v27 = vmul.f32 %v2599_v15, %v658_v17  ;;  %2125 = vrsqrt.f32 %v2606_v22  ;;  %vm593_vm7 = vweird.f32 %v2606_v22 }
 0x112   : > { %v515_v28 = vsel %vm393_vm0, %v487_v13, 0.0 }
 0x113   : > { %516 = vadd.xlane.f32.xlu0 %v515_v28  ;;  %v532_v29 = vpop.xlane.xlu0 %531  ;;  %v499_v48 = vpop.xlane.xlu1 %498  ;;  %v660_v20 = vmul.f32 0.5, %v659_v27 }
 0x114   : > { %v556_v31 = vmul.f32 %v532_v29, %v2462_v34  ;;  %v529_v32 = vpop.xlane.xlu2 %528  ;;  %v545_v12 = vmul.f32 %v499_v48, %v2462_v34 }
 0x115   : > { %v555_v33 = vmul.f32 %v529_v32, %v2462_v34  ;;  %v661_v18 = vsub.f32 1.5, %v660_v20 }
 0x116   : > { %v2616_v35 = vpop.eup %2123  ;;  %v2618_v36 = vadd.f32 1e-05, %v556_v31  ;;  %v2620_v37 = vadd.f32 1e-05, %v545_v12 }
 0x117   : > { %v2622_v40 = vpop.eup %2125  ;;  %v668_v41 = vmul.f32 %v2616_v35, %v570_v14  ;;  %v2625_v42 = vadd.f32 1e-05, %v555_v33  ;;  %v662_v57 = vmul.f32 %v2599_v15, %v661_v18  ;;  %vm674_vm5 = vweird.f32 %v2616_v35 }
 0x118   : > { %v588_v43 = vmul.f32 %v2622_v40, %v2606_v22  ;;  %2127 = vrsqrt.f32 %v2618_v36  ;;  %vm594_vm8 = vweird.f32 %v2622_v40  ;;  %vm2669_vm9 = vmor %vm673_vm4, %vm674_vm5  ;;  %vm693_vm10 = vweird.f32 %v2618_v36 }
 0x119   : > { %v669_v24 = vmul.f32 %v2616_v35, %v668_v41  ;;  %2129 = vrsqrt.f32 %v2625_v42  ;;  %v666_v10 = vsel %vm2654_vm6, %v2599_v15, %v662_v57  ;;  %vm683_vm11 = vweird.f32 %v2625_v42  ;;  %vm2691_vm12 = vmor %vm593_vm7, %vm594_vm8  ;;  %v2701_v41 = vld [vmem:[%s3657_s1] ss:$0 sm:$0xff] }
 0x11a   : > { %v589_v45 = vmul.f32 %v2622_v40, %v588_v43  ;;  %2131 = vrsqrt.f32 %v2620_v37  ;;  %v745_v31 = vmul.f32 %v666_v10, %v2465_v39  ;;  %vm583_vm13 = vweird.f32 %v2620_v37 }
 0x11b   : > { %v670_v46 = vmul.f32 0.5, %v669_v24  ;;  %v535_v47 = vpop.xlane.xlu0 %534  ;;  %v417_v49 = vpop.xlane.xlu1 %416 }
 0x11c   : > { %v590_v50 = vmul.f32 0.5, %v589_v45  ;;  %v557_v25 = vmul.f32 %v535_v47, %v2462_v34  ;;  %v508_v53 = vpop.xlane.xlu2 %507  ;;  %v456_v56 = vmul.f32 %v2462_v34, %v417_v49 }
 0x11d   : > { %v671_v59 = vsub.f32 1.5, %v670_v46  ;;  %v548_v60 = vmul.f32 %v508_v53, %v2462_v34  ;;  %v764_v53 = vmul.f32 %v2701_v41, %v745_v31 }
 0x11e   : > { %v2639_v62 = vpop.eup %2127  ;;  %v2643_v63 = vadd.f32 1e-05, %v557_v25  ;;  %v591_v1 = vsub.f32 1.5, %v590_v50  ;;  %v2663_v8 = vsub.f32 %v2520_v21, %v456_v56 }
 0x11f   : > { %v2645_v0 = vpop.eup %2129  ;;  %v672_v3 = vmul.f32 %v2616_v35, %v671_v59  ;;  %v688_v2 = vmul.f32 %v2639_v62, %v2618_v36  ;;  %v2650_v4 = vadd.f32 1e-05, %v548_v60  ;;  %vm694_vm15 = vweird.f32 %v2639_v62  ;;  %v2731_v60 = vld [vmem:[%s3658_s2] ss:$0 sm:$0xff] }
 0x120   : > { %v2652_v6 = vpop.eup %2131  ;;  %v678_v61 = vmul.f32 %v2645_v0, %v2625_v42  ;;  %2133 = vrsqrt.f32 %v2643_v63  ;;  %v592_v15 = vmul.f32 %v2622_v40, %v591_v1  ;;  %vm684_vm1 = vweird.f32 %v2645_v0  ;;  %vm2743_vm3 = vmor %vm693_vm10, %vm694_vm15 }
 0x121   : > { %v689_v17 = vmul.f32 %v2639_v62, %v688_v2  ;;  %v578_v13 = vmul.f32 %v2652_v6, %v2620_v37  ;;  %v676_v21 = vsel %vm2669_vm9, %v2616_v35, %v672_v3  ;;  %2135 = vrsqrt.f32 %v2650_v4  ;;  %vm2752_vm4 = vmor %vm683_vm11, %vm684_vm1 }
 0x122   : > { %v679_v27 = vmul.f32 %v2645_v0, %v678_v61  ;;  %v488_v35 = vmul.f32 %v2663_v8, %v2663_v8  ;;  %v746_v39 = vmul.f32 %v676_v21, %v2478_v51  ;;  %vm584_vm14 = vweird.f32 %v2652_v6 }
 0x123   : > { %v690_v14 = vmul.f32 0.5, %v689_v17  ;;  %v579_v28 = vmul.f32 %v2652_v6, %v578_v13  ;;  %v514_v29 = vpop.xlane.xlu0 %513  ;;  %v505_v48 = vpop.xlane.xlu1 %504  ;;  %v596_v46 = vsel %vm2691_vm12, %v2622_v40, %v592_v15  ;;  %vm585_vm2 = vmor %vm583_vm13, %vm584_vm14  ;;  %vm613_vm5 = vweird.f32 %v2650_v4 }
 0x124   : > { %v680_v12 = vmul.f32 0.5, %v679_v27  ;;  %v550_v20 = vmul.f32 %v514_v29, %v2462_v34  ;;  %v511_v33 = vpop.xlane.xlu2 %510  ;;  %v547_v18 = vmul.f32 %v505_v48, %v2462_v34  ;;  %v518_v45 = vsel %vm393_vm0, %v488_v35, 0.0 }
 0x125   : > { %v580_v43 = vmul.f32 0.5, %v579_v28  ;;  %v549_v22 = vmul.f32 %v511_v33, %v2462_v34  ;;  %v691_v47 = vsub.f32 1.5, %v690_v14  ;;  %519 = vadd.xlane.f32.xlu1 %v518_v45  ;;  %v765_v59 = vmul.f32 %v2701_v41, %v746_v39 }
 0x126   : > { %v2708_v24 = vadd.f32 1e-05, %v550_v20  ;;  %v681_v49 = vsub.f32 1.5, %v680_v12  ;;  %v2714_v50 = vpop.eup %2133  ;;  %v2725_v57 = vadd.f32 1e-05, %v547_v18  ;;  %v738_v1 = vmul.f32 %v596_v46, %v2480_v52 }
 0x127   : > { %v581_v51 = vsub.f32 1.5, %v580_v43  ;;  %v2718_v25 = vadd.f32 1e-05, %v549_v22  ;;  %v2721_v56 = vpop.eup %2135  ;;  %v692_v2 = vmul.f32 %v2639_v62, %v691_v47  ;;  %v698_v36 = vmul.f32 %v2714_v50, %v2643_v63 }
 0x128   : > { %2137 = vrsqrt.f32 %v2708_v24  ;;  %v608_v3 = vmul.f32 %v2721_v56, %v2650_v4  ;;  %v682_v61 = vmul.f32 %v2645_v0, %v681_v49  ;;  %v784_v21 = vadd.f32 %v2731_v60, %v765_v59 }
 0x129   : > { %v582_v40 = vmul.f32 %v2652_v6, %v581_v51  ;;  %2139 = vrsqrt.f32 %v2718_v25  ;;  %v696_v28 = vsel %vm2743_vm3, %v2639_v62, %v692_v2  ;;  %v699_v31 = vmul.f32 %v2714_v50, %v698_v36 }
 0x12a   : > { %v609_v17 = vmul.f32 %v2721_v56, %v608_v3  ;;  %2141 = vrsqrt.f32 %v2725_v57  ;;  %v686_v29 = vsel %vm2752_vm4, %v2645_v0, %v682_v61  ;;  %v757_v20 = vmul.f32 %v2701_v41, %v738_v1 }
 0x12b   : > { %v586_v52 = vsel %vm585_vm2, %v2652_v6, %v582_v40  ;;  %v538_v10 = vpop.xlane.xlu1 %537  ;;  %v783_v6 = vadd.f32 %v2731_v60, %v764_v53  ;;  %vm614_vm6 = vweird.f32 %v2721_v56  ;;  %v747_v39 = vmul.f32 %v686_v29, %v2494_v58 }
 0x12c   : > { %v737_v11 = vmul.f32 %v586_v52, %v2485_v54  ;;  %v544_v13 = vpop.xlane.xlu2 %543  ;;  %v610_v15 = vmul.f32 0.5, %v609_v17  ;;  %v558_v14 = vmul.f32 %v538_v10, %v2462_v34  ;;  %v748_v18 = vmul.f32 %v696_v28, %v2487_v55  ;;  %vm2797_vm7 = vmor %vm613_vm5, %vm614_vm6 }
 0x12d   : > { %v560_v42 = vmul.f32 %v544_v13, %v2462_v34  ;;  %v795_v48 = vpack.c.bf16 %v784_v21, %v783_v6  ;;  %v700_v49 = vmul.f32 0.5, %v699_v31  ;;  %v776_v58 = vadd.f32 %v2731_v60, %v757_v20 }
 0x12e   : > { %v2764_v27 = vpop.eup %2137  ;;  %v756_v54 = vmul.f32 %v2701_v41, %v737_v11  ;;  %v611_v32 = vsub.f32 1.5, %v610_v15  ;;  %v2775_v12 = vadd.f32 1e-05, %v558_v14  ;;  %vm603_vm8 = vweird.f32 %v2725_v57 }
 0x12f   : > { %v2778_v33 = vpop.eup %2139  ;;  %v628_v62 = vmul.f32 %v2764_v27, %v2708_v24  ;;  %2020 = vmatmul.msk.bf16.vlgmr.msra.gmra.mxu2 %vm393_vm0, %v795_v48  ;;  %2028 = vmatmul.msk.bf16.vlgmr.msra.gmra.mxu3 %vm393_vm0, %v795_v48  ;;  %v2786_v0 = vadd.f32 1e-05, %v560_v42  ;;  %v766_v1 = vmul.f32 %v2701_v41, %v747_v39  ;;  %v767_v7 = vmul.f32 %v2701_v41, %v748_v18 }
 0x130   : > { %v2142_v35 = vpop.eup %2141  ;;  %v618_v43 = vmul.f32 %v2778_v33, %v2718_v25  ;;  %v775_v22 = vadd.f32 %v2731_v60, %v756_v54  ;;  %v612_v45 = vmul.f32 %v2721_v56, %v611_v32  ;;  %2143 = vrsqrt.f32 %v2775_v12 }
 0x131   : > { %v598_v46 = vmul.f32 %v2142_v35, %v2725_v57  ;;  %v629_v53 = vmul.f32 %v2764_v27, %v628_v62  ;;  %2145 = vrsqrt.f32 %v2786_v0  ;;  %vm604_vm9 = vweird.f32 %v2142_v35 }
 0x132   : > { %v619_v55 = vmul.f32 %v2778_v33, %v618_v43  ;;  %v791_v59 = vpack.c.bf16 %v776_v58, %v775_v22  ;;  %v616_v3 = vsel %vm2797_vm7, %v2721_v56, %v612_v45  ;;  %v701_v61 = vsub.f32 1.5, %v700_v49  ;;  %vm605_vm12 = vmor %vm603_vm8, %vm604_vm9 }
 0x133   : > { %v541_v47 = vpop.xlane.xlu1 %540  ;;  %v599_v40 = vmul.f32 %v2142_v35, %v598_v46  ;;  %vm703_vm10 = vweird.f32 %v2643_v63  ;;  %v630_v10 = vmul.f32 0.5, %v629_v53  ;;  %vm704_vm11 = vweird.f32 %v2714_v50 }
 0x134   : > { %v559_v4 = vmul.f32 %v541_v47, %v2462_v34  ;;  %2016 = vmatmul.msk.bf16.vlgmr.msra.gmra.mxu0 %vm393_vm0, %v791_v59  ;;  %2024 = vmatmul.msk.bf16.vlgmr.msra.gmra.mxu1 %vm393_vm0, %v791_v59  ;;  %v740_v56 = vmul.f32 %v616_v3, %v2513_v9  ;;  %v620_v36 = vmul.f32 0.5, %v619_v55  ;;  %v785_v17 = vadd.f32 %v2731_v60, %v766_v1  ;;  %vm2831_vm13 = vmor %vm703_vm10, %vm704_vm11 }
 0x135   : > { %v600_v2 = vmul.f32 0.5, %v599_v40  ;;  %v786_v42 = vadd.f32 %v2731_v60, %v767_v7  ;;  %v702_v15 = vmul.f32 %v2714_v50, %v701_v61  ;;  %v631_v57 = vsub.f32 1.5, %v630_v10 }
 0x136   : > { %v2815_v52 = vadd.f32 1e-05, %v559_v4  ;;  %v2144_v11 = vpop.eup %2143  ;;  %vm713_vm14 = vweird.f32 %v2775_v12  ;;  %v759_v48 = vmul.f32 %v2701_v41, %v740_v56  ;;  %v621_v31 = vsub.f32 1.5, %v620_v36 }
 0x137   : > { %v601_v37 = vsub.f32 1.5, %v600_v2  ;;  %v2823_v13 = vpop.eup %2145  ;;  %v708_v21 = vmul.f32 %v2144_v11, %v2775_v12  ;;  %vm714_vm15 = vweird.f32 %v2144_v11  ;;  %v796_v63 = vpack.c.bf16 %v786_v42, %v785_v17 }
 0x138   : > { %2147 = vrsqrt.f32 %v2815_v52  ;;  %v728_v29 = vmul.f32 %v2823_v13, %v2786_v0  ;;  %v706_v20 = vsel %vm2831_vm13, %v2714_v50, %v702_v15  ;;  %vm633_vm1 = vweird.f32 %v2708_v24  ;;  %vm715_vm5 = vmor %vm713_vm14, %vm714_vm15 }
 0x139   : > { %v602_v6 = vmul.f32 %v2142_v35, %v601_v37  ;;  %v709_v54 = vmul.f32 %v2144_v11, %v708_v21  ;;  %vm634_vm2 = vweird.f32 %v2764_v27  ;;  %vm623_vm3 = vweird.f32 %v2718_v25 }
 0x13a   : > { %vm624_vm4 = vweird.f32 %v2778_v33  ;;  %v729_v50 = vmul.f32 %v2823_v13, %v728_v29  ;;  %v778_v18 = vadd.f32 %v2731_v60, %v759_v48  ;;  %v749_v25 = vmul.f32 %v706_v20, %v2507_v5  ;;  %vm2862_vm6 = vmor %vm633_vm1, %vm634_vm2 }
 0x13b   : > { %v606_v14 = vsel %vm605_vm12, %v2142_v35, %v602_v6  ;;  %v710_v32 = vmul.f32 0.5, %v709_v54  ;;  %v632_v35 = vmul.f32 %v2764_v27, %v631_v57  ;;  %v622_v46 = vmul.f32 %v2778_v33, %v621_v31  ;;  %vm2867_vm7 = vmor %vm623_vm3, %vm624_vm4 }
 0x13c   : > { %v739_v28 = vmul.f32 %v606_v14, %v2526_v23  ;;  %v730_v53 = vmul.f32 0.5, %v729_v50  ;;  %v768_v59 = vmul.f32 %v2701_v41, %v749_v25  ;;  %vm723_vm8 = vweird.f32 %v2815_v52 }
 0x13d   : > { %v711_v39 = vsub.f32 1.5, %v710_v32  ;;  %v636_v5 = vsel %vm2862_vm6, %v2764_v27, %v632_v35  ;;  %v626_v55 = vsel %vm2867_vm7, %v2778_v33, %v622_v46  ;;  %vm733_vm10 = vweird.f32 %v2786_v0 }
 0x13e   : > { %v758_v23 = vmul.f32 %v2701_v41, %v739_v28  ;;  %v2148_v62 = vpop.eup %2147  ;;  %v742_v3 = vmul.f32 %v636_v5, %v2529_v26  ;;  %v731_v27 = vsub.f32 1.5, %v730_v53  ;;  %v787_v33 = vadd.f32 %v2731_v60, %v768_v59 }
 0x13f   : > { %2021 = vmatmul.msk.bf16.gmra.mxu2 %vm393_vm0, %v796_v63  ;;  %2029 = vmatmul.msk.bf16.gmra.mxu3 %vm393_vm0, %v796_v63  ;;  %v718_v43 = vmul.f32 %v2148_v62, %v2815_v52  ;;  %v712_v12 = vmul.f32 %v2144_v11, %v711_v39  ;;  %vm724_vm9 = vweird.f32 %v2148_v62  ;;  %vm734_vm11 = vweird.f32 %v2823_v13 }
 0x140   : > { %v777_v22 = vadd.f32 %v2731_v60, %v758_v23  ;;  %vm725_vm12 = vmor %vm723_vm8, %vm724_vm9  ;;  %v732_v10 = vmul.f32 %v2823_v13, %v731_v27  ;;  %v761_v52 = vmul.f32 %v2701_v41, %v742_v3 }
 0x141   : > { %v719_v49 = vmul.f32 %v2148_v62, %v718_v43  ;;  %v716_v58 = vsel %vm715_vm5, %v2144_v11, %v712_v12  ;;  %vm735_vm13 = vmor %vm733_vm10, %vm734_vm11 }
 0x142   : > { %v792_v51 = vpack.c.bf16 %v778_v18, %v777_v22  ;;  %v750_v24 = vmul.f32 %v716_v58, %v2547_v19  ;;  %v741_v19 = vmul.f32 %v626_v55, %v2536_v30  ;;  %v736_v37 = vsel %vm735_vm13, %v2823_v13, %v732_v10 }
 0x143   : > { %v720_v40 = vmul.f32 0.5, %v719_v49  ;;  %v780_v11 = vadd.f32 %v2731_v60, %v761_v52  ;;  %v752_v36 = vmul.f32 %v736_v37, %v2552_v38 }
 0x144   : > { %2017 = vmatmul.msk.bf16.gmra.mxu0 %vm393_vm0, %v792_v51  ;;  %2025 = vmatmul.msk.bf16.gmra.mxu1 %vm393_vm0, %v792_v51  ;;  %v769_v1 = vmul.f32 %v2701_v41, %v750_v24  ;;  %v760_v26 = vmul.f32 %v2701_v41, %v741_v19 }
 0x145   : > { %v721_v4 = vsub.f32 1.5, %v720_v40  ;;  %v771_v21 = vmul.f32 %v2701_v41, %v752_v36 }
 0x146   : > { %v788_v2 = vadd.f32 %v2731_v60, %v769_v1  ;;  %v779_v0 = vadd.f32 %v2731_v60, %v760_v26 }
 0x147   : > { %v722_v7 = vmul.f32 %v2148_v62, %v721_v4  ;;  %v790_v13 = vadd.f32 %v2731_v60, %v771_v21 }
 0x148   : > { %v797_v61 = vpack.c.bf16 %v788_v2, %v787_v33  ;;  %v793_v17 = vpack.c.bf16 %v780_v11, %v779_v0 }
 0x149   : > { %v726_v30 = vsel %vm725_vm12, %v2148_v62, %v722_v7 }
 0x14a   : > { %v751_v56 = vmul.f32 %v726_v30, %v2561_v44 }
 0x14c   : > { %v770_v6 = vmul.f32 %v2701_v41, %v751_v56 }
 0x14e   : > { %v789_v42 = vadd.f32 %v2731_v60, %v770_v6 }
 0x14f   : > { %2022 = vmatmul.msk.bf16.gmra.mxu2 %vm393_vm0, %v797_v61  ;;  %2030 = vmatmul.msk.bf16.gmra.mxu3 %vm393_vm0, %v797_v61 }
 0x150   : > { %v798_v15 = vpack.c.bf16 %v790_v13, %v789_v42 }
 0x154   : > { %2018 = vmatmul.msk.bf16.gmra.mxu0 %vm393_vm0, %v793_v17  ;;  %2026 = vmatmul.msk.bf16.gmra.mxu1 %vm393_vm0, %v793_v17 }
 0x15f   : > { %2023 = vmatmul.msk.bf16.gmra.mxu2 %vm393_vm0, %v798_v15  ;;  %2031 = vmatmul.msk.bf16.gmra.mxu3 %vm393_vm0, %v798_v15 }
 0x186   : > { %v517_v44 = vpop.xlane.xlu0 %516 }
 0x187   : > { %v551_v38 = vmul.f32 %v517_v44, %v2462_v34 }
 0x189   : > { %v567_v9 = vadd.f32 1e-05, %v551_v38 }
 0x18b   : > { %2149 = vrsqrt.f32 %v567_v9  ;;  %vm643_vm14 = vweird.f32 %v567_v9 }
 0x191   : > { %v2150_v57 = vpop.eup %2149 }
 0x192   : > { %v638_v14 = vmul.f32 %v2150_v57, %v567_v9  ;;  %vm644_vm15 = vweird.f32 %v2150_v57 }
 0x193   : > { %vm645_vm1 = vmor %vm643_vm14, %vm644_vm15 }
 0x194   : > { %v639_v54 = vmul.f32 %v2150_v57, %v638_v14 }
 0x196   : > { %v640_v31 = vmul.f32 0.5, %v639_v54 }
 0x198   : > { %v520_v28 = vpop.xlane.xlu1 %519  ;;  %v641_v32 = vsub.f32 1.5, %v640_v31 }
 0x199   : > { %v552_v29 = vmul.f32 %v520_v28, %v2462_v34  ;;  %v803_v34 = vld [vmem:[%s3660_s4] sm:$0x3] }
 0x19a   : > { %v642_v20 = vmul.f32 %v2150_v57, %v641_v32  ;;  %v2914_v45 = vperm.slane %v803_v34, 0  ;;  %v2916_v46 = vperm.slane %v803_v34, 1 }
 0x19b   : > { %v568_v48 = vadd.f32 1e-05, %v552_v29 }
 0x19c   : > { %v646_v35 = vsel %vm645_vm1, %v2150_v57, %v642_v20 }
 0x19d   : > { %2151 = vrsqrt.f32 %v568_v48  ;;  %v743_v43 = vmul.f32 %v646_v35, %v2602_v16  ;;  %vm653_vm3 = vweird.f32 %v568_v48 }
 0x19f   : > { %v762_v12 = vmul.f32 %v2701_v41, %v743_v43 }
 0x1a1   : > { %v781_v24 = vadd.f32 %v2731_v60, %v762_v12 }
 0x1a3   : > { %v2152_v63 = vpop.eup %2151 }
 0x1a4   : > { %v648_v23 = vmul.f32 %v2152_v63, %v568_v48  ;;  %vm654_vm2 = vweird.f32 %v2152_v63 }
 0x1a5   : > { %vm655_vm4 = vmor %vm653_vm3, %vm654_vm2 }
 0x1a6   : > { %v649_v62 = vmul.f32 %v2152_v63, %v648_v23 }
 0x1a8   : > { %v650_v39 = vmul.f32 0.5, %v649_v62 }
 0x1aa   : > { %v651_v50 = vsub.f32 1.5, %v650_v39 }
 0x1ac   : > { %v652_v22 = vmul.f32 %v2152_v63, %v651_v50 }
 0x1ae   : > { %v656_v18 = vsel %vm655_vm4, %v2152_v63, %v652_v22 }
 0x1af   : > { %v744_v25 = vmul.f32 %v656_v18, %v2663_v8 }
 0x1b1   : > { %v763_v47 = vmul.f32 %v2701_v41, %v744_v25  ;;  %v862_v5 = vpop.f32.mrf.mxu0  ;;  %v911_v53 = vpop.f32.mrf.mxu1 }
 0x1b2   : > { %v882_v49 = vpop.f32.mrf.mxu2  ;;  %v931_v16 = vpop.f32.mrf.mxu3  ;;  %v2927_v40 = vadd.f32 %v862_v5, %v2914_v45  ;;  %v912_v55 = vadd.f32 %v911_v53, %v2916_v46 }
 0x1b3   : > { %v2921_v51 = vadd.f32 %v882_v49, %v2914_v45  ;;  %v932_v58 = vadd.f32 %v931_v16, %v2916_v46  ;;  %v782_v8 = vadd.f32 %v2731_v60, %v763_v47 }
 0x1b4   : > { %v2032_v1 = vmul.f32 -1.442695, %v2927_v40  ;;  %v2048_v3 = vmul.f32 -1.442695, %v912_v55 }
 0x1b5   : > { %v2040_v41 = vmul.f32 -1.442695, %v2921_v51  ;;  %v2056_v59 = vmul.f32 -1.442695, %v932_v58  ;;  %v794_v4 = vpack.c.bf16 %v782_v8, %v781_v24 }
 0x1b7   : > { %2153 = vpow2.f32 %v2040_v41  ;;  %2019 = vmatmul.msk.bf16.gmra.mxu0 %vm393_vm0, %v794_v4  ;;  %2027 = vmatmul.msk.bf16.gmra.mxu1 %vm393_vm0, %v794_v4 }
 0x1b8   : > { %2155 = vpow2.f32 %v2056_v59 }
 0x1b9   : > { %2157 = vpow2.f32 %v2032_v1  ;;  %v864_v33 = vpop.f32.mrf.mxu0  ;;  %v913_v7 = vpop.f32.mrf.mxu1 }
 0x1ba   : > { %2159 = vpow2.f32 %v2048_v3  ;;  %v884_v60 = vpop.f32.mrf.mxu2  ;;  %v933_v19 = vpop.f32.mrf.mxu3  ;;  %v914_v30 = vadd.f32 %v913_v7, %v2916_v46  ;;  %v2945_v56 = vadd.f32 %v864_v33, %v2914_v45 }
 0x1bb   : > { %v2935_v27 = vadd.f32 %v884_v60, %v2914_v45  ;;  %v934_v2 = vadd.f32 %v933_v19, %v2916_v46 }
 0x1bc   : > { %v2049_v21 = vmul.f32 -1.442695, %v914_v30  ;;  %v2033_v15 = vmul.f32 -1.442695, %v2945_v56 }
 0x1bd   : > { %v2154_v61 = vpop.eup %2153  ;;  %v2041_v10 = vmul.f32 -1.442695, %v2935_v27  ;;  %v2057_v11 = vmul.f32 -1.442695, %v934_v2 }
 0x1be   : > { %v2156_v26 = vpop.eup %2155  ;;  %v2939_v52 = vadd.f32 1.0, %v2154_v61 }
 0x1bf   : > { %v2158_v37 = vpop.eup %2157  ;;  %v2942_v0 = vadd.f32 1.0, %v2156_v26  ;;  %2161 = vpow2.f32 %v2041_v10 }
 0x1c0   : > { %v2160_v36 = vpop.eup %2159  ;;  %v2948_v17 = vadd.f32 1.0, %v2158_v37 }
 0x1c1   : > { %2163 = vrcp.f32 %v2942_v0  ;;  %v2951_v6 = vadd.f32 1.0, %v2160_v36  ;;  %v867_v38 = vpop.f32.mrf.mxu0  ;;  %v916_v9 = vpop.f32.mrf.mxu1  ;;  %vm1524_vm5 = vweird.f32 %v2942_v0  ;;  %v1528_v20 = vand.u32 2147483647, %v2942_v0 }
 0x1c2   : > { %2165 = vrcp.f32 %v2939_v52  ;;  %v887_v42 = vpop.f32.mrf.mxu2  ;;  %v936_v13 = vpop.f32.mrf.mxu3  ;;  %v2962_v28 = vadd.f32 %v867_v38, %v2914_v45  ;;  %v917_v31 = vadd.f32 %v916_v9, %v2916_v46  ;;  %v1530_v62 = vand.u32 2147483648, %v2942_v0 }
 0x1c3   : > { %2167 = vpow2.f32 %v2057_v11  ;;  %v2955_v44 = vadd.f32 %v887_v42, %v2914_v45  ;;  %v937_v14 = vadd.f32 %v936_v13, %v2916_v46  ;;  %v1408_v35 = vand.u32 2147483647, %v2951_v6 }
 0x1c4   : > { %2169 = vrcp.f32 %v2951_v6  ;;  %v2050_v39 = vmul.f32 -1.442695, %v917_v31  ;;  %v1410_v22 = vand.u32 2147483648, %v2951_v6  ;;  %v2034_v18 = vmul.f32 -1.442695, %v2962_v28 }
 0x1c5   : > { %2171 = vrcp.f32 %v2948_v17  ;;  %v2042_v57 = vmul.f32 -1.442695, %v2955_v44  ;;  %v2162_v54 = vpop.eup %2161  ;;  %v2058_v48 = vmul.f32 -1.442695, %v937_v14  ;;  %v1024_v49 = vand.u32 2147483647, %v2948_v17 }
 0x1c6   : > { %2173 = vpow2.f32 %v2049_v21  ;;  %v2979_v47 = vadd.f32 1.0, %v2162_v54  ;;  %vm2982_vm7 = vcmp.eq.f32.partialorder %v1528_v20, 8.507059e+37  ;;  %v1531_v8 = vor.u32 1.1754944e-38, %v1530_v62 }
 0x1c7   : > { %v2164_v29 = vpop.eup %2163  ;;  %2175 = vpow2.f32 %v2033_v15  ;;  %vm1404_vm8 = vweird.f32 %v2951_v6  ;;  %vm2990_vm9 = vcmp.eq.f32.partialorder %v1408_v35, 8.507059e+37  ;;  %v1411_v3 = vor.u32 1.1754944e-38, %v1410_v22 }
 0x1c8   : > { %v2965_v32 = vpop.eup %2165  ;;  %v1520_v63 = vmul.f32 %v2164_v29, %v2942_v0  ;;  %2177 = vpow2.f32 %v2042_v57  ;;  %vm1525_vm6 = vweird.f32 %v2164_v29  ;;  %v1026_v54 = vand.u32 2147483648, %v2948_v17 }
 0x1c9   : > { %v2168_v23 = vpop.eup %2167  ;;  %2179 = vpow2.f32 %v2058_v48  ;;  %vm1526_vm10 = vmor %vm1524_vm5, %vm1525_vm6  ;;  %v869_v20 = vpop.f32.mrf.mxu0 }
 0x1ca   : > { %v2170_v50 = vpop.eup %2169  ;;  %v1521_v43 = vsub.f32 1.0, %v1520_v63  ;;  %v2973_v34 = vadd.f32 1.0, %v2168_v23  ;;  %2181 = vpow2.f32 %v2050_v39  ;;  %v889_v53 = vpop.f32.mrf.mxu2 }
 0x1cb   : > { %v2976_v25 = vpop.eup %2171  ;;  %v1400_v12 = vmul.f32 %v2170_v50, %v2951_v6  ;;  %vm1405_vm11 = vweird.f32 %v2170_v50  ;;  %v3006_v2 = vadd.f32 %v889_v53, %v2914_v45  ;;  %v938_v33 = vpop.f32.mrf.mxu3  ;;  %v3065_v53 = vadd.f32 %v869_v20, %v2914_v45 }
 0x1cc   : > { %v2174_v16 = vpop.eup %2173  ;;  %v1522_v58 = vmul.f32 %v2164_v29, %v1521_v43  ;;  %2183 = vrcp.f32 %v2973_v34  ;;  %v1543_v61 = vand.u32 2147483647, %v2973_v34  ;;  %vm1406_vm12 = vmor %vm1404_vm8, %vm1405_vm11  ;;  %v1545_v21 = vand.u32 2147483648, %v2973_v34  ;;  %v918_v39 = vpop.f32.mrf.mxu1 }
 0x1cd   : > { %v2176_v24 = vpop.eup %2175  ;;  %v1401_v55 = vsub.f32 1.0, %v1400_v12  ;;  %v2988_v41 = vadd.f32 1.0, %v2174_v16  ;;  %2185 = vpow2.f32 %v2034_v18  ;;  %v3029_v15 = vmul.f32 %v2976_v25, %v2948_v17 }
 0x1ce   : > { %v2178_v59 = vpop.eup %2177  ;;  %v1523_v4 = vadd.f32 %v2164_v29, %v1522_v58  ;;  %2187 = vrcp.f32 %v2979_v47  ;;  %v3009_v10 = vadd.f32 1.0, %v2176_v24  ;;  %vm1539_vm13 = vweird.f32 %v2973_v34 }
 0x1cf   : > { %v2180_v60 = vpop.eup %2179  ;;  %v1402_v19 = vmul.f32 %v2170_v50, %v1401_v55  ;;  %2189 = vrcp.f32 %v2988_v41  ;;  %v3014_v0 = vadd.f32 1.0, %v2178_v59  ;;  %v1425_v42 = vand.u32 2147483648, %v2988_v41 }
 0x1d0   : > { %v1527_v7 = vsel %vm1526_vm10, %v2164_v29, %v1523_v4  ;;  %v2182_v26 = vpop.eup %2181  ;;  %v3016_v11 = vadd.f32 1.0, %v2180_v60  ;;  %v1423_v57 = vand.u32 2147483647, %v2988_v41  ;;  %vm3043_vm14 = vcmp.eq.f32.partialorder %v1543_v61, 8.507059e+37 }
 0x1d1   : > { %v1532_v30 = vsel %vm2982_vm7, %v1531_v8, %v1527_v7  ;;  %v1403_v37 = vadd.f32 %v2170_v50, %v1402_v19  ;;  %v3025_v13 = vadd.f32 1.0, %v2182_v26  ;;  %v3049_v63 = vmul.f32 -1.442695, %v3006_v2 }
 0x1d2   : > { %v2184_v36 = vpop.eup %2183  ;;  %1760 = vst.msk [vmem:[%s2999_s24 + $0x40] sm:$0xff] %vm393_vm0, %v1532_v30  ;;  %2191 = vrcp.f32 %v3016_v11  ;;  %v1546_v62 = vor.u32 1.1754944e-38, %v1545_v21  ;;  %vm1419_vm15 = vweird.f32 %v2988_v41  ;;  %v1426_v35 = vor.u32 1.1754944e-38, %v1425_v42 }
 0x1d3   : > { %v1407_v38 = vsel %vm1406_vm12, %v2170_v50, %v1403_v37  ;;  %v1535_v9 = vmul.f32 %v2184_v36, %v2973_v34  ;;  %v2186_v6 = vpop.eup %2185  ;;  %2193 = vrcp.f32 %v3009_v10  ;;  %v892_v50 = vpop.f32.mrf.mxu2  ;;  %vm1540_vm1 = vweird.f32 %v2184_v36 }
 0x1d4   : > { %v1412_v14 = vsel %vm2990_vm9, %v1411_v3, %v1407_v38  ;;  %v3039_v29 = vpop.eup %2187  ;;  %2195 = vrcp.f32 %v3014_v0  ;;  %vm3054_vm2 = vcmp.eq.f32.partialorder %v1423_v57, 8.507059e+37  ;;  %v3058_v12 = vadd.f32 1.0, %v2186_v6  ;;  %v941_v1 = vpop.f32.mrf.mxu3  ;;  %vm1541_vm5 = vmor %vm1539_vm13, %vm1540_vm1 }
 0x1d5   : > { %1752 = vst.msk [vmem:[%s2999_s24] sm:$0xff] %vm393_vm0, %v1412_v14  ;;  %v1536_v48 = vsub.f32 1.0, %v1535_v9  ;;  %v2190_v23 = vpop.eup %2189  ;;  %2197 = vrcp.f32 %v3025_v13  ;;  %vm1554_vm3 = vweird.f32 %v3016_v11  ;;  %v1558_v16 = vand.u32 2147483647, %v3016_v11 }
 0x1d6   : > { %v1415_v22 = vmul.f32 %v2190_v23, %v2988_v41  ;;  %v1560_v58 = vand.u32 2147483648, %v3016_v11  ;;  %v939_v5 = vadd.f32 %v938_v33, %v2916_v46  ;;  %vm1021_vm4 = vweird.f32 %v2976_v25 }
 0x1d7   : > { %v1537_v43 = vmul.f32 %v2184_v36, %v1536_v48  ;;  %v919_v59 = vadd.f32 %v918_v39, %v2916_v46  ;;  %v3070_v4 = vadd.f32 %v892_v50, %v2914_v45  ;;  %vm1420_vm6 = vweird.f32 %v2190_v23 }
 0x1d8   : > { %v2192_v24 = vpop.eup %2191  ;;  %v1416_v55 = vsub.f32 1.0, %v1415_v22  ;;  %v2059_v19 = vmul.f32 -1.442695, %v939_v5  ;;  %v2035_v33 = vmul.f32 -1.442695, %v3065_v53  ;;  %vm1020_vm7 = vweird.f32 %v2948_v17  ;;  %vm1421_vm9 = vmor %vm1419_vm15, %vm1420_vm6 }
 0x1d9   : > { %v1538_v8 = vadd.f32 %v2184_v36, %v1537_v43  ;;  %v3072_v3 = vpop.eup %2193  ;;  %v1550_v60 = vmul.f32 %v2192_v24, %v3016_v11  ;;  %vm1555_vm8 = vweird.f32 %v2192_v24  ;;  %v2051_v30 = vmul.f32 -1.442695, %v919_v59  ;;  %vm3119_vm15 = vmor %vm1020_vm7, %vm1021_vm4 }
 0x1da   : > { %v3080_v7 = vpop.eup %2195  ;;  %v1417_v26 = vmul.f32 %v2190_v23, %v1416_v55  ;;  %2199 = vpow2.f32 %v2059_v19  ;;  %v942_v42 = vadd.f32 %v941_v1, %v2916_v46  ;;  %v1017_v14 = vsub.f32 1.0, %v3029_v15  ;;  %vm1556_vm11 = vmor %vm1554_vm3, %vm1555_vm8 }
 0x1db   : > { %v1542_v61 = vsel %vm1541_vm5, %v2184_v36, %v1538_v8  ;;  %v2198_v37 = vpop.eup %2197  ;;  %v1551_v21 = vsub.f32 1.0, %v1550_v60  ;;  %2201 = vpow2.f32 %v2035_v33  ;;  %v2044_v36 = vmul.f32 -1.442695, %v3070_v4 }
 0x1dc   : > { %v1547_v34 = vsel %vm3043_vm14, %v1546_v62, %v1542_v61  ;;  %v1418_v38 = vadd.f32 %v2190_v23, %v1417_v26  ;;  %v1430_v9 = vmul.f32 %v2198_v37, %v3025_v13  ;;  %2203 = vpow2.f32 %v2051_v30 }
 0x1dd   : > { %1761 = vst.msk [vmem:[%s2999_s24 + $0x48] sm:$0xff] %vm393_vm0, %v1547_v34  ;;  %v1552_v57 = vmul.f32 %v2192_v24, %v1551_v21  ;;  %v2060_v6 = vmul.f32 -1.442695, %v942_v42  ;;  %vm3095_vm10 = vcmp.eq.f32.partialorder %v1024_v49, 8.507059e+37  ;;  %v1438_v62 = vand.u32 2147483647, %v3025_v13 }
 0x1de   : > { %v1422_v31 = vsel %vm1421_vm9, %v2190_v23, %v1418_v38  ;;  %v1431_v20 = vsub.f32 1.0, %v1430_v9  ;;  %v1440_v39 = vand.u32 2147483648, %v3025_v13  ;;  %v1018_v43 = vmul.f32 %v2976_v25, %v1017_v14  ;;  %v921_v23 = vpop.f32.mrf.mxu1 }
 0x1df   : > { %v1427_v41 = vsel %vm3054_vm2, %v1426_v35, %v1422_v31  ;;  %v1553_v50 = vadd.f32 %v2192_v24, %v1552_v57  ;;  %2205 = vpow2.f32 %v2060_v6  ;;  %vm1559_vm12 = vcmp.eq.f32.partialorder %v1558_v16, 8.507059e+37 }
 0x1e0   : > { %1753 = vst.msk [vmem:[%s2999_s24 + $0x8] sm:$0xff] %vm393_vm0, %v1427_v41  ;;  %v1561_v49 = vor.u32 1.1754944e-38, %v1560_v58  ;;  %v1432_v15 = vmul.f32 %v2198_v37, %v1431_v20  ;;  %vm1435_vm13 = vweird.f32 %v2198_v37  ;;  %v2200_v22 = vpop.eup %2199  ;;  %2207 = vpow2.f32 %v2044_v36  ;;  %v872_v58 = vpop.f32.mrf.mxu0 }
 0x1e1   : > { %v1557_v5 = vsel %vm1556_vm11, %v2192_v24, %v1553_v50  ;;  %v1019_v35 = vadd.f32 %v2976_v25, %v1018_v43  ;;  %v1151_v18 = vmul.f32 %v3039_v29, %v2979_v47  ;;  %v2202_v8 = vpop.eup %2201  ;;  %vm1434_vm14 = vweird.f32 %v3025_v13 }
 0x1e2   : > { %v1562_v55 = vsel %vm1559_vm12, %v1561_v49, %v1557_v5  ;;  %v1433_v59 = vadd.f32 %v2198_v37, %v1432_v15  ;;  %v3113_v11 = vadd.f32 1.0, %v2200_v22  ;;  %v2204_v24 = vpop.eup %2203  ;;  %2209 = vrcp.f32 %v3058_v12  ;;  %vm1436_vm1 = vmor %vm1434_vm14, %vm1435_vm13  ;;  %v894_v15 = vpop.f32.mrf.mxu2 }
 0x1e3   : > { %1762 = vst.msk [vmem:[%s2999_s24 + $0x50] sm:$0xff] %vm393_vm0, %v1562_v55  ;;  %v1441_v13 = vor.u32 1.1754944e-38, %v1440_v39  ;;  %v1023_v1 = vsel %vm3119_vm15, %v2976_v25, %v1019_v35  ;;  %v922_v60 = vadd.f32 %v921_v23, %v2916_v46  ;;  %vm1439_vm2 = vcmp.eq.f32.partialorder %v1438_v62, 8.507059e+37  ;;  %v943_v62 = vpop.f32.mrf.mxu3 }
 0x1e4   : > { %v1437_v19 = vsel %vm1436_vm1, %v2198_v37, %v1433_v59  ;;  %2211 = vrcp.f32 %v3113_v11  ;;  %v1027_v33 = vor.u32 1.1754944e-38, %v1026_v54  ;;  %v3134_v30 = vadd.f32 1.0, %v2204_v24 }
 0x1e5   : > { %v2206_v61 = vpop.eup %2205  ;;  %v1442_v26 = vsel %vm1439_vm2, %v1441_v13, %v1437_v19  ;;  %v3137_v34 = vadd.f32 %v872_v58, %v2914_v45  ;;  %v1152_v21 = vsub.f32 1.0, %v1151_v18  ;;  %v1575_v25 = vand.u32 2147483648, %v3113_v11 }
 0x1e6   : > { %1754 = vst.msk [vmem:[%s2999_s24 + $0x10] sm:$0xff] %vm393_vm0, %v1442_v26  ;;  %v3142_v42 = vadd.f32 1.0, %v2202_v8  ;;  %v3144_v37 = vadd.f32 1.0, %v2206_v61  ;;  %v1028_v17 = vsel %vm3095_vm10, %v1027_v33, %v1023_v1  ;;  %v2208_v54 = vpop.eup %2207  ;;  %v1573_v38 = vand.u32 2147483647, %v3113_v11 }
 0x1e7   : > { %2213 = vrcp.f32 %v3134_v30  ;;  %1271 = vrot.lane.b32.xlu2 %v1028_v17, %s2322_s12  ;;  %v2052_v9 = vmul.f32 -1.442695, %v922_v60  ;;  %vm1569_vm3 = vweird.f32 %v3113_v11  ;;  %v2036_v57 = vmul.f32 -1.442695, %v3137_v34 }
 0x1e8   : > { %2215 = vpow2.f32 %v3049_v63  ;;  %v3152_v36 = vpop.eup %2209  ;;  %v1153_v6 = vmul.f32 %v3039_v29, %v1152_v21  ;;  %v1576_v48 = vor.u32 1.1754944e-38, %v1575_v25  ;;  %v1453_v31 = vand.u32 2147483647, %v3134_v30 }
 0x1e9   : > { %2217 = vrcp.f32 %v3144_v37  ;;  %v3160_v20 = vadd.f32 1.0, %v2208_v54  ;;  %vm3163_vm4 = vcmp.eq.f32.partialorder %v1573_v38, 8.507059e+37  ;;  %v1455_v41 = vand.u32 2147483648, %v3134_v30 }
 0x1ea   : > { %v2212_v14 = vpop.eup %2211  ;;  %2219 = vrcp.f32 %v3142_v42  ;;  %vm1155_vm5 = vweird.f32 %v2979_v47  ;;  %vm1449_vm6 = vweird.f32 %v3134_v30  ;;  %v1154_v50 = vadd.f32 %v3039_v29, %v1153_v6 }
 0x1eb   : > { %v1565_v63 = vmul.f32 %v2212_v14, %v3113_v11  ;;  %2221 = vpow2.f32 %v2052_v9  ;;  %vm1156_vm7 = vweird.f32 %v3039_v29  ;;  %v1159_v43 = vand.u32 2147483647, %v2979_v47 }
 0x1ec   : > { %v1161_v49 = vand.u32 2147483648, %v2979_v47  ;;  %v1588_v5 = vand.u32 2147483647, %v3144_v37  ;;  %vm3175_vm8 = vmor %vm1155_vm5, %vm1156_vm7  ;;  %v944_v18 = vadd.f32 %v943_v62, %v2916_v46  ;;  %v1031_v8 = vmul.f32 %v3072_v3, %v3009_v10 }
 0x1ed   : > { %v2214_v23 = vpop.eup %2213  ;;  %v1566_v22 = vsub.f32 1.0, %v1565_v63  ;;  %vm1570_vm9 = vweird.f32 %v2212_v14  ;;  %vm1584_vm10 = vweird.f32 %v3144_v37  ;;  %v1590_v47 = vand.u32 2147483648, %v3144_v37 }
 0x1ee   : > { %v2216_v55 = vpop.eup %2215  ;;  %v1445_v59 = vmul.f32 %v2214_v23, %v3134_v30  ;;  %v1158_v16 = vsel %vm3175_vm8, %v3039_v29, %v1154_v50  ;;  %v1162_v13 = vor.u32 1.1754944e-38, %v1161_v49  ;;  %v3189_v1 = vadd.f32 %v894_v15, %v2914_v45  ;;  %vm1571_vm13 = vmor %vm1569_vm3, %vm1570_vm9 }
 0x1ef   : > { %v2218_v58 = vpop.eup %2217  ;;  %v1567_v24 = vmul.f32 %v2212_v14, %v1566_v22  ;;  %v2061_v60 = vmul.f32 -1.442695, %v944_v18  ;;  %vm1160_vm11 = vcmp.eq.f32.partialorder %v1159_v43, 8.507059e+37  ;;  %v1032_v26 = vsub.f32 1.0, %v1031_v8 }
 0x1f0   : > { %v3191_v19 = vpop.eup %2219  ;;  %v1446_v33 = vsub.f32 1.0, %v1445_v59  ;;  %v1580_v61 = vmul.f32 %v2218_v58, %v3144_v37  ;;  %vm1450_vm12 = vweird.f32 %v2214_v23  ;;  %2223 = vpow2.f32 %v2036_v57 }
 0x1f1   : > { %v2222_v21 = vpop.eup %2221  ;;  %v1568_v25 = vadd.f32 %v2212_v14, %v1567_v24  ;;  %v1163_v29 = vsel %vm1160_vm11, %v1162_v13, %v1158_v16  ;;  %2225 = vpow2.f32 %v2061_v60  ;;  %vm1585_vm14 = vweird.f32 %v2218_v58  ;;  %vm1451_vm15 = vmor %vm1449_vm6, %vm1450_vm12  ;;  %v874_v13 = vpop.f32.mrf.mxu0 }
 0x1f2   : > { %v1447_v17 = vmul.f32 %v2214_v23, %v1446_v33  ;;  %v1581_v54 = vsub.f32 1.0, %v1580_v61  ;;  %v3197_v38 = vadd.f32 1.0, %v2222_v21  ;;  %1289 = vrot.lane.b32.xlu1 %v1163_v29, %s2322_s12  ;;  %v2045_v6 = vmul.f32 -1.442695, %v3189_v1  ;;  %v897_v21 = vpop.f32.mrf.mxu2 }
 0x1f3   : > { %v1572_v9 = vsel %vm1571_vm13, %v2212_v14, %v1568_v25  ;;  %v1033_v62 = vmul.f32 %v3072_v3, %v1032_v26  ;;  %vm1454_vm1 = vcmp.eq.f32.partialorder %v1453_v31, 8.507059e+37  ;;  %v1456_v11 = vor.u32 1.1754944e-38, %v1455_v41 }
 0x1f4   : > { %v1577_v57 = vsel %vm3163_vm4, %v1576_v48, %v1572_v9  ;;  %v1448_v63 = vadd.f32 %v2214_v23, %v1447_v17  ;;  %v1582_v50 = vmul.f32 %v2218_v58, %v1581_v54  ;;  %2227 = vrcp.f32 %v3197_v38  ;;  %vm1586_vm4 = vmor %vm1584_vm10, %vm1585_vm14  ;;  %v946_v54 = vpop.f32.mrf.mxu3 }
 0x1f5   : > { %1763 = vst.msk [vmem:[%s2999_s24 + $0x58] sm:$0xff] %vm393_vm0, %v1577_v57  ;;  %vm3210_vm2 = vcmp.eq.f32.partialorder %v1588_v5, 8.507059e+37  ;;  %v1034_v39 = vadd.f32 %v3072_v3, %v1033_v62  ;;  %v1591_v49 = vor.u32 1.1754944e-38, %v1590_v47  ;;  %vm1036_vm3 = vweird.f32 %v3072_v3 }
 0x1f6   : > { %v1452_v48 = vsel %vm1451_vm15, %v2214_v23, %v1448_v63  ;;  %v1583_v43 = vadd.f32 %v2218_v58, %v1582_v50  ;;  %v2224_v15 = vpop.eup %2223  ;;  %vm1035_vm5 = vweird.f32 %v3009_v10  ;;  %v1039_v30 = vand.u32 2147483647, %v3009_v10 }
 0x1f7   : > { %v1457_v22 = vsel %vm1454_vm1, %v1456_v11, %v1452_v48  ;;  %v1041_v31 = vand.u32 2147483648, %v3009_v10  ;;  %v2226_v41 = vpop.eup %2225  ;;  %v1468_v5 = vand.u32 2147483647, %v3197_v38  ;;  %v1470_v35 = vand.u32 2147483648, %v3197_v38  ;;  %vm3226_vm6 = vmor %vm1035_vm5, %vm1036_vm3 }
 0x1f8   : > { %1755 = vst.msk [vmem:[%s2999_s24 + $0x18] sm:$0xff] %vm393_vm0, %v1457_v22  ;;  %v1587_v23 = vsel %vm1586_vm4, %v2218_v58, %v1583_v43  ;;  %2229 = vpow2.f32 %v2045_v6  ;;  %v3232_v8 = vadd.f32 1.0, %v2226_v41  ;;  %v1038_v10 = vsel %vm3226_vm6, %v3072_v3, %v1034_v39  ;;  %v923_v3 = vpop.f32.mrf.mxu1 }
 0x1f9   : > { %v1592_v37 = vsel %vm3210_vm2, %v1591_v49, %v1587_v23  ;;  %v1136_v59 = vmul.f32 %v2965_v32, %v2939_v52  ;;  %v3239_v16 = vadd.f32 1.0, %v2216_v55  ;;  %2231 = vrcp.f32 %v3160_v20 }
 0x1fa   : > { %v2228_v47 = vpop.eup %2227  ;;  %1764 = vst.msk [vmem:[%s2999_s24 + $0x60] sm:$0xff] %vm393_vm0, %v1592_v37  ;;  %v3244_v58 = vadd.f32 1.0, %v2224_v15  ;;  %v1042_v24 = vor.u32 1.1754944e-38, %v1041_v31  ;;  %vm1464_vm7 = vweird.f32 %v3197_v38  ;;  %2233 = vrcp.f32 %v3232_v8 }
 0x1fb   : > { %v1460_v60 = vmul.f32 %v2228_v47, %v3197_v38  ;;  %vm1040_vm8 = vcmp.eq.f32.partialorder %v1039_v30, 8.507059e+37  ;;  %vm3249_vm9 = vcmp.eq.f32.partialorder %v1468_v5, 8.507059e+37  ;;  %v1471_v55 = vor.u32 1.1754944e-38, %v1470_v35 }
 0x1fc   : > { %v1043_v61 = vsel %vm1040_vm8, %v1042_v24, %v1038_v10  ;;  %v1137_v26 = vsub.f32 1.0, %v1136_v59  ;;  %vm1140_vm10 = vweird.f32 %v2939_v52  ;;  %v1146_v29 = vand.u32 2147483648, %v2939_v52 }
 0x1fd   : > { %v1461_v25 = vsub.f32 1.0, %v1460_v60  ;;  %1273 = vrot.lane.b32.xlu0 %v1043_v61, %s2322_s12  ;;  %v3257_v17 = vadd.f32 %v874_v13, %v2914_v45  ;;  %vm1141_vm11 = vweird.f32 %v2965_v32  ;;  %v1144_v62 = vand.u32 2147483647, %v2939_v52 }
 0x1fe   : > { %v2230_v9 = vpop.eup %2229  ;;  %v1138_v6 = vmul.f32 %v2965_v32, %v1137_v26  ;;  %v924_v57 = vadd.f32 %v923_v3, %v2916_v46  ;;  %vm1465_vm12 = vweird.f32 %v2228_v47  ;;  %v3265_v11 = vadd.f32 %v897_v21, %v2914_v45  ;;  %vm1142_vm13 = vmor %vm1140_vm10, %vm1141_vm11 }
 0x1ff   : > { %v1462_v63 = vmul.f32 %v2228_v47, %v1461_v25  ;;  %v2037_v50 = vmul.f32 -1.442695, %v3257_v17  ;;  %v3267_v14 = vpop.eup %2231  ;;  %v947_v43 = vadd.f32 %v946_v54, %v2916_v46  ;;  %v1166_v49 = vmul.f32 %v3080_v7, %v3014_v0  ;;  %vm1466_vm14 = vmor %vm1464_vm7, %vm1465_vm12 }
 0x200   : > { %v1139_v39 = vadd.f32 %v2965_v32, %v1138_v6  ;;  %v2053_v48 = vmul.f32 -1.442695, %v924_v57  ;;  %v2234_v15 = vpop.eup %2233  ;;  %v3273_v30 = vadd.f32 1.0, %v2230_v9  ;;  %v1147_v31 = vor.u32 1.1754944e-38, %v1146_v29 }
 0x201   : > { %v1463_v22 = vadd.f32 %v2228_v47, %v1462_v63  ;;  %2235 = vpow2.f32 %v2037_v50  ;;  %v1595_v41 = vmul.f32 %v2234_v15, %v3232_v8  ;;  %vm1145_vm15 = vcmp.eq.f32.partialorder %v1144_v62, 8.507059e+37 }
 0x202   : > { %v1143_v23 = vsel %vm1142_vm13, %v2965_v32, %v1139_v39  ;;  %2237 = vpow2.f32 %v2053_v48  ;;  %v2046_v18 = vmul.f32 -1.442695, %v3265_v11  ;;  %v2062_v37 = vmul.f32 -1.442695, %v947_v43 }
 0x203   : > { %v1467_v5 = vsel %vm1466_vm14, %v2228_v47, %v1463_v22  ;;  %v1148_v35 = vsel %vm1145_vm15, %v1147_v31, %v1143_v23  ;;  %v1596_v10 = vsub.f32 1.0, %v1595_v41  ;;  %v1603_v59 = vand.u32 2147483647, %v3232_v8 }
 0x204   : > { %v1472_v52 = vsel %vm3249_vm9, %v1471_v55, %v1467_v5  ;;  %1287 = vrot.lane.b32.xlu2 %v1148_v35, %s2322_s12  ;;  %v1167_v38 = vsub.f32 1.0, %v1166_v49  ;;  %vm1600_vm1 = vweird.f32 %v2234_v15  ;;  %v1605_v32 = vand.u32 2147483648, %v3232_v8 }
 0x205   : > { %1756 = vst.msk [vmem:[%s2999_s24 + $0x20] sm:$0xff] %vm393_vm0, %v1472_v52  ;;  %2239 = vpow2.f32 %v2062_v37  ;;  %v1046_v47 = vmul.f32 %v3152_v36, %v3058_v12  ;;  %v1597_v24 = vmul.f32 %v2234_v15, %v1596_v10  ;;  %vm1171_vm2 = vweird.f32 %v3080_v7 }
 0x206   : > { %v1168_v13 = vmul.f32 %v3080_v7, %v1167_v38  ;;  %v1176_v60 = vand.u32 2147483648, %v3014_v0  ;;  %vm1599_vm3 = vweird.f32 %v3232_v8  ;;  %2241 = vpow2.f32 %v2046_v18 }
 0x207   : > { %v2236_v3 = vpop.eup %2235  ;;  %v1174_v33 = vand.u32 2147483647, %v3014_v0  ;;  %v1047_v55 = vsub.f32 1.0, %v1046_v47  ;;  %v1598_v26 = vadd.f32 %v2234_v15, %v1597_v24  ;;  %vm1601_vm4 = vmor %vm1599_vm3, %vm1600_vm1  ;;  %vm1604_vm5 = vcmp.eq.f32.partialorder %v1603_v59, 8.507059e+37 }
 0x208   : > { %v2238_v61 = vpop.eup %2237  ;;  %v1169_v21 = vadd.f32 %v3080_v7, %v1168_v13  ;;  %vm1170_vm6 = vweird.f32 %v3014_v0  ;;  %v1606_v25 = vor.u32 1.1754944e-38, %v1605_v32  ;;  %vm1051_vm8 = vweird.f32 %v3152_v36 }
 0x209   : > { %v3301_v29 = vadd.f32 1.0, %v2238_v61  ;;  %vm3305_vm7 = vmor %vm1170_vm6, %vm1171_vm2  ;;  %v1048_v54 = vmul.f32 %v3152_v36, %v1047_v55  ;;  %v1602_v9 = vsel %vm1601_vm4, %v2234_v15, %v1598_v26  ;;  %v1177_v0 = vor.u32 1.1754944e-38, %v1176_v60 }
 0x20a   : > { %v1173_v6 = vsel %vm3305_vm7, %v3080_v7, %v1169_v21  ;;  %v1056_v62 = vand.u32 2147483648, %v3058_v12  ;;  %v1607_v63 = vsel %vm1604_vm5, %v1606_v25, %v1602_v9  ;;  %vm1175_vm9 = vcmp.eq.f32.partialorder %v1174_v33, 8.507059e+37  ;;  %v948_v7 = vpop.f32.mrf.mxu3 }
 0x20b   : > { %v2240_v57 = vpop.eup %2239  ;;  %2243 = vrcp.f32 %v3301_v29  ;;  %v1054_v50 = vand.u32 2147483647, %v3058_v12  ;;  %1765 = vst.msk [vmem:[%s2999_s24 + $0x68] sm:$0xff] %vm393_vm0, %v1607_v63  ;;  %v3320_v39 = vadd.f32 1.0, %v2236_v3  ;;  %v1178_v43 = vsel %vm1175_vm9, %v1177_v0, %v1173_v6 }
 0x20c   : > { %2245 = vrcp.f32 %v3239_v16  ;;  %v3322_v48 = vadd.f32 1.0, %v2240_v57  ;;  %v2242_v49 = vpop.eup %2241  ;;  %1291 = vrot.lane.b32.xlu0 %v1178_v43, %s2322_s12  ;;  %v1049_v15 = vadd.f32 %v3152_v36, %v1048_v54  ;;  %vm1050_vm10 = vweird.f32 %v3058_v12 }
 0x20d   : > { %2247 = vrcp.f32 %v3244_v58  ;;  %v1483_v22 = vand.u32 2147483647, %v3301_v29  ;;  %v1485_v31 = vand.u32 2147483648, %v3301_v29  ;;  %vm1052_vm11 = vmor %vm1050_vm10, %vm1051_vm8  ;;  %v1057_v41 = vor.u32 1.1754944e-38, %v1056_v62 }
 0x20e   : > { %2249 = vrcp.f32 %v3322_v48  ;;  %v1053_v23 = vsel %vm1052_vm11, %v3152_v36, %v1049_v15  ;;  %vm1055_vm12 = vcmp.eq.f32.partialorder %v1054_v50, 8.507059e+37  ;;  %v949_v5 = vadd.f32 %v948_v7, %v2916_v46 }
 0x20f   : > { %2251 = vrcp.f32 %v3273_v30  ;;  %v3337_v12 = vadd.f32 1.0, %v2242_v49  ;;  %v1058_v35 = vsel %vm1055_vm12, %v1057_v41, %v1053_v23  ;;  %v1061_v18 = vmul.f32 %v3191_v19, %v3142_v42 }
 0x210   : > { %2253 = vrcp.f32 %v3320_v39  ;;  %vm1479_vm13 = vweird.f32 %v3301_v29  ;;  %v1618_v52 = vand.u32 2147483647, %v3322_v48  ;;  %1275 = vrot.lane.b32.xlu1 %v1058_v35, %s2322_s12  ;;  %v2063_v10 = vmul.f32 -1.442695, %v949_v5 }
 0x211   : > { %v2244_v37 = vpop.eup %2243  ;;  %v1069_v36 = vand.u32 2147483647, %v3142_v42  ;;  %vm3348_vm14 = vcmp.eq.f32.partialorder %v1483_v22, 8.507059e+37  ;;  %v1486_v47 = vor.u32 1.1754944e-38, %v1485_v31  ;;  %v1062_v24 = vsub.f32 1.0, %v1061_v18 }
 0x212   : > { %v3345_v59 = vpop.eup %2245  ;;  %v1475_v38 = vmul.f32 %v2244_v37, %v3301_v29  ;;  %v1071_v13 = vand.u32 2147483648, %v3142_v42  ;;  %vm1614_vm15 = vweird.f32 %v3322_v48  ;;  %v1620_v3 = vand.u32 2147483648, %v3322_v48 }
 0x213   : > { %v3353_v60 = vpop.eup %2247  ;;  %2255 = vpow2.f32 %v2063_v10  ;;  %vm1065_vm1 = vweird.f32 %v3142_v42  ;;  %v1196_v33 = vmul.f32 %v3267_v14, %v3160_v20  ;;  %vm1480_vm2 = vweird.f32 %v2244_v37 }
 0x214   : > { %v2250_v55 = vpop.eup %2249  ;;  %v1476_v61 = vsub.f32 1.0, %v1475_v38  ;;  %v1063_v26 = vmul.f32 %v3191_v19, %v1062_v24  ;;  %vm1066_vm3 = vweird.f32 %v3191_v19  ;;  %vm3365_vm4 = vcmp.eq.f32.partialorder %v1618_v52, 8.507059e+37  ;;  %vm1481_vm10 = vmor %vm1479_vm13, %vm1480_vm2 }
 0x215   : > { %v3362_v21 = vpop.eup %2251  ;;  %v1610_v25 = vmul.f32 %v2250_v55, %v3322_v48  ;;  %vm3369_vm5 = vcmp.eq.f32.partialorder %v1069_v36, 8.507059e+37  ;;  %v1197_v9 = vsub.f32 1.0, %v1196_v33  ;;  %vm1200_vm6 = vweird.f32 %v3160_v20  ;;  %vm1067_vm7 = vmor %vm1065_vm1, %vm1066_vm3 }
 0x216   : > { %v3374_v6 = vpop.eup %2253  ;;  %v1477_v0 = vmul.f32 %v2244_v37, %v1476_v61  ;;  %v1064_v62 = vadd.f32 %v3191_v19, %v1063_v26  ;;  %v1072_v57 = vor.u32 1.1754944e-38, %v1071_v13  ;;  %v1206_v63 = vand.u32 2147483648, %v3160_v20 }
 0x217   : > { %v1611_v50 = vsub.f32 1.0, %v1610_v25  ;;  %v1198_v43 = vmul.f32 %v3267_v14, %v1197_v9  ;;  %vm1201_vm8 = vweird.f32 %v3267_v14  ;;  %v1076_v7 = vmul.f32 %v3353_v60, %v3244_v58 }
 0x218   : > { %v1478_v49 = vadd.f32 %v2244_v37, %v1477_v0  ;;  %vm1615_vm9 = vweird.f32 %v2250_v55  ;;  %v1068_v15 = vsel %vm1067_vm7, %v3191_v19, %v1064_v62  ;;  %v1204_v22 = vand.u32 2147483647, %v3160_v20  ;;  %vm1202_vm11 = vmor %vm1200_vm6, %vm1201_vm8 }
 0x219   : > { %v2256_v31 = vpop.eup %2255  ;;  %v1612_v42 = vmul.f32 %v2250_v55, %v1611_v50  ;;  %v1073_v41 = vsel %vm3369_vm5, %v1072_v57, %v1068_v15  ;;  %v1199_v23 = vadd.f32 %v3267_v14, %v1198_v43  ;;  %v1077_v5 = vsub.f32 1.0, %v1076_v7  ;;  %vm1616_vm13 = vmor %vm1614_vm15, %vm1615_vm9 }
 0x21a   : > { %v1482_v35 = vsel %vm1481_vm10, %v2244_v37, %v1478_v49  ;;  %v3392_v18 = vadd.f32 1.0, %v2256_v31  ;;  %1277 = vrot.lane.b32.xlu2 %v1073_v41, %s2322_s12  ;;  %v1207_v19 = vor.u32 1.1754944e-38, %v1206_v63  ;;  %vm1081_vm12 = vweird.f32 %v3353_v60 }
 0x21b   : > { %v1487_v29 = vsel %vm3348_vm14, %v1486_v47, %v1482_v35  ;;  %v1613_v52 = vadd.f32 %v2250_v55, %v1612_v42  ;;  %v1203_v10 = vsel %vm1202_vm11, %v3267_v14, %v1199_v23  ;;  %v1078_v37 = vmul.f32 %v3353_v60, %v1077_v5 }
 0x21c   : > { %1757 = vst.msk [vmem:[%s2999_s24 + $0x28] sm:$0xff] %vm393_vm0, %v1487_v29  ;;  %v1621_v20 = vor.u32 1.1754944e-38, %v1620_v3  ;;  %2257 = vrcp.f32 %v3392_v18  ;;  %vm1205_vm1 = vcmp.eq.f32.partialorder %v1204_v22, 8.507059e+37  ;;  %vm1080_vm2 = vweird.f32 %v3244_v58 }
 0x21d   : > { %v1617_v36 = vsel %vm1616_vm13, %v2250_v55, %v1613_v52  ;;  %v1208_v38 = vsel %vm1205_vm1, %v1207_v19, %v1203_v10  ;;  %v1079_v32 = vadd.f32 %v3353_v60, %v1078_v37  ;;  %v1084_v14 = vand.u32 2147483647, %v3244_v58  ;;  %vm1082_vm14 = vmor %vm1080_vm2, %vm1081_vm12 }
 0x21e   : > { %2259 = vrcp.f32 %v3337_v12  ;;  %v1622_v47 = vsel %vm3365_vm4, %v1621_v20, %v1617_v36  ;;  %1295 = vrot.lane.b32.xlu1 %v1208_v38, %s2322_s12  ;;  %v1086_v48 = vand.u32 2147483648, %v3244_v58  ;;  %v1181_v13 = vmul.f32 %v3345_v59, %v3239_v16 }
 0x21f   : > { %1766 = vst.msk [vmem:[%s2999_s24 + $0x70] sm:$0xff] %vm393_vm0, %v1622_v47  ;;  %v1083_v24 = vsel %vm1082_vm14, %v3353_v60, %v1079_v32  ;;  %v1189_v33 = vand.u32 2147483647, %v3239_v16  ;;  %vm1085_vm15 = vcmp.eq.f32.partialorder %v1084_v14, 8.507059e+37  ;;  %v1191_v61 = vand.u32 2147483648, %v3239_v16 }
 0x220   : > { %v1087_v3 = vor.u32 1.1754944e-38, %v1086_v48  ;;  %v1182_v55 = vsub.f32 1.0, %v1181_v13  ;;  %v1091_v26 = vmul.f32 %v3374_v6, %v3320_v39  ;;  %v1633_v58 = vand.u32 2147483647, %v3392_v18 }
 0x221   : > { %v1635_v8 = vand.u32 2147483648, %v3392_v18  ;;  %vm1185_vm3 = vweird.f32 %v3239_v16  ;;  %vm1186_vm4 = vweird.f32 %v3345_v59  ;;  %vm3436_vm5 = vcmp.eq.f32.partialorder %v1189_v33, 8.507059e+37 }
 0x222   : > { %v2258_v25 = vpop.eup %2257  ;;  %v1088_v54 = vsel %vm1085_vm15, %v1087_v3, %v1083_v24  ;;  %v1183_v9 = vmul.f32 %v3345_v59, %v1182_v55  ;;  %v1092_v0 = vsub.f32 1.0, %v1091_v26  ;;  %vm1095_vm6 = vweird.f32 %v3320_v39  ;;  %vm1187_vm9 = vmor %vm1185_vm3, %vm1186_vm4 }
 0x223   : > { %v1625_v60 = vmul.f32 %v2258_v25, %v3392_v18  ;;  %1279 = vrot.lane.b32.xlu0 %v1088_v54, %s2322_s12  ;;  %vm1096_vm7 = vweird.f32 %v3374_v6  ;;  %v1211_v63 = vmul.f32 %v3362_v21, %v3273_v30  ;;  %v1192_v7 = vor.u32 1.1754944e-38, %v1191_v61  ;;  %v899_v54 = vpop.f32.mrf.mxu2 }
 0x224   : > { %v2260_v62 = vpop.eup %2259  ;;  %v1184_v43 = vadd.f32 %v3345_v59, %v1183_v9  ;;  %v1093_v49 = vmul.f32 %v3374_v6, %v1092_v0  ;;  %vm1630_vm8 = vweird.f32 %v2258_v25  ;;  %v1101_v15 = vand.u32 2147483648, %v3320_v39  ;;  %vm3464_vm12 = vmor %vm1095_vm6, %vm1096_vm7 }
 0x225   : > { %v1626_v50 = vsub.f32 1.0, %v1625_v60  ;;  %v1212_v22 = vsub.f32 1.0, %v1211_v63  ;;  %v1221_v31 = vand.u32 2147483648, %v3273_v30  ;;  %v1226_v5 = vmul.f32 %v2260_v62, %v3337_v12 }
 0x226   : > { %v1188_v41 = vsel %vm1187_vm9, %v3345_v59, %v1184_v43  ;;  %v1094_v23 = vadd.f32 %v3374_v6, %v1093_v49  ;;  %vm1216_vm10 = vweird.f32 %v3362_v21  ;;  %v1219_v16 = vand.u32 2147483647, %v3273_v30 }
 0x227   : > { %v1627_v42 = vmul.f32 %v2258_v25, %v1626_v50  ;;  %v1193_v35 = vsel %vm3436_vm5, %v1192_v7, %v1188_v41  ;;  %v1213_v19 = vmul.f32 %v3362_v21, %v1212_v22  ;;  %vm1629_vm11 = vweird.f32 %v3392_v18 }
 0x228   : > { %1293 = vrot.lane.b32.xlu2 %v1193_v35, %s2322_s12  ;;  %v1099_v52 = vand.u32 2147483647, %v3320_v39  ;;  %v1227_v10 = vsub.f32 1.0, %v1226_v5  ;;  %vm1631_vm13 = vmor %vm1629_vm11, %vm1630_vm8  ;;  %v1636_v37 = vor.u32 1.1754944e-38, %v1635_v8  ;;  %vm1215_vm1 = vweird.f32 %v3273_v30 }
 0x229   : > { %v1628_v29 = vadd.f32 %v2258_v25, %v1627_v42  ;;  %v1214_v20 = vadd.f32 %v3362_v21, %v1213_v19  ;;  %vm1634_vm2 = vcmp.eq.f32.partialorder %v1633_v58, 8.507059e+37  ;;  %v1098_v36 = vsel %vm3464_vm12, %v3374_v6, %v1094_v23  ;;  %vm1217_vm14 = vmor %vm1215_vm1, %vm1216_vm10 }
 0x22a   : > { %v1222_v38 = vor.u32 1.1754944e-38, %v1221_v31  ;;  %v1102_v39 = vor.u32 1.1754944e-38, %v1101_v15  ;;  %vm1220_vm15 = vcmp.eq.f32.partialorder %v1219_v16, 8.507059e+37  ;;  %vm1100_vm3 = vcmp.eq.f32.partialorder %v1099_v52, 8.507059e+37 }
 0x22b   : > { %v1632_v18 = vsel %vm1631_vm13, %v2258_v25, %v1628_v29  ;;  %v1218_v14 = vsel %vm1217_vm14, %v3362_v21, %v1214_v20  ;;  %v1228_v30 = vmul.f32 %v2260_v62, %v1227_v10  ;;  %vm1231_vm4 = vweird.f32 %v2260_v62 }
 0x22c   : > { %v1637_v32 = vsel %vm1634_vm2, %v1636_v37, %v1632_v18  ;;  %v1223_v47 = vsel %vm1220_vm15, %v1222_v38, %v1218_v14  ;;  %v1103_v48 = vsel %vm1100_vm3, %v1102_v39, %v1098_v36  ;;  %v1236_v24 = vand.u32 2147483648, %v3337_v12 }
 0x22d   : > { %1767 = vst.msk [vmem:[%s2999_s24 + $0x78] sm:$0xff] %vm393_vm0, %v1637_v32  ;;  %1297 = vrot.lane.b32.xlu0 %v1223_v47, %s2322_s12  ;;  %v1229_v6 = vadd.f32 %v2260_v62, %v1228_v30  ;;  %vm1230_vm5 = vweird.f32 %v3337_v12  ;;  %v1234_v21 = vand.u32 2147483647, %v3337_v12  ;;  %vm1655_vm8 = vcmask 257024  }
 0x22e   : > { %vm1232_vm6 = vmor %vm1230_vm5, %vm1231_vm4  ;;  %v1237_v3 = vor.u32 1.1754944e-38, %v1236_v24 }
 0x22f   : > { %v1233_v13 = vsel %vm1232_vm6, %v2260_v62, %v1229_v6  ;;  %vm1235_vm7 = vcmp.eq.f32.partialorder %v1234_v21, 8.507059e+37  ;;  %v3503_v62 = vadd.f32 %v899_v54, %v2914_v45 }
 0x230   : > { %1281 = vrot.lane.b32.xlu2 %v1103_v48, %s2322_s12  ;;  %v1238_v33 = vsel %vm1235_vm7, %v1237_v3, %v1233_v13 }
 0x231   : > { %v2047_v50 = vmul.f32 -1.442695, %v3503_v62 }
 0x234   : > { %v926_v12 = vpop.f32.mrf.mxu1  ;;  %v877_v60 = vpop.f32.mrf.mxu0 }
 0x235   : > { %v927_v25 = vadd.f32 %v926_v12, %v2916_v46  ;;  %v3506_v63 = vadd.f32 %v877_v60, %v2914_v45 }
 0x237   : > { %v2054_v58 = vmul.f32 -1.442695, %v927_v25  ;;  %v2038_v43 = vmul.f32 -1.442695, %v3506_v63 }
 0x238   : > { %1299 = vrot.lane.b32.xlu2 %v1238_v33, %s2322_s12 }
 0x239   : > { %2261 = vpow2.f32 %v2054_v58 }
 0x23c   : > { %v928_v8 = vpop.f32.mrf.mxu1  ;;  %v879_v7 = vpop.f32.mrf.mxu0 }
 0x23d   : > { %v3511_v22 = vadd.f32 %v879_v7, %v2914_v45 }
 0x23f   : > { %v2262_v9 = vpop.eup %2261  ;;  %v2039_v16 = vmul.f32 -1.442695, %v3511_v22 }
 0x240   : > { %v1389_v57 = vadd.f32 1.0, %v2262_v9 }
 0x241   : > { %v1272_v55 = vpop.permute.xlu2 %1271 }
 0x242   : > { %v1319_v61 = vmul.f32 %v1272_v55, %v2927_v40  ;;  %v929_v40 = vadd.f32 %v928_v8, %v2916_v46  ;;  %2263 = vrcp.f32 %v1389_v57  ;;  %v1500_v41 = vand.u32 2147483648, %v1389_v57 }
 0x243   : > { %v1498_v5 = vand.u32 2147483647, %v1389_v57  ;;  %vm1494_vm10 = vweird.f32 %v1389_v57 }
 0x244   : > { %v3495_v26 = vpack.c.bf16 %v1319_v61, %v1319_v61  ;;  %v2055_v0 = vmul.f32 -1.442695, %v929_v40  ;;  %v1501_v45 = vor.u32 1.1754944e-38, %v1500_v41 }
 0x245   : > { %vm1499_vm12 = vcmp.eq.f32.partialorder %v1498_v5, 8.507059e+37 }
 0x246   : > { %1656 = vst.msk [vmem:[%s3493_s10] sm:$0xf] %vm1655_vm8, %v3495_v26  ;;  %2265 = vpow2.f32 %v2055_v0 }
 0x247   : > { %2267 = vpow2.f32 %v2047_v50 }
 0x248   : > { %v2264_v49 = vpop.eup %2263  ;;  %2269 = vpow2.f32 %v2038_v43 }
 0x249   : > { %v1490_v15 = vmul.f32 %v2264_v49, %v1389_v57  ;;  %vm1495_vm9 = vweird.f32 %v2264_v49 }
 0x24a   : > { %vm1496_vm11 = vmor %vm1494_vm10, %vm1495_vm9 }
 0x24b   : > { %v1491_v42 = vsub.f32 1.0, %v1490_v15 }
 0x24c   : > { %v2266_v46 = vpop.eup %2265 }
 0x24d   : > { %v1390_v31 = vadd.f32 1.0, %v2266_v46  ;;  %v1492_v23 = vmul.f32 %v2264_v49, %v1491_v42  ;;  %v2268_v35 = vpop.eup %2267 }
 0x24e   : > { %v2270_v29 = vpop.eup %2269  ;;  %v3515_v10 = vadd.f32 1.0, %v2268_v35 }
 0x24f   : > { %2271 = vrcp.f32 %v1390_v31  ;;  %v1493_v52 = vadd.f32 %v2264_v49, %v1492_v23  ;;  %v1005_v36 = vadd.f32 1.0, %v2270_v29  ;;  %v1515_v47 = vand.u32 2147483648, %v1390_v31 }
 0x250   : > { %2273 = vpow2.f32 %v2039_v16  ;;  %v1513_v48 = vand.u32 2147483647, %v1390_v31  ;;  %vm1509_vm1 = vweird.f32 %v1390_v31  ;;  %vm1245_vm6 = vweird.f32 %v3515_v10 }
 0x251   : > { %v1497_v20 = vsel %vm1496_vm11, %v2264_v49, %v1493_v52  ;;  %2275 = vrcp.f32 %v3515_v10  ;;  %v1516_v13 = vor.u32 1.1754944e-38, %v1515_v47  ;;  %v1116_v9 = vand.u32 2147483648, %v1005_v36 }
 0x252   : > { %v1502_v38 = vsel %vm1499_vm12, %v1501_v45, %v1497_v20  ;;  %2277 = vrcp.f32 %v1005_v36  ;;  %vm1514_vm14 = vcmp.eq.f32.partialorder %v1513_v48, 8.507059e+37  ;;  %v1114_v50 = vand.u32 2147483647, %v1005_v36 }
 0x253   : > { %1758 = vst.msk [vmem:[%s2999_s24 + $0x30] sm:$0xff] %vm393_vm0, %v1502_v38  ;;  %vm1110_vm15 = vweird.f32 %v1005_v36  ;;  %v1117_v15 = vor.u32 1.1754944e-38, %v1116_v9  ;;  %v1251_v35 = vand.u32 2147483648, %v3515_v10  ;;  %v1249_v29 = vand.u32 2147483647, %v3515_v10 }
 0x254   : > { %vm1115_vm4 = vcmp.eq.f32.partialorder %v1114_v50, 8.507059e+37 }
 0x255   : > { %v2272_v18 = vpop.eup %2271 }
 0x256   : > { %v1505_v32 = vmul.f32 %v2272_v18, %v1390_v31  ;;  %vm1510_vm13 = vweird.f32 %v2272_v18  ;;  %v2274_v24 = vpop.eup %2273 }
 0x257   : > { %vm1511_vm2 = vmor %vm1509_vm1, %vm1510_vm13  ;;  %v2276_v3 = vpop.eup %2275  ;;  %v1006_v33 = vadd.f32 1.0, %v2274_v24  ;;  %vm1250_vm13 = vcmp.eq.f32.partialorder %v1249_v29, 8.507059e+37 }
 0x258   : > { %v1506_v39 = vsub.f32 1.0, %v1505_v32  ;;  %v2278_v55 = vpop.eup %2277  ;;  %v1241_v12 = vmul.f32 %v2276_v3, %v3515_v10  ;;  %vm1246_vm5 = vweird.f32 %v2276_v3 }
 0x259   : > { %2279 = vrcp.f32 %v1006_v33  ;;  %v1106_v8 = vmul.f32 %v2278_v55, %v1005_v36  ;;  %v1129_v16 = vand.u32 2147483647, %v1006_v33  ;;  %vm1247_vm9 = vmor %vm1245_vm6, %vm1246_vm5  ;;  %vm1125_vm10 = vweird.f32 %v1006_v33 }
 0x25a   : > { %v1507_v30 = vmul.f32 %v2272_v18, %v1506_v39  ;;  %v1242_v60 = vsub.f32 1.0, %v1241_v12 }
 0x25b   : > { %v1107_v54 = vsub.f32 1.0, %v1106_v8  ;;  %vm1130_vm12 = vcmp.eq.f32.partialorder %v1129_v16, 8.507059e+37 }
 0x25c   : > { %v1508_v21 = vadd.f32 %v2272_v18, %v1507_v30 }
 0x25d   : > { %v1108_v57 = vmul.f32 %v2278_v55, %v1107_v54 }
 0x25e   : > { %v1288_v19 = vpop.permute.xlu2 %1287 }
 0x25f   : > { %v1327_v59 = vmul.f32 %v1288_v19, %v2921_v51  ;;  %v2280_v43 = vpop.eup %2279  ;;  %v1109_v49 = vadd.f32 %v2278_v55, %v1108_v57 }
 0x260   : > { %v1121_v42 = vmul.f32 %v2280_v43, %v1006_v33  ;;  %vm1126_vm7 = vweird.f32 %v2280_v43 }
 0x261   : > { %v3517_v37 = vpack.c.bf16 %v1327_v59, %v1327_v59  ;;  %vm1127_vm11 = vmor %vm1125_vm10, %vm1126_vm7 }
 0x262   : > { %v1122_v23 = vsub.f32 1.0, %v1121_v42 }
 0x263   : > { %1664 = vst.msk [vmem:[%s3493_s10 + $0x20] sm:$0xf] %vm1655_vm8, %v3517_v37 }
 0x264   : > { %v1290_v51 = vpop.permute.xlu1 %1289  ;;  %v1123_v19 = vmul.f32 %v2280_v43, %v1122_v23 }
 0x265   : > { %v1328_v14 = vmul.f32 %v1290_v51, %v2935_v27  ;;  %v1512_v27 = vsel %vm1511_vm2, %v2272_v18, %v1508_v21  ;;  %v1252_v18 = vor.u32 1.1754944e-38, %v1251_v35 }
 0x266   : > { %v1517_v61 = vsel %vm1514_vm14, %v1516_v13, %v1512_v27  ;;  %v1124_v59 = vadd.f32 %v2280_v43, %v1123_v19 }
 0x267   : > { %v3526_v6 = vpack.c.bf16 %v1328_v14, %v1328_v14  ;;  %1759 = vst.msk [vmem:[%s2999_s24 + $0x38] sm:$0xff] %vm393_vm0, %v1517_v61  ;;  %vm1111_vm0 = vweird.f32 %v2278_v55 }
 0x268   : > { %vm1112_vm3 = vmor %vm1110_vm15, %vm1111_vm0  ;;  %v1128_v38 = vsel %vm1127_vm11, %v2280_v43, %v1124_v59 }
 0x269   : > { %1665 = vst.msk [vmem:[%s3493_s10 + $0x24] sm:$0xf] %vm1655_vm8, %v3526_v6  ;;  %v1113_v31 = vsel %vm1112_vm3, %v2278_v55, %v1109_v49 }
 0x26a   : > { %v1118_v41 = vsel %vm1115_vm4, %v1117_v15, %v1113_v31 }
 0x26b   : > { %1283 = vrot.lane.b32.xlu1 %v1118_v41, %s2322_s12 }
 0x26f   : > { %v1274_v25 = vpop.permute.xlu0 %1273 }
 0x270   : > { %v1320_v58 = vmul.f32 %v1274_v25, %v2945_v56  ;;  %v1243_v56 = vmul.f32 %v2276_v3, %v1242_v60 }
 0x272   : > { %v1640_v40 = vpack.c.bf16 %v1320_v58, %v1320_v58  ;;  %v1244_v5 = vadd.f32 %v2276_v3, %v1243_v56 }
 0x274   : > { %v1278_v0 = vpop.permute.xlu2 %1277  ;;  %1657 = vst.msk [vmem:[%s3493_s10 + $0x4] sm:$0xf] %vm1655_vm8, %v1640_v40  ;;  %1690 = vrot.lane.b32.xlu2 %v1640_v40, %s2323_s13  ;;  %v1248_v52 = vsel %vm1247_vm9, %v2276_v3, %v1244_v5 }
 0x275   : > { %v1322_v7 = vmul.f32 %v1278_v0, %v3065_v53  ;;  %v1131_v53 = vand.u32 2147483648, %v1006_v33  ;;  %v1253_v51 = vsel %vm1250_vm13, %v1252_v18, %v1248_v52 }
 0x276   : > { %1301 = vrot.lane.b32.xlu1 %v1253_v51, %s2322_s12 }
 0x277   : > { %v3539_v46 = vpack.c.bf16 %v1322_v7, %v1322_v7  ;;  %v1132_v20 = vor.u32 1.1754944e-38, %v1131_v53 }
 0x279   : > { %1659 = vst.msk [vmem:[%s3493_s10 + $0xc] sm:$0xf] %vm1655_vm8, %v3539_v46  ;;  %v1133_v32 = vsel %vm1130_vm12, %v1132_v20, %v1128_v38 }
 0x27a   : > { %1285 = vrot.lane.b32.xlu0 %v1133_v32, %s2322_s12 }
 0x27e   : > { %v1292_v45 = vpop.permute.xlu0 %1291  ;;  %1704 = vrot.lane.b32.xlu1 %v3517_v37, %s2323_s13 }
 0x27f   : > { %v1329_v36 = vmul.f32 %v1292_v45, %v2955_v44 }
 0x281   : > { %v1649_v39 = vpack.c.bf16 %v1329_v36, %v1329_v36 }
 0x282   : > { %v1294_v10 = vpop.permute.xlu2 %1293  ;;  %v1276_v14 = vpop.permute.xlu1 %1275  ;;  %1688 = vrot.lane.b32.xlu0 %v3495_v26, %s2323_s13 }
 0x283   : > { %v1330_v47 = vmul.f32 %v1294_v10, %v3006_v2  ;;  %1666 = vst.msk [vmem:[%s3493_s10 + $0x28] sm:$0xf] %vm1655_vm8, %v1649_v39  ;;  %v1321_v44 = vmul.f32 %v1276_v14, %v2962_v28  ;;  %1708 = vrot.lane.b32.xlu2 %v1649_v39, %s2323_s13 }
 0x285   : > { %v1650_v30 = vpack.c.bf16 %v1330_v47, %v1330_v47  ;;  %v1641_v48 = vpack.c.bf16 %v1321_v44, %v1321_v44 }
 0x287   : > { %1667 = vst.msk [vmem:[%s3493_s10 + $0x2c] sm:$0xf] %vm1655_vm8, %v1650_v30  ;;  %1692 = vrot.lane.b32.xlu1 %v1641_v48, %s2323_s13 }
 0x288   : > { %1658 = vst.msk [vmem:[%s3493_s10 + $0x8] sm:$0xf] %vm1655_vm8, %v1641_v48 }
 0x28a   : > { %v1282_v2 = vpop.permute.xlu2 %1281  ;;  %1706 = vrot.lane.b32.xlu0 %v3526_v6, %s2323_s13 }
 0x28b   : > { %v1324_v24 = vmul.f32 %v1282_v2, %v3257_v17 }
 0x28d   : > { %v1644_v28 = vpack.c.bf16 %v1324_v24, %v1324_v24 }
 0x28f   : > { %1661 = vst.msk [vmem:[%s3493_s10 + $0x14] sm:$0xf] %vm1655_vm8, %v1644_v28  ;;  %1710 = vrot.lane.b32.xlu1 %v1650_v30, %s2323_s13 }
 0x290   : > { %v1296_v21 = vpop.permute.xlu1 %1295 }
 0x291   : > { %v1331_v13 = vmul.f32 %v1296_v21, %v3070_v4 }
 0x292   : > { %v1300_v26 = vpop.permute.xlu2 %1299  ;;  %1694 = vrot.lane.b32.xlu0 %v3539_v46, %s2323_s13 }
 0x293   : > { %v1651_v3 = vpack.c.bf16 %v1331_v13, %v1331_v13  ;;  %v1333_v37 = vmul.f32 %v1300_v26, %v3265_v11 }
 0x295   : > { %1668 = vst.msk [vmem:[%s3493_s10 + $0x30] sm:$0xf] %vm1655_vm8, %v1651_v3  ;;  %v1280_v17 = vpop.permute.xlu0 %1279  ;;  %v1653_v33 = vpack.c.bf16 %v1333_v37, %v1333_v37 }
 0x296   : > { %v1323_v27 = vmul.f32 %v1280_v17, %v3137_v34 }
 0x297   : > { %1670 = vst.msk [vmem:[%s3493_s10 + $0x38] sm:$0xf] %vm1655_vm8, %v1653_v33  ;;  %1698 = vrot.lane.b32.xlu1 %v1644_v28, %s2323_s13 }
 0x298   : > { %v1643_v4 = vpack.c.bf16 %v1323_v27, %v1323_v27 }
 0x29a   : > { %1660 = vst.msk [vmem:[%s3493_s10 + $0x10] sm:$0xf] %vm1655_vm8, %v1643_v4  ;;  %1696 = vrot.lane.b32.xlu2 %v1643_v4, %s2323_s13  ;;  %1712 = vrot.lane.b32.xlu0 %v1651_v3, %s2323_s13 }
 0x29f   : > { %v1298_v11 = vpop.permute.xlu0 %1297  ;;  %1716 = vrot.lane.b32.xlu1 %v1653_v33, %s2323_s13 }
 0x2a0   : > { %v1332_v6 = vmul.f32 %v1298_v11, %v3189_v1 }
 0x2a2   : > { %v1652_v55 = vpack.c.bf16 %v1332_v6, %v1332_v6 }
 0x2a4   : > { %1669 = vst.msk [vmem:[%s3493_s10 + $0x34] sm:$0xf] %vm1655_vm8, %v1652_v55 }
 0x2ce   : > { %v1691_v34 = vpop.permute.xlu2 %1690 }
 0x2cf   : > { %1737 = vst.msk [vmem:[%s3594_s16 + $0x4] sm:$0xf] %vm1655_vm8, %v1691_v34 }
 0x2dd   : > { %v1709_v1 = vpop.permute.xlu2 %1708  ;;  %v1284_v61 = vpop.permute.xlu1 %1283 }
 0x2de   : > { %1746 = vst.msk [vmem:[%s3594_s16 + $0x28] sm:$0xf] %vm1655_vm8, %v1709_v1  ;;  %v1325_v12 = vmul.f32 %v1284_v61, %v3506_v63 }
 0x2e0   : > { %v1645_v25 = vpack.c.bf16 %v1325_v12, %v1325_v12 }
 0x2e2   : > { %1662 = vst.msk [vmem:[%s3493_s10 + $0x18] sm:$0xf] %vm1655_vm8, %v1645_v25  ;;  %1700 = vrot.lane.b32.xlu0 %v1645_v25, %s2323_s13 }
 0x2e8   : > { %v1302_v54 = vpop.permute.xlu1 %1301 }
 0x2e9   : > { %v1334_v60 = vmul.f32 %v1302_v54, %v3503_v62 }
 0x2eb   : > { %v1654_v63 = vpack.c.bf16 %v1334_v60, %v1334_v60 }
 0x2ec   : > { %v1286_v8 = vpop.permute.xlu0 %1285 }
 0x2ed   : > { %v1326_v40 = vmul.f32 %v1286_v8, %v3511_v22  ;;  %1671 = vst.msk [vmem:[%s3493_s10 + $0x3c] sm:$0xf] %vm1655_vm8, %v1654_v63  ;;  %1718 = vrot.lane.b32.xlu0 %v1654_v63, %s2323_s13 }
 0x2ef   : > { %v1646_v9 = vpack.c.bf16 %v1326_v40, %v1326_v40 }
 0x2f0   : > { %v1705_v22 = vpop.permute.xlu1 %1704 }
 0x2f1   : > { %1663 = vst.msk [vmem:[%s3493_s10 + $0x1c] sm:$0xf] %vm1655_vm8, %v1646_v9  ;;  %1702 = vrot.lane.b32.xlu2 %v1646_v9, %s2323_s13 }
 0x2f2   : > { %1744 = vst.msk [vmem:[%s3594_s16 + $0x20] sm:$0xf] %vm1655_vm8, %v1705_v22 }
 0x2f4   : > { %v1697_v58 = vpop.permute.xlu2 %1696  ;;  %v1689_v0 = vpop.permute.xlu0 %1688 }
 0x2f5   : > { %1740 = vst.msk [vmem:[%s3594_s16 + $0x10] sm:$0xf] %vm1655_vm8, %v1697_v58 }
 0x2f6   : > { %1736 = vst.msk [vmem:[%s3594_s16] sm:$0xf] %vm1655_vm8, %v1689_v0 }
 0x2f9   : > { %1714 = vrot.lane.b32.xlu2 %v1652_v55, %s2323_s13  ;;  %v1693_v57 = vpop.permute.xlu1 %1692 }
 0x2fa   : > { %1738 = vst.msk [vmem:[%s3594_s16 + $0x8] sm:$0xf] %vm1655_vm8, %v1693_v57 }
 0x2fc   : > { %v1707_v62 = vpop.permute.xlu0 %1706 }
 0x2fd   : > { %1745 = vst.msk [vmem:[%s3594_s16 + $0x24] sm:$0xf] %vm1655_vm8, %v1707_v62 }
 0x301   : > { %v1711_v43 = vpop.permute.xlu1 %1710 }
 0x302   : > { %1747 = vst.msk [vmem:[%s3594_s16 + $0x2c] sm:$0xf] %vm1655_vm8, %v1711_v43 }
 0x304   : > { %v1695_v50 = vpop.permute.xlu0 %1694 }
 0x305   : > { %1739 = vst.msk [vmem:[%s3594_s16 + $0xc] sm:$0xf] %vm1655_vm8, %v1695_v50 }
 0x309   : > { %v1699_v49 = vpop.permute.xlu1 %1698 }
 0x30a   : > { %1741 = vst.msk [vmem:[%s3594_s16 + $0x14] sm:$0xf] %vm1655_vm8, %v1699_v49 }
 0x30c   : > { %v1713_v7 = vpop.permute.xlu0 %1712 }
 0x30d   : > { %1748 = vst.msk [vmem:[%s3594_s16 + $0x30] sm:$0xf] %vm1655_vm8, %v1713_v7 }
 0x311   : > { %v1717_v56 = vpop.permute.xlu1 %1716 }
 0x312   : > { %1750 = vst.msk [vmem:[%s3594_s16 + $0x38] sm:$0xf] %vm1655_vm8, %v1717_v56 }
 0x34b   : > { %v1703_v46 = vpop.permute.xlu2 %1702 }
 0x34c   : > { %1743 = vst.msk [vmem:[%s3594_s16 + $0x1c] sm:$0xf] %vm1655_vm8, %v1703_v46 }
 0x353   : > { %v1715_v15 = vpop.permute.xlu2 %1714 }
 0x354   : > { %1749 = vst.msk [vmem:[%s3594_s16 + $0x34] sm:$0xf] %vm1655_vm8, %v1715_v15  ;;  %v1701_v31 = vpop.permute.xlu0 %1700 }
 0x355   : > { %1742 = vst.msk [vmem:[%s3594_s16 + $0x18] sm:$0xf] %vm1655_vm8, %v1701_v31 }
 0x35f   : > { %v1719_v42 = vpop.permute.xlu0 %1718 }
 0x360   : > { %1751 = vst.msk [vmem:[%s3594_s16 + $0x3c] sm:$0xf] %vm1655_vm8, %v1719_v42 }
 0x361 PF: > { %s18_s28 = sadd.s32 1, %s2319_s28   ;;  %s3716_s24 = smov %s2311_s26 }
 0x362   : > { %p15_p7 = scmp.ge.s32.totalorder %s18_s28, 6   ;;  %s3717_s25 = smov %s2315_s27 }
 0x363   : > { %s3718_s26 = smov %s3721_s29  ;;  %s3719_s27 = smov %s3725_s30 }
 0x364   :  { %17 = sbr.rel (!%p15_p7) target bundleno = 3 (0x3), region = 94 }

// kernel: pairwise_attention_block.17
= control target key start
LH: loop header
LB: loop body
LE: loop exit
PB: predicated region body
PF: predicated region fallthrough
CT: control target
= control target key end

     0   :  { %s4904_s27 = smov 0   ;;  %s4906_s28 = smov 0   ;;  %s7276_s0 = inlined_call_operand.vmem [shape: f32[2,16,16,32], index: 0, kind: input, shape index: {}]   ;;  %s7277_s1 = inlined_call_operand.vmem [shape: f32[2,4,16,16], index: 1, kind: input, shape index: {}]   ;;  %s7278_s2 = inlined_call_operand.vmem [shape: f32[1,32], index: 2, kind: input, shape index: {}]   ;;  %s7279_s3 = inlined_call_operand.vmem [shape: f32[1,32], index: 3, kind: input, shape index: {}]   ;;  %s7280_s4 = inlined_call_operand.vmem [shape: bf16[32,128], index: 4, kind: input, shape index: {}]   ;;  %s7281_s5 = inlined_call_operand.vmem [shape: f32[1,32], index: 5, kind: input, shape index: {}]   ;;  %s7282_s6 = inlined_call_operand.vmem [shape: bf16[32,32], index: 6, kind: input, shape index: {}]   ;;  %s7283_s7 = inlined_call_operand.vmem [shape: f32[1,32], index: 7, kind: input, shape index: {}]   ;;  %s7284_s8 = inlined_call_operand.vmem [shape: f32[2,16,16,32], index: 8, kind: output, shape index: {}]  }
   0x1   :  { %s4908_s29 = smov 0   ;;  %s4910_s30 = smov 0  }
   0x2   :  { %s4912_s9 = smov 0  }
   0x3 LB: > { %s27_s10 = sadd.s32 1, %s4833_s29  ;;  %s30_s11 = sadd.s32 1, %s4837_s30  ;;  %s4841_s9 = sphi %s4912_s9, %s18_s9   ;;  %s4837_s30 = sphi %s4910_s30, %s7397_s30   ;;  %s4833_s29 = sphi %s4908_s29, %s7396_s29   ;;  %s4829_s28 = sphi %s4906_s28, %s7395_s28   ;;  %s4825_s27 = sphi %s4904_s27, %s7394_s27  }
   0x4   : > { %p28_p0 = scmp.ge.s32.totalorder %s27_s10, 2  ;;  %p4237_p1 = scmp.ge.s32.totalorder %s4841_s9, 1 }
   0x5   : > { %p294_p2 = scmp.lt.s32.totalorder %s4841_s9, 5 }
   0x6   : > { %s7399_s10 = smov (%p28_p0, %s27_s10), 0  ;;  %s7401_s11 = smov (!%p28_p0, %s30_s11), %s4837_s30 }
   0x7   : > { %p295_p3 = pnand %p4237_p1, %p294_p2  ;;  %p32_p4 = scmp.ge.s32.totalorder %s7401_s11, 2 }
   0x9   : > { %s7403_s11 = smov (%p32_p4, %s7401_s11), 0  ;;  %298 = sbr.rel (%p295_p3) target bundleno = 3095 (0xc17), region = 52 }
   0xe   : > { %s4238_s12 = sshll.u32 %s4825_s27, 3  ;;  %p344_p5 = scmp.lt.s32.totalorder %s4829_s28, 1  ;;  %vm397_vm0 = vcmask 261120   ;;  %v4843_v32 = vmov 32.0  }
   0xf   : > { %p346_p6 = scmp.lt.s32.totalorder %s4238_s12, 15  ;;  %4433 = vrcp.f32 %v4843_v32  ;;  %s4847_s17 = smov 88  }
  0x10   : > { %s7405_s28 = smov (!%p344_p5, %s4829_s28), 1  ;;  %s4849_s23 = smov 112  }
  0x11   : > { %s7407_s12 = smov (!%p346_p6, %s4238_s12), 15  ;;  %s4240_s13 = sshll.u32 %s7405_s28, 5 }
  0x12   : > { %s4239_s14 = sshll.u32 %s7407_s12, 1  ;;  %s4844_s12 = smov 96  }
  0x13   : > { %s4937_s15 = sadd.s32 %s4240_s13, %s4239_s14  ;;  %s4845_s13 = smov 64  }
  0x14   : > { %s4241_s16 = sshll.u32 %s4937_s15, 3  ;;  %s4846_s14 = smov 120  }
  0x15   : > { %s4945_s19 = scalar_lea.vmem %s7276_s0, %s4241_s16  ;;  %v4434_v33 = vpop.eup %4433  ;;  %s4362_s18 = sshll.u32 %s7405_s28, 6 }
  0x16   : > { %v4948_v0 = vld [vmem:[%s4945_s19 + $0x40] sm:$0xff]  ;;  %v4957_v6 = vld [vmem:[%s4945_s19 + $0x48] sm:$0xff]  ;;  %v4972_v12 = vld [vmem:[%s4945_s19 + $0x30] sm:$0xff]  ;;  %v447_v34 = vmul.f32 32.0, %v4434_v33  ;;  %vm451_vm1 = vweird.f32 %v4434_v33  ;;  %s5716_s22 = scalar_lea.vmem %s7277_s1, %s4362_s18  ;;  %s4848_s28 = smov 56  }
  0x17   : > { %v375_v1 = vld [vmem:[%s4945_s19 + $0x20] sm:$0xff]  ;;  %v422_v3 = vsel %vm397_vm0, %v4948_v0, 0.0  ;;  %v4960_v7 = vld [vmem:[%s4945_s19 + $0x28] sm:$0xff]  ;;  %v425_v9 = vsel %vm397_vm0, %v4957_v6, 0.0  ;;  %v4975_v13 = vld [vmem:[%s4945_s19 + $0x18] sm:$0xff]  ;;  %v416_v15 = vsel %vm397_vm0, %v4972_v12, 0.0 }
  0x18   : > { %v371_v2 = vld [vmem:[%s4945_s19] sm:$0xff]  ;;  %v410_v4 = vsel %vm397_vm0, %v375_v1, 0.0  ;;  %423 = vadd.xlane.f32.xlu2 %v422_v3  ;;  %v4963_v8 = vld [vmem:[%s4945_s19 + $0x8] sm:$0xff]  ;;  %v413_v10 = vsel %vm397_vm0, %v4960_v7, 0.0  ;;  %v4978_v14 = vld [vmem:[%s4945_s19 + $0x10] sm:$0xff]  ;;  %v407_v16 = vsel %vm397_vm0, %v4975_v13, 0.0 }
  0x19   : > { %v398_v5 = vsel %vm397_vm0, %v371_v2, 0.0  ;;  %411 = vadd.xlane.f32.xlu1 %v410_v4  ;;  %v401_v11 = vsel %vm397_vm0, %v4963_v8, 0.0  ;;  %v404_v17 = vsel %vm397_vm0, %v4978_v14, 0.0  ;;  %v4987_v18 = vld [vmem:[%s4945_s19 + $0x58] sm:$0xff]  ;;  %v4990_v19 = vld [vmem:[%s4945_s19 + $0x50] sm:$0xff]  ;;  %v5005_v25 = vld [vmem:[%s4945_s19 + $0x68] sm:$0xff] }
  0x1a   : > { %399 = vadd.xlane.f32.xlu0 %v398_v5  ;;  %v4993_v20 = vld [vmem:[%s4945_s19 + $0x38] sm:$0xff]  ;;  %v431_v21 = vsel %vm397_vm0, %v4987_v18, 0.0  ;;  %v428_v22 = vsel %vm397_vm0, %v4990_v19, 0.0  ;;  %v5002_v24 = vld [vmem:[%s4945_s19 + $0x70] sm:$0xff]  ;;  %v5008_v26 = vld [vmem:[%s4945_s19 + $0x60] sm:$0xff]  ;;  %v437_v28 = vsel %vm397_vm0, %v5005_v25, 0.0 }
  0x1b   : > { %v419_v23 = vsel %vm397_vm0, %v4993_v20, 0.0  ;;  %v440_v27 = vsel %vm397_vm0, %v5002_v24, 0.0  ;;  %v434_v29 = vsel %vm397_vm0, %v5008_v26, 0.0  ;;  %v5017_v30 = vld [vmem:[%s4945_s19 + $0x78] sm:$0xff]  ;;  %v448_v35 = vsub.f32 1.0, %v447_v34  ;;  %s4850_s24 = smov 80  }
  0x1c   : > { %v443_v31 = vsel %vm397_vm0, %v5017_v30, 0.0  ;;  %s4851_s25 = smov 48   ;;  %s4852_s26 = smov 72  }
  0x1d   : > { %v449_v36 = vmul.f32 %v4434_v33, %v448_v35  ;;  %s4853_s27 = smov 104   ;;  %s4855_s18 = smov 8  }
  0x1e   : > { %s4856_s20 = smov 16   ;;  %s4858_s21 = smov 24  }
  0x1f   : > { %v450_v37 = vadd.f32 %v4434_v33, %v449_v36 }
  0x20   : > { %426 = vadd.xlane.f32.xlu2 %v425_v9 }
  0x21   : > { %414 = vadd.xlane.f32.xlu1 %v413_v10  ;;  %v5021_v38 = vsel %vm451_vm1, %v4434_v33, %v450_v37 }
  0x22   : > { %402 = vadd.xlane.f32.xlu0 %v401_v11 }
  0x28   : > { %417 = vadd.xlane.f32.xlu2 %v416_v15 }
  0x29   : > { %408 = vadd.xlane.f32.xlu1 %v407_v16 }
  0x2a   : > { %405 = vadd.xlane.f32.xlu0 %v404_v17 }
  0x30   : > { %432 = vadd.xlane.f32.xlu2 %v431_v21 }
  0x31   : > { %429 = vadd.xlane.f32.xlu1 %v428_v22 }
  0x32   : > { %420 = vadd.xlane.f32.xlu0 %v419_v23 }
  0x38   : > { %441 = vadd.xlane.f32.xlu2 %v440_v27 }
  0x39   : > { %438 = vadd.xlane.f32.xlu1 %v437_v28 }
  0x3a   : > { %435 = vadd.xlane.f32.xlu0 %v434_v29 }
  0x42   : > { %444 = vadd.xlane.f32.xlu0 %v443_v31 }
  0x8b   : > { %v424_v39 = vpop.xlane.xlu2 %423 }
  0x8c   : > { %v412_v40 = vpop.xlane.xlu1 %411  ;;  %v461_v58 = vmul.f32 %v5021_v38, %v424_v39 }
  0x8d   : > { %v457_v41 = vmul.f32 %v5021_v38, %v412_v40  ;;  %v400_v42 = vpop.xlane.xlu0 %399 }
  0x8e   : > { %v453_v43 = vmul.f32 %v5021_v38, %v400_v42 }
  0x8f   : > { %v5025_v44 = vsub.f32 %v375_v1, %v457_v41 }
  0x90   : > { %v5027_v45 = vsub.f32 %v371_v2, %v453_v43  ;;  %v5057_v2 = vsub.f32 %v4948_v0, %v461_v58 }
  0x91   : > { %v489_v46 = vmul.f32 %v5025_v44, %v5025_v44 }
  0x92   : > { %v485_v47 = vmul.f32 %v5027_v45, %v5027_v45  ;;  %v493_v11 = vmul.f32 %v5057_v2, %v5057_v2 }
  0x93   : > { %v513_v48 = vsel %vm397_vm0, %v489_v46, 0.0  ;;  %v427_v49 = vpop.xlane.xlu2 %426 }
  0x94   : > { %v415_v50 = vpop.xlane.xlu1 %414  ;;  %514 = vadd.xlane.f32.xlu0 %v513_v48  ;;  %v501_v51 = vsel %vm397_vm0, %v485_v47, 0.0  ;;  %v462_v52 = vmul.f32 %v5021_v38, %v427_v49 }
  0x95   : > { %v458_v53 = vmul.f32 %v5021_v38, %v415_v50  ;;  %502 = vadd.xlane.f32.xlu1 %v501_v51  ;;  %v403_v54 = vpop.xlane.xlu0 %402 }
  0x96   : > { %v454_v55 = vmul.f32 %v5021_v38, %v403_v54  ;;  %v5039_v56 = vsub.f32 %v4957_v6, %v462_v52 }
  0x97   : > { %v5042_v57 = vsub.f32 %v4960_v7, %v458_v53 }
  0x98   : > { %v5046_v59 = vsub.f32 %v4963_v8, %v454_v55  ;;  %v494_v60 = vmul.f32 %v5039_v56, %v5039_v56 }
  0x99   : > { %v490_v61 = vmul.f32 %v5042_v57, %v5042_v57 }
  0x9a   : > { %v486_v62 = vmul.f32 %v5046_v59, %v5046_v59  ;;  %v528_v63 = vsel %vm397_vm0, %v494_v60, 0.0 }
  0x9b   : > { %v516_v1 = vsel %vm397_vm0, %v490_v61, 0.0  ;;  %v418_v3 = vpop.xlane.xlu2 %417 }
  0x9c   : > { %529 = vadd.xlane.f32.xlu0 %v528_v63  ;;  %v504_v4 = vsel %vm397_vm0, %v486_v62, 0.0  ;;  %v409_v5 = vpop.xlane.xlu1 %408  ;;  %v459_v6 = vmul.f32 %v5021_v38, %v418_v3 }
  0x9d   : > { %517 = vadd.xlane.f32.xlu1 %v516_v1  ;;  %505 = vadd.xlane.f32.xlu2 %v504_v4  ;;  %v406_v7 = vpop.xlane.xlu0 %405  ;;  %v456_v9 = vmul.f32 %v5021_v38, %v409_v5 }
  0x9e   : > { %v455_v8 = vmul.f32 %v5021_v38, %v406_v7  ;;  %v5064_v10 = vsub.f32 %v4972_v12, %v459_v6  ;;  %v525_v12 = vsel %vm397_vm0, %v493_v11, 0.0 }
  0x9f   : > { %v5074_v16 = vsub.f32 %v4975_v13, %v456_v9 }
  0xa0   : > { %v5067_v0 = vsub.f32 %v4978_v14, %v455_v8  ;;  %v491_v15 = vmul.f32 %v5064_v10, %v5064_v10 }
  0xa1   : > { %v488_v31 = vmul.f32 %v5074_v16, %v5074_v16 }
  0xa2   : > { %v487_v17 = vmul.f32 %v5067_v0, %v5067_v0  ;;  %v519_v21 = vsel %vm397_vm0, %v491_v15, 0.0 }
  0xa3   : > { %v433_v22 = vpop.xlane.xlu2 %432  ;;  %v510_v36 = vsel %vm397_vm0, %v488_v31, 0.0 }
  0xa4   : > { %520 = vadd.xlane.f32.xlu0 %v519_v21  ;;  %v507_v14 = vsel %vm397_vm0, %v487_v17, 0.0  ;;  %v430_v23 = vpop.xlane.xlu1 %429  ;;  %v464_v27 = vmul.f32 %v5021_v38, %v433_v22  ;;  %v4363_v17 = vld [vmem:[%s7280_s4] sm:$0xff] }
  0xa5   : > { %526 = vadd.xlane.f32.xlu2 %v525_v12  ;;  %508 = vadd.xlane.f32.xlu1 %v507_v14  ;;  %v421_v28 = vpop.xlane.xlu0 %420  ;;  %v463_v29 = vmul.f32 %v5021_v38, %v430_v23 }
  0xa6   : > { %v460_v13 = vmul.f32 %v5021_v38, %v421_v28  ;;  %v5087_v32 = vsub.f32 %v4987_v18, %v464_v27 }
  0xa7   : > { %v5095_v35 = vsub.f32 %v4990_v19, %v463_v29 }
  0xa8   : > { %v5090_v33 = vsub.f32 %v4993_v20, %v460_v13  ;;  %v496_v34 = vmul.f32 %v5087_v32, %v5087_v32 }
  0xa9   : > { %v495_v46 = vmul.f32 %v5095_v35, %v5095_v35 }
  0xaa   : > { %v492_v37 = vmul.f32 %v5090_v33, %v5090_v33  ;;  %v534_v39 = vsel %vm397_vm0, %v496_v34, 0.0 }
  0xab   : > { %v442_v40 = vpop.xlane.xlu2 %441  ;;  %v531_v51 = vsel %vm397_vm0, %v495_v46, 0.0 }
  0xac   : > { %535 = vadd.xlane.f32.xlu0 %v534_v39  ;;  %v522_v18 = vsel %vm397_vm0, %v492_v37, 0.0  ;;  %v439_v41 = vpop.xlane.xlu1 %438  ;;  %v467_v20 = vmul.f32 %v5021_v38, %v442_v40 }
  0xad   : > { %511 = vadd.xlane.f32.xlu2 %v510_v36  ;;  %523 = vadd.xlane.f32.xlu1 %v522_v18  ;;  %v436_v42 = vpop.xlane.xlu0 %435  ;;  %v466_v43 = vmul.f32 %v5021_v38, %v439_v41 }
  0xae   : > { %v465_v19 = vmul.f32 %v5021_v38, %v436_v42  ;;  %v5108_v47 = vsub.f32 %v5002_v24, %v467_v20 }
  0xaf   : > { %v5116_v50 = vsub.f32 %v5005_v25, %v466_v43 }
  0xb0   : > { %v5111_v48 = vsub.f32 %v5008_v26, %v465_v19  ;;  %v499_v49 = vmul.f32 %v5108_v47, %v5108_v47 }
  0xb1   : > { %v498_v55 = vmul.f32 %v5116_v50, %v5116_v50 }
  0xb2   : > { %v497_v52 = vmul.f32 %v5111_v48, %v5111_v48  ;;  %v543_v53 = vsel %vm397_vm0, %v499_v49, 0.0 }
  0xb3   : > { %v540_v58 = vsel %vm397_vm0, %v498_v55, 0.0 }
  0xb4   : > { %544 = vadd.xlane.f32.xlu0 %v543_v53  ;;  %v537_v24 = vsel %vm397_vm0, %v497_v52, 0.0 }
  0xb5   : > { %532 = vadd.xlane.f32.xlu2 %v531_v51  ;;  %538 = vadd.xlane.f32.xlu1 %v537_v24  ;;  %v445_v26 = vpop.xlane.xlu0 %444 }
  0xb6   : > { %v468_v54 = vmul.f32 %v5021_v38, %v445_v26 }
  0xb8   : > { %v5127_v25 = vsub.f32 %v5017_v30, %v468_v54  ;;  %v4364_v30 = vld [vmem:[%s7280_s4 + $0x8] sm:$0xff] }
  0xb9   : > { %849 = vmatpush.bf16.msra.mxu0 %v4364_v30  ;;  %4367 = vmatpush.bf16.msra.mxu1 %v4364_v30 }
  0xba   : > { %v500_v60 = vmul.f32 %v5127_v25, %v5127_v25  ;;  %4368 = vmatpush.bf16.msra.mxu2 %v4364_v30  ;;  %4369 = vmatpush.bf16.msra.mxu3 %v4364_v30 }
  0xbc   : > { %v546_v61 = vsel %vm397_vm0, %v500_v60, 0.0 }
  0xbd   : > { %541 = vadd.xlane.f32.xlu2 %v540_v58  ;;  %547 = vadd.xlane.f32.xlu1 %v546_v61 }
  0xbe   : > { %850 = vmatpush.bf16.msra.mxu0 %v4363_v17  ;;  %4370 = vmatpush.bf16.msra.mxu1 %v4363_v17 }
  0xbf   : > { %4371 = vmatpush.bf16.msra.mxu2 %v4363_v17  ;;  %4372 = vmatpush.bf16.msra.mxu3 %v4363_v17 }
 0x107   : > { %v515_v62 = vpop.xlane.xlu0 %514 }
 0x108   : > { %v503_v63 = vpop.xlane.xlu1 %502  ;;  %v553_v1 = vmul.f32 %v515_v62, %v5021_v38 }
 0x109   : > { %v549_v3 = vmul.f32 %v503_v63, %v5021_v38 }
 0x10a   : > { %v5138_v4 = vadd.f32 1e-05, %v553_v1 }
 0x10b   : > { %v5140_v5 = vadd.f32 1e-05, %v549_v3 }
 0x10c   : > { %4435 = vrsqrt.f32 %v5138_v4  ;;  %vm627_vm3 = vweird.f32 %v5138_v4 }
 0x10d   : > { %4437 = vrsqrt.f32 %v5140_v5  ;;  %vm587_vm2 = vweird.f32 %v5140_v5 }
 0x10f   : > { %v530_v6 = vpop.xlane.xlu0 %529 }
 0x110   : > { %v518_v7 = vpop.xlane.xlu1 %517  ;;  %v506_v8 = vpop.xlane.xlu2 %505  ;;  %v558_v9 = vmul.f32 %v530_v6, %v5021_v38 }
 0x111   : > { %v554_v11 = vmul.f32 %v518_v7, %v5021_v38  ;;  %v550_v15 = vmul.f32 %v506_v8, %v5021_v38 }
 0x112   : > { %v5150_v21 = vpop.eup %4435  ;;  %v5152_v22 = vadd.f32 1e-05, %v558_v9 }
 0x113   : > { %v5154_v12 = vpop.eup %4437  ;;  %v622_v14 = vmul.f32 %v5150_v21, %v5138_v4  ;;  %v5158_v23 = vadd.f32 1e-05, %v554_v11  ;;  %v5160_v27 = vadd.f32 1e-05, %v550_v15  ;;  %vm628_vm5 = vweird.f32 %v5150_v21 }
 0x114   : > { %v582_v28 = vmul.f32 %v5154_v12, %v5140_v5  ;;  %4439 = vrsqrt.f32 %v5152_v22  ;;  %vm588_vm4 = vweird.f32 %v5154_v12  ;;  %vm677_vm6 = vweird.f32 %v5152_v22  ;;  %vm5235_vm11 = vmor %vm627_vm3, %vm628_vm5 }
 0x115   : > { %4441 = vrsqrt.f32 %v5158_v23  ;;  %v623_v29 = vmul.f32 %v5150_v21, %v622_v14  ;;  %vm5209_vm7 = vmor %vm587_vm2, %vm588_vm4  ;;  %vm637_vm8 = vweird.f32 %v5158_v23  ;;  %vm597_vm10 = vweird.f32 %v5160_v27 }
 0x116   : > { %v583_v13 = vmul.f32 %v5154_v12, %v582_v28  ;;  %4443 = vrsqrt.f32 %v5160_v27 }
 0x117   : > { %v521_v31 = vpop.xlane.xlu0 %520  ;;  %v624_v20 = vmul.f32 0.5, %v623_v29 }
 0x118   : > { %v584_v34 = vmul.f32 0.5, %v583_v13  ;;  %v527_v36 = vpop.xlane.xlu2 %526  ;;  %v509_v37 = vpop.xlane.xlu1 %508  ;;  %v555_v39 = vmul.f32 %v521_v31, %v5021_v38 }
 0x119   : > { %v557_v40 = vmul.f32 %v527_v36, %v5021_v38  ;;  %v551_v18 = vmul.f32 %v509_v37, %v5021_v38  ;;  %v625_v54 = vsub.f32 1.5, %v624_v20 }
 0x11a   : > { %v5172_v41 = vpop.eup %4439  ;;  %v585_v19 = vsub.f32 1.5, %v584_v34  ;;  %v5186_v53 = vadd.f32 1e-05, %v555_v39 }
 0x11b   : > { %v5174_v42 = vpop.eup %4441  ;;  %v672_v43 = vmul.f32 %v5172_v41, %v5152_v22  ;;  %v5178_v46 = vadd.f32 1e-05, %v557_v40  ;;  %v5184_v52 = vadd.f32 1e-05, %v551_v18  ;;  %v626_v11 = vmul.f32 %v5150_v21, %v625_v54 }
 0x11c   : > { %v5180_v49 = vpop.eup %4443  ;;  %v632_v51 = vmul.f32 %v5174_v42, %v5158_v23  ;;  %v586_v58 = vmul.f32 %v5154_v12, %v585_v19  ;;  %vm638_vm12 = vweird.f32 %v5174_v42  ;;  %vm678_vm13 = vweird.f32 %v5172_v41 }
 0x11d   : > { %v592_v24 = vmul.f32 %v5180_v49, %v5160_v27  ;;  %v673_v26 = vmul.f32 %v5172_v41, %v672_v43  ;;  %4445 = vrsqrt.f32 %v5178_v46  ;;  %vm598_vm9 = vweird.f32 %v5180_v49  ;;  %vm5286_vm1 = vmor %vm677_vm6, %vm678_vm13 }
 0x11e   : > { %v633_v55 = vmul.f32 %v5174_v42, %v632_v51  ;;  %4447 = vrsqrt.f32 %v5184_v52  ;;  %v590_v17 = vsel %vm5209_vm7, %v5154_v12, %v586_v58  ;;  %v630_v39 = vsel %vm5235_vm11, %v5150_v21, %v626_v11  ;;  %vm5251_vm14 = vmor %vm597_vm10, %vm598_vm9  ;;  %v5271_v51 = vld [vmem:[%s7278_s2] ss:$0 sm:$0xff] }
 0x11f   : > { %v593_v60 = vmul.f32 %v5180_v49, %v592_v24  ;;  %v674_v61 = vmul.f32 0.5, %v673_v26  ;;  %v536_v62 = vpop.xlane.xlu0 %535  ;;  %4449 = vrsqrt.f32 %v5186_v53  ;;  %v741_v18 = vmul.f32 %v590_v17, %v5027_v45  ;;  %vm5297_vm3 = vmor %vm637_vm8, %vm638_vm12  ;;  %v5322_v17 = vld [vmem:[%s7279_s3] ss:$0 sm:$0xff] }
 0x120   : > { %v634_v63 = vmul.f32 0.5, %v633_v55  ;;  %v512_v1 = vpop.xlane.xlu2 %511  ;;  %v524_v3 = vpop.xlane.xlu1 %523  ;;  %v560_v30 = vmul.f32 %v536_v62, %v5021_v38  ;;  %vm607_vm15 = vweird.f32 %v5184_v52  ;;  %vm647_vm2 = vweird.f32 %v5186_v53 }
 0x121   : > { %v594_v6 = vmul.f32 0.5, %v593_v60  ;;  %v552_v7 = vmul.f32 %v512_v1, %v5021_v38  ;;  %v556_v8 = vmul.f32 %v524_v3, %v5021_v38  ;;  %v675_v28 = vsub.f32 1.5, %v674_v61 }
 0x122   : > { %v5216_v15 = vadd.f32 1e-05, %v560_v30  ;;  %v635_v29 = vsub.f32 1.5, %v634_v63  ;;  %v745_v30 = vmul.f32 %v630_v39, %v5025_v44  ;;  %vm667_vm4 = vweird.f32 %v5178_v46 }
 0x123   : > { %v595_v14 = vsub.f32 1.5, %v594_v6  ;;  %v5221_v13 = vadd.f32 1e-05, %v552_v7  ;;  %v5223_v5 = vpop.eup %4445  ;;  %v5226_v31 = vadd.f32 1e-05, %v556_v8  ;;  %v5263_v19 = vmul.f32 %v5172_v41, %v675_v28 }
 0x124   : > { %4451 = vrsqrt.f32 %v5216_v15  ;;  %v5229_v34 = vpop.eup %4447  ;;  %v662_v27 = vmul.f32 %v5223_v5, %v5178_v46  ;;  %v636_v24 = vmul.f32 %v5174_v42, %v635_v29  ;;  %v760_v44 = vmul.f32 %v5271_v51, %v741_v18 }
 0x125   : > { %v596_v36 = vmul.f32 %v5180_v49, %v595_v14  ;;  %v5244_v37 = vpop.eup %4449  ;;  %v602_v40 = vmul.f32 %v5229_v34, %v5184_v52  ;;  %4453 = vrsqrt.f32 %v5221_v13  ;;  %v680_v22 = vsel %vm5286_vm1, %v5172_v41, %v5263_v19 }
 0x126   : > { %v663_v21 = vmul.f32 %v5223_v5, %v662_v27  ;;  %v642_v43 = vmul.f32 %v5244_v37, %v5186_v53  ;;  %4455 = vrsqrt.f32 %v5226_v31  ;;  %v640_v23 = vsel %vm5297_vm3, %v5174_v42, %v636_v24 }
 0x127   : > { %v600_v20 = vsel %vm5251_vm14, %v5180_v49, %v596_v36  ;;  %v603_v45 = vmul.f32 %v5229_v34, %v602_v40  ;;  %v545_v1 = vpop.xlane.xlu0 %544  ;;  %vm668_vm5 = vweird.f32 %v5223_v5  ;;  %vm608_vm6 = vweird.f32 %v5229_v34 }
 0x128   : > { %v533_v49 = vpop.xlane.xlu2 %532  ;;  %v539_v26 = vpop.xlane.xlu1 %538  ;;  %v664_v54 = vmul.f32 0.5, %v663_v21  ;;  %v643_v55 = vmul.f32 %v5244_v37, %v642_v43  ;;  %v742_v3 = vmul.f32 %v600_v20, %v5046_v59  ;;  %v563_v12 = vmul.f32 %v545_v1, %v5021_v38  ;;  %vm5346_vm10 = vmor %vm607_vm15, %vm608_vm6 }
 0x129   : > { %v559_v58 = vmul.f32 %v533_v49, %v5021_v38  ;;  %v561_v60 = vmul.f32 %v539_v26, %v5021_v38  ;;  %v604_v63 = vmul.f32 0.5, %v603_v45  ;;  %vm648_vm7 = vweird.f32 %v5244_v37  ;;  %vm5365_vm12 = vmor %vm667_vm4, %vm668_vm5 }
 0x12a   : > { %v5280_v61 = vpop.eup %4451  ;;  %v644_v7 = vmul.f32 0.5, %v643_v55  ;;  %v665_v14 = vsub.f32 1.5, %v664_v54  ;;  %v761_v39 = vmul.f32 %v5271_v51, %v742_v3  ;;  %vm617_vm8 = vweird.f32 %v5221_v13  ;;  %vm5383_vm15 = vmor %vm647_vm2, %vm648_vm7 }
 0x12b   : > { %v692_v59 = vmul.f32 %v5280_v61, %v5216_v15  ;;  %v5309_v8 = vpop.eup %4453  ;;  %v5315_v9 = vadd.f32 1e-05, %v559_v58  ;;  %v5317_v11 = vadd.f32 1e-05, %v561_v60  ;;  %v605_v28 = vsub.f32 1.5, %v604_v63 }
 0x12c   : > { %v612_v29 = vmul.f32 %v5309_v8, %v5221_v13  ;;  %v5327_v36 = vpop.eup %4455  ;;  %v645_v42 = vsub.f32 1.5, %v644_v7  ;;  %v779_v20 = vadd.f32 %v5322_v17, %v760_v44  ;;  %v666_v43 = vmul.f32 %v5223_v5, %v665_v14 }
 0x12d   : > { %v693_v27 = vmul.f32 %v5280_v61, %v692_v59  ;;  %4457 = vrsqrt.f32 %v5315_v9  ;;  %v652_v40 = vmul.f32 %v5327_v36, %v5226_v31  ;;  %v606_v24 = vmul.f32 %v5229_v34, %v605_v28 }
 0x12e   : > { %v613_v4 = vmul.f32 %v5309_v8, %v612_v29  ;;  %4459 = vrsqrt.f32 %v5317_v11  ;;  %vm657_vm9 = vweird.f32 %v5226_v31  ;;  %v5351_v54 = vmul.f32 %v5244_v37, %v645_v42 }
 0x12f   : > { %v694_v18 = vmul.f32 0.5, %v693_v27  ;;  %v653_v49 = vmul.f32 %v5327_v36, %v652_v40  ;;  %v5353_v55 = vadd.f32 1e-05, %v563_v12  ;;  %v780_v58 = vadd.f32 %v5322_v17, %v761_v39 }
 0x130   : > { %v542_v21 = vpop.xlane.xlu2 %541  ;;  %v614_v45 = vmul.f32 0.5, %v613_v4  ;;  %v746_v60 = vmul.f32 %v640_v23, %v5042_v57  ;;  %vm618_vm11 = vweird.f32 %v5309_v8  ;;  %vm697_vm13 = vweird.f32 %v5216_v15  ;;  %v548_v29 = vpop.xlane.xlu1 %547 }
 0x131   : > { %v654_v1 = vmul.f32 0.5, %v653_v49  ;;  %v562_v3 = vmul.f32 %v542_v21, %v5021_v38  ;;  %v695_v7 = vsub.f32 1.5, %v694_v18  ;;  %vm698_vm14 = vweird.f32 %v5280_v61  ;;  %vm5410_vm5 = vmor %vm617_vm8, %vm618_vm11 }
 0x132   : > { %v615_v63 = vsub.f32 1.5, %v614_v45  ;;  %4461 = vrsqrt.f32 %v5353_v55  ;;  %v795_v57 = vpack.c.bf16 %v780_v58, %v779_v20  ;;  %v764_v59 = vmul.f32 %v5271_v51, %v745_v30 }
 0x133   : > { %v5359_v52 = vpop.eup %4457  ;;  %v670_v44 = vsel %vm5365_vm12, %v5223_v5, %v666_v43  ;;  %v610_v46 = vsel %vm5346_vm10, %v5229_v34, %v606_v24  ;;  %vm687_vm3 = vweird.f32 %v5315_v9  ;;  %v650_v34 = vsel %vm5383_vm15, %v5244_v37, %v5351_v54 }
 0x134   : > { %v616_v14 = vmul.f32 %v5309_v8, %v615_v63  ;;  %v682_v30 = vmul.f32 %v5359_v52, %v5315_v9  ;;  %v5391_v5 = vpop.eup %4459  ;;  %vm658_vm4 = vweird.f32 %v5327_v36  ;;  %4256 = vmatmul.msk.bf16.vlgmr.msra.gmra.mxu0 %vm397_vm0, %v795_v57  ;;  %v765_v53 = vmul.f32 %v5271_v51, %v746_v60 }
 0x135   : > { %v5400_v28 = vadd.f32 1e-05, %v562_v3  ;;  %v655_v12 = vsub.f32 1.5, %v654_v1  ;;  %v702_v27 = vmul.f32 %v5391_v5, %v5317_v11  ;;  %vm707_vm2 = vweird.f32 %v5317_v11  ;;  %vm5439_vm7 = vmor %vm657_vm9, %vm658_vm4 }
 0x136   : > { %v683_v42 = vmul.f32 %v5359_v52, %v682_v30  ;;  %v696_v39 = vmul.f32 %v5280_v61, %v695_v7  ;;  %v783_v4 = vadd.f32 %v5322_v17, %v764_v59  ;;  %v784_v40 = vadd.f32 %v5322_v17, %v765_v53  ;;  %vm5470_vm9 = vmor %vm697_vm13, %vm698_vm14 }
 0x137   : > { %4463 = vrsqrt.f32 %v5400_v28  ;;  %v620_v18 = vsel %vm5410_vm5, %v5309_v8, %v616_v14  ;;  %v703_v21 = vmul.f32 %v5391_v5, %v702_v27  ;;  %v564_v13 = vmul.f32 %v548_v29, %v5021_v38 }
 0x138   : > { %v684_v20 = vmul.f32 0.5, %v683_v42  ;;  %v5423_v43 = vpop.eup %4461  ;;  %v797_v24 = vpack.c.bf16 %v784_v40, %v783_v4  ;;  %v749_v45 = vmul.f32 %v670_v44, %v5057_v2  ;;  %v750_v49 = vmul.f32 %v680_v22, %v5039_v56 }
 0x139   : > { %v743_v26 = vmul.f32 %v610_v46, %v5067_v0  ;;  %v656_v8 = vmul.f32 %v5327_v36, %v655_v12  ;;  %vm688_vm6 = vweird.f32 %v5359_v52  ;;  %v704_v38 = vmul.f32 0.5, %v703_v21 }
 0x13a   : > { %v685_v54 = vsub.f32 1.5, %v684_v20  ;;  %4258 = vmatmul.msk.bf16.vlgmr.msra.gmra.mxu1 %vm397_vm0, %v797_v24  ;;  %v5444_v41 = vadd.f32 1e-05, %v564_v13  ;;  %v768_v56 = vmul.f32 %v5271_v51, %v749_v45  ;;  %v769_v0 = vmul.f32 %v5271_v51, %v750_v49  ;;  %vm5455_vm8 = vmor %vm687_vm3, %vm688_vm6 }
 0x13b   : > { %v744_v19 = vmul.f32 %v620_v18, %v5074_v16  ;;  %v705_v22 = vsub.f32 1.5, %v704_v38  ;;  %vm708_vm1 = vweird.f32 %v5391_v5  ;;  %v722_v31 = vmul.f32 %v5423_v43, %v5353_v55 }
 0x13c   : > { %v686_v62 = vmul.f32 %v5359_v52, %v685_v54  ;;  %4465 = vrsqrt.f32 %v5444_v41  ;;  %v787_v63 = vadd.f32 %v5322_v17, %v768_v56  ;;  %v788_v16 = vadd.f32 %v5322_v17, %v769_v0  ;;  %vm5484_vm10 = vmor %vm707_vm2, %vm708_vm1 }
 0x13d   : > { %v4464_v58 = vpop.eup %4463  ;;  %v762_v1 = vmul.f32 %v5271_v51, %v743_v26  ;;  %v660_v3 = vsel %vm5439_vm7, %v5327_v36, %v656_v8  ;;  %v706_v7 = vmul.f32 %v5391_v5, %v705_v22  ;;  %v700_v36 = vsel %vm5470_vm9, %v5280_v61, %v696_v39 }
 0x13e   : > { %v690_v6 = vsel %vm5455_vm8, %v5359_v52, %v686_v62  ;;  %v712_v57 = vmul.f32 %v4464_v58, %v5400_v28  ;;  %v799_v59 = vpack.c.bf16 %v788_v16, %v787_v63  ;;  %v763_v44 = vmul.f32 %v5271_v51, %v744_v19 }
 0x13f   : > { %v723_v46 = vmul.f32 %v5423_v43, %v722_v31  ;;  %vm717_vm11 = vweird.f32 %v5400_v28  ;;  %v747_v23 = vmul.f32 %v650_v34, %v5064_v10  ;;  %v781_v61 = vadd.f32 %v5322_v17, %v762_v1 }
 0x140   : > { %v713_v52 = vmul.f32 %v4464_v58, %v712_v57  ;;  %4260 = vmatmul.msk.bf16.vlgmr.msra.gmra.mxu2 %vm397_vm0, %v799_v59  ;;  %v782_v11 = vadd.f32 %v5322_v17, %v763_v44  ;;  %v748_v14 = vmul.f32 %v660_v3, %v5090_v33  ;;  %v751_v30 = vmul.f32 %v690_v6, %v5095_v35 }
 0x141   : > { %v710_v53 = vsel %vm5484_vm10, %v5391_v5, %v706_v7  ;;  %vm718_vm12 = vweird.f32 %v4464_v58  ;;  %v766_v12 = vmul.f32 %v5271_v51, %v747_v23  ;;  %v752_v27 = vmul.f32 %v700_v36, %v5087_v32 }
 0x142   : > { %v714_v29 = vmul.f32 0.5, %v713_v52  ;;  %v4466_v42 = vpop.eup %4465  ;;  %v796_v10 = vpack.c.bf16 %v782_v11, %v781_v61  ;;  %v767_v34 = vmul.f32 %v5271_v51, %v748_v14  ;;  %vm719_vm13 = vmor %vm717_vm11, %vm718_vm12  ;;  %v770_v5 = vmul.f32 %v5271_v51, %v751_v30 }
 0x143   : > { %v732_v39 = vmul.f32 %v4466_v42, %v5444_v41  ;;  %v785_v33 = vadd.f32 %v5322_v17, %v766_v12  ;;  %v753_v4 = vmul.f32 %v710_v53, %v5111_v48  ;;  %v724_v40 = vmul.f32 0.5, %v723_v46 }
 0x144   : > { %v715_v37 = vsub.f32 1.5, %v714_v29  ;;  %4257 = vmatmul.msk.bf16.gmra.mxu0 %vm397_vm0, %v796_v10  ;;  %v786_v35 = vadd.f32 %v5322_v17, %v767_v34  ;;  %v771_v21 = vmul.f32 %v5271_v51, %v752_v27  ;;  %v789_v28 = vadd.f32 %v5322_v17, %v770_v5 }
 0x145   : > { %v733_v20 = vmul.f32 %v4466_v42, %v732_v39  ;;  %v772_v49 = vmul.f32 %v5271_v51, %v753_v4  ;;  %v725_v26 = vsub.f32 1.5, %v724_v40  ;;  %vm737_vm14 = vweird.f32 %v5444_v41 }
 0x146   : > { %v716_v18 = vmul.f32 %v4464_v58, %v715_v37  ;;  %v798_v32 = vpack.c.bf16 %v786_v35, %v785_v33  ;;  %vm738_vm15 = vweird.f32 %v4466_v42  ;;  %v790_v48 = vadd.f32 %v5322_v17, %v771_v21 }
 0x147   : > { %v734_v24 = vmul.f32 0.5, %v733_v20  ;;  %vm727_vm3 = vweird.f32 %v5353_v55  ;;  %vm728_vm4 = vweird.f32 %v5423_v43  ;;  %vm739_vm2 = vmor %vm737_vm14, %vm738_vm15  ;;  %v791_v2 = vadd.f32 %v5322_v17, %v772_v49 }
 0x148   : > { %v720_v13 = vsel %vm719_vm13, %v4464_v58, %v716_v18  ;;  %v726_v41 = vmul.f32 %v5423_v43, %v725_v26  ;;  %vm729_vm5 = vmor %vm727_vm3, %vm728_vm4  ;;  %vm1278_vm6 = vcmask 64512   ;;  %vm1523_vm7 = vcmask 130048  }
 0x149   : > { %v754_v45 = vmul.f32 %v720_v13, %v5116_v50  ;;  %v735_v8 = vsub.f32 1.5, %v734_v24  ;;  %v800_v50 = vpack.c.bf16 %v790_v48, %v789_v28 }
 0x14a   : > { %4259 = vmatmul.msk.bf16.gmra.mxu1 %vm397_vm0, %v798_v32  ;;  %v730_v55 = vsel %vm729_vm5, %v5423_v43, %v726_v41 }
 0x14b   : > { %v773_v54 = vmul.f32 %v5271_v51, %v754_v45  ;;  %v736_v38 = vmul.f32 %v4466_v42, %v735_v8  ;;  %v755_v22 = vmul.f32 %v730_v55, %v5108_v47 }
 0x14d   : > { %v792_v56 = vadd.f32 %v5322_v17, %v773_v54  ;;  %v740_v19 = vsel %vm739_vm2, %v4466_v42, %v736_v38  ;;  %v774_v58 = vmul.f32 %v5271_v51, %v755_v22 }
 0x14e   : > { %v756_v62 = vmul.f32 %v740_v19, %v5127_v25 }
 0x14f   : > { %v801_v0 = vpack.c.bf16 %v792_v56, %v791_v2  ;;  %v793_v63 = vadd.f32 %v5322_v17, %v774_v58 }
 0x150   : > { %4261 = vmatmul.msk.bf16.gmra.mxu2 %vm397_vm0, %v800_v50  ;;  %v775_v31 = vmul.f32 %v5271_v51, %v756_v62 }
 0x151   : > { %4262 = vmatmul.msk.bf16.vlgmr.msra.gmra.mxu3 %vm397_vm0, %v801_v0 }
 0x152   : > { %v794_v60 = vadd.f32 %v5322_v17, %v775_v31 }
 0x154   : > { %v802_v16 = vpack.c.bf16 %v794_v60, %v793_v63 }
 0x161   : > { %4263 = vmatmul.msk.bf16.gmra.mxu3 %vm397_vm0, %v802_v16 }
 0x1b1   : > { %v5534_v1 = vpop.f32.mrf.mxu0 }
 0x1b2   : > { %v1250_v25 = vpack.c.bf16 %v5534_v1, %v5534_v1  ;;  %v892_v10 = vmul.f32 0.35355338, %v5534_v1 }
 0x1b4   : > { %v1273_v51 = vunpack.c.l.b16 %v1250_v25  ;;  %v1234_v40 = vpack.c.bf16 %v892_v10, %v892_v10 }
 0x1b6   : > { %v1268_v28 = vunpack.c.l.b16 %v1234_v40 }
 0x1b7   : > { %v5536_v3 = vpop.f32.mrf.mxu1 }
 0x1b8   : > { %v1254_v17 = vpack.c.bf16 %v5536_v3, %v5536_v3 }
 0x1b9   : > { %v5540_v43 = vpop.f32.mrf.mxu0 }
 0x1ba   : > { %v1251_v47 = vpack.c.bf16 %v5540_v43, %v5540_v43  ;;  %v1338_v15 = vunpack.c.l.b16 %v1254_v17  ;;  %v893_v53 = vmul.f32 0.35355338, %v5540_v43 }
 0x1bc   : > { %v1274_v9 = vunpack.c.l.b16 %v1251_v47  ;;  %v1235_v35 = vpack.c.bf16 %v893_v53, %v893_v53 }
 0x1be   : > { %v5546_v6 = vpack.c.b16 %v1274_v9, %v1273_v51  ;;  %v1269_v13 = vunpack.c.l.b16 %v1235_v35 }
 0x1bf   : > { %v5548_v7 = vpop.f32.mrf.mxu1 }
 0x1c0   : > { %v1255_v57 = vpack.c.bf16 %v5548_v7, %v5548_v7  ;;  %1276 = vrot.lane.b32.xlu2 %v5546_v6, %s4844_s12  ;;  %v5600_v45 = vpack.c.b16 %v1269_v13, %v1268_v28 }
 0x1c1   : > { %v5554_v36 = vpop.f32.mrf.mxu0 }
 0x1c2   : > { %v1339_v59 = vunpack.c.l.b16 %v1255_v57  ;;  %v1252_v23 = vpack.c.bf16 %v5554_v36, %v5554_v36  ;;  %v894_v25 = vmul.f32 0.35355338, %v5554_v36 }
 0x1c3   : > { %v5556_v44 = vpop.f32.mrf.mxu2 }
 0x1c4   : > { %v5558_v46 = vpack.c.b16 %v1339_v59, %v1338_v15  ;;  %v1258_v11 = vpack.c.bf16 %v5556_v44, %v5556_v44  ;;  %v1306_v12 = vunpack.c.l.b16 %v1252_v23  ;;  %v1236_v51 = vpack.c.bf16 %v894_v25, %v894_v25 }
 0x1c6   : > { %1341 = vrot.lane.b32.xlu0 %v5558_v46, %s4844_s12  ;;  %v1402_v34 = vunpack.c.l.b16 %v1258_v11  ;;  %v1301_v17 = vunpack.c.l.b16 %v1236_v51 }
 0x1c7   : > { %v5562_v52 = vpop.f32.mrf.mxu1 }
 0x1c8   : > { %v1256_v27 = vpack.c.bf16 %v5562_v52, %v5562_v52  ;;  %v898_v11 = vmul.f32 0.35355338, %v5562_v52 }
 0x1c9   : > { %v5566_v61 = vpop.f32.mrf.mxu0 }
 0x1ca   : > { %v1253_v14 = vpack.c.bf16 %v5566_v61, %v5566_v61  ;;  %v1370_v18 = vunpack.c.l.b16 %v1256_v27  ;;  %v895_v16 = vmul.f32 0.35355338, %v5566_v61 }
 0x1cb   : > { %v5572_v30 = vpop.f32.mrf.mxu2 }
 0x1cc   : > { %7318 = vst [vmem:[#allocation2_spill] sm:$0xff] %v5572_v30  ;;  %v1259_v29 = vpack.c.bf16 %v5572_v30, %v5572_v30  ;;  %v1307_v42 = vunpack.c.l.b16 %v1253_v14  ;;  %v1237_v47 = vpack.c.bf16 %v895_v16, %v895_v16 }
 0x1ce   : > { %v1403_v37 = vunpack.c.l.b16 %v1259_v29  ;;  %v5580_v39 = vpack.c.b16 %v1307_v42, %v1306_v12  ;;  %v1302_v9 = vunpack.c.l.b16 %v1237_v47  ;;  %v1240_v29 = vpack.c.bf16 %v898_v11, %v898_v11 }
 0x1cf   : > { %v5582_v33 = vpop.f32.mrf.mxu1  ;;  %v897_v42 = vmul.f32 0.35355338, %v5548_v7 }
 0x1d0   : > { %v5584_v5 = vpack.c.b16 %v1403_v37, %v1402_v34  ;;  %v1257_v4 = vpack.c.bf16 %v5582_v33, %v5582_v33  ;;  %1309 = vrot.lane.b32.xlu1 %v5580_v39, %s4844_s12  ;;  %v5656_v57 = vpack.c.b16 %v1302_v9, %v1301_v17  ;;  %v899_v23 = vmul.f32 0.35355338, %v5582_v33 }
 0x1d1   : > { %v896_v34 = vmul.f32 0.35355338, %v5536_v3  ;;  %v1365_v27 = vunpack.c.l.b16 %v1240_v29  ;;  %v1239_v37 = vpack.c.bf16 %v897_v42, %v897_v42 }
 0x1d2   : > { %v1371_v20 = vunpack.c.l.b16 %v1257_v4  ;;  %1821 = vrot.lane.b32.xlu0 %v5584_v5, %s4845_s13  ;;  %v1241_v14 = vpack.c.bf16 %v899_v23, %v899_v23 }
 0x1d3   : > { %v5592_v32 = vpop.f32.mrf.mxu2  ;;  %v1238_v40 = vpack.c.bf16 %v896_v34, %v896_v34 }
 0x1d4   : > { %7319 = vst [vmem:[#allocation3_spill] sm:$0xff] %v5592_v32  ;;  %v5594_v21 = vpop.f32.mrf.mxu3  ;;  %v5596_v24 = vpack.c.b16 %v1371_v20, %v1370_v18  ;;  %v1260_v49 = vpack.c.bf16 %v5592_v32, %v5592_v32  ;;  %v1366_v10 = vunpack.c.l.b16 %v1241_v14  ;;  %v1334_v20 = vunpack.c.l.b16 %v1239_v37 }
 0x1d5   : > { %7320 = vst [vmem:[#allocation4_spill] sm:$0xff] %v5594_v21  ;;  %v1262_v26 = vpack.c.bf16 %v5594_v21, %v5594_v21  ;;  %v1333_v13 = vunpack.c.l.b16 %v1238_v40 }
 0x1d6   : > { %1373 = vrot.lane.b32.xlu2 %v5596_v24, %s4844_s12  ;;  %v1434_v50 = vunpack.c.l.b16 %v1260_v49  ;;  %v5668_v35 = vpack.c.b16 %v1366_v10, %v1365_v27 }
 0x1d7   : > { %v1466_v56 = vunpack.c.l.b16 %v1262_v26  ;;  %v5673_v28 = vpack.c.b16 %v1334_v20, %v1333_v13 }
 0x1da   : > { %1916 = vrot.lane.b32.xlu0 %v5600_v45, %s4846_s14 }
 0x1db   : > { %v5608_v8 = vpop.f32.mrf.mxu2 }
 0x1dc   : > { %7321 = vst [vmem:[#allocation5_spill] sm:$0xff] %v5608_v8  ;;  %v5610_v48 = vpop.f32.mrf.mxu3  ;;  %v1261_v54 = vpack.c.bf16 %v5608_v8, %v5608_v8 }
 0x1dd   : > { %7322 = vst [vmem:[#allocation6_spill] sm:$0xff] %v5610_v48  ;;  %v1263_v38 = vpack.c.bf16 %v5610_v48, %v5610_v48 }
 0x1de   : > { %v1435_v2 = vunpack.c.l.b16 %v1261_v54  ;;  %1405 = vrot.lane.b32.xlu2 %v5584_v5, %s4844_s12 }
 0x1df   : > { %v1467_v41 = vunpack.c.l.b16 %v1263_v38 }
 0x1e0   : > { %v5618_v0 = vpack.c.b16 %v1435_v2, %v1434_v50 }
 0x1e1   : > { %v5620_v19 = vpack.c.b16 %v1467_v41, %v1466_v56  ;;  %v901_v56 = vmul.f32 0.35355338, %v5572_v30  ;;  %v903_v41 = vmul.f32 0.35355338, %v5608_v8 }
 0x1e2   : > { %1437 = vrot.lane.b32.xlu0 %v5618_v0, %s4844_s12 }
 0x1e3   : > { %1469 = vrot.lane.b32.xlu1 %v5620_v19, %s4844_s12  ;;  %v1243_v16 = vpack.c.bf16 %v901_v56, %v901_v56  ;;  %v1245_v25 = vpack.c.bf16 %v903_v41, %v903_v41 }
 0x1e4   : > { %v5626_v55 = vpop.f32.mrf.mxu3 }
 0x1e5   : > { %7323 = vst [vmem:[#allocation7_spill] sm:$0xff] %v5626_v55  ;;  %v1264_v62 = vpack.c.bf16 %v5626_v55, %v5626_v55  ;;  %v1398_v14 = vunpack.c.l.b16 %v1243_v16  ;;  %v1430_v29 = vunpack.c.l.b16 %v1245_v25  ;;  %v906_v20 = vmul.f32 0.35355338, %v5626_v55  ;;  %v387_v16 = vld [vmem:[%s5716_s22] sm:$0xff] }
 0x1e6   : > { %1721 = vrot.lane.b32.xlu2 %v5546_v6, %s4845_s13 }
 0x1e7   : > { %v1498_v58 = vunpack.c.l.b16 %v1264_v62  ;;  %v905_v62 = vmul.f32 0.35355338, %v5610_v48 }
 0x1e9   : > { %v1247_v47 = vpack.c.bf16 %v905_v62, %v905_v62 }
 0x1eb   : > { %1918 = vrot.lane.b32.xlu1 %v5546_v6, %s4847_s17 }
 0x1ec   : > { %v5634_v22 = vpop.f32.mrf.mxu3 }
 0x1ed   : > { %7324 = vst [vmem:[#allocation8_spill] sm:$0xff] %v5634_v22  ;;  %v1265_v31 = vpack.c.bf16 %v5634_v22, %v5634_v22 }
 0x1ee   : > { %1771 = vrot.lane.b32.xlu2 %v5558_v46, %s4845_s13 }
 0x1ef   : > { %v1499_v60 = vunpack.c.l.b16 %v1265_v31  ;;  %v900_v31 = vmul.f32 0.35355338, %v5556_v44 }
 0x1f1   : > { %v5640_v63 = vpack.c.b16 %v1499_v60, %v1498_v58  ;;  %v902_v58 = vmul.f32 0.35355338, %v5592_v32  ;;  %v904_v60 = vmul.f32 0.35355338, %v5594_v21  ;;  %v1242_v51 = vpack.c.bf16 %v900_v31, %v900_v31 }
 0x1f3   : > { %1796 = vrot.lane.b32.xlu1 %v5596_v24, %s4845_s13  ;;  %1501 = vrot.lane.b32.xlu0 %v5640_v63, %s4844_s12  ;;  %v1397_v42 = vunpack.c.l.b16 %v1242_v51 }
 0x1f5   : > { %v5691_v27 = vpack.c.b16 %v1398_v14, %v1397_v42 }
 0x1f6   : > { %1871 = vrot.lane.b32.xlu2 %v5620_v19, %s4845_s13 }
 0x1fb   : > { %1746 = vrot.lane.b32.xlu1 %v5580_v39, %s4845_s13  ;;  %1846 = vrot.lane.b32.xlu0 %v5618_v0, %s4845_s13 }
 0x203   : > { %1942 = vrot.lane.b32.xlu1 %v5580_v39, %s4847_s17 }
 0x20b   : > { %1940 = vrot.lane.b32.xlu1 %v5656_v57, %s4846_s14 }
 0x21a   : > { %v1277_v15 = vpop.permute.xlu2 %1276 }
 0x21b   : > { %v1283_v59 = vsel %vm1278_vm6, %v1277_v15, 0  ;;  %v1244_v15 = vpack.c.bf16 %v902_v58, %v902_v58 }
 0x21c   : > { %1292 = vmatpush.bf16.xpose.msrb.mxu1 %v1283_v59  ;;  %v1246_v59 = vpack.c.bf16 %v904_v60, %v904_v60 }
 0x21d   : > { %v1429_v10 = vunpack.c.l.b16 %v1244_v15 }
 0x21e   : > { %v1461_v34 = vunpack.c.l.b16 %v1246_v59 }
 0x21f   : > { %v5693_v37 = vpack.c.b16 %v1430_v29, %v1429_v10 }
 0x223   : > { %4280 = vmatmul.msk.bf16.vlgmr.msrb.gmra.mxu1 %vm1278_vm6, %v5600_v45 }
 0x230   : > { %v1374_v53 = vpop.permute.xlu2 %1373 }
 0x231   : > { %v1379_v12 = vsel %vm1278_vm6, %v1374_v53, 0 }
 0x232   : > { %1388 = vmatpush.bf16.xpose.msra.mxu1 %v1379_v12  ;;  %v1462_v12 = vunpack.c.l.b16 %v1247_v47 }
 0x238   : > { %v1342_v4 = vpop.permute.xlu0 %1341  ;;  %v1406_v49 = vpop.permute.xlu2 %1405 }
 0x239   : > { %4283 = vmatmul.msk.bf16.vlgmr.msra.gmra.mxu1 %vm1278_vm6, %v5668_v35  ;;  %v1347_v18 = vsel %vm1278_vm6, %v1342_v4, 0  ;;  %v1411_v50 = vsel %vm1278_vm6, %v1406_v49, 0  ;;  %v5695_v4 = vpack.c.b16 %v1462_v12, %v1461_v34 }
 0x23a   : > { %1356 = vmatpush.bf16.xpose.msrb.mxu3 %v1347_v18  ;;  %v907_v18 = vmul.f32 0.35355338, %v5634_v22 }
 0x23c   : > { %v1249_v13 = vpack.c.bf16 %v907_v18, %v907_v18 }
 0x23e   : > { %v1494_v41 = vunpack.c.l.b16 %v1249_v13 }
 0x240   : > { %v1722_v53 = vpop.permute.xlu2 %1721 }
 0x241   : > { %4282 = vmatmul.msk.bf16.vlgmr.msrb.gmra.mxu3 %vm1278_vm6, %v5673_v28 }
 0x242   : > { %v1310_v26 = vpop.permute.xlu1 %1309 }
 0x243   : > { %v1315_v38 = vsel %vm1278_vm6, %v1310_v26, 0 }
 0x244   : > { %v1822_v54 = vpop.permute.xlu0 %1821  ;;  %1324 = vmatpush.bf16.xpose.msrb.mxu2 %v1315_v38  ;;  %v1248_v38 = vpack.c.bf16 %v906_v20, %v906_v20 }
 0x246   : > { %v1493_v62 = vunpack.c.l.b16 %v1248_v38 }
 0x248   : > { %v1772_v56 = vpop.permute.xlu2 %1771  ;;  %v5708_v31 = vpack.c.b16 %v1494_v41, %v1493_v62 }
 0x24b   : > { %4281 = vmatmul.msk.bf16.vlgmr.msrb.gmra.mxu2 %vm1278_vm6, %v5656_v57 }
 0x24c   : > { %1420 = vmatpush.bf16.xpose.msra.mxu2 %v1411_v50  ;;  %v5679_v2 = vpop.permute.xlu0 %1916 }
 0x254   : > { %v1438_v9 = vpop.permute.xlu0 %1437 }
 0x255   : > { %v1470_v17 = vpop.permute.xlu1 %1469  ;;  %v1443_v23 = vsel %vm1278_vm6, %v1438_v9, 0  ;;  %v388_v9 = vld [vmem:[%s5716_s22 + $0x8] sm:$0xff] }
 0x256   : > { %v1475_v11 = vsel %vm1278_vm6, %v1470_v17, 0  ;;  %1452 = vmatpush.bf16.xpose.msra.mxu3 %v1443_v23 }
 0x257   : > { %1484 = vmatpush.bf16.xpose.msrb.mxu1 %v1475_v11 }
 0x25b   : > { %4284 = vmatmul.msk.bf16.vlgmr.msra.gmra.mxu2 %vm1278_vm6, %v5691_v27 }
 0x25d   : > { %v5699_v40 = vpop.permute.xlu1 %1918  ;;  %4285 = vmatmul.msk.bf16.vlgmr.msra.gmra.mxu3 %vm1278_vm6, %v5693_v37 }
 0x25e   : > { %1734 = vmatpush.bf16.msrb.mxu3 %v1722_v53  ;;  %4286 = vmatmul.msk.bf16.vlgmr.msrb.gmra.mxu1 %vm1278_vm6, %v5695_v4 }
 0x265   : > { %v1797_v49 = vpop.permute.xlu1 %1796  ;;  %v1502_v26 = vpop.permute.xlu0 %1501 }
 0x266   : > { %v1507_v50 = vsel %vm1278_vm6, %v1502_v26, 0  ;;  %1809 = vmatpush.bf16.msra.mxu3 %v1797_v49 }
 0x267   : > { %1516 = vmatpush.bf16.xpose.msrb.mxu2 %v1507_v50 }
 0x26d   : > { %v1747_v58 = vpop.permute.xlu1 %1746  ;;  %v1847_v60 = vpop.permute.xlu0 %1846 }
 0x26e   : > { %4287 = vmatmul.msk.bf16.vlgmr.msrb.gmra.mxu2 %vm1278_vm6, %v5708_v31  ;;  %1759 = vmatpush.bf16.msra.mxu1 %v1747_v58 }
 0x26f   : > { %1784 = vmatpush.bf16.msra.mxu2 %v1772_v56 }
 0x272   : > { %1834 = vmatpush.bf16.msrb.mxu1 %v1822_v54 }
 0x273   : > { %1859 = vmatpush.bf16.msrb.mxu2 %v1847_v60 }
 0x2a0   : > { %v1294_v25 = vpop.f32.mrf.mxu1 }
 0x2a1   : > { %v5719_v47 = vadd.f32 %v1294_v25, %v387_v16 }
 0x2a3   : > { %v1524_v51 = vsel %vm1523_vm7, %v5719_v47, -inf }
 0x2a4   : > { %1525 = vmax.xlane.f32.xlu2 %v1524_v51 }
 0x2a8   : > { %v1296_v54 = vpop.f32.mrf.mxu1 }
 0x2a9   : > { %v5724_v17 = vadd.f32 %v1296_v54, %v388_v9 }
 0x2ab   : > { %v1527_v15 = vsel %vm1523_vm7, %v5724_v17, -inf }
 0x2ac   : > { %1528 = vmax.xlane.f32.xlu1 %v1527_v15 }
 0x2b6   : > { %v1390_v59 = vpop.f32.mrf.mxu1 }
 0x2b7   : > { %v5728_v23 = vadd.f32 %v1390_v59, %v387_v16 }
 0x2b9   : > { %v1542_v11 = vsel %vm1523_vm7, %v5728_v23, -inf }
 0x2ba   : > { %1543 = vmax.xlane.f32.xlu1 %v1542_v11 }
 0x2be   : > { %v1392_v12 = vpop.f32.mrf.mxu1 }
 0x2bf   : > { %v5736_v42 = vadd.f32 %v1392_v12, %v388_v9 }
 0x2c1   : > { %v1545_v20 = vsel %vm1523_vm7, %v5736_v42, -inf }
 0x2c4   : > { %v1358_v14 = vpop.f32.mrf.mxu3 }
 0x2c5   : > { %v5732_v53 = vadd.f32 %v1358_v14, %v387_v16 }
 0x2c7   : > { %v1536_v29 = vsel %vm1523_vm7, %v5732_v53, -inf }
 0x2c8   : > { %1537 = vmax.xlane.f32.xlu0 %v1536_v29 }
 0x2cc   : > { %v1360_v10 = vpop.f32.mrf.mxu3 }
 0x2cd   : > { %v5738_v34 = vadd.f32 %v1360_v10, %v388_v9 }
 0x2ce   : > { %v1326_v13 = vpop.f32.mrf.mxu2 }
 0x2cf   : > { %v1539_v18 = vsel %vm1523_vm7, %v5738_v34, -inf  ;;  %v5744_v49 = vadd.f32 %v1326_v13, %v387_v16 }
 0x2d0   : > { %1540 = vmax.xlane.f32.xlu2 %v1539_v18  ;;  %1546 = vmax.xlane.f32.xlu0 %v1545_v20 }
 0x2d1   : > { %v1530_v26 = vsel %vm1523_vm7, %v5744_v49, -inf }
 0x2d6   : > { %v1328_v38 = vpop.f32.mrf.mxu2 }
 0x2d7   : > { %v5748_v50 = vadd.f32 %v1328_v38, %v388_v9 }
 0x2d8   : > { %1531 = vmax.xlane.f32.xlu2 %v1530_v26 }
 0x2d9   : > { %v1533_v56 = vsel %vm1523_vm7, %v5748_v50, -inf }
 0x2da   : > { %1534 = vmax.xlane.f32.xlu1 %v1533_v56 }
 0x2db   : > { %v1486_v41 = vpop.f32.mrf.mxu1 }
 0x2dc   : > { %v5752_v62 = vadd.f32 %v1486_v41, %v387_v16 }
 0x2de   : > { %v1422_v58 = vpop.f32.mrf.mxu2  ;;  %v1560_v25 = vsel %vm1523_vm7, %v5752_v62, -inf }
 0x2df   : > { %v5772_v13 = vadd.f32 %v1422_v58, %v387_v16  ;;  %v5784_v58 = vpop.permute.xlu1 %1942 }
 0x2e0   : > { %v1454_v60 = vpop.f32.mrf.mxu3 }
 0x2e1   : > { %v5756_v51 = vadd.f32 %v1454_v60, %v387_v16  ;;  %v1548_v56 = vsel %vm1523_vm7, %v5772_v13, -inf }
 0x2e2   : > { %1561 = vmax.xlane.f32.xlu1 %v1560_v25 }
 0x2e3   : > { %v1488_v54 = vpop.f32.mrf.mxu1  ;;  %v1554_v15 = vsel %vm1523_vm7, %v5756_v51, -inf }
 0x2e4   : > { %1555 = vmax.xlane.f32.xlu0 %v1554_v15  ;;  %v5760_v59 = vadd.f32 %v1488_v54, %v388_v9  ;;  %v5786_v15 = vpop.permute.xlu2 %1871 }
 0x2e6   : > { %v1424_v11 = vpop.f32.mrf.mxu2  ;;  %v1563_v10 = vsel %vm1523_vm7, %v5760_v59, -inf }
 0x2e7   : > { %v5762_v29 = vadd.f32 %v1424_v11, %v388_v9 }
 0x2e8   : > { %v1456_v14 = vpop.f32.mrf.mxu3 }
 0x2e9   : > { %v5764_v12 = vadd.f32 %v1456_v14, %v388_v9  ;;  %v1551_v18 = vsel %vm1523_vm7, %v5762_v29, -inf }
 0x2ea   : > { %1552 = vmax.xlane.f32.xlu1 %v1551_v18 }
 0x2eb   : > { %v1557_v20 = vsel %vm1523_vm7, %v5764_v12, -inf }
 0x2ec   : > { %1558 = vmax.xlane.f32.xlu2 %v1557_v20  ;;  %1564 = vmax.xlane.f32.xlu0 %v1563_v10 }
 0x2f1   : > { %v1518_v26 = vpop.f32.mrf.mxu2 }
 0x2f2   : > { %v5774_v38 = vadd.f32 %v1518_v26, %v387_v16  ;;  %v5788_v16 = vpop.permute.xlu1 %1940 }
 0x2f4   : > { %v1566_v41 = vsel %vm1523_vm7, %v5774_v38, -inf  ;;  %1549 = vmax.xlane.f32.xlu2 %v1548_v56 }
 0x2f5   : > { %1567 = vmax.xlane.f32.xlu0 %v1566_v41 }
 0x2f9   : > { %v1520_v60 = vpop.f32.mrf.mxu2 }
 0x2fa   : > { %v5780_v25 = vadd.f32 %v1520_v60, %v388_v9 }
 0x2fc   : > { %v1569_v54 = vsel %vm1523_vm7, %v5780_v25, -inf }
 0x2fd   : > { %1570 = vmax.xlane.f32.xlu2 %v1569_v54 }
 0x317   : > { %v1526_v11 = vpop.xlane.xlu2 %1525 }
 0x318   : > { %v1572_v14 = vsub.f32 %v5719_v47, %v1526_v11 }
 0x31a   : > { %v1588_v10 = vmul.f32 1.442695, %v1572_v14 }
 0x31c   : > { %4467 = vpow2.f32 %v1588_v10 }
 0x31f   : > { %v1529_v18 = vpop.xlane.xlu1 %1528 }
 0x320   : > { %v1573_v20 = vsub.f32 %v5724_v17, %v1529_v18 }
 0x322   : > { %v5792_v9 = vpop.eup %4467  ;;  %v1590_v26 = vmul.f32 1.442695, %v1573_v20 }
 0x323   : > { %v1620_v56 = vsel %vm1523_vm7, %v5792_v9, 0.0 }
 0x324   : > { %4469 = vpow2.f32 %v1590_v26  ;;  %1621 = vadd.xlane.f32.xlu1 %v1620_v56 }
 0x32a   : > { %v5796_v41 = vpop.eup %4469 }
 0x32b   : > { %v1623_v60 = vsel %vm1523_vm7, %v5796_v41, 0.0 }
 0x32c   : > { %1624 = vadd.xlane.f32.xlu0 %v1623_v60 }
 0x32d   : > { %v1544_v47 = vpop.xlane.xlu1 %1543 }
 0x32e   : > { %v1578_v17 = vsub.f32 %v5728_v23, %v1544_v47 }
 0x330   : > { %v1600_v10 = vmul.f32 1.442695, %v1578_v17 }
 0x33b   : > { %v1538_v54 = vpop.xlane.xlu0 %1537 }
 0x33c   : > { %v1576_v11 = vsub.f32 %v5732_v53, %v1538_v54 }
 0x33e   : > { %v1596_v14 = vmul.f32 1.442695, %v1576_v11 }
 0x340   : > { %4471 = vpow2.f32 %v1596_v14 }
 0x341   : > { %4473 = vpow2.f32 %v1600_v10 }
 0x343   : > { %v1541_v18 = vpop.xlane.xlu2 %1540  ;;  %v1547_v20 = vpop.xlane.xlu0 %1546 }
 0x344   : > { %v1577_v26 = vsub.f32 %v5738_v34, %v1541_v18  ;;  %v1579_v21 = vsub.f32 %v5736_v42, %v1547_v20 }
 0x346   : > { %v5803_v56 = vpop.eup %4471  ;;  %v1598_v22 = vmul.f32 1.442695, %v1577_v26  ;;  %v1602_v53 = vmul.f32 1.442695, %v1579_v21 }
 0x347   : > { %v1632_v60 = vsel %vm1523_vm7, %v5803_v56, 0.0  ;;  %v5808_v47 = vpop.eup %4473 }
 0x348   : > { %4475 = vpow2.f32 %v1598_v22  ;;  %1633 = vadd.xlane.f32.xlu1 %v1632_v60  ;;  %v1638_v42 = vsel %vm1523_vm7, %v5808_v47, 0.0 }
 0x349   : > { %4477 = vpow2.f32 %v1602_v53 }
 0x34b   : > { %v1532_v23 = vpop.xlane.xlu2 %1531 }
 0x34c   : > { %v1574_v54 = vsub.f32 %v5744_v49, %v1532_v23 }
 0x34d   : > { %v1535_v21 = vpop.xlane.xlu1 %1534 }
 0x34e   : > { %v5811_v11 = vpop.eup %4475  ;;  %v1592_v34 = vmul.f32 1.442695, %v1574_v54  ;;  %v1575_v26 = vsub.f32 %v5748_v50, %v1535_v21 }
 0x34f   : > { %v1635_v17 = vsel %vm1523_vm7, %v5811_v11, 0.0  ;;  %v5817_v22 = vpop.eup %4477 }
 0x350   : > { %4479 = vpow2.f32 %v1592_v34  ;;  %1636 = vadd.xlane.f32.xlu0 %v1635_v17  ;;  %1639 = vadd.xlane.f32.xlu1 %v1638_v42  ;;  %v1641_v10 = vsel %vm1523_vm7, %v5817_v22, 0.0  ;;  %v1594_v53 = vmul.f32 1.442695, %v1575_v26 }
 0x355   : > { %v1562_v23 = vpop.xlane.xlu1 %1561 }
 0x356   : > { %v5819_v14 = vpop.eup %4479  ;;  %v1584_v42 = vsub.f32 %v5752_v62, %v1562_v23 }
 0x357   : > { %v1626_v49 = vsel %vm1523_vm7, %v5819_v14, 0.0  ;;  %v1556_v18 = vpop.xlane.xlu0 %1555 }
 0x358   : > { %1627 = vadd.xlane.f32.xlu1 %v1626_v49  ;;  %1642 = vadd.xlane.f32.xlu0 %v1641_v10  ;;  %v1582_v20 = vsub.f32 %v5756_v51, %v1556_v18  ;;  %v1612_v51 = vmul.f32 1.442695, %v1584_v42 }
 0x35a   : > { %v1608_v60 = vmul.f32 1.442695, %v1582_v20 }
 0x35c   : > { %4481 = vpow2.f32 %v1608_v60 }
 0x35d   : > { %4483 = vpow2.f32 %v1594_v53  ;;  %v1553_v18 = vpop.xlane.xlu1 %1552 }
 0x35e   : > { %v1581_v60 = vsub.f32 %v5762_v29, %v1553_v18 }
 0x35f   : > { %v1559_v54 = vpop.xlane.xlu2 %1558  ;;  %v1565_v20 = vpop.xlane.xlu0 %1564 }
 0x360   : > { %v1583_v34 = vsub.f32 %v5764_v12, %v1559_v54  ;;  %v1606_v53 = vmul.f32 1.442695, %v1581_v60 }
 0x362   : > { %v5828_v17 = vpop.eup %4481  ;;  %v1610_v55 = vmul.f32 1.442695, %v1583_v34 }
 0x363   : > { %v1650_v49 = vsel %vm1523_vm7, %v5828_v17, 0.0  ;;  %v5833_v50 = vpop.eup %4483 }
 0x364   : > { %4485 = vpow2.f32 %v1610_v55  ;;  %1651 = vadd.xlane.f32.xlu0 %v1650_v49  ;;  %v1629_v10 = vsel %vm1523_vm7, %v5833_v50, 0.0 }
 0x365   : > { %4487 = vpow2.f32 %v1612_v51 }
 0x366   : > { %4489 = vpow2.f32 %v1606_v53 }
 0x367   : > { %v1550_v26 = vpop.xlane.xlu2 %1549 }
 0x368   : > { %v5854_v23 = vpop.xlane.xlu0 %1567 }
 0x36a   : > { %v5835_v21 = vpop.eup %4485 }
 0x36b   : > { %v1653_v12 = vsel %vm1523_vm7, %v5835_v21, 0.0  ;;  %v5841_v62 = vpop.eup %4487 }
 0x36c   : > { %1654 = vadd.xlane.f32.xlu2 %v1653_v12  ;;  %1630 = vadd.xlane.f32.xlu0 %v1629_v10  ;;  %v1656_v55 = vsel %vm1523_vm7, %v5841_v62, 0.0  ;;  %v5857_v49 = vpop.eup %4489 }
 0x36d   : > { %v1647_v29 = vsel %vm1523_vm7, %v5857_v49, 0.0 }
 0x370   : > { %v1571_v34 = vpop.xlane.xlu2 %1570 }
 0x371   : > { %1990 = vrot.lane.b32.xlu1 %v5596_v24, %s4847_s17  ;;  %v1587_v42 = vsub.f32 %v5780_v25, %v1571_v34  ;;  %v1585_v34 = vsub.f32 %v5760_v59, %v1565_v20 }
 0x373   : > { %v1618_v51 = vmul.f32 1.442695, %v1587_v42 }
 0x374   : > { %1657 = vadd.xlane.f32.xlu0 %v1656_v55  ;;  %v1580_v55 = vsub.f32 %v5772_v13, %v1550_v26 }
 0x376   : > { %v1604_v60 = vmul.f32 1.442695, %v1580_v55 }
 0x379   : > { %2014 = vrot.lane.b32.xlu1 %v5584_v5, %s4847_s17 }
 0x384   : > { %1896 = vrot.lane.b32.xlu2 %v5640_v63, %s4845_s13  ;;  %s4854_s13 = smov 40  }
 0x388   : > { %1966 = vrot.lane.b32.xlu0 %v5558_v46, %s4847_s17 }
 0x397   : > { %v1622_v54 = vpop.xlane.xlu1 %1621 }
 0x398   : > { %4491 = vrcp.f32 %v1622_v54 }
 0x39e   : > { %v4492_v10 = vpop.eup %4491 }
 0x39f   : > { %v1625_v12 = vpop.xlane.xlu0 %1624  ;;  %v1684_v18 = vmul.f32 %v4492_v10, %v5792_v9 }
 0x3a0   : > { %4493 = vrcp.f32 %v1625_v12  ;;  %v1614_v12 = vmul.f32 1.442695, %v1585_v34 }
 0x3a1   : > { %4495 = vpow2.f32 %v1618_v51  ;;  %v1700_v54 = vpack.c.bf16 %v1684_v18, %v1684_v18 }
 0x3a2   : > { %4497 = vpow2.f32 %v1604_v60 }
 0x3a3   : > { %1648 = vadd.xlane.f32.xlu1 %v1647_v29  ;;  %v1718_v13 = vunpack.c.l.b16 %v1700_v54  ;;  %4499 = vpow2.f32 %v1614_v12 }
 0x3a6   : > { %v4494_v53 = vpop.eup %4493 }
 0x3a7   : > { %v1685_v25 = vmul.f32 %v4494_v53, %v5796_v41  ;;  %v5865_v42 = vpop.eup %4495 }
 0x3a8   : > { %v1665_v51 = vsel %vm1523_vm7, %v5865_v42, 0.0  ;;  %v5869_v9 = vpop.eup %4497 }
 0x3a9   : > { %v1701_v48 = vpack.c.bf16 %v1685_v25, %v1685_v25  ;;  %v1644_v59 = vsel %vm1523_vm7, %v5869_v9, 0.0  ;;  %v5875_v41 = vpop.eup %4499 }
 0x3ab   : > { %v1719_v26 = vunpack.c.l.b16 %v1701_v48  ;;  %v1659_v48 = vsel %vm1523_vm7, %v5875_v41, 0.0 }
 0x3ad   : > { %v1720_v32 = vpack.c.b16 %v1719_v26, %v1718_v13  ;;  %1666 = vadd.xlane.f32.xlu2 %v1665_v51 }
 0x3af   : > { %4288 = vmatmul.msk.bf16.vlgmr.msrb.gmra.mxu3 %vm1523_vm7, %v1720_v32 }
 0x3b0   : > { %1884 = vmatpush.bf16.msrb.mxu3 %v5786_v15 }
 0x3b2   : > { %1645 = vadd.xlane.f32.xlu0 %v1644_v59 }
 0x3ba   : > { %1660 = vadd.xlane.f32.xlu0 %v1659_v48 }
 0x3bb   : > { %v1634_v20 = vpop.xlane.xlu1 %1633 }
 0x3bc   : > { %1988 = vrot.lane.b32.xlu1 %v5668_v35, %s4846_s14  ;;  %4501 = vrcp.f32 %v1634_v20 }
 0x3c2   : > { %v4502_v15 = vpop.eup %4501 }
 0x3c3   : > { %v1637_v10 = vpop.xlane.xlu0 %1636  ;;  %v1640_v32 = vpop.xlane.xlu1 %1639  ;;  %v1688_v55 = vmul.f32 %v4502_v15, %v5803_v56 }
 0x3c4   : > { %2062 = vrot.lane.b32.xlu1 %v5620_v19, %s4847_s17  ;;  %4503 = vrcp.f32 %v1637_v10 }
 0x3c5   : > { %1964 = vrot.lane.b32.xlu2 %v5673_v28, %s4846_s14  ;;  %4505 = vrcp.f32 %v1640_v32  ;;  %v1704_v60 = vpack.c.bf16 %v1688_v55, %v1688_v55 }
 0x3c7   : > { %v1768_v34 = vunpack.c.l.b16 %v1704_v60 }
 0x3ca   : > { %v4504_v29 = vpop.eup %4503 }
 0x3cb   : > { %v1643_v18 = vpop.xlane.xlu0 %1642  ;;  %v1689_v53 = vmul.f32 %v4504_v29, %v5811_v11  ;;  %v4506_v54 = vpop.eup %4505  ;;  %v1924_v11 = vsel %vm1278_vm6, %v5699_v40, 0  ;;  %v1948_v40 = vsel %vm1278_vm6, %v5784_v58, 0 }
 0x3cc   : > { %2036 = vrot.lane.b32.xlu1 %v5693_v37, %s4846_s14  ;;  %4507 = vrcp.f32 %v1643_v18  ;;  %v1690_v56 = vmul.f32 %v4506_v54, %v5808_v47  ;;  %v1628_v10 = vpop.xlane.xlu1 %1627  ;;  %v1586_v54 = vsub.f32 %v5774_v38, %v5854_v23 }
 0x3cd   : > { %2060 = vrot.lane.b32.xlu2 %v5695_v4, %s4846_s14  ;;  %v1705_v25 = vpack.c.bf16 %v1689_v53, %v1689_v53 }
 0x3ce   : > { %2012 = vrot.lane.b32.xlu0 %v5691_v27, %s4846_s14  ;;  %v1706_v51 = vpack.c.bf16 %v1690_v56, %v1690_v56 }
 0x3cf   : > { %v1769_v13 = vunpack.c.l.b16 %v1705_v25 }
 0x3d0   : > { %v1793_v20 = vunpack.c.l.b16 %v1706_v51 }
 0x3d1   : > { %v1770_v26 = vpack.c.b16 %v1769_v13, %v1768_v34 }
 0x3d2   : > { %v4508_v12 = vpop.eup %4507 }
 0x3d3   : > { %v1691_v59 = vmul.f32 %v4508_v12, %v5817_v22  ;;  %4290 = vmatmul.msk.bf16.vlgmr.msra.gmra.mxu2 %vm1523_vm7, %v1770_v26 }
 0x3d4   : > { %2305 = vrot.lane.b32.xlu1 %v5546_v6, %s4848_s28  ;;  %1933 = vmatpush.bf16.xpose.msra.mxu2 %v1924_v11  ;;  %v1616_v11 = vmul.f32 1.442695, %v1586_v54 }
 0x3d5   : > { %2084 = vrot.lane.b32.xlu2 %v5708_v31, %s4846_s14  ;;  %v1707_v47 = vpack.c.bf16 %v1691_v59, %v1691_v59  ;;  %s7196_s14 = scalar_lea.vmem %s7284_s8, %s4241_s16 }
 0x3d7   : > { %v1652_v48 = vpop.xlane.xlu0 %1651  ;;  %v1794_v32 = vunpack.c.l.b16 %v1707_v47 }
 0x3d8   : > { %4509 = vrcp.f32 %v1652_v48 }
 0x3d9   : > { %v1795_v15 = vpack.c.b16 %v1794_v32, %v1793_v20  ;;  %4511 = vrcp.f32 %v1628_v10 }
 0x3db   : > { %4291 = vmatmul.msk.bf16.vlgmr.msra.gmra.mxu3 %vm1523_vm7, %v1795_v15 }
 0x3dc   : > { %2330 = vrot.lane.b32.xlu1 %v5580_v39, %s4848_s28  ;;  %1957 = vmatpush.bf16.xpose.msra.mxu3 %v1948_v40 }
 0x3dd   : > { %2405 = vrot.lane.b32.xlu2 %v5584_v5, %s4848_s28 }
 0x3de   : > { %v4510_v29 = vpop.eup %4509 }
 0x3df   : > { %v1655_v22 = vpop.xlane.xlu2 %1654  ;;  %v1631_v55 = vpop.xlane.xlu0 %1630  ;;  %v1694_v60 = vmul.f32 %v4510_v29, %v5828_v17 }
 0x3e0   : > { %4513 = vrcp.f32 %v1655_v22  ;;  %v4512_v18 = vpop.eup %4511 }
 0x3e1   : > { %4515 = vrcp.f32 %v1631_v55  ;;  %v1686_v53 = vmul.f32 %v4512_v18, %v5819_v14  ;;  %v1710_v34 = vpack.c.bf16 %v1694_v60, %v1694_v60 }
 0x3e2   : > { %4517 = vpow2.f32 %v1616_v11 }
 0x3e3   : > { %v1702_v13 = vpack.c.bf16 %v1686_v53, %v1686_v53  ;;  %v1843_v59 = vunpack.c.l.b16 %v1710_v34  ;;  %v1991_v20 = vpop.permute.xlu1 %1990 }
 0x3e4   : > { %v1996_v38 = vsel %vm1278_vm6, %v1991_v20, 0 }
 0x3e5   : > { %v1743_v48 = vunpack.c.l.b16 %v1702_v13 }
 0x3e6   : > { %v4514_v58 = vpop.eup %4513 }
 0x3e7   : > { %v4516_v25 = vpop.eup %4515  ;;  %v1695_v56 = vmul.f32 %v4514_v58, %v5835_v21  ;;  %v1897_v23 = vpop.permute.xlu2 %1896 }
 0x3e8   : > { %v1687_v26 = vmul.f32 %v4516_v25, %v5833_v50  ;;  %v5918_v50 = vpop.eup %4517  ;;  %v1658_v32 = vpop.xlane.xlu0 %1657 }
 0x3e9   : > { %v1711_v12 = vpack.c.bf16 %v1695_v56, %v1695_v56  ;;  %v1662_v21 = vsel %vm1523_vm7, %v5918_v50, 0.0 }
 0x3ea   : > { %v1703_v51 = vpack.c.bf16 %v1687_v26, %v1687_v26 }
 0x3eb   : > { %v1844_v47 = vunpack.c.l.b16 %v1711_v12  ;;  %v2015_v15 = vpop.permute.xlu1 %2014 }
 0x3ec   : > { %v1744_v17 = vunpack.c.l.b16 %v1703_v51 }
 0x3ed   : > { %v1845_v14 = vpack.c.b16 %v1844_v47, %v1843_v59 }
 0x3ee   : > { %v1745_v10 = vpack.c.b16 %v1744_v17, %v1743_v48 }
 0x3ef   : > { %4293 = vmatmul.msk.bf16.vlgmr.msrb.gmra.mxu2 %vm1523_vm7, %v1845_v14 }
 0x3f0   : > { %4289 = vmatmul.msk.bf16.vlgmr.msra.gmra.mxu1 %vm1523_vm7, %v1745_v10  ;;  %2005 = vmatpush.bf16.xpose.msrb.mxu2 %v1996_v38 }
 0x3f1   : > { %1909 = vmatpush.bf16.msra.mxu1 %v1897_v23  ;;  %v2020_v23 = vsel %vm1278_vm6, %v2015_v15, 0 }
 0x3f8   : > { %1663 = vadd.xlane.f32.xlu0 %v1662_v21 }
 0x3fa   : > { %v1967_v40 = vpop.permute.xlu0 %1966 }
 0x3fb   : > { %v1972_v48 = vsel %vm1278_vm6, %v1967_v40, 0 }
 0x3ff   : > { %4296 = vmatmul.msk.bf16.vlgmr.msra.gmra.mxu2 %vm1278_vm6, %v5679_v2 }
 0x40c   : > { %2038 = vrot.lane.b32.xlu0 %v5618_v0, %s4847_s17 }
 0x414   : > { %2086 = vrot.lane.b32.xlu0 %v5640_v63, %s4847_s17 }
 0x416   : > { %v1649_v22 = vpop.xlane.xlu1 %1648 }
 0x417   : > { %4519 = vrcp.f32 %v1649_v22 }
 0x41c   : > { %2355 = vrot.lane.b32.xlu0 %v5558_v46, %s4848_s28 }
 0x41d   : > { %v4520_v18 = vpop.eup %4519 }
 0x41e   : > { %v1693_v2 = vmul.f32 %v4520_v18, %v5857_v49 }
 0x420   : > { %v1667_v55 = vpop.xlane.xlu2 %1666  ;;  %v1709_v58 = vpack.c.bf16 %v1693_v2, %v1693_v2 }
 0x422   : > { %v1819_v12 = vunpack.c.l.b16 %v1709_v58 }
 0x425   : > { %v1646_v29 = vpop.xlane.xlu0 %1645 }
 0x426   : > { %4521 = vrcp.f32 %v1646_v29 }
 0x427   : > { %4523 = vrcp.f32 %v1658_v32 }
 0x428   : > { %v5931_v60 = vpop.permute.xlu2 %1964 }
 0x42c   : > { %v4522_v53 = vpop.eup %4521 }
 0x42d   : > { %v1692_v54 = vmul.f32 %v4522_v53, %v5869_v9  ;;  %v1661_v25 = vpop.xlane.xlu0 %1660  ;;  %v4524_v34 = vpop.eup %4523 }
 0x42e   : > { %v1989_v56 = vpop.permute.xlu1 %1988  ;;  %4525 = vrcp.f32 %v1661_v25  ;;  %v1696_v26 = vmul.f32 %v4524_v34, %v5841_v62 }
 0x42f   : > { %v1708_v13 = vpack.c.bf16 %v1692_v54, %v1692_v54  ;;  %4299 = vmatmul.msk.bf16.vlgmr.msrb.gmra.mxu2 %vm1278_vm6, %v1989_v56  ;;  %4527 = vrcp.f32 %v1667_v55 }
 0x430   : > { %v2061_v59 = vpop.permute.xlu2 %2060  ;;  %v1712_v47 = vpack.c.bf16 %v1696_v26, %v1696_v26 }
 0x431   : > { %v1818_v11 = vunpack.c.l.b16 %v1708_v13 }
 0x432   : > { %v1868_v10 = vunpack.c.l.b16 %v1712_v47 }
 0x433   : > { %v1820_v51 = vpack.c.b16 %v1819_v12, %v1818_v11 }
 0x434   : > { %v4526_v49 = vpop.eup %4525 }
 0x435   : > { %v1697_v17 = vmul.f32 %v4526_v49, %v5875_v41  ;;  %4292 = vmatmul.msk.bf16.vlgmr.msrb.gmra.mxu1 %vm1523_vm7, %v1820_v51  ;;  %v4528_v2 = vpop.eup %4527  ;;  %v5959_v51 = vld [vmem:[%s5716_s22 + $0x10] sm:$0xff] }
 0x436   : > { %v2063_v9 = vpop.permute.xlu1 %2062  ;;  %1981 = vmatpush.bf16.xpose.msrb.mxu1 %v1972_v48  ;;  %v1699_v53 = vmul.f32 %v4528_v2, %v5865_v42 }
 0x437   : > { %v1713_v20 = vpack.c.bf16 %v1697_v17, %v1697_v17  ;;  %v2068_v14 = vsel %vm1278_vm6, %v2063_v9, 0  ;;  %v5971_v9 = vpop.f32.mrf.mxu3 }
 0x438   : > { %2077 = vmatpush.bf16.xpose.msra.mxu2 %v2068_v14  ;;  %v2085_v21 = vpop.permute.xlu2 %2084  ;;  %v1715_v25 = vpack.c.bf16 %v1699_v53, %v1699_v53  ;;  %7329 = vst [vmem:[#allocation13_spill] sm:$0xff] %v5971_v9 }
 0x439   : > { %v1869_v62 = vunpack.c.l.b16 %v1713_v20 }
 0x43a   : > { %v1894_v56 = vunpack.c.l.b16 %v1715_v25 }
 0x43b   : > { %v1870_v38 = vpack.c.b16 %v1869_v62, %v1868_v10 }
 0x43d   : > { %4294 = vmatmul.msk.bf16.vlgmr.msrb.gmra.mxu3 %vm1523_vm7, %v1870_v38 }
 0x43e   : > { %v2037_v32 = vpop.permute.xlu1 %2036  ;;  %2029 = vmatpush.bf16.xpose.msrb.mxu3 %v2020_v23 }
 0x43f   : > { %4302 = vmatmul.msk.bf16.vlgmr.msra.gmra.mxu2 %vm1278_vm6, %v2061_v59  ;;  %v5973_v20 = vpop.f32.mrf.mxu3 }
 0x440   : > { %v2406_v40 = vpop.permute.xlu2 %2405  ;;  %v2013_v22 = vpop.permute.xlu0 %2012  ;;  %7330 = vst [vmem:[#allocation14_spill] sm:$0xff] %v5973_v20 }
 0x446   : > { %v2306_v41 = vpop.permute.xlu1 %2305 }
 0x447   : > { %2318 = vmatpush.bf16.msrb.mxu0 %v2306_v41 }
 0x44b   : > { %2418 = vmatpush.bf16.msra.mxu0 %v2406_v40  ;;  %v5991_v40 = vld [vmem:[%s5716_s22 + $0x18] sm:$0xff] }
 0x44d   : > { %4297 = vmatmul.msk.bf16.vlgmr.msra.gmra.mxu3 %vm1278_vm6, %v5788_v16 }
 0x44e   : > { %v2331_v48 = vpop.permute.xlu1 %2330 }
 0x456   : > { %v5946_v29 = vpop.f32.mrf.mxu2 }
 0x457   : > { %7325 = vst [vmem:[#allocation9_spill] sm:$0xff] %v5946_v29 }
 0x45d   : > { %4300 = vmatmul.msk.bf16.vlgmr.msrb.gmra.mxu3 %vm1278_vm6, %v2013_v22 }
 0x45e   : > { %v5948_v15 = vpop.f32.mrf.mxu2  ;;  %v5975_v14 = vpop.f32.mrf.mxu3 }
 0x45f   : > { %7326 = vst [vmem:[#allocation10_spill] sm:$0xff] %v5948_v15 }
 0x460   : > { %7331 = vst [vmem:[#allocation15_spill] sm:$0xff] %v5975_v14 }
 0x466   : > { %v5977_v10 = vpop.f32.mrf.mxu3 }
 0x467   : > { %7332 = vst [vmem:[#allocation16_spill] sm:$0xff] %v5977_v10 }
 0x46b   : > { %v1664_v18 = vpop.xlane.xlu0 %1663 }
 0x46c   : > { %4529 = vrcp.f32 %v1664_v18 }
 0x472   : > { %v4530_v58 = vpop.eup %4529  ;;  %v5951_v54 = vpop.f32.mrf.mxu2 }
 0x473   : > { %7327 = vst [vmem:[#allocation11_spill] sm:$0xff] %v5951_v54  ;;  %v1698_v16 = vmul.f32 %v4530_v58, %v5918_v50 }
 0x475   : > { %v1714_v34 = vpack.c.bf16 %v1698_v16, %v1698_v16 }
 0x477   : > { %v1893_v13 = vunpack.c.l.b16 %v1714_v34 }
 0x479   : > { %v1895_v26 = vpack.c.b16 %v1894_v56, %v1893_v13 }
 0x47a   : > { %v5954_v12 = vpop.f32.mrf.mxu2 }
 0x47b   : > { %7328 = vst [vmem:[#allocation12_spill] sm:$0xff] %v5954_v12  ;;  %4295 = vmatmul.msk.bf16.vlgmr.msra.gmra.mxu1 %vm1523_vm7, %v1895_v26 }
 0x47e   : > { %v2039_v55 = vpop.permute.xlu0 %2038 }
 0x47f   : > { %v2044_v11 = vsel %vm1278_vm6, %v2039_v55, 0 }
 0x480   : > { %2053 = vmatpush.bf16.xpose.msra.mxu1 %v2044_v11 }
 0x482   : > { %v1935_v42 = vpop.f32.mrf.mxu2 }
 0x483   : > { %v5962_v59 = vadd.f32 %v1935_v42, %v5959_v51 }
 0x485   : > { %v2108_v50 = vsel %vm1523_vm7, %v5962_v59, -inf }
 0x486   : > { %2109 = vmax.xlane.f32.xlu1 %v2108_v50  ;;  %v2087_v49 = vpop.permute.xlu0 %2086 }
 0x487   : > { %v2092_v47 = vsel %vm1278_vm6, %v2087_v49, 0 }
 0x488   : > { %2101 = vmatpush.bf16.xpose.msra.mxu3 %v2092_v47 }
 0x48b   : > { %4298 = vmatmul.msk.bf16.vlgmr.msrb.gmra.mxu1 %vm1278_vm6, %v5931_v60  ;;  %v1937_v60 = vpop.f32.mrf.mxu2 }
 0x48c   : > { %2343 = vmatpush.bf16.msrb.mxu1 %v2331_v48  ;;  %v5994_v22 = vadd.f32 %v1937_v60, %v5991_v40 }
 0x48e   : > { %v2356_v17 = vpop.permute.xlu0 %2355  ;;  %v2111_v25 = vsel %vm1523_vm7, %v5994_v22, -inf }
 0x48f   : > { %4303 = vmatmul.msk.bf16.vlgmr.msra.gmra.mxu3 %vm1278_vm6, %v2085_v21  ;;  %2368 = vmatpush.bf16.msrb.mxu2 %v2356_v17 }
 0x49b   : > { %4301 = vmatmul.msk.bf16.vlgmr.msra.gmra.mxu1 %vm1278_vm6, %v2037_v32  ;;  %v5988_v32 = vpop.f32.mrf.mxu1 }
 0x49c   : > { %7335 = vst [vmem:[#allocation19_spill] sm:$0xff] %v5988_v32 }
 0x4a3   : > { %v6003_v16 = vpop.f32.mrf.mxu1 }
 0x4a4   : > { %7336 = vst [vmem:[#allocation20_spill] sm:$0xff] %v6003_v16 }
 0x4b2   : > { %v2007_v18 = vpop.f32.mrf.mxu2  ;;  %v6015_v42 = vpop.f32.mrf.mxu1 }
 0x4b3   : > { %v6006_v34 = vadd.f32 %v2007_v18, %v5959_v51  ;;  %7337 = vst [vmem:[#allocation21_spill] sm:$0xff] %v6015_v42 }
 0x4b5   : > { %v2126_v55 = vsel %vm1523_vm7, %v6006_v34, -inf }
 0x4ba   : > { %v2009_v26 = vpop.f32.mrf.mxu2 }
 0x4bb   : > { %v6018_v50 = vadd.f32 %v2009_v26, %v5991_v40 }
 0x4bd   : > { %v2129_v17 = vsel %vm1523_vm7, %v6018_v50, -inf }
 0x4c0   : > { %v5979_v62 = vpop.f32.mrf.mxu3 }
 0x4c1   : > { %7333 = vst [vmem:[#allocation17_spill] sm:$0xff] %v5979_v62 }
 0x4c2   : > { %v2079_v60 = vpop.f32.mrf.mxu2 }
 0x4c8   : > { %v5981_v38 = vpop.f32.mrf.mxu3 }
 0x4c9   : > { %7334 = vst [vmem:[#allocation18_spill] sm:$0xff] %v5981_v38 }
 0x4d0   : > { %v1959_v23 = vpop.f32.mrf.mxu3 }
 0x4d1   : > { %v5984_v41 = vadd.f32 %v1959_v23, %v5959_v51  ;;  %v6028_v23 = vadd.f32 %v2079_v60, %v5959_v51 }
 0x4d3   : > { %v2114_v21 = vsel %vm1523_vm7, %v5984_v41, -inf  ;;  %v2144_v18 = vsel %vm1523_vm7, %v6028_v23, -inf }
 0x4d4   : > { %2115 = vmax.xlane.f32.xlu0 %v2114_v21  ;;  %v6030_v21 = vpop.f32.mrf.mxu1 }
 0x4d5   : > { %7338 = vst [vmem:[#allocation22_spill] sm:$0xff] %v6030_v21 }
 0x4d8   : > { %v1961_v2 = vpop.f32.mrf.mxu3 }
 0x4d9   : > { %v5997_v53 = vadd.f32 %v1961_v2, %v5991_v40 }
 0x4db   : > { %v2117_v58 = vsel %vm1523_vm7, %v5997_v53, -inf }
 0x4dc   : > { %2118 = vmax.xlane.f32.xlu2 %v2117_v58  ;;  %2112 = vmax.xlane.f32.xlu0 %v2111_v25 }
 0x4e0   : > { %v2031_v56 = vpop.f32.mrf.mxu3 }
 0x4e1   : > { %v6009_v13 = vadd.f32 %v2031_v56, %v5959_v51 }
 0x4e3   : > { %v2132_v11 = vsel %vm1523_vm7, %v6009_v13, -inf }
 0x4e4   : > { %2127 = vmax.xlane.f32.xlu2 %v2126_v55  ;;  %2133 = vmax.xlane.f32.xlu1 %v2132_v11 }
 0x4e8   : > { %v2033_v49 = vpop.f32.mrf.mxu3 }
 0x4e9   : > { %v6021_v47 = vadd.f32 %v2033_v49, %v5991_v40 }
 0x4eb   : > { %v2135_v48 = vsel %vm1523_vm7, %v6021_v47, -inf }
 0x4ec   : > { %2136 = vmax.xlane.f32.xlu0 %v2135_v48  ;;  %2130 = vmax.xlane.f32.xlu1 %v2129_v17 }
 0x4f4   : > { %2145 = vmax.xlane.f32.xlu0 %v2144_v18 }
 0x4f8   : > { %v6034_v2 = vpop.f32.mrf.mxu1 }
 0x4f9   : > { %7339 = vst [vmem:[#allocation23_spill] sm:$0xff] %v6034_v2  ;;  %v2110_v2 = vpop.xlane.xlu1 %2109 }
 0x4fa   : > { %v2156_v42 = vsub.f32 %v5962_v59, %v2110_v2 }
 0x4fc   : > { %v2172_v10 = vmul.f32 1.442695, %v2156_v42 }
 0x500   : > { %v6036_v58 = vpop.f32.mrf.mxu1 }
 0x501   : > { %7340 = vst [vmem:[#allocation24_spill] sm:$0xff] %v6036_v58  ;;  %v2081_v58 = vpop.f32.mrf.mxu2 }
 0x502   : > { %v6080_v54 = vadd.f32 %v2081_v58, %v5991_v40 }
 0x508   : > { %2455 = vrot.lane.b32.xlu0 %v5620_v19, %s4848_s28  ;;  %v1983_v25 = vpop.f32.mrf.mxu1 }
 0x509   : > { %v6041_v56 = vadd.f32 %v1983_v25, %v5959_v51 }
 0x50b   : > { %v2120_v26 = vsel %vm1523_vm7, %v6041_v56, -inf }
 0x50c   : > { %2121 = vmax.xlane.f32.xlu2 %v2120_v26 }
 0x510   : > { %2430 = vrot.lane.b32.xlu0 %v5618_v0, %s4848_s28  ;;  %v1985_v55 = vpop.f32.mrf.mxu1 }
 0x511   : > { %v6048_v11 = vadd.f32 %v1985_v55, %v5991_v40 }
 0x512   : > { %v2103_v25 = vpop.f32.mrf.mxu3 }
 0x513   : > { %v2123_v49 = vsel %vm1523_vm7, %v6048_v11, -inf  ;;  %v6074_v55 = vadd.f32 %v2103_v25, %v5959_v51 }
 0x514   : > { %2124 = vmax.xlane.f32.xlu1 %v2123_v49 }
 0x518   : > { %2500 = vrot.lane.b32.xlu0 %v5600_v45, %s4849_s23  ;;  %v2055_v48 = vpop.f32.mrf.mxu1 }
 0x519   : > { %v6055_v17 = vadd.f32 %v2055_v48, %v5959_v51 }
 0x51a   : > { %v2105_v62 = vpop.f32.mrf.mxu3 }
 0x51b   : > { %v2138_v60 = vsel %vm1523_vm7, %v6055_v17, -inf  ;;  %v6085_v25 = vadd.f32 %v2105_v62, %v5991_v40 }
 0x51c   : > { %2139 = vmax.xlane.f32.xlu1 %v2138_v60  ;;  %v2150_v60 = vsel %vm1523_vm7, %v6074_v55, -inf }
 0x520   : > { %2550 = vrot.lane.b32.xlu0 %v5558_v46, %s4850_s24 }
 0x524   : > { %2380 = vrot.lane.b32.xlu2 %v5596_v24, %s4848_s28 }
 0x528   : > { %2526 = vrot.lane.b32.xlu0 %v5580_v39, %s4850_s24 }
 0x52c   : > { %2548 = vrot.lane.b32.xlu2 %v5673_v28, %s4849_s23 }
 0x530   : > { %2598 = vrot.lane.b32.xlu0 %v5584_v5, %s4850_s24 }
 0x535   : > { %2502 = vrot.lane.b32.xlu1 %v5546_v6, %s4850_s24 }
 0x538   : > { %2480 = vrot.lane.b32.xlu0 %v5640_v63, %s4848_s28 }
 0x547   : > { %v2116_v18 = vpop.xlane.xlu0 %2115 }
 0x548   : > { %v2158_v62 = vsub.f32 %v5984_v41, %v2116_v18 }
 0x54f   : > { %v2119_v26 = vpop.xlane.xlu2 %2118  ;;  %v2113_v49 = vpop.xlane.xlu0 %2112 }
 0x550   : > { %v2157_v48 = vsub.f32 %v5994_v22, %v2113_v49  ;;  %v2057_v22 = vpop.f32.mrf.mxu1  ;;  %v2159_v21 = vsub.f32 %v5997_v53, %v2119_v26 }
 0x552   : > { %v2174_v38 = vmul.f32 1.442695, %v2157_v48  ;;  %v2147_v48 = vsel %vm1523_vm7, %v6080_v54, -inf  ;;  %v2178_v59 = vmul.f32 1.442695, %v2159_v21 }
 0x554   : > { %4531 = vpow2.f32 %v2174_v38 }
 0x555   : > { %2151 = vmax.xlane.f32.xlu2 %v2150_v60  ;;  %v6091_v60 = vadd.f32 %v2057_v22, %v5991_v40  ;;  %v2176_v40 = vmul.f32 1.442695, %v2158_v62 }
 0x557   : > { %v2128_v12 = vpop.xlane.xlu2 %2127  ;;  %v2141_v38 = vsel %vm1523_vm7, %v6091_v60, -inf }
 0x558   : > { %v2162_v51 = vsub.f32 %v6006_v34, %v2128_v12  ;;  %v2153_v12 = vsel %vm1523_vm7, %v6085_v25, -inf }
 0x55a   : > { %v2184_v49 = vmul.f32 1.442695, %v2162_v51  ;;  %v6096_v34 = vpop.eup %4531 }
 0x55b   : > { %v2207_v42 = vsel %vm1523_vm7, %v6096_v34, 0.0 }
 0x55c   : > { %4533 = vpow2.f32 %v2184_v49  ;;  %v2134_v49 = vpop.xlane.xlu1 %2133 }
 0x55d   : > { %2148 = vmax.xlane.f32.xlu2 %v2147_v48  ;;  %4535 = vpow2.f32 %v2172_v10 }
 0x55e   : > { %4537 = vpow2.f32 %v2178_v59 }
 0x55f   : > { %2154 = vmax.xlane.f32.xlu1 %v2153_v12  ;;  %4539 = vpow2.f32 %v2176_v40  ;;  %v2137_v41 = vpop.xlane.xlu0 %2136 }
 0x562   : > { %2142 = vmax.xlane.f32.xlu0 %v2141_v38  ;;  %v6100_v53 = vpop.eup %4533  ;;  %v2164_v38 = vsub.f32 %v6009_v13, %v2134_v49  ;;  %v2165_v13 = vsub.f32 %v6021_v47, %v2137_v41 }
 0x563   : > { %v6104_v2 = vpop.eup %4535  ;;  %v2222_v10 = vsel %vm1523_vm7, %v6100_v53, 0.0 }
 0x564   : > { %v6108_v21 = vpop.eup %4537  ;;  %v2204_v58 = vsel %vm1523_vm7, %v6104_v2, 0.0  ;;  %v2131_v12 = vpop.xlane.xlu1 %2130 }
 0x565   : > { %2208 = vadd.xlane.f32.xlu2 %v2207_v42  ;;  %v2213_v18 = vsel %vm1523_vm7, %v6108_v21, 0.0  ;;  %v6114_v26 = vpop.eup %4539 }
 0x566   : > { %v2210_v51 = vsel %vm1523_vm7, %v6114_v26, 0.0 }
 0x567   : > { %2223 = vadd.xlane.f32.xlu1 %v2222_v10  ;;  %v2146_v22 = vpop.xlane.xlu0 %2145  ;;  %v2188_v10 = vmul.f32 1.442695, %v2164_v38 }
 0x568   : > { %v2168_v47 = vsub.f32 %v6028_v23, %v2146_v22 }
 0x56a   : > { %2205 = vadd.xlane.f32.xlu0 %v2204_v58 }
 0x56d   : > { %2214 = vadd.xlane.f32.xlu2 %v2213_v18 }
 0x572   : > { %2211 = vadd.xlane.f32.xlu0 %v2210_v51 }
 0x57a   : > { %v2456_v48 = vpop.permute.xlu0 %2455 }
 0x57b   : > { %2468 = vmatpush.bf16.msra.mxu2 %v2456_v48  ;;  %v2163_v48 = vsub.f32 %v6018_v50, %v2131_v12  ;;  %v2196_v12 = vmul.f32 1.442695, %v2168_v47 }
 0x57d   : > { %v2186_v49 = vmul.f32 1.442695, %v2163_v48 }
 0x57f   : > { %v2122_v59 = vpop.xlane.xlu2 %2121 }
 0x580   : > { %v2160_v62 = vsub.f32 %v6041_v56, %v2122_v59  ;;  %v2190_v59 = vmul.f32 1.442695, %v2165_v13 }
 0x582   : > { %v2180_v40 = vmul.f32 1.442695, %v2160_v62  ;;  %v2431_v42 = vpop.permute.xlu0 %2430 }
 0x583   : > { %2443 = vmatpush.bf16.msra.mxu1 %v2431_v42 }
 0x584   : > { %4541 = vpow2.f32 %v2180_v40 }
 0x585   : > { %4543 = vpow2.f32 %v2188_v10 }
 0x587   : > { %v2125_v58 = vpop.xlane.xlu1 %2124  ;;  %v2381_v18 = vpop.permute.xlu2 %2380 }
 0x588   : > { %v2161_v14 = vsub.f32 %v6048_v11, %v2125_v58  ;;  %2393 = vmatpush.bf16.msrb.mxu3 %v2381_v18 }
 0x58a   : > { %v6121_v51 = vpop.eup %4541  ;;  %v2182_v29 = vmul.f32 1.442695, %v2161_v14  ;;  %v6124_v15 = vpop.permute.xlu0 %2500 }
 0x58b   : > { %v2216_v56 = vsel %vm1523_vm7, %v6121_v51, 0.0  ;;  %v6129_v11 = vpop.eup %4543 }
 0x58c   : > { %4545 = vpow2.f32 %v2182_v29  ;;  %2217 = vadd.xlane.f32.xlu0 %v2216_v56  ;;  %v2228_v29 = vsel %vm1523_vm7, %v6129_v11, 0.0 }
 0x58d   : > { %4547 = vpow2.f32 %v2186_v49 }
 0x58e   : > { %4549 = vpow2.f32 %v2190_v59 }
 0x58f   : > { %v2140_v62 = vpop.xlane.xlu1 %2139  ;;  %v6167_v59 = vpop.permute.xlu2 %2548 }
 0x590   : > { %v2166_v38 = vsub.f32 %v6055_v17, %v2140_v62 }
 0x592   : > { %v6132_v40 = vpop.eup %4545  ;;  %v2192_v14 = vmul.f32 1.442695, %v2166_v38  ;;  %v6134_v50 = vpop.permute.xlu0 %2550 }
 0x593   : > { %v2219_v41 = vsel %vm1523_vm7, %v6132_v40, 0.0  ;;  %v6141_v17 = vpop.eup %4547 }
 0x594   : > { %4551 = vpow2.f32 %v2192_v14  ;;  %2229 = vadd.xlane.f32.xlu0 %v2228_v29  ;;  %2220 = vadd.xlane.f32.xlu2 %v2219_v41  ;;  %v6143_v42 = vpop.eup %4549  ;;  %v2225_v22 = vsel %vm1523_vm7, %v6141_v17, 0.0 }
 0x595   : > { %4553 = vpow2.f32 %v2196_v12  ;;  %v2231_v18 = vsel %vm1523_vm7, %v6143_v42, 0.0 }
 0x59a   : > { %v6145_v10 = vpop.eup %4551  ;;  %v6147_v58 = vpop.permute.xlu0 %2526 }
 0x59b   : > { %v2234_v23 = vsel %vm1523_vm7, %v6145_v10, 0.0  ;;  %v6155_v48 = vpop.eup %4553 }
 0x59c   : > { %2235 = vadd.xlane.f32.xlu1 %v2234_v23  ;;  %2226 = vadd.xlane.f32.xlu0 %v2225_v22  ;;  %v2240_v56 = vsel %vm1523_vm7, %v6155_v48, 0.0 }
 0x59d   : > { %2232 = vadd.xlane.f32.xlu2 %v2231_v18 }
 0x5a2   : > { %v6157_v13 = vpop.permute.xlu0 %2598 }
 0x5a5   : > { %2241 = vadd.xlane.f32.xlu2 %v2240_v56 }
 0x5a7   : > { %v2503_v14 = vpop.permute.xlu1 %2502 }
 0x5aa   : > { %v2481_v49 = vpop.permute.xlu0 %2480 }
 0x5ab   : > { %2493 = vmatpush.bf16.msra.mxu3 %v2481_v49 }
 0x5b0   : > { %2596 = vrot.lane.b32.xlu0 %v5691_v27, %s4849_s23 }
 0x5b8   : > { %2574 = vrot.lane.b32.xlu0 %v5596_v24, %s4850_s24 }
 0x5bd   : > { %2622 = vrot.lane.b32.xlu2 %v5618_v0, %s4850_s24 }
 0x5c8   : > { %v2152_v62 = vpop.xlane.xlu2 %2151 }
 0x5c9   : > { %v2170_v38 = vsub.f32 %v6074_v55, %v2152_v62 }
 0x5cb   : > { %v2200_v47 = vmul.f32 1.442695, %v2170_v38 }
 0x5cd   : > { %4555 = vpow2.f32 %v2200_v47 }
 0x5d0   : > { %v2149_v29 = vpop.xlane.xlu2 %2148 }
 0x5d1   : > { %v2169_v41 = vsub.f32 %v6080_v54, %v2149_v29 }
 0x5d2   : > { %v2155_v12 = vpop.xlane.xlu1 %2154 }
 0x5d3   : > { %v6171_v23 = vpop.eup %4555  ;;  %v2198_v22 = vmul.f32 1.442695, %v2169_v41  ;;  %v2171_v18 = vsub.f32 %v6085_v25, %v2155_v12 }
 0x5d4   : > { %v2246_v56 = vsel %vm1523_vm7, %v6171_v23, 0.0 }
 0x5d5   : > { %4557 = vpow2.f32 %v2198_v22  ;;  %2247 = vadd.xlane.f32.xlu1 %v2246_v56  ;;  %v2143_v49 = vpop.xlane.xlu0 %2142  ;;  %v2202_v62 = vmul.f32 1.442695, %v2171_v18 }
 0x5d6   : > { %v2167_v55 = vsub.f32 %v6091_v60, %v2143_v49 }
 0x5d8   : > { %v2194_v38 = vmul.f32 1.442695, %v2167_v55  ;;  %v2209_v47 = vpop.xlane.xlu2 %2208 }
 0x5d9   : > { %4559 = vrcp.f32 %v2209_v47 }
 0x5da   : > { %4561 = vpow2.f32 %v2194_v38 }
 0x5db   : > { %v6177_v54 = vpop.eup %4557  ;;  %4563 = vpow2.f32 %v2202_v62 }
 0x5dc   : > { %v2243_v29 = vsel %vm1523_vm7, %v6177_v54, 0.0 }
 0x5dd   : > { %2244 = vadd.xlane.f32.xlu1 %v2243_v29  ;;  %v2206_v25 = vpop.xlane.xlu0 %2205 }
 0x5de   : > { %4565 = vrcp.f32 %v2206_v25 }
 0x5df   : > { %v4560_v41 = vpop.eup %4559 }
 0x5e0   : > { %v6181_v12 = vpop.eup %4561  ;;  %v2215_v22 = vpop.xlane.xlu2 %2214  ;;  %v2269_v60 = vmul.f32 %v4560_v41, %v6096_v34 }
 0x5e1   : > { %4567 = vrcp.f32 %v2215_v22  ;;  %v2237_v18 = vsel %vm1523_vm7, %v6181_v12, 0.0  ;;  %v6186_v56 = vpop.eup %4563 }
 0x5e2   : > { %2238 = vadd.xlane.f32.xlu0 %v2237_v18  ;;  %v2285_v55 = vpack.c.bf16 %v2269_v60, %v2269_v60  ;;  %v2249_v38 = vsel %vm1523_vm7, %v6186_v56, 0.0  ;;  %v2508_v18 = vsel %vm1278_vm6, %v2503_v14, 0 }
 0x5e4   : > { %v4566_v49 = vpop.eup %4565  ;;  %v2303_v22 = vunpack.c.l.b16 %v2285_v55 }
 0x5e5   : > { %v2268_v62 = vmul.f32 %v4566_v49, %v6104_v2  ;;  %v2212_v47 = vpop.xlane.xlu0 %2211 }
 0x5e6   : > { %2250 = vadd.xlane.f32.xlu2 %v2249_v38  ;;  %4569 = vrcp.f32 %v2212_v47 }
 0x5e7   : > { %v4568_v29 = vpop.eup %4567  ;;  %v2284_v25 = vpack.c.bf16 %v2268_v62, %v2268_v62  ;;  %v2532_v62 = vsel %vm1278_vm6, %v6147_v58, 0 }
 0x5e8   : > { %v2271_v34 = vmul.f32 %v4568_v29, %v6108_v21 }
 0x5e9   : > { %v2302_v41 = vunpack.c.l.b16 %v2284_v25 }
 0x5ea   : > { %v2287_v20 = vpack.c.bf16 %v2271_v34, %v2271_v34 }
 0x5eb   : > { %v2304_v16 = vpack.c.b16 %v2303_v22, %v2302_v41 }
 0x5ec   : > { %v4570_v32 = vpop.eup %4569  ;;  %v2328_v49 = vunpack.c.l.b16 %v2287_v20 }
 0x5ed   : > { %v2270_v60 = vmul.f32 %v4570_v32, %v6114_v26  ;;  %4304 = vmatmul.msk.bf16.vlgmr.msrb.gmra.mxu0 %vm1523_vm7, %v2304_v16  ;;  %v2224_v26 = vpop.xlane.xlu1 %2223 }
 0x5ee   : > { %2517 = vmatpush.bf16.xpose.msrb.mxu0 %v2508_v18 }
 0x5ef   : > { %v2286_v2 = vpack.c.bf16 %v2270_v60, %v2270_v60 }
 0x5f1   : > { %v2327_v38 = vunpack.c.l.b16 %v2286_v2 }
 0x5f3   : > { %v2329_v47 = vpack.c.b16 %v2328_v49, %v2327_v38 }
 0x5f5   : > { %4305 = vmatmul.msk.bf16.vlgmr.msrb.gmra.mxu1 %vm1523_vm7, %v2329_v47  ;;  %v2556_v47 = vsel %vm1278_vm6, %v6134_v50, 0  ;;  %v2604_v50 = vsel %vm1278_vm6, %v6157_v13, 0 }
 0x5f6   : > { %2541 = vmatpush.bf16.xpose.msrb.mxu1 %v2532_v62  ;;  %2524 = vrot.lane.b32.xlu1 %v5656_v57, %s4849_s23 }
 0x5f7   : > { %2646 = vrot.lane.b32.xlu0 %v5620_v19, %s4850_s24 }
 0x5fe   : > { %2620 = vrot.lane.b32.xlu2 %v5693_v37, %s4849_s23  ;;  %2572 = vrot.lane.b32.xlu1 %v5668_v35, %s4849_s23 }
 0x5ff   : > { %2644 = vrot.lane.b32.xlu0 %v5695_v4, %s4849_s23  ;;  %v2218_v20 = vpop.xlane.xlu0 %2217 }
 0x600   : > { %4571 = vrcp.f32 %v2218_v20 }
 0x606   : > { %2889 = vrot.lane.b32.xlu2 %v5546_v6, %s4851_s25  ;;  %2670 = vrot.lane.b32.xlu1 %v5640_v63, %s4850_s24  ;;  %v4572_v21 = vpop.eup %4571 }
 0x607   : > { %2668 = vrot.lane.b32.xlu0 %v5708_v31, %s4849_s23  ;;  %v2221_v32 = vpop.xlane.xlu2 %2220  ;;  %v2230_v16 = vpop.xlane.xlu0 %2229  ;;  %v2272_v58 = vmul.f32 %v4572_v21, %v6121_v51 }
 0x608   : > { %4573 = vrcp.f32 %v2221_v32 }
 0x609   : > { %4575 = vrcp.f32 %v2230_v16  ;;  %v2288_v55 = vpack.c.bf16 %v2272_v58, %v2272_v58 }
 0x60a   : > { %4577 = vrcp.f32 %v2224_v26 }
 0x60b   : > { %v2352_v18 = vunpack.c.l.b16 %v2288_v55 }
 0x60e   : > { %v4574_v14 = vpop.eup %4573  ;;  %2914 = vrot.lane.b32.xlu2 %v5580_v39, %s4851_s25  ;;  %2989 = vrot.lane.b32.xlu1 %v5584_v5, %s4851_s25 }
 0x60f   : > { %v2273_v29 = vmul.f32 %v4574_v14, %v6132_v40  ;;  %2939 = vrot.lane.b32.xlu0 %v5558_v46, %s4851_s25  ;;  %v2227_v25 = vpop.xlane.xlu0 %2226  ;;  %v4576_v41 = vpop.eup %4575 }
 0x610   : > { %v2233_v34 = vpop.xlane.xlu2 %2232  ;;  %v4578_v51 = vpop.eup %4577  ;;  %v2276_v2 = vmul.f32 %v4576_v41, %v6129_v11 }
 0x611   : > { %v2289_v22 = vpack.c.bf16 %v2273_v29, %v2273_v29  ;;  %4579 = vrcp.f32 %v2233_v34  ;;  %v2274_v49 = vmul.f32 %v4578_v51, %v6100_v53  ;;  %v2236_v41 = vpop.xlane.xlu1 %2235 }
 0x612   : > { %4581 = vrcp.f32 %v2227_v25  ;;  %v2292_v20 = vpack.c.bf16 %v2276_v2, %v2276_v2 }
 0x613   : > { %v2353_v60 = vunpack.c.l.b16 %v2289_v22  ;;  %v2290_v53 = vpack.c.bf16 %v2274_v49, %v2274_v49 }
 0x614   : > { %v2402_v26 = vunpack.c.l.b16 %v2292_v20 }
 0x615   : > { %v2354_v38 = vpack.c.b16 %v2353_v60, %v2352_v18  ;;  %v2377_v14 = vunpack.c.l.b16 %v2290_v53 }
 0x616   : > { %3086 = vrot.lane.b32.xlu2 %v5546_v6, %s4852_s26  ;;  %3014 = vrot.lane.b32.xlu1 %v5618_v0, %s4851_s25 }
 0x617   : > { %v4580_v40 = vpop.eup %4579  ;;  %4306 = vmatmul.msk.bf16.vlgmr.msrb.gmra.mxu2 %vm1523_vm7, %v2354_v38 }
 0x618   : > { %v4582_v62 = vpop.eup %4581  ;;  %v2277_v11 = vmul.f32 %v4580_v40, %v6143_v42  ;;  %2565 = vmatpush.bf16.xpose.msrb.mxu2 %v2556_v47  ;;  %v2242_v22 = vpop.xlane.xlu2 %2241 }
 0x619   : > { %v2275_v32 = vmul.f32 %v4582_v62, %v6141_v17  ;;  %4583 = vrcp.f32 %v2242_v22 }
 0x61a   : > { %v2293_v16 = vpack.c.bf16 %v2277_v11, %v2277_v11  ;;  %4585 = vrcp.f32 %v2236_v41 }
 0x61b   : > { %v2291_v21 = vpack.c.bf16 %v2275_v32, %v2275_v32 }
 0x61c   : > { %v2403_v58 = vunpack.c.l.b16 %v2293_v16 }
 0x61d   : > { %v2378_v55 = vunpack.c.l.b16 %v2291_v21 }
 0x61e   : > { %v2404_v29 = vpack.c.b16 %v2403_v58, %v2402_v26 }
 0x61f   : > { %v2379_v25 = vpack.c.b16 %v2378_v55, %v2377_v14  ;;  %v4584_v18 = vpop.eup %4583 }
 0x620   : > { %4308 = vmatmul.msk.bf16.vlgmr.msra.gmra.mxu0 %vm1523_vm7, %v2404_v29  ;;  %v2623_v60 = vpop.permute.xlu2 %2622  ;;  %v2280_v2 = vmul.f32 %v4584_v18, %v6155_v48  ;;  %v4586_v38 = vpop.eup %4585 }
 0x621   : > { %4307 = vmatmul.msk.bf16.vlgmr.msrb.gmra.mxu3 %vm1523_vm7, %v2379_v25  ;;  %2613 = vmatpush.bf16.xpose.msra.mxu0 %v2604_v50  ;;  %v2278_v62 = vmul.f32 %v4586_v38, %v6145_v10  ;;  %v2628_v41 = vsel %vm1278_vm6, %v2623_v60, 0 }
 0x622   : > { %v2597_v42 = vpop.permute.xlu0 %2596  ;;  %v2296_v47 = vpack.c.bf16 %v2280_v2, %v2280_v2 }
 0x623   : > { %v2294_v26 = vpack.c.bf16 %v2278_v62, %v2278_v62 }
 0x624   : > { %v2452_v16 = vunpack.c.l.b16 %v2296_v47 }
 0x62a   : > { %v2575_v34 = vpop.permute.xlu0 %2574 }
 0x62b   : > { %v2580_v17 = vsel %vm1278_vm6, %v2575_v34, 0 }
 0x62c   : > { %2589 = vmatpush.bf16.xpose.msrb.mxu3 %v2580_v17 }
 0x630   : > { %4312 = vmatmul.msk.bf16.vlgmr.msrb.gmra.mxu0 %vm1278_vm6, %v6124_v15 }
 0x640   : > { %4316 = vmatmul.msk.bf16.vlgmr.msra.gmra.mxu0 %vm1278_vm6, %v2597_v42 }
 0x648   : > { %v2248_v51 = vpop.xlane.xlu1 %2247 }
 0x650   : > { %v2245_v13 = vpop.xlane.xlu1 %2244 }
 0x651   : > { %4587 = vrcp.f32 %v2245_v13 }
 0x652   : > { %4589 = vrcp.f32 %v2248_v51 }
 0x655   : > { %v2239_v49 = vpop.xlane.xlu0 %2238 }
 0x656   : > { %4591 = vrcp.f32 %v2239_v49 }
 0x657   : > { %v4588_v40 = vpop.eup %4587 }
 0x658   : > { %v2281_v15 = vmul.f32 %v4588_v40, %v6177_v54  ;;  %v4590_v11 = vpop.eup %4589  ;;  %v2427_v54 = vunpack.c.l.b16 %v2294_v26 }
 0x659   : > { %v2251_v20 = vpop.xlane.xlu2 %2250  ;;  %v2282_v48 = vmul.f32 %v4590_v11, %v6171_v23 }
 0x65a   : > { %v2297_v53 = vpack.c.bf16 %v2281_v15, %v2281_v15  ;;  %4593 = vrcp.f32 %v2251_v20 }
 0x65b   : > { %v2298_v25 = vpack.c.bf16 %v2282_v48, %v2282_v48 }
 0x65c   : > { %v4592_v32 = vpop.eup %4591  ;;  %v2453_v21 = vunpack.c.l.b16 %v2297_v53 }
 0x65d   : > { %v2279_v58 = vmul.f32 %v4592_v32, %v6181_v12  ;;  %v2477_v22 = vunpack.c.l.b16 %v2298_v25 }
 0x65e   : > { %v2454_v14 = vpack.c.b16 %v2453_v21, %v2452_v16  ;;  %v6269_v16 = vld [vmem:[%s5716_s22 + $0x20] sm:$0xff] }
 0x65f   : > { %v2295_v55 = vpack.c.bf16 %v2279_v58, %v2279_v58  ;;  %v6277_v58 = vld [vmem:[%s5716_s22 + $0x28] sm:$0xff] }
 0x660   : > { %v4594_v29 = vpop.eup %4593  ;;  %4310 = vmatmul.msk.bf16.vlgmr.msra.gmra.mxu2 %vm1523_vm7, %v2454_v14 }
 0x661   : > { %v2428_v10 = vunpack.c.l.b16 %v2295_v55  ;;  %v2283_v50 = vmul.f32 %v4594_v29, %v6186_v56  ;;  %v2621_v42 = vpop.permute.xlu2 %2620 }
 0x663   : > { %v2429_v34 = vpack.c.b16 %v2428_v10, %v2427_v54  ;;  %v2299_v17 = vpack.c.bf16 %v2283_v50, %v2283_v50 }
 0x665   : > { %v2478_v51 = vunpack.c.l.b16 %v2299_v17  ;;  %4309 = vmatmul.msk.bf16.vlgmr.msra.gmra.mxu1 %vm1523_vm7, %v2429_v34 }
 0x666   : > { %2637 = vmatpush.bf16.xpose.msra.mxu1 %v2628_v41 }
 0x667   : > { %v2479_v23 = vpack.c.b16 %v2478_v51, %v2477_v22 }
 0x668   : > { %v2525_v12 = vpop.permute.xlu1 %2524 }
 0x669   : > { %v2890_v13 = vpop.permute.xlu2 %2889  ;;  %4311 = vmatmul.msk.bf16.vlgmr.msra.gmra.mxu3 %vm1523_vm7, %v2479_v23  ;;  %v2647_v18 = vpop.permute.xlu0 %2646 }
 0x66a   : > { %v2652_v2 = vsel %vm1278_vm6, %v2647_v18, 0  ;;  %2902 = vmatpush.bf16.msrb.mxu0 %v2890_v13  ;;  %v6260_v20 = vpop.f32.mrf.mxu0 }
 0x66b   : > { %2661 = vmatpush.bf16.xpose.msra.mxu2 %v2652_v2 }
 0x670   : > { %v2573_v56 = vpop.permute.xlu1 %2572  ;;  %4314 = vmatmul.msk.bf16.vlgmr.msrb.gmra.mxu2 %vm1278_vm6, %v6167_v59 }
 0x671   : > { %v2645_v60 = vpop.permute.xlu0 %2644  ;;  %v2915_v49 = vpop.permute.xlu2 %2914 }
 0x672   : > { %v6262_v11 = vpop.f32.mrf.mxu0  ;;  %v6289_v50 = vpop.f32.mrf.mxu1 }
 0x675   : > { %4313 = vmatmul.msk.bf16.vlgmr.msrb.gmra.mxu1 %vm1278_vm6, %v2525_v12 }
 0x676   : > { %2927 = vmatpush.bf16.msrb.mxu1 %v2915_v49 }
 0x678   : > { %v2671_v38 = vpop.permute.xlu1 %2670 }
 0x679   : > { %v2676_v40 = vsel %vm1278_vm6, %v2671_v38, 0  ;;  %4315 = vmatmul.msk.bf16.vlgmr.msrb.gmra.mxu3 %vm1278_vm6, %v2573_v56  ;;  %v2669_v47 = vpop.permute.xlu0 %2668 }
 0x67a   : > { %2685 = vmatpush.bf16.xpose.msra.mxu3 %v2676_v40  ;;  %v6293_v34 = vpop.f32.mrf.mxu1 }
 0x680   : > { %v2990_v15 = vpop.permute.xlu1 %2989  ;;  %4318 = vmatmul.msk.bf16.vlgmr.msra.gmra.mxu2 %vm1278_vm6, %v2645_v60 }
 0x681   : > { %v2940_v62 = vpop.permute.xlu0 %2939  ;;  %3002 = vmatpush.bf16.msra.mxu0 %v2990_v15 }
 0x682   : > { %2952 = vmatpush.bf16.msrb.mxu2 %v2940_v62 }
 0x685   : > { %4317 = vmatmul.msk.bf16.vlgmr.msra.gmra.mxu1 %vm1278_vm6, %v2621_v42 }
 0x688   : > { %v3015_v59 = vpop.permute.xlu1 %3014 }
 0x689   : > { %4319 = vmatmul.msk.bf16.vlgmr.msra.gmra.mxu3 %vm1278_vm6, %v2669_v47  ;;  %3027 = vmatpush.bf16.msra.mxu1 %v3015_v59 }
 0x69a   : > { %v6291_v42 = vpop.f32.mrf.mxu2 }
 0x69d   : > { %v6264_v53 = vpop.f32.mrf.mxu0 }
 0x69e   : > { %7341 = vst [vmem:[#allocation25_spill] sm:$0xff] %v6264_v53 }
 0x6a2   : > { %v6297_v41 = vpop.f32.mrf.mxu2 }
 0x6a4   : > { %v6295_v17 = vpop.f32.mrf.mxu3 }
 0x6a5   : > { %v6266_v32 = vpop.f32.mrf.mxu0 }
 0x6a6   : > { %7342 = vst [vmem:[#allocation26_spill] sm:$0xff] %v6266_v32 }
 0x6ac   : > { %v6303_v23 = vpop.f32.mrf.mxu3 }
 0x6ad   : > { %v2519_v21 = vpop.f32.mrf.mxu0  ;;  %7345 = vst [vmem:[#allocation29_spill] sm:$0xff] %v6303_v23 }
 0x6ae   : > { %v6272_v26 = vadd.f32 %v2519_v21, %v6269_v16 }
 0x6b0   : > { %v2692_v48 = vsel %vm1523_vm7, %v6272_v26, -inf }
 0x6b1   : > { %2693 = vmax.xlane.f32.xlu2 %v2692_v48 }
 0x6b5   : > { %v2521_v14 = vpop.f32.mrf.mxu0 }
 0x6b6   : > { %v6280_v55 = vadd.f32 %v2521_v14, %v6277_v58 }
 0x6b8   : > { %v2695_v29 = vsel %vm1523_vm7, %v6280_v55, -inf }
 0x6b9   : > { %2696 = vmax.xlane.f32.xlu1 %v2695_v29 }
 0x6bd   : > { %v2615_v54 = vpop.f32.mrf.mxu0 }
 0x6be   : > { %v6285_v25 = vadd.f32 %v2615_v54, %v6269_v16 }
 0x6c0   : > { %v2716_v10 = vsel %vm1523_vm7, %v6285_v25, -inf }
 0x6c1   : > { %2717 = vmax.xlane.f32.xlu1 %v2716_v10 }
 0x6c5   : > { %v2617_v47 = vpop.f32.mrf.mxu0 }
 0x6c6   : > { %v6324_v62 = vadd.f32 %v2617_v47, %v6277_v58 }
 0x6c8   : > { %v2719_v54 = vsel %vm1523_vm7, %v6324_v62, -inf }
 0x6e2   : > { %v6299_v22 = vpop.f32.mrf.mxu1 }
 0x6e3   : > { %7343 = vst [vmem:[#allocation27_spill] sm:$0xff] %v6299_v22  ;;  %v6301_v51 = vpop.f32.mrf.mxu2  ;;  %v6378_v22 = vpop.permute.xlu2 %3086 }
 0x6e4   : > { %7344 = vst [vmem:[#allocation28_spill] sm:$0xff] %v6301_v51 }
 0x6ea   : > { %v6305_v12 = vpop.f32.mrf.mxu1 }
 0x6eb   : > { %7346 = vst [vmem:[#allocation30_spill] sm:$0xff] %v6305_v12  ;;  %v6307_v13 = vpop.f32.mrf.mxu2 }
 0x6ec   : > { %7347 = vst [vmem:[#allocation31_spill] sm:$0xff] %v6307_v13  ;;  %v6309_v18 = vpop.f32.mrf.mxu3 }
 0x6ed   : > { %7348 = vst [vmem:[#allocation32_spill] sm:$0xff] %v6309_v18 }
 0x6f2   : > { %v2543_v2 = vpop.f32.mrf.mxu1 }
 0x6f3   : > { %v6312_v56 = vadd.f32 %v2543_v2, %v6269_v16  ;;  %v2567_v60 = vpop.f32.mrf.mxu2 }
 0x6f4   : > { %v6314_v49 = vpop.f32.mrf.mxu3  ;;  %v6317_v38 = vadd.f32 %v2567_v60, %v6269_v16 }
 0x6f5   : > { %7349 = vst [vmem:[#allocation33_spill] sm:$0xff] %v6314_v49  ;;  %v2698_v40 = vsel %vm1523_vm7, %v6312_v56, -inf }
 0x6f6   : > { %2699 = vmax.xlane.f32.xlu0 %v2698_v40  ;;  %v2704_v15 = vsel %vm1523_vm7, %v6317_v38, -inf }
 0x6f7   : > { %2705 = vmax.xlane.f32.xlu2 %v2704_v15 }
 0x6fa   : > { %v2545_v59 = vpop.f32.mrf.mxu1 }
 0x6fb   : > { %v6327_v21 = vadd.f32 %v2545_v59, %v6277_v58  ;;  %v2569_v48 = vpop.f32.mrf.mxu2 }
 0x6fc   : > { %v2591_v14 = vpop.f32.mrf.mxu3  ;;  %v6339_v40 = vadd.f32 %v2569_v48, %v6277_v58 }
 0x6fd   : > { %v6330_v29 = vadd.f32 %v2591_v14, %v6269_v16  ;;  %v2701_v10 = vsel %vm1523_vm7, %v6327_v21, -inf }
 0x6fe   : > { %2720 = vmax.xlane.f32.xlu0 %v2719_v54  ;;  %v2707_v9 = vsel %vm1523_vm7, %v6339_v40, -inf }
 0x6ff   : > { %v2710_v2 = vsel %vm1523_vm7, %v6330_v29, -inf  ;;  %2702 = vmax.xlane.f32.xlu2 %v2701_v10 }
 0x700   : > { %2711 = vmax.xlane.f32.xlu1 %v2710_v2 }
 0x702   : > { %v2639_v60 = vpop.f32.mrf.mxu1 }
 0x703   : > { %v2663_v47 = vpop.f32.mrf.mxu2  ;;  %v6354_v2 = vadd.f32 %v2639_v60, %v6269_v16 }
 0x704   : > { %v2593_v15 = vpop.f32.mrf.mxu3  ;;  %v6342_v59 = vadd.f32 %v2663_v47, %v6269_v16 }
 0x705   : > { %v6345_v14 = vadd.f32 %v2593_v15, %v6277_v58 }
 0x706   : > { %v2728_v54 = vsel %vm1523_vm7, %v6342_v59, -inf }
 0x707   : > { %v2713_v10 = vsel %vm1523_vm7, %v6345_v14, -inf  ;;  %2729 = vmax.xlane.f32.xlu2 %v2728_v54 }
 0x708   : > { %2708 = vmax.xlane.f32.xlu1 %v2707_v9  ;;  %2714 = vmax.xlane.f32.xlu0 %v2713_v10  ;;  %v2722_v9 = vsel %vm1523_vm7, %v6354_v2, -inf }
 0x70a   : > { %v2641_v48 = vpop.f32.mrf.mxu1 }
 0x70b   : > { %v6357_v47 = vadd.f32 %v2641_v48, %v6277_v58  ;;  %v2665_v15 = vpop.f32.mrf.mxu2 }
 0x70c   : > { %v6360_v49 = vadd.f32 %v2665_v15, %v6277_v58  ;;  %v2687_v51 = vpop.f32.mrf.mxu3 }
 0x70d   : > { %v2725_v13 = vsel %vm1523_vm7, %v6357_v47, -inf  ;;  %v6369_v60 = vadd.f32 %v2687_v51, %v6269_v16 }
 0x70e   : > { %v2731_v54 = vsel %vm1523_vm7, %v6360_v49, -inf }
 0x70f   : > { %2726 = vmax.xlane.f32.xlu2 %v2725_v13  ;;  %v2734_v18 = vsel %vm1523_vm7, %v6369_v60, -inf }
 0x710   : > { %2723 = vmax.xlane.f32.xlu0 %v2722_v9  ;;  %2732 = vmax.xlane.f32.xlu1 %v2731_v54 }
 0x714   : > { %v2689_v10 = vpop.f32.mrf.mxu3 }
 0x715   : > { %v6372_v48 = vadd.f32 %v2689_v10, %v6277_v58 }
 0x717   : > { %v2737_v15 = vsel %vm1523_vm7, %v6372_v48, -inf }
 0x718   : > { %2738 = vmax.xlane.f32.xlu2 %v2737_v15  ;;  %2735 = vmax.xlane.f32.xlu0 %v2734_v18 }
 0x724   : > { %v2694_v13 = vpop.xlane.xlu2 %2693 }
 0x725   : > { %v2740_v54 = vsub.f32 %v6272_v26, %v2694_v13 }
 0x727   : > { %v2756_v9 = vmul.f32 1.442695, %v2740_v54 }
 0x729   : > { %4595 = vpow2.f32 %v2756_v9 }
 0x72c   : > { %v2697_v16 = vpop.xlane.xlu1 %2696 }
 0x72d   : > { %v2741_v51 = vsub.f32 %v6280_v55, %v2697_v16 }
 0x72f   : > { %v6382_v58 = vpop.eup %4595  ;;  %v2758_v10 = vmul.f32 1.442695, %v2741_v51 }
 0x730   : > { %2964 = vrot.lane.b32.xlu2 %v5596_v24, %s4851_s25  ;;  %v2788_v15 = vsel %vm1523_vm7, %v6382_v58, 0.0 }
 0x731   : > { %4597 = vpow2.f32 %v2758_v10  ;;  %2789 = vadd.xlane.f32.xlu1 %v2788_v15 }
 0x734   : > { %v2718_v13 = vpop.xlane.xlu1 %2717 }
 0x735   : > { %v2748_v16 = vsub.f32 %v6285_v25, %v2718_v13 }
 0x737   : > { %v6388_v18 = vpop.eup %4597  ;;  %v2772_v32 = vmul.f32 1.442695, %v2748_v16 }
 0x738   : > { %v2791_v26 = vsel %vm1523_vm7, %v6388_v18, 0.0 }
 0x739   : > { %2792 = vadd.xlane.f32.xlu0 %v2791_v26 }
 0x769   : > { %v2700_v54 = vpop.xlane.xlu0 %2699 }
 0x76a   : > { %v2742_v55 = vsub.f32 %v6312_v56, %v2700_v54  ;;  %v2706_v9 = vpop.xlane.xlu2 %2705 }
 0x76b   : > { %v2744_v26 = vsub.f32 %v6317_v38, %v2706_v9 }
 0x76c   : > { %v2760_v51 = vmul.f32 1.442695, %v2742_v55 }
 0x76d   : > { %v2764_v25 = vmul.f32 1.442695, %v2744_v26 }
 0x76e   : > { %4599 = vpow2.f32 %v2760_v51 }
 0x76f   : > { %4601 = vpow2.f32 %v2772_v32 }
 0x771   : > { %v2721_v12 = vpop.xlane.xlu0 %2720 }
 0x772   : > { %v2703_v23 = vpop.xlane.xlu2 %2702  ;;  %v2749_v8 = vsub.f32 %v6324_v62, %v2721_v12 }
 0x773   : > { %v2712_v10 = vpop.xlane.xlu1 %2711  ;;  %v2743_v15 = vsub.f32 %v6327_v21, %v2703_v23 }
 0x774   : > { %v6395_v30 = vpop.eup %4599  ;;  %v2774_v13 = vmul.f32 1.442695, %v2749_v8  ;;  %v2746_v32 = vsub.f32 %v6330_v29, %v2712_v10 }
 0x775   : > { %v2762_v53 = vmul.f32 1.442695, %v2743_v15  ;;  %v2794_v56 = vsel %vm1523_vm7, %v6395_v30, 0.0  ;;  %v6401_v54 = vpop.eup %4601 }
 0x776   : > { %2795 = vadd.xlane.f32.xlu1 %v2794_v56 }
 0x777   : > { %4603 = vpow2.f32 %v2762_v53  ;;  %v2812_v53 = vsel %vm1523_vm7, %v6401_v54, 0.0 }
 0x778   : > { %4605 = vpow2.f32 %v2764_v25 }
 0x779   : > { %4607 = vpow2.f32 %v2774_v13 }
 0x77a   : > { %v2730_v55 = vpop.xlane.xlu2 %2729 }
 0x77b   : > { %v2709_v16 = vpop.xlane.xlu1 %2708  ;;  %v2752_v23 = vsub.f32 %v6342_v59, %v2730_v55  ;;  %v2715_v21 = vpop.xlane.xlu0 %2714  ;;  %v2768_v59 = vmul.f32 1.442695, %v2746_v32 }
 0x77c   : > { %v2745_v12 = vsub.f32 %v6339_v40, %v2709_v16  ;;  %v2747_v26 = vsub.f32 %v6345_v14, %v2715_v21 }
 0x77d   : > { %v6405_v38 = vpop.eup %4603  ;;  %v2780_v62 = vmul.f32 1.442695, %v2752_v23 }
 0x77e   : > { %2813 = vadd.xlane.f32.xlu1 %v2812_v53  ;;  %v2797_v8 = vsel %vm1523_vm7, %v6405_v38, 0.0  ;;  %v2766_v9 = vmul.f32 1.442695, %v2745_v12  ;;  %v6412_v51 = vpop.eup %4605  ;;  %v2770_v14 = vmul.f32 1.442695, %v2747_v26 }
 0x77f   : > { %4609 = vpow2.f32 %v2780_v62  ;;  %2798 = vadd.xlane.f32.xlu0 %v2797_v8  ;;  %v6414_v10 = vpop.eup %4607  ;;  %v2800_v55 = vsel %vm1523_vm7, %v6412_v51, 0.0 }
 0x780   : > { %4611 = vpow2.f32 %v2768_v59  ;;  %v2815_v23 = vsel %vm1523_vm7, %v6414_v10, 0.0 }
 0x781   : > { %4613 = vpow2.f32 %v2766_v9 }
 0x782   : > { %v2727_v29 = vpop.xlane.xlu2 %2726 }
 0x783   : > { %v2733_v15 = vpop.xlane.xlu1 %2732  ;;  %v2751_v40 = vsub.f32 %v6357_v47, %v2727_v29  ;;  %v2724_v32 = vpop.xlane.xlu0 %2723 }
 0x784   : > { %v2753_v25 = vsub.f32 %v6360_v49, %v2733_v15  ;;  %v2750_v53 = vsub.f32 %v6354_v2, %v2724_v32 }
 0x785   : > { %v6418_v56 = vpop.eup %4609  ;;  %v2778_v13 = vmul.f32 1.442695, %v2751_v40 }
 0x786   : > { %2801 = vadd.xlane.f32.xlu1 %v2800_v55  ;;  %v2824_v16 = vsel %vm1523_vm7, %v6418_v56, 0.0  ;;  %v2782_v47 = vmul.f32 1.442695, %v2753_v25  ;;  %v6427_v12 = vpop.eup %4611  ;;  %v2776_v15 = vmul.f32 1.442695, %v2750_v53 }
 0x787   : > { %4615 = vpow2.f32 %v2778_v13  ;;  %2825 = vadd.xlane.f32.xlu2 %v2824_v16  ;;  %2816 = vadd.xlane.f32.xlu0 %v2815_v23  ;;  %v6429_v49 = vpop.eup %4613  ;;  %v2806_v59 = vsel %vm1523_vm7, %v6427_v12, 0.0 }
 0x788   : > { %4617 = vpow2.f32 %v2770_v14  ;;  %v2803_v29 = vsel %vm1523_vm7, %v6429_v49, 0.0 }
 0x789   : > { %4619 = vpow2.f32 %v2782_v47 }
 0x78a   : > { %4621 = vpow2.f32 %v2776_v15 }
 0x78b   : > { %v2739_v62 = vpop.xlane.xlu2 %2738  ;;  %v2736_v47 = vpop.xlane.xlu0 %2735 }
 0x78c   : > { %v2755_v21 = vsub.f32 %v6372_v48, %v2739_v62 }
 0x78d   : > { %v6432_v8 = vpop.eup %4615 }
 0x78e   : > { %2807 = vadd.xlane.f32.xlu1 %v2806_v59  ;;  %v2821_v9 = vsel %vm1523_vm7, %v6432_v8, 0.0  ;;  %v2786_v40 = vmul.f32 1.442695, %v2755_v21  ;;  %v6441_v2 = vpop.eup %4617 }
 0x78f   : > { %2822 = vadd.xlane.f32.xlu2 %v2821_v9  ;;  %2804 = vadd.xlane.f32.xlu0 %v2803_v29  ;;  %v6443_v26 = vpop.eup %4619  ;;  %v2809_v13 = vsel %vm1523_vm7, %v6441_v2, 0.0 }
 0x790   : > { %4623 = vpow2.f32 %v2786_v40  ;;  %v2827_v48 = vsel %vm1523_vm7, %v6443_v26, 0.0  ;;  %v6449_v55 = vpop.eup %4621 }
 0x791   : > { %v2818_v14 = vsel %vm1523_vm7, %v6449_v55, 0.0 }
 0x793   : > { %v2965_v25 = vpop.permute.xlu2 %2964 }
 0x794   : > { %2977 = vmatpush.bf16.msrb.mxu3 %v2965_v25 }
 0x796   : > { %v6451_v16 = vpop.eup %4623 }
 0x797   : > { %2828 = vadd.xlane.f32.xlu2 %v2827_v48  ;;  %2810 = vadd.xlane.f32.xlu0 %v2809_v13  ;;  %v2833_v23 = vsel %vm1523_vm7, %v6451_v16, 0.0 }
 0x79f   : > { %2834 = vadd.xlane.f32.xlu2 %v2833_v23  ;;  %2819 = vadd.xlane.f32.xlu0 %v2818_v14 }
 0x7a4   : > { %v2790_v32 = vpop.xlane.xlu1 %2789 }
 0x7a5   : > { %4625 = vrcp.f32 %v2790_v32 }
 0x7a7   : > { %3039 = vrot.lane.b32.xlu1 %v5620_v19, %s4851_s25 }
 0x7ab   : > { %v4626_v53 = vpop.eup %4625 }
 0x7ac   : > { %v2793_v62 = vpop.xlane.xlu0 %2792  ;;  %v2852_v21 = vmul.f32 %v4626_v53, %v6382_v58  ;;  %v3092_v58 = vsel %vm1278_vm6, %v6378_v22, 0 }
 0x7ad   : > { %4627 = vrcp.f32 %v2793_v62 }
 0x7ae   : > { %v2868_v9 = vpack.c.bf16 %v2852_v21, %v2852_v21 }
 0x7af   : > { %3110 = vrot.lane.b32.xlu1 %v5580_v39, %s4852_s26 }
 0x7b0   : > { %v2886_v40 = vunpack.c.l.b16 %v2868_v9 }
 0x7b3   : > { %v4628_v59 = vpop.eup %4627  ;;  %3084 = vrot.lane.b32.xlu0 %v5600_v45, %s4853_s27  ;;  %v2754_v45 = vsub.f32 %v6369_v60, %v2736_v47 }
 0x7b4   : > { %v2853_v29 = vmul.f32 %v4628_v59, %v6388_v18 }
 0x7b5   : > { %v2784_v18 = vmul.f32 1.442695, %v2754_v45 }
 0x7b6   : > { %v2869_v15 = vpack.c.bf16 %v2853_v29, %v2853_v29 }
 0x7b7   : > { %3158 = vrot.lane.b32.xlu2 %v5596_v24, %s4852_s26  ;;  %3134 = vrot.lane.b32.xlu1 %v5558_v46, %s4852_s26  ;;  %4629 = vpow2.f32 %v2784_v18 }
 0x7b8   : > { %v2887_v25 = vunpack.c.l.b16 %v2869_v15 }
 0x7ba   : > { %v2888_v48 = vpack.c.b16 %v2887_v25, %v2886_v40 }
 0x7bc   : > { %4320 = vmatmul.msk.bf16.vlgmr.msrb.gmra.mxu0 %vm1523_vm7, %v2888_v48 }
 0x7bd   : > { %3101 = vmatpush.bf16.xpose.msrb.mxu0 %v3092_v58 }
 0x7bf   : > { %3204 = vrot.lane.b32.xlu2 %v5693_v37, %s4853_s27  ;;  %3108 = vrot.lane.b32.xlu1 %v5656_v57, %s4853_s27  ;;  %v6485_v37 = vpop.eup %4629 }
 0x7c0   : > { %v2830_v57 = vsel %vm1523_vm7, %v6485_v37, 0.0 }
 0x7c7   : > { %3252 = vrot.lane.b32.xlu2 %v5708_v31, %s4853_s27  ;;  %3064 = vrot.lane.b32.xlu1 %v5640_v63, %s4851_s25 }
 0x7cf   : > { %3132 = vrot.lane.b32.xlu1 %v5673_v28, %s4853_s27 }
 0x7d7   : > { %3182 = vrot.lane.b32.xlu1 %v5584_v5, %s4852_s26 }
 0x7dd   : > { %2831 = vadd.xlane.f32.xlu0 %v2830_v57 }
 0x7df   : > { %3180 = vrot.lane.b32.xlu1 %v5691_v27, %s4853_s27 }
 0x7e7   : > { %3230 = vrot.lane.b32.xlu1 %v5620_v19, %s4852_s26 }
 0x7e9   : > { %v2796_v31 = vpop.xlane.xlu1 %2795 }
 0x7ea   : > { %4631 = vrcp.f32 %v2796_v31 }
 0x7ef   : > { %3254 = vrot.lane.b32.xlu1 %v5640_v63, %s4852_s26 }
 0x7f0   : > { %v4632_v60 = vpop.eup %4631 }
 0x7f1   : > { %v2814_v28 = vpop.xlane.xlu1 %2813  ;;  %3156 = vrot.lane.b32.xlu0 %v5668_v35, %s4853_s27  ;;  %v2854_v13 = vmul.f32 %v4632_v60, %v6395_v30 }
 0x7f2   : > { %v2799_v22 = vpop.xlane.xlu0 %2798 }
 0x7f3   : > { %4633 = vrcp.f32 %v2799_v22  ;;  %v2870_v14 = vpack.c.bf16 %v2854_v13, %v2854_v13 }
 0x7f4   : > { %4635 = vrcp.f32 %v2814_v28 }
 0x7f5   : > { %v2911_v35 = vunpack.c.l.b16 %v2870_v14 }
 0x7f9   : > { %v4634_v23 = vpop.eup %4633  ;;  %v2802_v27 = vpop.xlane.xlu1 %2801  ;;  %3206 = vrot.lane.b32.xlu0 %v5618_v0, %s4852_s26 }
 0x7fa   : > { %v2855_v47 = vmul.f32 %v4634_v23, %v6405_v38  ;;  %v2826_v32 = vpop.xlane.xlu2 %2825  ;;  %v2817_v62 = vpop.xlane.xlu0 %2816 }
 0x7fb   : > { %v4636_v53 = vpop.eup %4635  ;;  %4637 = vrcp.f32 %v2817_v62 }
 0x7fc   : > { %v2871_v21 = vpack.c.bf16 %v2855_v47, %v2855_v47  ;;  %4639 = vrcp.f32 %v2802_v27  ;;  %v2860_v9 = vmul.f32 %v4636_v53, %v6401_v54 }
 0x7fe   : > { %v2912_v59 = vunpack.c.l.b16 %v2871_v21  ;;  %v2876_v38 = vpack.c.bf16 %v2860_v9, %v2860_v9 }
 0x800   : > { %v2913_v30 = vpack.c.b16 %v2912_v59, %v2911_v35  ;;  %v2986_v18 = vunpack.c.l.b16 %v2876_v38 }
 0x801   : > { %3228 = vrot.lane.b32.xlu0 %v5695_v4, %s4853_s27  ;;  %v4638_v29 = vpop.eup %4637  ;;  %v2808_v48 = vpop.xlane.xlu1 %2807 }
 0x802   : > { %v2823_v15 = vpop.xlane.xlu2 %2822  ;;  %4321 = vmatmul.msk.bf16.vlgmr.msrb.gmra.mxu1 %vm1523_vm7, %v2913_v30  ;;  %v2805_v40 = vpop.xlane.xlu0 %2804  ;;  %v2861_v25 = vmul.f32 %v4638_v29, %v6414_v10 }
 0x803   : > { %v4640_v58 = vpop.eup %4639  ;;  %4641 = vrcp.f32 %v2805_v40 }
 0x804   : > { %v2877_v45 = vpack.c.bf16 %v2861_v25, %v2861_v25  ;;  %4643 = vrcp.f32 %v2808_v48  ;;  %v2856_v54 = vmul.f32 %v4640_v58, %v6412_v51 }
 0x806   : > { %v2987_v57 = vunpack.c.l.b16 %v2877_v45  ;;  %v2872_v60 = vpack.c.bf16 %v2856_v54, %v2856_v54 }
 0x808   : > { %v2988_v31 = vpack.c.b16 %v2987_v57, %v2986_v18  ;;  %v2936_v51 = vunpack.c.l.b16 %v2872_v60 }
 0x809   : > { %3473 = vrot.lane.b32.xlu0 %v5546_v6, %s4854_s13  ;;  %v4642_v4 = vpop.eup %4641 }
 0x80a   : > { %v2829_v28 = vpop.xlane.xlu2 %2828  ;;  %v2811_v22 = vpop.xlane.xlu0 %2810  ;;  %v2857_v10 = vmul.f32 %v4642_v4, %v6429_v49  ;;  %4324 = vmatmul.msk.bf16.vlgmr.msra.gmra.mxu0 %vm1523_vm7, %v2988_v31 }
 0x80b   : > { %4645 = vrcp.f32 %v2829_v28  ;;  %v4644_v13 = vpop.eup %4643 }
 0x80c   : > { %4647 = vrcp.f32 %v2811_v22  ;;  %v2873_v23 = vpack.c.bf16 %v2857_v10, %v2857_v10  ;;  %v2858_v27 = vmul.f32 %v4644_v13, %v6427_v12 }
 0x80d   : > { %4649 = vrcp.f32 %v2826_v32 }
 0x80e   : > { %4651 = vrcp.f32 %v2823_v15  ;;  %v2937_v14 = vunpack.c.l.b16 %v2873_v23  ;;  %v2874_v21 = vpack.c.bf16 %v2858_v27, %v2858_v27 }
 0x810   : > { %v2938_v6 = vpack.c.b16 %v2937_v14, %v2936_v51  ;;  %v2961_v30 = vunpack.c.l.b16 %v2874_v21 }
 0x811   : > { %v4646_v47 = vpop.eup %4645  ;;  %3498 = vrot.lane.b32.xlu0 %v5580_v39, %s4854_s13 }
 0x812   : > { %v4648_v62 = vpop.eup %4647  ;;  %v2820_v53 = vpop.xlane.xlu0 %2819  ;;  %4322 = vmatmul.msk.bf16.vlgmr.msrb.gmra.mxu2 %vm1523_vm7, %v2938_v6  ;;  %v2865_v59 = vmul.f32 %v4646_v47, %v6443_v26 }
 0x813   : > { %v4650_v49 = vpop.eup %4649  ;;  %v2859_v35 = vmul.f32 %v4648_v62, %v6441_v2  ;;  %4653 = vrcp.f32 %v2820_v53  ;;  %v2835_v60 = vpop.xlane.xlu2 %2834 }
 0x814   : > { %v4652_v32 = vpop.eup %4651  ;;  %v2864_v12 = vmul.f32 %v4650_v49, %v6418_v56  ;;  %v2881_v39 = vpack.c.bf16 %v2865_v59, %v2865_v59  ;;  %4655 = vrcp.f32 %v2835_v60 }
 0x815   : > { %v2875_v9 = vpack.c.bf16 %v2859_v35, %v2859_v35  ;;  %v2863_v29 = vmul.f32 %v4652_v32, %v6432_v8 }
 0x816   : > { %v2880_v48 = vpack.c.bf16 %v2864_v12, %v2864_v12  ;;  %v3037_v45 = vunpack.c.l.b16 %v2881_v39 }
 0x817   : > { %v2962_v15 = vunpack.c.l.b16 %v2875_v9  ;;  %v2879_v2 = vpack.c.bf16 %v2863_v29, %v2863_v29 }
 0x818   : > { %v3036_v18 = vunpack.c.l.b16 %v2880_v48 }
 0x819   : > { %v2963_v40 = vpack.c.b16 %v2962_v15, %v2961_v30  ;;  %v3040_v38 = vpop.permute.xlu1 %3039  ;;  %v4654_v25 = vpop.eup %4653  ;;  %v3012_v54 = vunpack.c.l.b16 %v2879_v2 }
 0x81a   : > { %3052 = vmatpush.bf16.msra.mxu2 %v3040_v38  ;;  %v2862_v58 = vmul.f32 %v4654_v25, %v6449_v55  ;;  %v3038_v57 = vpack.c.b16 %v3037_v45, %v3036_v18  ;;  %v4656_v62 = vpop.eup %4655 }
 0x81b   : > { %4323 = vmatmul.msk.bf16.vlgmr.msrb.gmra.mxu3 %vm1523_vm7, %v2963_v40  ;;  %v3159_v13 = vpop.permute.xlu2 %3158  ;;  %v2867_v49 = vmul.f32 %v4656_v62, %v6451_v16 }
 0x81c   : > { %v2878_v26 = vpack.c.bf16 %v2862_v58, %v2862_v58  ;;  %v3164_v51 = vsel %vm1278_vm6, %v3159_v13, 0 }
 0x81d   : > { %v2883_v35 = vpack.c.bf16 %v2867_v49, %v2867_v49 }
 0x81e   : > { %v3011_v56 = vunpack.c.l.b16 %v2878_v26 }
 0x81f   : > { %v3062_v30 = vunpack.c.l.b16 %v2883_v35 }
 0x820   : > { %v3013_v31 = vpack.c.b16 %v3012_v54, %v3011_v56 }
 0x821   : > { %v3111_v8 = vpop.permute.xlu1 %3110 }
 0x822   : > { %v3116_v4 = vsel %vm1278_vm6, %v3111_v8, 0  ;;  %4325 = vmatmul.msk.bf16.vlgmr.msra.gmra.mxu1 %vm1523_vm7, %v3013_v31  ;;  %4326 = vmatmul.msk.bf16.vlgmr.msra.gmra.mxu2 %vm1523_vm7, %v3038_v57 }
 0x823   : > { %3125 = vmatpush.bf16.xpose.msrb.mxu1 %v3116_v4  ;;  %v6556_v4 = vld [vmem:[%s5716_s22 + $0x30] sm:$0xff] }
 0x825   : > { %v3085_v28 = vpop.permute.xlu0 %3084 }
 0x826   : > { %4328 = vmatmul.msk.bf16.vlgmr.msrb.gmra.mxu0 %vm1278_vm6, %v3085_v28 }
 0x829   : > { %v3135_v55 = vpop.permute.xlu1 %3134 }
 0x82a   : > { %v3140_v22 = vsel %vm1278_vm6, %v3135_v55, 0 }
 0x82b   : > { %3149 = vmatpush.bf16.xpose.msrb.mxu2 %v3140_v22 }
 0x831   : > { %v3109_v10 = vpop.permute.xlu1 %3108 }
 0x832   : > { %4329 = vmatmul.msk.bf16.vlgmr.msrb.gmra.mxu1 %vm1278_vm6, %v3109_v10  ;;  %v6566_v10 = vld [vmem:[%s5716_s22 + $0x38] sm:$0xff] }
 0x839   : > { %v3065_v23 = vpop.permute.xlu1 %3064  ;;  %v6540_v45 = vpop.f32.mrf.mxu0 }
 0x83a   : > { %3077 = vmatpush.bf16.msra.mxu3 %v3065_v23 }
 0x83e   : > { %3173 = vmatpush.bf16.xpose.msrb.mxu3 %v3164_v51 }
 0x841   : > { %v3133_v27 = vpop.permute.xlu1 %3132  ;;  %v6543_v18 = vpop.f32.mrf.mxu0 }
 0x842   : > { %4330 = vmatmul.msk.bf16.vlgmr.msrb.gmra.mxu2 %vm1278_vm6, %v3133_v27 }
 0x849   : > { %v3183_v14 = vpop.permute.xlu1 %3182 }
 0x84a   : > { %v3188_v47 = vsel %vm1278_vm6, %v3183_v14, 0 }
 0x84b   : > { %3197 = vmatpush.bf16.xpose.msra.mxu0 %v3188_v47 }
 0x850   : > { %v2832_v6 = vpop.xlane.xlu0 %2831 }
 0x851   : > { %4657 = vrcp.f32 %v2832_v6  ;;  %v3181_v53 = vpop.permute.xlu1 %3180 }
 0x852   : > { %4332 = vmatmul.msk.bf16.vlgmr.msra.gmra.mxu0 %vm1278_vm6, %v3181_v53 }
 0x857   : > { %v4658_v21 = vpop.eup %4657 }
 0x858   : > { %v2866_v32 = vmul.f32 %v4658_v21, %v6485_v37  ;;  %v3205_v37 = vpop.permute.xlu2 %3204 }
 0x859   : > { %v3231_v59 = vpop.permute.xlu1 %3230 }
 0x85a   : > { %v2882_v9 = vpack.c.bf16 %v2866_v32, %v2866_v32  ;;  %v3236_v12 = vsel %vm1278_vm6, %v3231_v59, 0 }
 0x85b   : > { %3245 = vmatpush.bf16.xpose.msra.mxu2 %v3236_v12 }
 0x85c   : > { %v3061_v29 = vunpack.c.l.b16 %v2882_v9 }
 0x85e   : > { %v3063_v15 = vpack.c.b16 %v3062_v30, %v3061_v29 }
 0x860   : > { %4327 = vmatmul.msk.bf16.vlgmr.msra.gmra.mxu3 %vm1523_vm7, %v3063_v15  ;;  %v3253_v58 = vpop.permute.xlu2 %3252 }
 0x861   : > { %v3255_v39 = vpop.permute.xlu1 %3254 }
 0x862   : > { %v3260_v40 = vsel %vm1278_vm6, %v3255_v39, 0 }
 0x863   : > { %3269 = vmatpush.bf16.xpose.msra.mxu3 %v3260_v40  ;;  %v3157_v38 = vpop.permute.xlu0 %3156 }
 0x86b   : > { %v3207_v16 = vpop.permute.xlu0 %3206 }
 0x86c   : > { %v3212_v25 = vsel %vm1278_vm6, %v3207_v16, 0 }
 0x86d   : > { %3221 = vmatpush.bf16.xpose.msra.mxu1 %v3212_v25 }
 0x870   : > { %4331 = vmatmul.msk.bf16.vlgmr.msrb.gmra.mxu3 %vm1278_vm6, %v3157_v38 }
 0x873   : > { %v3229_v48 = vpop.permute.xlu0 %3228 }
 0x874   : > { %4333 = vmatmul.msk.bf16.vlgmr.msra.gmra.mxu1 %vm1278_vm6, %v3205_v37  ;;  %4334 = vmatmul.msk.bf16.vlgmr.msra.gmra.mxu2 %vm1278_vm6, %v3229_v48 }
 0x87b   : > { %v3474_v2 = vpop.permute.xlu0 %3473 }
 0x87c   : > { %3486 = vmatpush.bf16.msrb.mxu0 %v3474_v2 }
 0x87f   : > { %v6545_v54 = vpop.f32.mrf.mxu1 }
 0x880   : > { %4335 = vmatmul.msk.bf16.vlgmr.msra.gmra.mxu3 %vm1278_vm6, %v3253_v58 }
 0x883   : > { %v3499_v26 = vpop.permute.xlu0 %3498 }
 0x884   : > { %3511 = vmatpush.bf16.msrb.mxu1 %v3499_v26 }
 0x887   : > { %v6547_v56 = vpop.f32.mrf.mxu0  ;;  %v6549_v57 = vpop.f32.mrf.mxu1 }
 0x88f   : > { %v6551_v31 = vpop.f32.mrf.mxu0 }
 0x895   : > { %v6568_v13 = vpop.f32.mrf.mxu2 }
 0x89d   : > { %v6580_v62 = vpop.f32.mrf.mxu2 }
 0x89e   : > { %v6594_v12 = vpop.f32.mrf.mxu3 }
 0x89f   : > { %v6553_v8 = vpop.f32.mrf.mxu1 }
 0x8a0   : > { %7350 = vst [vmem:[#allocation34_spill] sm:$0xff] %v6553_v8 }
 0x8a3   : > { %v3103_v28 = vpop.f32.mrf.mxu0 }
 0x8a4   : > { %v6559_v55 = vadd.f32 %v3103_v28, %v6556_v4 }
 0x8a5   : > { %v6587_v35 = vpop.f32.mrf.mxu2 }
 0x8a6   : > { %v3276_v22 = vsel %vm1523_vm7, %v6559_v55, -inf  ;;  %v6608_v25 = vpop.f32.mrf.mxu3 }
 0x8a7   : > { %3277 = vmax.xlane.f32.xlu0 %v3276_v22  ;;  %v6563_v60 = vpop.f32.mrf.mxu1 }
 0x8ab   : > { %v3105_v23 = vpop.f32.mrf.mxu0 }
 0x8ac   : > { %v6571_v51 = vadd.f32 %v3105_v23, %v6566_v10 }
 0x8ad   : > { %v6589_v32 = vpop.f32.mrf.mxu2 }
 0x8ae   : > { %v3279_v27 = vsel %vm1523_vm7, %v6571_v51, -inf  ;;  %7351 = vst [vmem:[#allocation35_spill] sm:$0xff] %v6589_v32 }
 0x8af   : > { %3280 = vmax.xlane.f32.xlu1 %v3279_v27  ;;  %v3127_v14 = vpop.f32.mrf.mxu1 }
 0x8b0   : > { %v6576_v47 = vadd.f32 %v3127_v14, %v6556_v4 }
 0x8b2   : > { %v3282_v6 = vsel %vm1523_vm7, %v6576_v47, -inf }
 0x8b3   : > { %3283 = vmax.xlane.f32.xlu2 %v3282_v6 }
 0x8b7   : > { %v3129_v53 = vpop.f32.mrf.mxu1 }
 0x8b8   : > { %v6583_v49 = vadd.f32 %v3129_v53, %v6566_v10 }
 0x8ba   : > { %v3285_v21 = vsel %vm1523_vm7, %v6583_v49, -inf }
 0x8bb   : > { %3286 = vmax.xlane.f32.xlu0 %v3285_v21 }
 0x8c5   : > { %v3151_v30 = vpop.f32.mrf.mxu2 }
 0x8c6   : > { %v6599_v15 = vadd.f32 %v3151_v30, %v6556_v4 }
 0x8c8   : > { %v3288_v16 = vsel %vm1523_vm7, %v6599_v15, -inf }
 0x8cd   : > { %v3153_v37 = vpop.f32.mrf.mxu2 }
 0x8ce   : > { %v6611_v48 = vadd.f32 %v3153_v37, %v6566_v10 }
 0x8cf   : > { %v3199_v59 = vpop.f32.mrf.mxu0 }
 0x8d0   : > { %v6592_v9 = vadd.f32 %v3199_v59, %v6556_v4  ;;  %v3291_v2 = vsel %vm1523_vm7, %v6611_v48, -inf }
 0x8d2   : > { %v3300_v29 = vsel %vm1523_vm7, %v6592_v9, -inf }
 0x8d3   : > { %3301 = vmax.xlane.f32.xlu1 %v3300_v29 }
 0x8d7   : > { %v3201_v39 = vpop.f32.mrf.mxu0 }
 0x8d8   : > { %v6602_v40 = vadd.f32 %v3201_v39, %v6566_v10 }
 0x8da   : > { %v3303_v38 = vsel %vm1523_vm7, %v6602_v40, -inf }
 0x8db   : > { %3304 = vmax.xlane.f32.xlu2 %v3303_v38  ;;  %3289 = vmax.xlane.f32.xlu1 %v3288_v16 }
 0x8e3   : > { %3292 = vmax.xlane.f32.xlu2 %v3291_v2  ;;  %v6615_v58 = vpop.f32.mrf.mxu3 }
 0x8e4   : > { %7352 = vst [vmem:[#allocation36_spill] sm:$0xff] %v6615_v58 }
 0x8eb   : > { %v6617_v26 = vpop.f32.mrf.mxu3 }
 0x8ec   : > { %7353 = vst [vmem:[#allocation37_spill] sm:$0xff] %v6617_v26 }
 0x8f1   : > { %v3223_v28 = vpop.f32.mrf.mxu1 }
 0x8f2   : > { %v6620_v22 = vadd.f32 %v3223_v28, %v6556_v4 }
 0x8f3   : > { %v3175_v23 = vpop.f32.mrf.mxu3 }
 0x8f4   : > { %v6623_v27 = vadd.f32 %v3175_v23, %v6556_v4  ;;  %v3306_v14 = vsel %vm1523_vm7, %v6620_v22, -inf }
 0x8f5   : > { %3307 = vmax.xlane.f32.xlu1 %v3306_v14 }
 0x8f6   : > { %v3294_v6 = vsel %vm1523_vm7, %v6623_v27, -inf }
 0x8f7   : > { %3295 = vmax.xlane.f32.xlu0 %v3294_v6  ;;  %v3247_v53 = vpop.f32.mrf.mxu2 }
 0x8f8   : > { %v6643_v2 = vadd.f32 %v3247_v53, %v6556_v4 }
 0x8f9   : > { %v3225_v21 = vpop.f32.mrf.mxu1 }
 0x8fa   : > { %v6630_v59 = vadd.f32 %v3225_v21, %v6566_v10  ;;  %v3312_v14 = vsel %vm1523_vm7, %v6643_v2, -inf }
 0x8fb   : > { %v3177_v30 = vpop.f32.mrf.mxu3 }
 0x8fc   : > { %v6633_v29 = vadd.f32 %v3177_v30, %v6566_v10  ;;  %v3309_v39 = vsel %vm1523_vm7, %v6630_v59, -inf }
 0x8fd   : > { %3310 = vmax.xlane.f32.xlu2 %v3309_v39 }
 0x8fe   : > { %v3297_v38 = vsel %vm1523_vm7, %v6633_v29, -inf }
 0x8ff   : > { %3298 = vmax.xlane.f32.xlu1 %v3297_v38  ;;  %v3249_v16 = vpop.f32.mrf.mxu2 }
 0x900   : > { %v6640_v37 = vadd.f32 %v3249_v16, %v6566_v10 }
 0x902   : > { %v3315_v23 = vsel %vm1523_vm7, %v6640_v37, -inf }
 0x903   : > { %v3271_v28 = vpop.f32.mrf.mxu3 }
 0x905   : > { %3316 = vmax.xlane.f32.xlu2 %v3315_v23 }
 0x907   : > { %3313 = vmax.xlane.f32.xlu1 %v3312_v14 }
 0x90b   : > { %v3273_v6 = vpop.f32.mrf.mxu3 }
 0x90c   : > { %v6650_v21 = vadd.f32 %v3273_v6, %v6566_v10 }
 0x90e   : > { %v3321_v30 = vsel %vm1523_vm7, %v6650_v21, -inf }
 0x90f   : > { %3322 = vmax.xlane.f32.xlu1 %v3321_v30 }
 0x91a   : > { %v3278_v39 = vpop.xlane.xlu0 %3277 }
 0x91b   : > { %v3324_v53 = vsub.f32 %v6559_v55, %v3278_v39 }
 0x91d   : > { %v3340_v38 = vmul.f32 1.442695, %v3324_v53 }
 0x91f   : > { %4659 = vpow2.f32 %v3340_v38 }
 0x922   : > { %v3281_v16 = vpop.xlane.xlu1 %3280 }
 0x923   : > { %v3325_v23 = vsub.f32 %v6571_v51, %v3281_v16 }
 0x925   : > { %v6656_v58 = vpop.eup %4659  ;;  %v3342_v32 = vmul.f32 1.442695, %v3325_v23 }
 0x926   : > { %v3372_v14 = vsel %vm1523_vm7, %v6656_v58, 0.0  ;;  %v3284_v10 = vpop.xlane.xlu2 %3283 }
 0x927   : > { %4661 = vpow2.f32 %v3342_v32  ;;  %3373 = vadd.xlane.f32.xlu2 %v3372_v14  ;;  %v3326_v6 = vsub.f32 %v6576_v47, %v3284_v10 }
 0x929   : > { %v3344_v30 = vmul.f32 1.442695, %v3326_v6 }
 0x92b   : > { %4663 = vpow2.f32 %v3344_v30 }
 0x92d   : > { %v6661_v26 = vpop.eup %4661 }
 0x92e   : > { %v3375_v55 = vsel %vm1523_vm7, %v6661_v26, 0.0  ;;  %v3287_v39 = vpop.xlane.xlu0 %3286 }
 0x92f   : > { %3376 = vadd.xlane.f32.xlu0 %v3375_v55  ;;  %v3327_v51 = vsub.f32 %v6583_v49, %v3287_v39 }
 0x931   : > { %v6666_v53 = vpop.eup %4663  ;;  %v3346_v38 = vmul.f32 1.442695, %v3327_v51 }
 0x932   : > { %v3378_v32 = vsel %vm1523_vm7, %v6666_v53, 0.0 }
 0x933   : > { %4665 = vpow2.f32 %v3346_v38  ;;  %3379 = vadd.xlane.f32.xlu1 %v3378_v32 }
 0x939   : > { %v6670_v47 = vpop.eup %4665 }
 0x93a   : > { %v3381_v16 = vsel %vm1523_vm7, %v6670_v47, 0.0 }
 0x93b   : > { %3382 = vadd.xlane.f32.xlu2 %v3381_v16 }
 0x943   : > { %3523 = vrot.lane.b32.xlu0 %v5558_v46, %s4854_s13 }
 0x946   : > { %v3302_v23 = vpop.xlane.xlu1 %3301 }
 0x94e   : > { %v3305_v14 = vpop.xlane.xlu2 %3304  ;;  %v3290_v49 = vpop.xlane.xlu1 %3289 }
 0x94f   : > { %v3328_v10 = vsub.f32 %v6599_v15, %v3290_v49  ;;  %v6687_v15 = vadd.f32 %v3271_v28, %v6556_v4 }
 0x951   : > { %v3348_v6 = vmul.f32 1.442695, %v3328_v10  ;;  %v3332_v10 = vsub.f32 %v6592_v9, %v3302_v23 }
 0x953   : > { %4667 = vpow2.f32 %v3348_v6  ;;  %v3318_v6 = vsel %vm1523_vm7, %v6687_v15, -inf }
 0x956   : > { %v3293_v30 = vpop.xlane.xlu2 %3292 }
 0x957   : > { %v3329_v55 = vsub.f32 %v6611_v48, %v3293_v30 }
 0x959   : > { %v3350_v39 = vmul.f32 1.442695, %v3329_v55  ;;  %v6678_v51 = vpop.eup %4667  ;;  %v3356_v55 = vmul.f32 1.442695, %v3332_v10 }
 0x95a   : > { %v3384_v38 = vsel %vm1523_vm7, %v6678_v51, 0.0 }
 0x95b   : > { %4669 = vpow2.f32 %v3350_v39  ;;  %3385 = vadd.xlane.f32.xlu1 %v3384_v38 }
 0x961   : > { %v6682_v32 = vpop.eup %4669 }
 0x962   : > { %v3387_v46 = vsel %vm1523_vm7, %v6682_v32, 0.0 }
 0x963   : > { %3388 = vadd.xlane.f32.xlu2 %v3387_v46 }
 0x968   : > { %v6689_v16 = vpop.xlane.xlu1 %3307 }
 0x96a   : > { %v3296_v48 = vpop.xlane.xlu0 %3295 }
 0x96b   : > { %v3330_v49 = vsub.f32 %v6623_v27, %v3296_v48  ;;  %v3333_v27 = vsub.f32 %v6602_v40, %v3305_v14 }
 0x96d   : > { %v3352_v30 = vmul.f32 1.442695, %v3330_v49  ;;  %3319 = vmax.xlane.f32.xlu0 %v3318_v6  ;;  %v3358_v48 = vmul.f32 1.442695, %v3333_v27 }
 0x96f   : > { %4671 = vpow2.f32 %v3352_v30 }
 0x970   : > { %v3311_v39 = vpop.xlane.xlu2 %3310  ;;  %4673 = vpow2.f32 %v3356_v55 }
 0x971   : > { %v3335_v38 = vsub.f32 %v6630_v59, %v3311_v39 }
 0x972   : > { %v3299_v46 = vpop.xlane.xlu1 %3298 }
 0x973   : > { %v3362_v4 = vmul.f32 1.442695, %v3335_v38  ;;  %v3331_v28 = vsub.f32 %v6633_v29, %v3299_v46 }
 0x975   : > { %v6697_v8 = vpop.eup %4671  ;;  %4675 = vpow2.f32 %v3362_v4  ;;  %v3354_v9 = vmul.f32 1.442695, %v3331_v28 }
 0x976   : > { %v3390_v23 = vsel %vm1523_vm7, %v6697_v8, 0.0  ;;  %v6702_v49 = vpop.eup %4673 }
 0x977   : > { %4677 = vpow2.f32 %v3354_v9  ;;  %3391 = vadd.xlane.f32.xlu1 %v3390_v23  ;;  %v3396_v55 = vsel %vm1523_vm7, %v6702_v49, 0.0 }
 0x978   : > { %4679 = vpow2.f32 %v3358_v48  ;;  %v3317_v4 = vpop.xlane.xlu2 %3316 }
 0x97a   : > { %v3314_v59 = vpop.xlane.xlu1 %3313 }
 0x97b   : > { %v6704_v10 = vpop.eup %4675  ;;  %v3336_v29 = vsub.f32 %v6643_v2, %v3314_v59 }
 0x97c   : > { %v3405_v6 = vsel %vm1523_vm7, %v6704_v10, 0.0 }
 0x97d   : > { %v6709_v30 = vpop.eup %4677  ;;  %v3364_v40 = vmul.f32 1.442695, %v3336_v29  ;;  %3406 = vadd.xlane.f32.xlu0 %v3405_v6 }
 0x97e   : > { %v3393_v14 = vsel %vm1523_vm7, %v6709_v30, 0.0  ;;  %v6715_v39 = vpop.eup %4679 }
 0x97f   : > { %4681 = vpow2.f32 %v3364_v40  ;;  %3394 = vadd.xlane.f32.xlu2 %v3393_v14  ;;  %3397 = vadd.xlane.f32.xlu1 %v3396_v55  ;;  %v3399_v46 = vsel %vm1523_vm7, %v6715_v39, 0.0 }
 0x982   : > { %v3323_v27 = vpop.xlane.xlu1 %3322 }
 0x985   : > { %v6717_v2 = vpop.eup %4681 }
 0x986   : > { %v3408_v38 = vsel %vm1523_vm7, %v6717_v2, 0.0 }
 0x987   : > { %3409 = vadd.xlane.f32.xlu0 %v3408_v38  ;;  %3400 = vadd.xlane.f32.xlu1 %v3399_v46 }
 0x997   : > { %3548 = vrot.lane.b32.xlu2 %v5596_v24, %s4854_s13 }
 0x99a   : > { %v3374_v28 = vpop.xlane.xlu2 %3373 }
 0x99b   : > { %3598 = vrot.lane.b32.xlu0 %v5618_v0, %s4854_s13  ;;  %4683 = vrcp.f32 %v3374_v28  ;;  %v3334_v0 = vsub.f32 %v6620_v22, %v6689_v16  ;;  %v3337_v22 = vsub.f32 %v6640_v37, %v3317_v4 }
 0x99d   : > { %v3360_v28 = vmul.f32 1.442695, %v3334_v0  ;;  %v3339_v0 = vsub.f32 %v6650_v21, %v3323_v27 }
 0x9a0   : > { %3573 = vrot.lane.b32.xlu1 %v5584_v5, %s4854_s13 }
 0x9a1   : > { %v4684_v23 = vpop.eup %4683 }
 0x9a2   : > { %v3377_v9 = vpop.xlane.xlu0 %3376  ;;  %v3436_v48 = vmul.f32 %v4684_v23, %v6656_v58 }
 0x9a3   : > { %4685 = vrcp.f32 %v3377_v9 }
 0x9a4   : > { %v3452_v6 = vpack.c.bf16 %v3436_v48, %v3436_v48 }
 0x9a6   : > { %v3380_v59 = vpop.xlane.xlu1 %3379  ;;  %v3470_v14 = vunpack.c.l.b16 %v3452_v6 }
 0x9a7   : > { %4687 = vrcp.f32 %v3380_v59 }
 0x9a9   : > { %v4686_v29 = vpop.eup %4685 }
 0x9aa   : > { %v3437_v40 = vmul.f32 %v4686_v29, %v6661_v26 }
 0x9ac   : > { %v3453_v24 = vpack.c.bf16 %v3437_v40, %v3437_v40  ;;  %v3366_v40 = vmul.f32 1.442695, %v3337_v22 }
 0x9ad   : > { %v4688_v46 = vpop.eup %4687 }
 0x9ae   : > { %v3471_v55 = vunpack.c.l.b16 %v3453_v24  ;;  %v3383_v38 = vpop.xlane.xlu2 %3382  ;;  %v3438_v58 = vmul.f32 %v4688_v46, %v6666_v53 }
 0x9af   : > { %4689 = vrcp.f32 %v3383_v38 }
 0x9b0   : > { %v3472_v5 = vpack.c.b16 %v3471_v55, %v3470_v14  ;;  %4691 = vpow2.f32 %v3360_v28  ;;  %v3454_v26 = vpack.c.bf16 %v3438_v58, %v3438_v58  ;;  %v3370_v14 = vmul.f32 1.442695, %v3339_v0 }
 0x9b1   : > { %4693 = vpow2.f32 %v3366_v40 }
 0x9b2   : > { %4336 = vmatmul.msk.bf16.vlgmr.msrb.gmra.mxu0 %vm1523_vm7, %v3472_v5  ;;  %v3495_v59 = vunpack.c.l.b16 %v3454_v26  ;;  %4695 = vpow2.f32 %v3370_v14 }
 0x9b5   : > { %v3524_v9 = vpop.permute.xlu0 %3523  ;;  %v4690_v23 = vpop.eup %4689 }
 0x9b6   : > { %3536 = vmatpush.bf16.msrb.mxu2 %v3524_v9  ;;  %v3439_v48 = vmul.f32 %v4690_v23, %v6670_v47  ;;  %v6737_v6 = vpop.eup %4691 }
 0x9b7   : > { %v3402_v53 = vsel %vm1523_vm7, %v6737_v6, 0.0  ;;  %v6743_v47 = vpop.eup %4693 }
 0x9b8   : > { %v3455_v16 = vpack.c.bf16 %v3439_v48, %v3439_v48  ;;  %v3411_v37 = vsel %vm1523_vm7, %v6743_v47, 0.0  ;;  %v6747_v4 = vpop.eup %4695 }
 0x9b9   : > { %v3417_v38 = vsel %vm1523_vm7, %v6747_v4, 0.0 }
 0x9ba   : > { %v3496_v29 = vunpack.c.l.b16 %v3455_v16 }
 0x9bc   : > { %v3497_v24 = vpack.c.b16 %v3496_v29, %v3495_v59 }
 0x9be   : > { %4337 = vmatmul.msk.bf16.vlgmr.msrb.gmra.mxu1 %vm1523_vm7, %v3497_v24 }
 0x9c0   : > { %3403 = vadd.xlane.f32.xlu2 %v3402_v53 }
 0x9ca   : > { %3412 = vadd.xlane.f32.xlu1 %v3411_v37 }
 0x9ce   : > { %v3386_v55 = vpop.xlane.xlu1 %3385 }
 0x9cf   : > { %4697 = vrcp.f32 %v3386_v55 }
 0x9d2   : > { %3418 = vadd.xlane.f32.xlu1 %v3417_v38 }
 0x9d5   : > { %v4698_v5 = vpop.eup %4697 }
 0x9d6   : > { %v3389_v46 = vpop.xlane.xlu2 %3388  ;;  %v3440_v21 = vmul.f32 %v4698_v5, %v6678_v51 }
 0x9d7   : > { %4699 = vrcp.f32 %v3389_v46 }
 0x9d8   : > { %3623 = vrot.lane.b32.xlu2 %v5620_v19, %s4854_s13  ;;  %v3456_v28 = vpack.c.bf16 %v3440_v21, %v3440_v21  ;;  %v4431_v19 = vld [vmem:[%s7281_s5] ss:$0 sm:$0xff] }
 0x9da   : > { %v3520_v48 = vunpack.c.l.b16 %v3456_v28 }
 0x9dd   : > { %v4700_v27 = vpop.eup %4699 }
 0x9de   : > { %v3441_v58 = vmul.f32 %v4700_v27, %v6682_v32 }
 0x9e0   : > { %v3457_v9 = vpack.c.bf16 %v3441_v58, %v3441_v58  ;;  %3648 = vrot.lane.b32.xlu2 %v5640_v63, %s4854_s13  ;;  %v3320_v23 = vpop.xlane.xlu0 %3319 }
 0x9e1   : > { %v3338_v26 = vsub.f32 %v6687_v15, %v3320_v23 }
 0x9e2   : > { %v3521_v22 = vunpack.c.l.b16 %v3457_v9 }
 0x9e3   : > { %v3368_v16 = vmul.f32 1.442695, %v3338_v26 }
 0x9e4   : > { %v3522_v59 = vpack.c.b16 %v3521_v22, %v3520_v48 }
 0x9e5   : > { %4701 = vpow2.f32 %v3368_v16 }
 0x9e6   : > { %4338 = vmatmul.msk.bf16.vlgmr.msrb.gmra.mxu2 %vm1523_vm7, %v3522_v59 }
 0x9e8   : > { %3684 = vrot.lane.b32.xlu2 %v6260_v20, %s4855_s18 }
 0x9ea   : > { %v3392_v51 = vpop.xlane.xlu1 %3391 }
 0x9eb   : > { %v6764_v63 = vpop.eup %4701  ;;  %911 = vrot.lane.b32.xlu1 %v4431_v19, %s4844_s12  ;;  %4703 = vrcp.f32 %v3392_v51  ;;  %s4857_s12 = smov 32  }
 0x9ec   : > { %v3414_v32 = vsel %vm1523_vm7, %v6764_v63, 0.0 }
 0x9ed   : > { %3415 = vadd.xlane.f32.xlu0 %v3414_v32 }
 0x9f0   : > { %3686 = vrot.lane.b32.xlu2 %v6262_v11, %s4855_s18  ;;  %v3407_v38 = vpop.xlane.xlu0 %3406 }
 0x9f1   : > { %v4704_v40 = vpop.eup %4703 }
 0x9f2   : > { %v3395_v15 = vpop.xlane.xlu2 %3394  ;;  %v3398_v29 = vpop.xlane.xlu1 %3397  ;;  %v3442_v24 = vmul.f32 %v4704_v40, %v6697_v8 }
 0x9f3   : > { %4705 = vrcp.f32 %v3395_v15 }
 0x9f4   : > { %v3458_v53 = vpack.c.bf16 %v3442_v24, %v3442_v24 }
 0x9f6   : > { %v3545_v11 = vunpack.c.l.b16 %v3458_v53 }
 0x9f8   : > { %3748 = vrot.lane.b32.xlu2 %v6540_v45, %s4856_s20 }
 0x9f9   : > { %v4706_v20 = vpop.eup %4705 }
 0x9fa   : > { %v3443_v0 = vmul.f32 %v4706_v20, %v6709_v30  ;;  %v3549_v14 = vpop.permute.xlu2 %3548  ;;  %v3401_v55 = vpop.xlane.xlu1 %3400 }
 0x9fb   : > { %3561 = vmatpush.bf16.msrb.mxu3 %v3549_v14  ;;  %4707 = vrcp.f32 %v3401_v55  ;;  %v3410_v8 = vpop.xlane.xlu0 %3409 }
 0x9fc   : > { %v3459_v37 = vpack.c.bf16 %v3443_v0, %v3443_v0  ;;  %4709 = vrcp.f32 %v3398_v29 }
 0x9fd   : > { %4711 = vrcp.f32 %v3407_v38 }
 0x9fe   : > { %v3546_v46 = vunpack.c.l.b16 %v3459_v37 }
 0xa00   : > { %v3547_v5 = vpack.c.b16 %v3546_v46, %v3545_v11 }
 0xa01   : > { %3750 = vrot.lane.b32.xlu0 %v6543_v18, %s4856_s20  ;;  %v4708_v45 = vpop.eup %4707 }
 0xa02   : > { %4339 = vmatmul.msk.bf16.vlgmr.msrb.gmra.mxu3 %vm1523_vm7, %v3547_v5  ;;  %v4710_v21 = vpop.eup %4709  ;;  %v3445_v30 = vmul.f32 %v4708_v45, %v6715_v39 }
 0xa03   : > { %v3444_v27 = vmul.f32 %v4710_v21, %v6702_v49  ;;  %v4712_v22 = vpop.eup %4711 }
 0xa04   : > { %v3461_v28 = vpack.c.bf16 %v3445_v30, %v3445_v30 }
 0xa05   : > { %v3460_v9 = vpack.c.bf16 %v3444_v27, %v3444_v27 }
 0xa06   : > { %v3571_v23 = vunpack.c.l.b16 %v3461_v28 }
 0xa07   : > { %v3570_v18 = vunpack.c.l.b16 %v3460_v9 }
 0xa09   : > { %3688 = vrot.lane.b32.xlu0 %v6289_v50, %s4855_s18  ;;  %v3572_v48 = vpack.c.b16 %v3571_v23, %v3570_v18  ;;  %v3447_v50 = vmul.f32 %v4712_v22, %v6704_v10 }
 0xa0b   : > { %v3463_v16 = vpack.c.bf16 %v3447_v50, %v3447_v50 }
 0xa0d   : > { %v3599_v58 = vpop.permute.xlu0 %3598  ;;  %v3596_v15 = vunpack.c.l.b16 %v3463_v16 }
 0xa0e   : > { %3611 = vmatpush.bf16.msra.mxu1 %v3599_v58 }
 0xa11   : > { %3754 = vrot.lane.b32.xlu0 %v6549_v57, %s4856_s20 }
 0xa12   : > { %v3574_v26 = vpop.permute.xlu1 %3573 }
 0xa13   : > { %3586 = vmatpush.bf16.msra.mxu0 %v3574_v26 }
 0xa16   : > { %4340 = vmatmul.msk.bf16.vlgmr.msra.gmra.mxu0 %vm1523_vm7, %v3572_v48 }
 0xa33   : > { %v3404_v39 = vpop.xlane.xlu2 %3403 }
 0xa34   : > { %4713 = vrcp.f32 %v3404_v39 }
 0xa35   : > { %4715 = vrcp.f32 %v3410_v8 }
 0xa3a   : > { %v4714_v49 = vpop.eup %4713 }
 0xa3b   : > { %v3446_v59 = vmul.f32 %v4714_v49, %v6737_v6  ;;  %v3624_v19 = vpop.permute.xlu2 %3623  ;;  %v4716_v32 = vpop.eup %4715 }
 0xa3c   : > { %3636 = vmatpush.bf16.msra.mxu2 %v3624_v19  ;;  %v3448_v40 = vmul.f32 %v4716_v32, %v6717_v2 }
 0xa3d   : > { %v3462_v57 = vpack.c.bf16 %v3446_v59, %v3446_v59  ;;  %v3413_v51 = vpop.xlane.xlu1 %3412 }
 0xa3e   : > { %4717 = vrcp.f32 %v3413_v51  ;;  %v3464_v53 = vpack.c.bf16 %v3448_v40, %v3448_v40 }
 0xa3f   : > { %v3595_v29 = vunpack.c.l.b16 %v3462_v57 }
 0xa40   : > { %v3620_v14 = vunpack.c.l.b16 %v3464_v53 }
 0xa41   : > { %v3597_v24 = vpack.c.b16 %v3596_v15, %v3595_v29 }
 0xa43   : > { %v3649_v20 = vpop.permute.xlu2 %3648  ;;  %4341 = vmatmul.msk.bf16.vlgmr.msra.gmra.mxu1 %vm1523_vm7, %v3597_v24 }
 0xa44   : > { %v4718_v10 = vpop.eup %4717  ;;  %3661 = vmatpush.bf16.msra.mxu3 %v3649_v20 }
 0xa45   : > { %v3449_v0 = vmul.f32 %v4718_v10, %v6743_v47  ;;  %v3419_v38 = vpop.xlane.xlu1 %3418 }
 0xa46   : > { %4719 = vrcp.f32 %v3419_v38 }
 0xa47   : > { %v3465_v6 = vpack.c.bf16 %v3449_v0, %v3449_v0 }
 0xa49   : > { %v3621_v37 = vunpack.c.l.b16 %v3465_v6 }
 0xa4b   : > { %v3622_v55 = vpack.c.b16 %v3621_v37, %v3620_v14 }
 0xa4c   : > { %v4720_v28 = vpop.eup %4719 }
 0xa4d   : > { %4342 = vmatmul.msk.bf16.vlgmr.msra.gmra.mxu2 %vm1523_vm7, %v3622_v55 }
 0xa5d   : > { %v6791_v11 = vpop.permute.xlu1 %911 }
 0xa5e   : > { %v915_v2 = vadd.f32 %v6791_v11, %v5540_v43  ;;  %v914_v46 = vadd.f32 %v6791_v11, %v5534_v1  ;;  %v916_v5 = vadd.f32 %v6791_v11, %v5554_v36  ;;  %v917_v47 = vadd.f32 %v6791_v11, %v5566_v61 }
 0xa5f   : > { %v919_v45 = vadd.f32 %v6791_v11, %v5548_v7  ;;  %v3451_v1 = vmul.f32 %v4720_v28, %v6747_v4  ;;  %v918_v22 = vadd.f32 %v6791_v11, %v5536_v3 }
 0xa60   : > { %v3416_v8 = vpop.xlane.xlu0 %3415  ;;  %v4265_v21 = vmul.f32 -1.442695, %v915_v2  ;;  %v4264_v30 = vmul.f32 -1.442695, %v914_v46  ;;  %v4266_v27 = vmul.f32 -1.442695, %v916_v5 }
 0xa61   : > { %4721 = vrcp.f32 %v3416_v8  ;;  %v4267_v58 = vmul.f32 -1.442695, %v917_v47  ;;  %v4269_v43 = vmul.f32 -1.442695, %v919_v45  ;;  %v3467_v9 = vpack.c.bf16 %v3451_v1, %v3451_v1 }
 0xa62   : > { %4723 = vpow2.f32 %v4265_v21  ;;  %v4268_v51 = vmul.f32 -1.442695, %v918_v22 }
 0xa63   : > { %4725 = vpow2.f32 %v4264_v30  ;;  %v3646_v4 = vunpack.c.l.b16 %v3467_v9 }
 0xa64   : > { %4727 = vpow2.f32 %v4266_v27 }
 0xa65   : > { %4729 = vpow2.f32 %v4267_v58 }
 0xa66   : > { %4731 = vpow2.f32 %v4269_v43 }
 0xa67   : > { %v4722_v36 = vpop.eup %4721 }
 0xa68   : > { %v4724_v61 = vpop.eup %4723  ;;  %v3450_v7 = vmul.f32 %v4722_v36, %v6764_v63 }
 0xa69   : > { %v4726_v23 = vpop.eup %4725  ;;  %v979_v18 = vadd.f32 1.0, %v4724_v61 }
 0xa6a   : > { %v4728_v26 = vpop.eup %4727  ;;  %v3466_v48 = vpack.c.bf16 %v3450_v7, %v3450_v7  ;;  %v978_v39 = vadd.f32 1.0, %v4726_v23 }
 0xa6b   : > { %v4730_v50 = vpop.eup %4729  ;;  %4733 = vrcp.f32 %v979_v18  ;;  %v980_v59 = vadd.f32 1.0, %v4728_v26  ;;  %v1018_v24 = vand.u32 2147483647, %v979_v18  ;;  %v1020_v20 = vand.u32 2147483648, %v979_v18 }
 0xa6c   : > { %v4732_v49 = vpop.eup %4731  ;;  %v3645_v16 = vunpack.c.l.b16 %v3466_v48  ;;  %4735 = vrcp.f32 %v978_v39  ;;  %v6807_v57 = vadd.f32 1.0, %v4730_v50  ;;  %v1005_v0 = vand.u32 2147483648, %v978_v39 }
 0xa6d   : > { %4737 = vrcp.f32 %v980_v59  ;;  %v6809_v63 = vadd.f32 1.0, %v4732_v49  ;;  %vm1014_vm1 = vweird.f32 %v979_v18  ;;  %vm999_vm9 = vweird.f32 %v978_v39 }
 0xa6e   : > { %v3647_v19 = vpack.c.b16 %v3646_v4, %v3645_v16  ;;  %4739 = vrcp.f32 %v6807_v57  ;;  %v1003_v38 = vand.u32 2147483647, %v978_v39  ;;  %vm1019_vm11 = vcmp.eq.f32.partialorder %v1018_v24, 8.507059e+37 }
 0xa6f   : > { %4741 = vpow2.f32 %v4268_v51  ;;  %v1021_v5 = vor.u32 1.1754944e-38, %v1020_v20  ;;  %v1006_v21 = vor.u32 1.1754944e-38, %v1005_v0  ;;  %v1035_v30 = vand.u32 2147483648, %v980_v59 }
 0xa70   : > { %4343 = vmatmul.msk.bf16.vlgmr.msra.gmra.mxu3 %vm1523_vm7, %v3647_v19  ;;  %4743 = vrcp.f32 %v6809_v63  ;;  %v1033_v43 = vand.u32 2147483647, %v980_v59  ;;  %vm1004_vm15 = vcmp.eq.f32.partialorder %v1003_v38, 8.507059e+37  ;;  %vm1029_vm3 = vweird.f32 %v980_v59 }
 0xa71   : > { %v4734_v32 = vpop.eup %4733  ;;  %v1048_v19 = vand.u32 2147483647, %v6807_v57 }
 0xa72   : > { %v4736_v3 = vpop.eup %4735  ;;  %v1010_v15 = vmul.f32 %v4734_v32, %v979_v18  ;;  %vm1015_vm8 = vweird.f32 %v4734_v32  ;;  %v1036_v18 = vor.u32 1.1754944e-38, %v1035_v30  ;;  %vm1034_vm2 = vcmp.eq.f32.partialorder %v1033_v43, 8.507059e+37  ;;  %v3513_v43 = vpop.f32.mrf.mxu1 }
 0xa73   : > { %v995_v29 = vmul.f32 %v4736_v3, %v978_v39  ;;  %v4738_v10 = vpop.eup %4737  ;;  %vm1000_vm10 = vweird.f32 %v4736_v3  ;;  %vm1016_vm12 = vmor %vm1014_vm1, %vm1015_vm8  ;;  %vm1044_vm1 = vweird.f32 %v6807_v57 }
 0xa74   : > { %v1011_v40 = vsub.f32 1.0, %v1010_v15  ;;  %v6814_v6 = vpop.eup %4739  ;;  %v1025_v37 = vmul.f32 %v4738_v10, %v980_v59  ;;  %vm1001_vm13 = vmor %vm999_vm9, %vm1000_vm10  ;;  %vm1030_vm14 = vweird.f32 %v4738_v10  ;;  %v1050_v59 = vand.u32 2147483648, %v6807_v57 }
 0xa75   : > { %v996_v53 = vsub.f32 1.0, %v995_v29  ;;  %v4742_v2 = vpop.eup %4741  ;;  %v1040_v27 = vmul.f32 %v6814_v6, %v6807_v57  ;;  %vm1031_vm4 = vmor %vm1029_vm3, %vm1030_vm14  ;;  %vm1045_vm5 = vweird.f32 %v6814_v6  ;;  %vm1074_vm10 = vweird.f32 %v6809_v63 }
 0xa76   : > { %v1012_v14 = vmul.f32 %v4734_v32, %v1011_v40  ;;  %v1026_v47 = vsub.f32 1.0, %v1025_v37  ;;  %v6816_v45 = vpop.eup %4743  ;;  %v6821_v61 = vadd.f32 1.0, %v4742_v2  ;;  %vm1046_vm8 = vmor %vm1044_vm1, %vm1045_vm5  ;;  %v1078_v15 = vand.u32 2147483647, %v6809_v63 }
 0xa77   : > { %v997_v55 = vmul.f32 %v4736_v3, %v996_v53  ;;  %v1070_v23 = vmul.f32 %v6816_v45, %v6809_v63  ;;  %v1041_v26 = vsub.f32 1.0, %v1040_v27  ;;  %vm1075_vm9 = vweird.f32 %v6816_v45  ;;  %v3538_v27 = vpop.f32.mrf.mxu2 }
 0xa78   : > { %v1013_v46 = vadd.f32 %v4734_v32, %v1012_v14  ;;  %v1027_v58 = vmul.f32 %v4738_v10, %v1026_v47  ;;  %4745 = vrcp.f32 %v6821_v61  ;;  %v921_v57 = vadd.f32 %v6791_v11, %v5582_v33 }
 0xa79   : > { %v998_v8 = vadd.f32 %v4736_v3, %v997_v55  ;;  %v1071_v22 = vsub.f32 1.0, %v1070_v23  ;;  %v1042_v50 = vmul.f32 %v6814_v6, %v1041_v26  ;;  %v922_v33 = vadd.f32 %v6791_v11, %v5556_v44 }
 0xa7a   : > { %v1017_v28 = vsel %vm1016_vm12, %v4734_v32, %v1013_v46  ;;  %v1028_v7 = vadd.f32 %v4738_v10, %v1027_v58  ;;  %v1080_v32 = vand.u32 2147483648, %v6809_v63  ;;  %vm1076_vm12 = vmor %vm1074_vm10, %vm1075_vm9  ;;  %v4271_v63 = vmul.f32 -1.442695, %v921_v57 }
 0xa7b   : > { %v1022_v1 = vsel %vm1019_vm11, %v1021_v5, %v1017_v28  ;;  %v1002_v36 = vsel %vm1001_vm13, %v4736_v3, %v998_v8  ;;  %v1072_v49 = vmul.f32 %v6816_v45, %v1071_v22  ;;  %v1043_v16 = vadd.f32 %v6814_v6, %v1042_v50 }
 0xa7c   : > { %3927 = vrot.lane.b32.xlu1 %v1022_v1, %s4857_s12  ;;  %v1007_v9 = vsel %vm1004_vm15, %v1006_v21, %v1002_v36  ;;  %v1032_v48 = vsel %vm1031_vm4, %v4738_v10, %v1028_v7  ;;  %v1051_v3 = vor.u32 1.1754944e-38, %v1050_v59  ;;  %vm1049_vm11 = vcmp.eq.f32.partialorder %v1048_v19, 8.507059e+37  ;;  %v7357_v7 = vld [vmem:[#allocation29_spill] sm:$0xff] }
 0xa7d   : > { %3925 = vrot.lane.b32.xlu2 %v1007_v9, %s4857_s12  ;;  %v1037_v39 = vsel %vm1034_vm2, %v1036_v18, %v1032_v48  ;;  %v1047_v51 = vsel %vm1046_vm8, %v6814_v6, %v1043_v16  ;;  %v1081_v20 = vor.u32 1.1754944e-38, %v1080_v32  ;;  %vm1079_vm13 = vcmp.eq.f32.partialorder %v1078_v15, 8.507059e+37 }
 0xa7e   : > { %3929 = vrot.lane.b32.xlu0 %v1037_v39, %s4857_s12  ;;  %v4746_v4 = vpop.eup %4745  ;;  %v1052_v29 = vsel %vm1049_vm11, %v1051_v3, %v1047_v51  ;;  %4747 = vpow2.f32 %v4271_v63  ;;  %v4272_v0 = vmul.f32 -1.442695, %v922_v33  ;;  %v1065_v6 = vand.u32 2147483648, %v6821_v61  ;;  %v7362_v33 = vld [vmem:[#allocation3_spill] sm:$0xff] }
 0xa7f   : > { %vm1060_vm14 = vweird.f32 %v4746_v4  ;;  %vm1059_vm15 = vweird.f32 %v6821_v61  ;;  %v1063_v44 = vand.u32 2147483647, %v6821_v61 }
 0xa80   : > { %vm1061_vm3 = vmor %vm1059_vm15, %vm1060_vm14  ;;  %v1066_v38 = vor.u32 1.1754944e-38, %v1065_v6 }
 0xa81   : > { %vm1064_vm4 = vcmp.eq.f32.partialorder %v1063_v44, 8.507059e+37 }
 0xa84   : > { %3752 = vrot.lane.b32.xlu1 %v6545_v54, %s4856_s20  ;;  %v1073_v54 = vadd.f32 %v6816_v45, %v1072_v49  ;;  %v4748_v14 = vpop.eup %4747 }
 0xa85   : > { %3690 = vrot.lane.b32.xlu2 %v6293_v34, %s4855_s18  ;;  %v1055_v34 = vmul.f32 %v4746_v4, %v6821_v61  ;;  %v6869_v46 = vadd.f32 1.0, %v4748_v14  ;;  %v7356_v61 = vld [vmem:[#allocation2_spill] sm:$0xff]  ;;  %v3563_v26 = vpop.f32.mrf.mxu3 }
 0xa86   : > { %3694 = vrot.lane.b32.xlu0 %v6297_v41, %s4855_s18  ;;  %v920_v41 = vadd.f32 %v6791_v11, %v5562_v52  ;;  %v1077_v40 = vsel %vm1076_vm12, %v6816_v45, %v1073_v54  ;;  %v923_v9 = vadd.f32 %v6791_v11, %v7356_v61 }
 0xa87   : > { %v1056_v24 = vsub.f32 1.0, %v1055_v34  ;;  %v1082_v10 = vsel %vm1079_vm13, %v1081_v20, %v1077_v40  ;;  %v1110_v54 = vand.u32 2147483648, %v6869_v46  ;;  %vm1104_vm1 = vweird.f32 %v6869_v46 }
 0xa88   : > { %v4270_v53 = vmul.f32 -1.442695, %v920_v41  ;;  %v4273_v39 = vmul.f32 -1.442695, %v923_v9  ;;  %v1108_v34 = vand.u32 2147483647, %v6869_v46 }
 0xa89   : > { %v1057_v52 = vmul.f32 %v4746_v4, %v1056_v24  ;;  %v1111_v20 = vor.u32 1.1754944e-38, %v1110_v54 }
 0xa8a   : > { %4749 = vpow2.f32 %v4270_v53  ;;  %vm1109_vm12 = vcmp.eq.f32.partialorder %v1108_v34, 8.507059e+37 }
 0xa8b   : > { %4751 = vpow2.f32 %v4272_v0  ;;  %v6933_v0 = vpop.permute.xlu2 %3684 }
 0xa8c   : > { %3692 = vrot.lane.b32.xlu1 %v6291_v42, %s4855_s18  ;;  %v1058_v42 = vadd.f32 %v4746_v4, %v1057_v52  ;;  %4753 = vrcp.f32 %v6869_v46 }
 0xa8d   : > { %3931 = vrot.lane.b32.xlu2 %v1052_v29, %s4857_s12  ;;  %v3565_v51 = vpop.f32.mrf.mxu3 }
 0xa8e   : > { %3935 = vrot.lane.b32.xlu0 %v1082_v10, %s4857_s12  ;;  %v1062_v37 = vsel %vm1061_vm3, %v4746_v4, %v1058_v42  ;;  %v3515_v4 = vpop.f32.mrf.mxu1  ;;  %v924_v10 = vadd.f32 %v6791_v11, %v7362_v33 }
 0xa8f   : > { %v1067_v2 = vsel %vm1064_vm4, %v1066_v38, %v1062_v37 }
 0xa90   : > { %v4750_v55 = vpop.eup %4749 }
 0xa91   : > { %v6872_v5 = vadd.f32 1.0, %v4750_v55  ;;  %v4274_v55 = vmul.f32 -1.442695, %v924_v10 }
 0xa93   : > { %4755 = vrcp.f32 %v6872_v5  ;;  %vm1089_vm8 = vweird.f32 %v6872_v5  ;;  %v1093_v32 = vand.u32 2147483647, %v6872_v5 }
 0xa94   : > { %3758 = vrot.lane.b32.xlu1 %v6580_v62, %s4856_s20  ;;  %v3488_v62 = vpop.f32.mrf.mxu0 }
 0xa95   : > { %3756 = vrot.lane.b32.xlu2 %v6568_v13, %s4856_s20  ;;  %v4752_v13 = vpop.eup %4751  ;;  %vm1094_vm14 = vcmp.eq.f32.partialorder %v1093_v32, 8.507059e+37 }
 0xa96   : > { %3760 = vrot.lane.b32.xlu0 %v6594_v12, %s4856_s20  ;;  %v6877_v47 = vadd.f32 1.0, %v4752_v13  ;;  %v7354_v12 = vld [vmem:[#allocation25_spill] sm:$0xff]  ;;  %v4754_v8 = vpop.eup %4753  ;;  %v6945_v13 = vpop.permute.xlu2 %3686 }
 0xa97   : > { %v1100_v28 = vmul.f32 %v4754_v8, %v6869_v46  ;;  %vm1105_vm2 = vweird.f32 %v4754_v8 }
 0xa98   : > { %4757 = vrcp.f32 %v6877_v47  ;;  %vm6911_vm9 = vmor %vm1104_vm1, %vm1105_vm2  ;;  %v1125_v63 = vand.u32 2147483648, %v6877_v47  ;;  %vm1119_vm13 = vweird.f32 %v6877_v47  ;;  %v1123_v52 = vand.u32 2147483647, %v6877_v47 }
 0xa99   : > { %v4756_v21 = vpop.eup %4755  ;;  %v1101_v23 = vsub.f32 1.0, %v1100_v28 }
 0xa9a   : > { %v1085_v1 = vmul.f32 %v4756_v21, %v6872_v5  ;;  %vm1090_vm5 = vweird.f32 %v4756_v21  ;;  %v1126_v37 = vor.u32 1.1754944e-38, %v1125_v63  ;;  %vm1124_vm3 = vcmp.eq.f32.partialorder %v1123_v52, 8.507059e+37 }
 0xa9b   : > { %v1102_v22 = vmul.f32 %v4754_v8, %v1101_v23  ;;  %vm6918_vm10 = vmor %vm1089_vm8, %vm1090_vm5 }
 0xa9c   : > { %3933 = vrot.lane.b32.xlu1 %v1067_v2, %s4857_s12  ;;  %v3490_v45 = vpop.f32.mrf.mxu0  ;;  %v1086_v48 = vsub.f32 1.0, %v1085_v1  ;;  %v3540_v2 = vpop.f32.mrf.mxu2 }
 0xa9d   : > { %3696 = vrot.lane.b32.xlu2 %v6295_v17, %s4855_s18  ;;  %v7355_v17 = vld [vmem:[#allocation5_spill] sm:$0xff]  ;;  %v1103_v59 = vadd.f32 %v4754_v8, %v1102_v22  ;;  %v7367_v22 = vld [vmem:[#allocation4_spill] sm:$0xff] }
 0xa9e   : > { %3700 = vrot.lane.b32.xlu0 %v7354_v12, %s4855_s18  ;;  %v925_v30 = vadd.f32 %v6791_v11, %v7355_v17  ;;  %v6889_v58 = vpop.eup %4757  ;;  %v1087_v49 = vmul.f32 %v4756_v21, %v1086_v48  ;;  %v7363_v12 = vld [vmem:[#allocation30_spill] sm:$0xff]  ;;  %v6961_v9 = vpop.permute.xlu2 %3748 }
 0xa9f   : > { %v1115_v18 = vmul.f32 %v6889_v58, %v6877_v47  ;;  %v1107_v41 = vsel %vm6911_vm9, %v4754_v8, %v1103_v59  ;;  %vm1120_vm11 = vweird.f32 %v6889_v58  ;;  %v7364_v17 = vld [vmem:[#allocation6_spill] sm:$0xff] }
 0xaa0   : > { %v4275_v36 = vmul.f32 -1.442695, %v925_v30  ;;  %v1112_v42 = vsel %vm1109_vm12, %v1111_v20, %v1107_v41  ;;  %vm1121_vm15 = vmor %vm1119_vm13, %vm1120_vm11  ;;  %v927_v30 = vadd.f32 %v6791_v11, %v7364_v17 }
 0xaa1   : > { %v1116_v50 = vsub.f32 1.0, %v1115_v18 }
 0xaa2   : > { %4759 = vpow2.f32 %v4275_v36  ;;  %v4277_v1 = vmul.f32 -1.442695, %v927_v30  ;;  %v7366_v36 = vld [vmem:[#allocation7_spill] sm:$0xff] }
 0xaa3   : > { %4761 = vpow2.f32 %v4273_v39  ;;  %v1117_v19 = vmul.f32 %v6889_v58, %v1116_v50  ;;  %v928_v61 = vadd.f32 %v6791_v11, %v7366_v36  ;;  %v926_v50 = vadd.f32 %v6791_v11, %v7367_v22  ;;  %v4366_v22 = vld [vmem:[%s7282_s6 + $0x8] sm:$0xff] }
 0xaa4   : > { %3814 = vrot.lane.b32.xlu1 %v3490_v45, %s4858_s21  ;;  %v3588_v8 = vpop.f32.mrf.mxu0  ;;  %4047 = vmatpush.bf16.msrb.mxu0 %v4366_v22 }
 0xaa5   : > { %3812 = vrot.lane.b32.xlu2 %v3488_v62, %s4858_s21  ;;  %v1118_v29 = vadd.f32 %v6889_v58, %v1117_v19  ;;  %v4278_v48 = vmul.f32 -1.442695, %v928_v61  ;;  %v6972_v19 = vpop.permute.xlu0 %3750 }
 0xaa6   : > { %3820 = vrot.lane.b32.xlu0 %v3538_v27, %s4858_s21 }
 0xaa7   : > { %v1122_v44 = vsel %vm1121_vm15, %v6889_v58, %v1118_v29  ;;  %v7365_v58 = vld [vmem:[#allocation26_spill] sm:$0xff] }
 0xaa8   : > { %v4760_v16 = vpop.eup %4759  ;;  %v1127_v62 = vsel %vm1124_vm3, %v1126_v37, %v1122_v44  ;;  %v7369_v37 = vld [vmem:[#allocation34_spill] sm:$0xff] }
 0xaa9   : > { %v6915_v15 = vadd.f32 1.0, %v4760_v16  ;;  %v4762_v40 = vpop.eup %4761 }
 0xaaa   : > { %v6938_v14 = vadd.f32 1.0, %v4762_v40  ;;  %v7368_v40 = vld [vmem:[#allocation27_spill] sm:$0xff] }
 0xaab   : > { %4763 = vrcp.f32 %v6915_v15  ;;  %vm1164_vm2 = vweird.f32 %v6915_v15 }
 0xaac   : > { %3698 = vrot.lane.b32.xlu1 %v7357_v7, %s4855_s18  ;;  %4765 = vrcp.f32 %v6938_v14  ;;  %v3590_v39 = vpop.f32.mrf.mxu0  ;;  %vm1134_vm9 = vweird.f32 %v6938_v14  ;;  %v1138_v34 = vand.u32 2147483647, %v6938_v14 }
 0xaad   : > { %3762 = vrot.lane.b32.xlu2 %v6608_v25, %s4856_s20  ;;  %v1088_v25 = vadd.f32 %v4756_v21, %v1087_v49  ;;  %4767 = vpow2.f32 %v4274_v55 }
 0xaae   : > { %3766 = vrot.lane.b32.xlu0 %v6551_v31, %s4856_s20  ;;  %v1095_v31 = vand.u32 2147483648, %v6872_v5  ;;  %vm1139_vm11 = vcmp.eq.f32.partialorder %v1138_v34, 8.507059e+37 }
 0xaaf   : > { %v1092_v24 = vsel %vm6918_vm10, %v4756_v21, %v1088_v25  ;;  %v1140_v25 = vand.u32 2147483648, %v6938_v14 }
 0xab0   : > { %v1096_v53 = vor.u32 1.1754944e-38, %v1095_v31 }
 0xab1   : > { %v4764_v38 = vpop.eup %4763  ;;  %v1141_v57 = vor.u32 1.1754944e-38, %v1140_v25 }
 0xab2   : > { %v1097_v6 = vsel %vm1094_vm14, %v1096_v53, %v1092_v24  ;;  %v1160_v46 = vmul.f32 %v4764_v38, %v6915_v15  ;;  %v4766_v5 = vpop.eup %4765  ;;  %vm1165_vm4 = vweird.f32 %v4764_v38  ;;  %v6993_v53 = vpop.permute.xlu0 %3688 }
 0xab3   : > { %v4768_v47 = vpop.eup %4767  ;;  %v1130_v21 = vmul.f32 %v4766_v5, %v6938_v14  ;;  %vm1166_vm5 = vmor %vm1164_vm2, %vm1165_vm4  ;;  %vm1135_vm1 = vweird.f32 %v4766_v5 }
 0xab4   : > { %3818 = vrot.lane.b32.xlu1 %v3515_v4, %s4858_s21  ;;  %v1161_v45 = vsub.f32 1.0, %v1160_v46  ;;  %v6953_v27 = vadd.f32 1.0, %v4768_v47  ;;  %vm1136_vm10 = vmor %vm1134_vm9, %vm1135_vm1 }
 0xab5   : > { %3816 = vrot.lane.b32.xlu2 %v3513_v43, %s4858_s21  ;;  %v1131_v43 = vsub.f32 1.0, %v1130_v21 }
 0xab6   : > { %3826 = vrot.lane.b32.xlu0 %v3565_v51, %s4858_s21  ;;  %v1162_v28 = vmul.f32 %v4764_v38, %v1161_v45  ;;  %4769 = vrcp.f32 %v6953_v27  ;;  %v4276_v51 = vmul.f32 -1.442695, %v926_v50  ;;  %v1155_v55 = vand.u32 2147483648, %v6953_v27  ;;  %v7370_v45 = vld [vmem:[#allocation8_spill] sm:$0xff] }
 0xab7   : > { %v1132_v18 = vmul.f32 %v4766_v5, %v1131_v43  ;;  %4771 = vpow2.f32 %v4277_v1  ;;  %vm1149_vm13 = vweird.f32 %v6953_v27  ;;  %v7371_v1 = vld [vmem:[#allocation32_spill] sm:$0xff] }
 0xab8   : > { %v1163_v23 = vadd.f32 %v4764_v38, %v1162_v28  ;;  %4773 = vpow2.f32 %v4278_v48 }
 0xab9   : > { %v1133_v59 = vadd.f32 %v4766_v5, %v1132_v18  ;;  %4775 = vpow2.f32 %v4276_v51 }
 0xaba   : > { %v1167_v49 = vsel %vm1166_vm5, %v4764_v38, %v1163_v23  ;;  %v7014_v47 = vpop.permute.xlu0 %3754  ;;  %v7372_v23 = vld [vmem:[#allocation31_spill] sm:$0xff] }
 0xabc   : > { %3939 = vrot.lane.b32.xlu1 %v1112_v42, %s4857_s12  ;;  %v4770_v4 = vpop.eup %4769 }
 0xabd   : > { %3937 = vrot.lane.b32.xlu2 %v1097_v6, %s4857_s12  ;;  %v4772_v32 = vpop.eup %4771  ;;  %v1145_v3 = vmul.f32 %v4770_v4, %v6953_v27  ;;  %vm1150_vm12 = vweird.f32 %v4770_v4 }
 0xabe   : > { %3941 = vrot.lane.b32.xlu0 %v1127_v62, %s4857_s12  ;;  %v6981_v41 = vadd.f32 1.0, %v4772_v32  ;;  %v4774_v29 = vpop.eup %4773  ;;  %vm1151_vm14 = vmor %vm1149_vm13, %vm1150_vm12 }
 0xabf   : > { %v1146_v20 = vsub.f32 1.0, %v1145_v3  ;;  %v6991_v10 = vadd.f32 1.0, %v4774_v29  ;;  %v4776_v42 = vpop.eup %4775  ;;  %v4365_v29 = vld [vmem:[%s7282_s6] sm:$0xff] }
 0xac0   : > { %v3613_v7 = vpop.f32.mrf.mxu1  ;;  %4777 = vrcp.f32 %v6981_v41  ;;  %v7000_v44 = vadd.f32 1.0, %v4776_v42  ;;  %v1200_v48 = vand.u32 2147483648, %v6981_v41  ;;  %vm1194_vm4 = vweird.f32 %v6981_v41  ;;  %4048 = vmatpush.bf16.msrb.mxu0 %v4365_v29 }
 0xac1   : > { %v1147_v52 = vmul.f32 %v4770_v4, %v1146_v20  ;;  %4779 = vrcp.f32 %v6991_v10  ;;  %v1215_v51 = vand.u32 2147483648, %v6991_v10  ;;  %v7375_v20 = vld [vmem:[#allocation35_spill] sm:$0xff] }
 0xac2   : > { %4781 = vrcp.f32 %v7000_v44  ;;  %v1201_v34 = vor.u32 1.1754944e-38, %v1200_v48  ;;  %v1185_v42 = vand.u32 2147483648, %v7000_v44  ;;  %vm1179_vm12 = vweird.f32 %v7000_v44 }
 0xac3   : > { %v1148_v6 = vadd.f32 %v4770_v4, %v1147_v52 }
 0xac4   : > { %3824 = vrot.lane.b32.xlu1 %v3563_v26, %s4858_s21  ;;  %v1168_v26 = vand.u32 2147483647, %v6915_v15 }
 0xac5   : > { %3822 = vrot.lane.b32.xlu2 %v3540_v2, %s4858_s21 }
 0xac6   : > { %3706 = vrot.lane.b32.xlu0 %v7363_v12, %s4855_s18  ;;  %vm1169_vm8 = vcmp.eq.f32.partialorder %v1168_v26, 8.507059e+37  ;;  %v4778_v14 = vpop.eup %4777  ;;  %v7373_v26 = vld [vmem:[#allocation28_spill] sm:$0xff] }
 0xac7   : > { %v1190_v2 = vmul.f32 %v4778_v14, %v6981_v41  ;;  %v7012_v46 = vpop.eup %4779  ;;  %vm1195_vm3 = vweird.f32 %v4778_v14 }
 0xac8   : > { %v3615_v21 = vpop.f32.mrf.mxu1  ;;  %v1205_v30 = vmul.f32 %v7012_v46, %v6991_v10  ;;  %vm1196_vm2 = vmor %vm1194_vm4, %vm1195_vm3  ;;  %vm1210_vm5 = vweird.f32 %v7012_v46 }
 0xac9   : > { %v1191_v17 = vsub.f32 1.0, %v1190_v2 }
 0xaca   : > { %v1206_v36 = vsub.f32 1.0, %v1205_v30 }
 0xacc   : > { %3764 = vrot.lane.b32.xlu1 %v6547_v56, %s4856_s20  ;;  %v1170_v56 = vand.u32 2147483648, %v6915_v15  ;;  %v1137_v15 = vsel %vm1136_vm10, %v4766_v5, %v1133_v59  ;;  %v1156_v5 = vor.u32 1.1754944e-38, %v1155_v55  ;;  %v1207_v18 = vmul.f32 %v7012_v46, %v1206_v36 }
 0xacd   : > { %3702 = vrot.lane.b32.xlu2 %v7365_v58, %s4855_s18  ;;  %v1142_v24 = vsel %vm1139_vm11, %v1141_v57, %v1137_v15  ;;  %v1213_v15 = vand.u32 2147483647, %v6991_v10 }
 0xace   : > { %3832 = vrot.lane.b32.xlu0 %v3613_v7, %s4858_s21  ;;  %v1171_v16 = vor.u32 1.1754944e-38, %v1170_v56  ;;  %v1208_v25 = vadd.f32 %v7012_v46, %v1207_v18 }
 0xacf   : > { %vm1214_vm11 = vcmp.eq.f32.partialorder %v1213_v15, 8.507059e+37  ;;  %v7380_v15 = vld [vmem:[#allocation19_spill] sm:$0xff] }
 0xad0   : > { %v1172_v54 = vsel %vm1169_vm8, %v1171_v16, %v1167_v49  ;;  %v6985_v63 = vpop.f32.mrf.mxu2  ;;  %v1198_v49 = vand.u32 2147483647, %v6981_v41  ;;  %v7374_v16 = vld [vmem:[#allocation37_spill] sm:$0xff]  ;;  %vm1209_vm8 = vweird.f32 %v6991_v10 }
 0xad1   : > { %vm1211_vm9 = vmor %vm1209_vm8, %vm1210_vm5 }
 0xad2   : > { %vm1199_vm1 = vcmp.eq.f32.partialorder %v1198_v49, 8.507059e+37  ;;  %v1212_v41 = vsel %vm1211_vm9, %v7012_v46, %v1208_v25 }
 0xad4   : > { %3830 = vrot.lane.b32.xlu1 %v3590_v39, %s4858_s21 }
 0xad5   : > { %3828 = vrot.lane.b32.xlu2 %v3588_v8, %s4858_s21  ;;  %v929_v8 = vadd.f32 %v6791_v11, %v7370_v45  ;;  %v1192_v11 = vmul.f32 %v4778_v14, %v1191_v17 }
 0xad6   : > { %3947 = vrot.lane.b32.xlu0 %v1172_v54, %s4857_s12 }
 0xad7   : > { %v6975_v31 = vpop.permute.xlu2 %3925  ;;  %v4279_v43 = vmul.f32 -1.442695, %v929_v8  ;;  %v1193_v56 = vadd.f32 %v4778_v14, %v1192_v11  ;;  %v7376_v8 = vld [vmem:[#allocation36_spill] sm:$0xff] }
 0xad8   : > { %v3640_v62 = vpop.f32.mrf.mxu2 }
 0xad9   : > { %4783 = vpow2.f32 %v4279_v43  ;;  %v1197_v59 = vsel %vm1196_vm2, %v4778_v14, %v1193_v56 }
 0xada   : > { %v1202_v57 = vsel %vm1199_vm1, %v1201_v34, %v1197_v59 }
 0xadc   : > { %3704 = vrot.lane.b32.xlu1 %v7368_v40, %s4855_s18 }
 0xadd   : > { %3943 = vrot.lane.b32.xlu2 %v1142_v24, %s4857_s12  ;;  %v1216_v24 = vor.u32 1.1754944e-38, %v1215_v51 }
 0xade   : > { %3772 = vrot.lane.b32.xlu0 %v6587_v35, %s4856_s20  ;;  %v1153_v35 = vand.u32 2147483647, %v6953_v27  ;;  %v7022_v27 = vpop.eup %4781 }
 0xadf   : > { %v6988_v33 = vpop.permute.xlu2 %3690  ;;  %v1175_v61 = vmul.f32 %v7022_v27, %v7000_v44  ;;  %v4784_v54 = vpop.eup %4783  ;;  %vm1180_vm10 = vweird.f32 %v7022_v27 }
 0xae0   : > { %vm1154_vm15 = vcmp.eq.f32.partialorder %v1153_v35, 8.507059e+37  ;;  %v993_v40 = vadd.f32 1.0, %v4784_v54  ;;  %vm1181_vm13 = vmor %vm1179_vm12, %vm1180_vm10 }
 0xae1   : > { %v1176_v39 = vsub.f32 1.0, %v1175_v61 }
 0xae2   : > { %4785 = vrcp.f32 %v993_v40  ;;  %vm1224_vm4 = vweird.f32 %v993_v40  ;;  %v1228_v49 = vand.u32 2147483647, %v993_v40 }
 0xae3   : > { %v1177_v32 = vmul.f32 %v7022_v27, %v1176_v39  ;;  %v1230_v39 = vand.u32 2147483648, %v993_v40 }
 0xae4   : > { %3770 = vrot.lane.b32.xlu1 %v6563_v60, %s4856_s20  ;;  %v1152_v60 = vsel %vm1151_vm14, %v4770_v4, %v1148_v6  ;;  %v1217_v6 = vsel %vm1214_vm11, %v1216_v24, %v1212_v41  ;;  %vm1229_vm5 = vcmp.eq.f32.partialorder %v1228_v49, 8.507059e+37  ;;  %v7387_v49 = vld [vmem:[#allocation21_spill] sm:$0xff] }
 0xae5   : > { %3768 = vrot.lane.b32.xlu2 %v7369_v37, %s4856_s20  ;;  %v1157_v12 = vsel %vm1154_vm15, %v1156_v5, %v1152_v60  ;;  %v1178_v52 = vadd.f32 %v7022_v27, %v1177_v32  ;;  %v1183_v37 = vand.u32 2147483647, %v7000_v44  ;;  %vm3892_vm15 = vcmask 195584  }
 0xae6   : > { %3838 = vrot.lane.b32.xlu0 %v3640_v62, %s4858_s21  ;;  %v1186_v62 = vor.u32 1.1754944e-38, %v1185_v42  ;;  %v1231_v34 = vor.u32 1.1754944e-38, %v1230_v39 }
 0xae7   : > { %v7007_v38 = vpop.permute.xlu2 %3931  ;;  %v1182_v55 = vsel %vm1181_vm13, %v7022_v27, %v1178_v52  ;;  %vm1184_vm14 = vcmp.eq.f32.partialorder %v1183_v37, 8.507059e+37 }
 0xae8   : > { %v1187_v60 = vsel %vm1184_vm14, %v1186_v62, %v1182_v55  ;;  %v4786_v2 = vpop.eup %4785 }
 0xae9   : > { %vm1225_vm3 = vweird.f32 %v4786_v2 }
 0xaea   : > { %vm1226_vm2 = vmor %vm1224_vm4, %vm1225_vm3 }
 0xaec   : > { %3945 = vrot.lane.b32.xlu1 %v1157_v12, %s4857_s12  ;;  %v1220_v12 = vmul.f32 %v4786_v2, %v993_v40 }
 0xaed   : > { %3834 = vrot.lane.b32.xlu2 %v3615_v21, %s4858_s21  ;;  %v7377_v21 = vld [vmem:[#allocation33_spill] sm:$0xff] }
 0xaee   : > { %v7024_v28 = vpop.permute.xlu1 %3927  ;;  %3712 = vrot.lane.b32.xlu0 %v7371_v1, %s4855_s18  ;;  %v1221_v17 = vsub.f32 1.0, %v1220_v12  ;;  %v7378_v1 = vld [vmem:[#allocation13_spill] sm:$0xff] }
 0xaef   : > { %v7026_v58 = vpop.permute.xlu2 %3756  ;;  %v3860_v11 = vsel %vm1278_vm6, %v7378_v1, %v6933_v0 }
 0xaf0   : > { %v7032_v7 = vpop.permute.xlu0 %3929  ;;  %v1222_v27 = vmul.f32 %v4786_v2, %v1221_v17  ;;  %v3876_v61 = vsel %vm1523_vm7, %v3860_v11, %v6961_v9 }
 0xaf3   : > { %v3663_v44 = vpop.f32.mrf.mxu3 }
 0xaf4   : > { %3710 = vrot.lane.b32.xlu1 %v7372_v23, %s4855_s18  ;;  %v7379_v23 = vld [vmem:[#allocation14_spill] sm:$0xff] }
 0xaf5   : > { %3708 = vrot.lane.b32.xlu2 %v7373_v26, %s4855_s18  ;;  %v3861_v56 = vsel %vm1278_vm6, %v7379_v23, %v6945_v13  ;;  %v1223_v26 = vadd.f32 %v4786_v2, %v1222_v27 }
 0xaf6   : > { %v7043_v50 = vpop.permute.xlu1 %3752  ;;  %3778 = vrot.lane.b32.xlu0 %v7374_v16, %s4856_s20  ;;  %v3877_v48 = vsel %vm1523_vm7, %v3861_v56, %v6972_v19 }
 0xaf7   : > { %v7047_v4 = vpop.permute.xlu2 %3696  ;;  %v1227_v59 = vsel %vm1226_vm2, %v4786_v2, %v1223_v26 }
 0xaf8   : > { %v7055_v3 = vpop.permute.xlu0 %3694  ;;  %v1232_v51 = vsel %vm1229_vm5, %v1231_v34, %v1227_v59 }
 0xafb   : > { %v3665_v36 = vpop.f32.mrf.mxu3 }
 0xafc   : > { %3951 = vrot.lane.b32.xlu1 %v1202_v57, %s4857_s12  ;;  %v3862_v57 = vsel %vm1278_vm6, %v7380_v15, %v6993_v53 }
 0xafd   : > { %3774 = vrot.lane.b32.xlu2 %v7375_v20, %s4856_s20  ;;  %v3878_v29 = vsel %vm1523_vm7, %v3862_v57, %v7043_v50  ;;  %v7382_v50 = vld [vmem:[#allocation10_spill] sm:$0xff]  ;;  %v7388_v57 = vld [vmem:[#allocation11_spill] sm:$0xff] }
 0xafe   : > { %v7068_v10 = vpop.permute.xlu1 %3692  ;;  %3953 = vrot.lane.b32.xlu0 %v1217_v6, %s4857_s12  ;;  %v3865_v62 = vsel %vm1278_vm6, %v7382_v50, %v7055_v3  ;;  %v7390_v50 = vld [vmem:[#allocation18_spill] sm:$0xff] }
 0xaff   : > { %v3813_v14 = vpop.permute.xlu2 %3812 }
 0xb00   : > { %v7075_v35 = vpop.permute.xlu0 %3935  ;;  %v3893_v18 = vsel %vm3892_vm15, %v3876_v61, %v3813_v14 }
 0xb01   : > { %v3973_v16 = vmul.f32 %v6975_v31, %v3893_v18  ;;  %v7381_v31 = vld [vmem:[#allocation20_spill] sm:$0xff] }
 0xb04   : > { %3836 = vrot.lane.b32.xlu1 %v6985_v63, %s4858_s21 }
 0xb05   : > { %3949 = vrot.lane.b32.xlu2 %v1187_v60, %s4857_s12  ;;  %v7383_v60 = vld [vmem:[#allocation9_spill] sm:$0xff] }
 0xb06   : > { %v3759_v46 = vpop.permute.xlu1 %3758 }
 0xb07   : > { %v7080_v5 = vpop.permute.xlu2 %3762  ;;  %v3881_v2 = vsel %vm1523_vm7, %v3865_v62, %v3759_v46 }
 0xb08   : > { %v7082_v45 = vpop.permute.xlu0 %3760 }
 0xb0c   : > { %3776 = vrot.lane.b32.xlu1 %v7376_v8, %s4856_s20 }
 0xb0d   : > { %3714 = vrot.lane.b32.xlu2 %v7377_v21, %s4855_s18 }
 0xb0e   : > { %v3934_v30 = vpop.permute.xlu1 %3933 }
 0xb0f   : > { %v3817_v63 = vpop.permute.xlu2 %3816 }
 0xb10   : > { %v7088_v43 = vpop.permute.xlu0 %3700  ;;  %v3895_v40 = vsel %vm3892_vm15, %v3878_v29, %v3817_v63  ;;  %v7389_v29 = vld [vmem:[#allocation12_spill] sm:$0xff] }
 0xb11   : > { %v3975_v6 = vmul.f32 %v7032_v7, %v3895_v40 }
 0xb14   : > { %3842 = vrot.lane.b32.xlu1 %v3665_v36, %s4858_s21  ;;  %v7385_v36 = vld [vmem:[#allocation16_spill] sm:$0xff] }
 0xb15   : > { %3840 = vrot.lane.b32.xlu2 %v3663_v44, %s4858_s21 }
 0xb16   : > { %v3815_v0 = vpop.permute.xlu1 %3814 }
 0xb17   : > { %v3938_v22 = vpop.permute.xlu2 %3937  ;;  %v3894_v9 = vsel %vm3892_vm15, %v3877_v48, %v3815_v0 }
 0xb18   : > { %v3974_v13 = vmul.f32 %v7024_v28, %v3894_v9  ;;  %v3821_v54 = vpop.permute.xlu0 %3820  ;;  %v3863_v28 = vsel %vm1278_vm6, %v7381_v31, %v6988_v33 }
 0xb19   : > { %v3879_v20 = vsel %vm1523_vm7, %v3863_v28, %v7014_v47  ;;  %v3864_v47 = vsel %vm1278_vm6, %v7383_v60, %v7068_v10  ;;  %v7384_v10 = vld [vmem:[#allocation15_spill] sm:$0xff]  ;;  %v7391_v60 = vld [vmem:[#allocation17_spill] sm:$0xff] }
 0xb1a   : > { %v3989_v25 = vpack.c.bf16 %v3974_v13, %v3973_v16  ;;  %v3866_v46 = vsel %vm1278_vm6, %v7384_v10, %v7047_v4  ;;  %v3868_v16 = vsel %vm1278_vm6, %v7387_v49, %v7088_v43  ;;  %v4787_v49 = vld [vmem:[%s4945_s19] sm:$0xff] }
 0xb1c   : > { %4352 = vmatmul.msk.bf16.vlgmr.msrb.gmra.mxu0 %vm397_vm0, %v3989_v25 }
 0xb1d   : > { %3955 = vrot.lane.b32.xlu2 %v1232_v51, %s4857_s12 }
 0xb1e   : > { %v3699_v19 = vpop.permute.xlu1 %3698 }
 0xb1f   : > { %v3823_v32 = vpop.permute.xlu2 %3822 }
 0xb20   : > { %v3767_v41 = vpop.permute.xlu0 %3766  ;;  %v3898_v7 = vsel %vm3892_vm15, %v3881_v2, %v3823_v32 }
 0xb21   : > { %v3978_v12 = vmul.f32 %v7075_v35, %v3898_v7  ;;  %v3867_v35 = vsel %vm1278_vm6, %v7385_v36, %v3699_v19  ;;  %v7393_v36 = vld [vmem:[#allocation24_spill] sm:$0xff] }
 0xb26   : > { %v3819_v24 = vpop.permute.xlu1 %3818 }
 0xb27   : > { %v3896_v52 = vsel %vm3892_vm15, %v3879_v20, %v3819_v24  ;;  %v3703_v42 = vpop.permute.xlu2 %3702 }
 0xb28   : > { %v3976_v53 = vmul.f32 %v7007_v38, %v3896_v52  ;;  %v3827_v33 = vpop.permute.xlu0 %3826  ;;  %v3880_v38 = vsel %vm1523_vm7, %v3864_v47, %v7026_v58  ;;  %v3882_v58 = vsel %vm1523_vm7, %v3866_v46, %v7082_v45  ;;  %v7386_v45 = vld [vmem:[#allocation22_spill] sm:$0xff] }
 0xb29   : > { %v3897_v44 = vsel %vm3892_vm15, %v3880_v38, %v3821_v54  ;;  %v3869_v9 = vsel %vm1278_vm6, %v7386_v45, %v3703_v42 }
 0xb2a   : > { %v3990_v14 = vpack.c.bf16 %v3976_v53, %v3975_v6  ;;  %v3977_v63 = vmul.f32 %v3934_v30, %v3897_v44  ;;  %v3883_v30 = vsel %vm1523_vm7, %v3867_v35, %v7080_v5 }
 0xb2b   : > { %v3900_v18 = vsel %vm3892_vm15, %v3883_v30, %v3827_v33 }
 0xb2c   : > { %4353 = vmatmul.msk.bf16.gmra.mxu0 %vm397_vm0, %v3990_v14  ;;  %v3991_v3 = vpack.c.bf16 %v3978_v12, %v3977_v63 }
 0xb2e   : > { %v3940_v37 = vpop.permute.xlu1 %3939 }
 0xb2f   : > { %v3829_v55 = vpop.permute.xlu2 %3828  ;;  %v3980_v26 = vmul.f32 %v3940_v37, %v3900_v18 }
 0xb30   : > { %v3942_v21 = vpop.permute.xlu0 %3941 }
 0xb36   : > { %v3825_v8 = vpop.permute.xlu1 %3824 }
 0xb37   : > { %v3944_v17 = vpop.permute.xlu2 %3943  ;;  %v3899_v61 = vsel %vm3892_vm15, %v3882_v58, %v3825_v8 }
 0xb38   : > { %v3707_v1 = vpop.permute.xlu0 %3706  ;;  %v3979_v23 = vmul.f32 %v3938_v22, %v3899_v61  ;;  %v3885_v22 = vsel %vm1523_vm7, %v3869_v9, %v3767_v41 }
 0xb39   : > { %v3871_v41 = vsel %vm1278_vm6, %v7389_v29, %v3707_v1  ;;  %v7392_v1 = vld [vmem:[#allocation23_spill] sm:$0xff] }
 0xb3a   : > { %v3992_v48 = vpack.c.bf16 %v3980_v26, %v3979_v23 }
 0xb3c   : > { %4354 = vmatmul.msk.bf16.gmra.mxu0 %vm397_vm0, %v3991_v3 }
 0xb3e   : > { %v3765_v27 = vpop.permute.xlu1 %3764 }
 0xb3f   : > { %v3769_v11 = vpop.permute.xlu2 %3768  ;;  %v3884_v5 = vsel %vm1523_vm7, %v3868_v16, %v3765_v27 }
 0xb40   : > { %v3833_v4 = vpop.permute.xlu0 %3832  ;;  %v3901_v59 = vsel %vm3892_vm15, %v3884_v5, %v3829_v55 }
 0xb41   : > { %v3981_v19 = vmul.f32 %v3942_v21, %v3901_v59 }
 0xb46   : > { %v3831_v56 = vpop.permute.xlu1 %3830 }
 0xb47   : > { %v3835_v0 = vpop.permute.xlu2 %3834  ;;  %v3902_v13 = vsel %vm3892_vm15, %v3885_v22, %v3831_v56 }
 0xb48   : > { %v3948_v25 = vpop.permute.xlu0 %3947  ;;  %v3982_v34 = vmul.f32 %v3944_v17, %v3902_v13  ;;  %v4788_v13 = vld [vmem:[%s4945_s19 + $0x8] sm:$0xff] }
 0xb4a   : > { %v3993_v32 = vpack.c.bf16 %v3982_v34, %v3981_v19  ;;  %v4789_v34 = vld [vmem:[%s4945_s19 + $0x10] sm:$0xff] }
 0xb4c   : > { %4355 = vmatmul.msk.bf16.gmra.mxu0 %vm397_vm0, %v3992_v48 }
 0xb4e   : > { %v3705_v39 = vpop.permute.xlu1 %3704 }
 0xb4f   : > { %v3709_v54 = vpop.permute.xlu2 %3708  ;;  %v3870_v43 = vsel %vm1278_vm6, %v7388_v57, %v3705_v39  ;;  %v7188_v39 = vld [vmem:[%s7283_s7] ss:$0 sm:$0xff] }
 0xb50   : > { %v3773_v31 = vpop.permute.xlu0 %3772  ;;  %v3886_v24 = vsel %vm1523_vm7, %v3870_v43, %v3769_v11  ;;  %v3872_v47 = vsel %vm1278_vm6, %v7391_v60, %v3709_v54  ;;  %v4795_v60 = vld [vmem:[%s4945_s19 + $0x40] sm:$0xff] }
 0xb51   : > { %v3903_v52 = vsel %vm3892_vm15, %v3886_v24, %v3833_v4  ;;  %v3888_v44 = vsel %vm1523_vm7, %v3872_v47, %v3773_v31  ;;  %v4792_v24 = vld [vmem:[%s4945_s19 + $0x28] sm:$0xff] }
 0xb56   : > { %v3771_v51 = vpop.permute.xlu1 %3770 }
 0xb57   : > { %v3775_v28 = vpop.permute.xlu2 %3774  ;;  %v3887_v40 = vsel %vm1523_vm7, %v3871_v41, %v3771_v51 }
 0xb58   : > { %v3904_v20 = vsel %vm3892_vm15, %v3887_v40, %v3835_v0  ;;  %v3839_v14 = vpop.permute.xlu0 %3838 }
 0xb59   : > { %v3984_v53 = vmul.f32 %v3948_v25, %v3904_v20 }
 0xb5c   : > { %4356 = vmatmul.msk.bf16.gmra.mxu0 %vm397_vm0, %v3993_v32 }
 0xb5e   : > { %v3946_v15 = vpop.permute.xlu1 %3945 }
 0xb5f   : > { %v3983_v42 = vmul.f32 %v3946_v15, %v3903_v52  ;;  %v3950_v33 = vpop.permute.xlu2 %3949  ;;  %v4790_v15 = vld [vmem:[%s4945_s19 + $0x18] sm:$0xff] }
 0xb60   : > { %v3713_v2 = vpop.permute.xlu0 %3712 }
 0xb61   : > { %v3994_v37 = vpack.c.bf16 %v3984_v53, %v3983_v42  ;;  %v3874_v11 = vsel %vm1278_vm6, %v7392_v1, %v3713_v2 }
 0xb66   : > { %v3711_v6 = vpop.permute.xlu1 %3710 }
 0xb67   : > { %v3873_v62 = vsel %vm1278_vm6, %v7390_v50, %v3711_v6  ;;  %v3715_v7 = vpop.permute.xlu2 %3714  ;;  %v4793_v6 = vld [vmem:[%s4945_s19 + $0x30] sm:$0xff] }
 0xb68   : > { %v3889_v38 = vsel %vm1523_vm7, %v3873_v62, %v3775_v28  ;;  %v3779_v27 = vpop.permute.xlu0 %3778  ;;  %v3875_v35 = vsel %vm1278_vm6, %v7393_v36, %v3715_v7  ;;  %v4791_v28 = vld [vmem:[%s4945_s19 + $0x20] sm:$0xff] }
 0xb69   : > { %v3906_v8 = vsel %vm3892_vm15, %v3889_v38, %v3839_v14  ;;  %v3891_v30 = vsel %vm1523_vm7, %v3875_v35, %v3779_v27  ;;  %v4796_v38 = vld [vmem:[%s4945_s19 + $0x48] sm:$0xff]  ;;  %v4798_v27 = vld [vmem:[%s4945_s19 + $0x58] sm:$0xff] }
 0xb6c   : > { %4357 = vmatmul.msk.bf16.gmra.mxu0 %vm397_vm0, %v3994_v37  ;;  %v4794_v37 = vld [vmem:[%s4945_s19 + $0x38] sm:$0xff] }
 0xb6e   : > { %v3952_v55 = vpop.permute.xlu1 %3951 }
 0xb6f   : > { %v3986_v17 = vmul.f32 %v3952_v55, %v3906_v8  ;;  %v3841_v10 = vpop.permute.xlu2 %3840 }
 0xb70   : > { %v3954_v56 = vpop.permute.xlu0 %3953 }
 0xb76   : > { %v3837_v12 = vpop.permute.xlu1 %3836 }
 0xb77   : > { %v3905_v21 = vsel %vm3892_vm15, %v3888_v44, %v3837_v12  ;;  %v3956_v18 = vpop.permute.xlu2 %3955 }
 0xb78   : > { %v3985_v63 = vmul.f32 %v3950_v33, %v3905_v21  ;;  %v4797_v21 = vld [vmem:[%s4945_s19 + $0x50] sm:$0xff] }
 0xb7a   : > { %v3995_v3 = vpack.c.bf16 %v3986_v17, %v3985_v63 }
 0xb7c   : > { %4358 = vmatmul.msk.bf16.gmra.mxu0 %vm397_vm0, %v3995_v3 }
 0xb7e   : > { %v3777_v46 = vpop.permute.xlu1 %3776 }
 0xb7f   : > { %v3890_v58 = vsel %vm1523_vm7, %v3874_v11, %v3777_v46  ;;  %v4799_v11 = vld [vmem:[%s4945_s19 + $0x60] sm:$0xff] }
 0xb80   : > { %v3907_v61 = vsel %vm3892_vm15, %v3890_v58, %v3841_v10 }
 0xb81   : > { %v3987_v48 = vmul.f32 %v3954_v56, %v3907_v61  ;;  %v4800_v61 = vld [vmem:[%s4945_s19 + $0x68] sm:$0xff] }
 0xb86   : > { %v3843_v23 = vpop.permute.xlu1 %3842 }
 0xb87   : > { %v3908_v26 = vsel %vm3892_vm15, %v3891_v30, %v3843_v23 }
 0xb88   : > { %v3988_v4 = vmul.f32 %v3956_v18, %v3908_v26  ;;  %v4801_v18 = vld [vmem:[%s4945_s19 + $0x70] sm:$0xff] }
 0xb8a   : > { %v3996_v0 = vpack.c.bf16 %v3988_v4, %v3987_v48 }
 0xb8c   : > { %4359 = vmatmul.msk.bf16.gmra.mxu0 %vm397_vm0, %v3996_v0  ;;  %v4802_v0 = vld [vmem:[%s4945_s19 + $0x78] sm:$0xff] }
 0xb99   : > { %v4050_v45 = vpop.f32.mrf.mxu0 }
 0xb9a   : > { %v4051_v9 = vadd.f32 %v7188_v39, %v4050_v45 }
 0xb9c   : > { %v4090_v16 = vadd.f32 %v4787_v49, %v4051_v9 }
 0xb9e   : > { %4106 = vst.msk [vmem:[%s7196_s14] sm:$0xff] %vm397_vm0, %v4090_v16 }
 0xba1   : > { %v4052_v5 = vpop.f32.mrf.mxu0 }
 0xba2   : > { %v4053_v22 = vadd.f32 %v7188_v39, %v4052_v5 }
 0xba4   : > { %v4091_v59 = vadd.f32 %v4788_v13, %v4053_v22 }
 0xba6   : > { %4107 = vst.msk [vmem:[%s7196_s14 + $0x8] sm:$0xff] %vm397_vm0, %v4091_v59 }
 0xba9   : > { %v4055_v25 = vpop.f32.mrf.mxu0 }
 0xbaa   : > { %v4056_v54 = vadd.f32 %v7188_v39, %v4055_v25 }
 0xbac   : > { %v4092_v51 = vadd.f32 %v4789_v34, %v4056_v54 }
 0xbae   : > { %4108 = vst.msk [vmem:[%s7196_s14 + $0x10] sm:$0xff] %vm397_vm0, %v4092_v51 }
 0xbb1   : > { %v4057_v19 = vpop.f32.mrf.mxu0 }
 0xbb2   : > { %v4058_v32 = vadd.f32 %v7188_v39, %v4057_v19 }
 0xbb4   : > { %v4093_v57 = vadd.f32 %v4790_v15, %v4058_v32 }
 0xbb6   : > { %4109 = vst.msk [vmem:[%s7196_s14 + $0x18] sm:$0xff] %vm397_vm0, %v4093_v57 }
 0xbb9   : > { %v4060_v43 = vpop.f32.mrf.mxu0 }
 0xbba   : > { %v4061_v31 = vadd.f32 %v7188_v39, %v4060_v43 }
 0xbbc   : > { %v4094_v29 = vadd.f32 %v4791_v28, %v4061_v31 }
 0xbbe   : > { %4110 = vst.msk [vmem:[%s7196_s14 + $0x20] sm:$0xff] %vm397_vm0, %v4094_v29 }
 0xbc1   : > { %v4062_v41 = vpop.f32.mrf.mxu0 }
 0xbc2   : > { %v4063_v40 = vadd.f32 %v7188_v39, %v4062_v41 }
 0xbc4   : > { %v4095_v20 = vadd.f32 %v4792_v24, %v4063_v40 }
 0xbc6   : > { %4111 = vst.msk [vmem:[%s7196_s14 + $0x28] sm:$0xff] %vm397_vm0, %v4095_v20 }
 0xbc9   : > { %v4065_v52 = vpop.f32.mrf.mxu0 }
 0xbca   : > { %v4066_v42 = vadd.f32 %v7188_v39, %v4065_v52 }
 0xbcc   : > { %v4096_v53 = vadd.f32 %v4793_v6, %v4066_v42 }
 0xbce   : > { %4112 = vst.msk [vmem:[%s7196_s14 + $0x30] sm:$0xff] %vm397_vm0, %v4096_v53 }
 0xbd1   : > { %v4067_v14 = vpop.f32.mrf.mxu0 }
 0xbd2   : > { %v4068_v33 = vadd.f32 %v7188_v39, %v4067_v14 }
 0xbd4   : > { %v4097_v55 = vadd.f32 %v4794_v37, %v4068_v33 }
 0xbd6   : > { %4113 = vst.msk [vmem:[%s7196_s14 + $0x38] sm:$0xff] %vm397_vm0, %v4097_v55 }
 0xbd9   : > { %v4070_v50 = vpop.f32.mrf.mxu0 }
 0xbda   : > { %v4071_v62 = vadd.f32 %v7188_v39, %v4070_v50 }
 0xbdc   : > { %v4098_v47 = vadd.f32 %v4795_v60, %v4071_v62 }
 0xbde   : > { %4114 = vst.msk [vmem:[%s7196_s14 + $0x40] sm:$0xff] %vm397_vm0, %v4098_v47 }
 0xbe1   : > { %v4072_v2 = vpop.f32.mrf.mxu0 }
 0xbe2   : > { %v4073_v7 = vadd.f32 %v7188_v39, %v4072_v2 }
 0xbe4   : > { %v4099_v44 = vadd.f32 %v4796_v38, %v4073_v7 }
 0xbe6   : > { %4115 = vst.msk [vmem:[%s7196_s14 + $0x48] sm:$0xff] %vm397_vm0, %v4099_v44 }
 0xbe9   : > { %v4075_v12 = vpop.f32.mrf.mxu0 }
 0xbea   : > { %v4076_v8 = vadd.f32 %v7188_v39, %v4075_v12 }
 0xbec   : > { %v4100_v17 = vadd.f32 %v4797_v21, %v4076_v8 }
 0xbee   : > { %4116 = vst.msk [vmem:[%s7196_s14 + $0x50] sm:$0xff] %vm397_vm0, %v4100_v17 }
 0xbf1   : > { %v4077_v63 = vpop.f32.mrf.mxu0 }
 0xbf2   : > { %v4078_v3 = vadd.f32 %v7188_v39, %v4077_v63 }
 0xbf4   : > { %v4101_v10 = vadd.f32 %v4798_v27, %v4078_v3 }
 0xbf6   : > { %4117 = vst.msk [vmem:[%s7196_s14 + $0x58] sm:$0xff] %vm397_vm0, %v4101_v10 }
 0xbf9   : > { %v4080_v46 = vpop.f32.mrf.mxu0 }
 0xbfa   : > { %v4081_v1 = vadd.f32 %v7188_v39, %v4080_v46 }
 0xbfc   : > { %v4102_v58 = vadd.f32 %v4799_v11, %v4081_v1 }
 0xbfe   : > { %4118 = vst.msk [vmem:[%s7196_s14 + $0x60] sm:$0xff] %vm397_vm0, %v4102_v58 }
 0xc01   : > { %v4082_v36 = vpop.f32.mrf.mxu0 }
 0xc02   : > { %v4083_v35 = vadd.f32 %v7188_v39, %v4082_v36 }
 0xc04   : > { %v4103_v30 = vadd.f32 %v4800_v61, %v4083_v35 }
 0xc06   : > { %4119 = vst.msk [vmem:[%s7196_s14 + $0x68] sm:$0xff] %vm397_vm0, %v4103_v30 }
 0xc09   : > { %v4085_v23 = vpop.f32.mrf.mxu0 }
 0xc0a   : > { %v4086_v56 = vadd.f32 %v7188_v39, %v4085_v23 }
 0xc0c   : > { %v4104_v26 = vadd.f32 %v4801_v18, %v4086_v56 }
 0xc0e   : > { %4120 = vst.msk [vmem:[%s7196_s14 + $0x70] sm:$0xff] %vm397_vm0, %v4104_v26 }
 0xc11   : > { %v4087_v48 = vpop.f32.mrf.mxu0 }
 0xc12   : > { %v4088_v4 = vadd.f32 %v7188_v39, %v4087_v48 }
 0xc14   : > { %v4105_v45 = vadd.f32 %v4802_v0, %v4088_v4 }
 0xc16   : > { %4121 = vst.msk [vmem:[%s7196_s14 + $0x78] sm:$0xff] %vm397_vm0, %v4105_v45 }
 0xc17 PF: > { %s18_s9 = sadd.s32 1, %s4841_s9   ;;  %s7394_s27 = smov %s4833_s29 }
 0xc18   : > { %p15_p7 = scmp.ge.s32.totalorder %s18_s9, 6   ;;  %s7395_s28 = smov %s4837_s30 }
 0xc19   : > { %s7396_s29 = smov %s7399_s10  ;;  %s7397_s30 = smov %s7403_s11 }
 0xc1a   :  { %17 = sbr.rel (!%p15_p7) target bundleno = 3 (0x3), region = 85 }

</bundles_post_ra>
